<compile_context>
chip_gen: v7x
topology: tpu7x:2x2x1
jax: 0.10.0
libtpu: 0.0.40
codegen_flags: <defaults>
</compile_context>

<pallas_src>
import functools

import jax
import jax.numpy as jnp
from jax.experimental import pallas as pl
from jax.experimental.pallas import tpu as pltpu


# ---------------------------------------------------------------------------
# Pallas kernels
# ---------------------------------------------------------------------------

def _linear_kernel(x_ref, w_ref, b_ref, o_ref, *, apply_relu, compute_dtype):
    """One row-tile of y = relu(x @ w + b) (relu optional). f32 accumulation on the MXU."""
    x = x_ref[...]
    w = w_ref[...]
    if compute_dtype is not None:
        x = x.astype(compute_dtype)
        w = w.astype(compute_dtype)
    acc = jnp.dot(x, w, preferred_element_type=jnp.float32) + b_ref[...]
    if apply_relu:
        acc = jnp.maximum(acc, 0.0)
    o_ref[...] = acc.astype(o_ref.dtype)


def _mlp_head_kernel(x_ref, w1_ref, b1_ref, w2_ref, b2_ref, o_ref, *, compute_dtype):
    """Fused fc1 + ReLU + fc2 for one batch tile. fc2 is lane-padded to 128 output columns."""
    x = x_ref[...]
    w1 = w1_ref[...]
    if compute_dtype is not None:
        x = x.astype(compute_dtype)
        w1 = w1.astype(compute_dtype)
    h = jnp.dot(x, w1, preferred_element_type=jnp.float32) + b1_ref[...]
    h = jnp.maximum(h, 0.0)
    w2 = w2_ref[...]
    if compute_dtype is not None:
        h = h.astype(compute_dtype)
        w2 = w2.astype(compute_dtype)
    out = jnp.dot(h, w2, preferred_element_type=jnp.float32) + b2_ref[...]
    o_ref[...] = out.astype(o_ref.dtype)


# ---------------------------------------------------------------------------
# Wrappers
# ---------------------------------------------------------------------------

def _pick_tile_m(m, target=256):
    """Row-tile: multiple of 8 (f32 sublane), >=2 grid steps when possible, capped at `target`."""
    if m <= 8:
        return m
    half = -(-m // 2)                  # ceil(m / 2) -> at least two grid steps
    tile = ((half + 7) // 8) * 8       # round up to a sublane multiple
    return min(tile, target)


_COMPILER_PARAMS = pltpu.CompilerParams(
    dimension_semantics=("parallel",),          # independent row tiles -> megacore-shardable
    vmem_limit_bytes=32 * 1024 * 1024,          # safe on v5e/v6e/v7x; our per-step footprint ~10 MiB
)


def pallas_linear(x, w, b, *, relu, tile_m=None, compute_dtype=None):
    """y = (relu)(x @ w + b). x: [M, K], w: [K, N], b: [N]."""
    m, k = x.shape
    k2, n = w.shape
    assert k == k2
    if tile_m is None:
        tile_m = _pick_tile_m(m)
    mp = pl.cdiv(m, tile_m) * tile_m
    if mp != m:                                   # explicit zero pad -> no partial tiles
        x = jnp.pad(x, ((0, mp - m), (0, 0)))
    grid = (mp // tile_m,)

    kernel = functools.partial(_linear_kernel, apply_relu=relu, compute_dtype=compute_dtype)
    out = pl.pallas_call(
        kernel,
        out_shape=jax.ShapeDtypeStruct((mp, n), x.dtype),
        grid_spec=pltpu.PrefetchScalarGridSpec(
            num_scalar_prefetch=0,
            grid=grid,
            in_specs=[
                pl.BlockSpec((tile_m, k), lambda i: (i, 0)),   # activation row tile
                pl.BlockSpec((k, n), lambda i: (0, 0)),        # weight: VMEM-resident
                pl.BlockSpec((1, n), lambda i: (0, 0)),        # bias:   VMEM-resident
            ],
            out_specs=pl.BlockSpec((tile_m, n), lambda i: (i, 0)),
        ),
        compiler_params=_COMPILER_PARAMS,
    )(x, w, b.reshape(1, n))
    return out[:m] if mp != m else out


def pallas_mlp_head(x, w1, b1, w2, b2, *, tile_b=None, compute_dtype=None):
    """Fused fc1+ReLU+fc2. x: [B, K], w1: [K, H], w2: [H, N] (N already padded to 128·k)."""
    batch, k = x.shape
    hdim = w1.shape[1]
    n = w2.shape[1]
    if tile_b is None:
        tile_b = _pick_tile_m(batch)
    bp = pl.cdiv(batch, tile_b) * tile_b
    if bp != batch:
        x = jnp.pad(x, ((0, bp - batch), (0, 0)))
    grid = (bp // tile_b,)

    kernel = functools.partial(_mlp_head_kernel, compute_dtype=compute_dtype)
    out = pl.pallas_call(
        kernel,
        out_shape=jax.ShapeDtypeStruct((bp, n), x.dtype),
        grid_spec=pltpu.PrefetchScalarGridSpec(
            num_scalar_prefetch=0,
            grid=grid,
            in_specs=[
                pl.BlockSpec((tile_b, k), lambda i: (i, 0)),   # flattened features tile
                pl.BlockSpec((k, hdim), lambda i: (0, 0)),     # fc1 weight (resident)
                pl.BlockSpec((1, hdim), lambda i: (0, 0)),     # fc1 bias
                pl.BlockSpec((hdim, n), lambda i: (0, 0)),     # fc2 weight (lane-padded)
                pl.BlockSpec((1, n), lambda i: (0, 0)),        # fc2 bias (lane-padded)
            ],
            out_specs=pl.BlockSpec((tile_b, n), lambda i: (i, 0)),
        ),
        compiler_params=_COMPILER_PARAMS,
    )(x, w1, b1.reshape(1, hdim), w2, b2.reshape(1, n))
    return out[:batch] if bp != batch else out


def _im2col_nhwc(x, ksize, stride):
    """x: [B, H, W, C] -> ([B*OH*OW, C*K*K], (OH, OW)); feature order (c, kh, kw) = PyTorch."""
    b, h, w, c = x.shape
    oh = (h - ksize) // stride + 1
    ow = (w - ksize) // stride + 1
    cols = []
    for kh in range(ksize):
        for kw in range(ksize):
            cols.append(x[:, kh:kh + stride * (oh - 1) + 1:stride,
                            kw:kw + stride * (ow - 1) + 1:stride, :])   # [B, OH, OW, C]
    p = jnp.stack(cols, axis=3)                     # [B, OH, OW, K*K, C]
    p = p.transpose(0, 1, 2, 4, 3)                  # [B, OH, OW, C, K*K]
    return p.reshape(b * oh * ow, c * ksize * ksize), (oh, ow)


def _conv_weight_as_matrix(w_pt):
    """PyTorch conv weight [Cout, Cin, K, K] -> [Cin*K*K, Cout] matching _im2col_nhwc order."""
    cout = w_pt.shape[0]
    return w_pt.transpose(1, 2, 3, 0).reshape(-1, cout)


def atari_net_forward(x_nchw, params, *, compute_dtype=None):
    """AtariNet1.forward. x_nchw: [B, obs_channels, 80, 80] -> [B, action_space]."""
    batch = x_nchw.shape[0]
    x = jnp.transpose(x_nchw, (0, 2, 3, 1))   # NHWC activations internally

    # conv1: 8x8 / stride 4 + ReLU
    p, (oh, ow) = _im2col_nhwc(x, 8, 4)
    h = pallas_linear(p, _conv_weight_as_matrix(params["conv1_w"]), params["conv1_b"],
                      relu=True, compute_dtype=compute_dtype)
    x = h.reshape(batch, oh, ow, 32)

    # conv2: 4x4 / stride 2 + ReLU
    p, (oh, ow) = _im2col_nhwc(x, 4, 2)
    h = pallas_linear(p, _conv_weight_as_matrix(params["conv2_w"]), params["conv2_b"],
                      relu=True, compute_dtype=compute_dtype)
    x = h.reshape(batch, oh, ow, 64)

    # conv3: 3x3 / stride 1 + ReLU
    p, (oh, ow) = _im2col_nhwc(x, 3, 1)
    h = pallas_linear(p, _conv_weight_as_matrix(params["conv3_w"]), params["conv3_b"],
                      relu=True, compute_dtype=compute_dtype)
    x = h.reshape(batch, oh, ow, 64)

    # flatten in PyTorch NCHW order (x.view(B, -1) on [B, 64, H, W])
    flat = jnp.transpose(x, (0, 3, 1, 2)).reshape(batch, -1)

    # fc1 + ReLU + fc2 fused; pad fc2 output columns to 128 for lane-dense stores.
    act = params["fc2_w"].shape[0]
    n_pad = max(128, (-(-act // 128)) * 128)
    w_fc1 = params["fc1_w"].T                                     # [2304, 512]
    w_fc2 = jnp.pad(params["fc2_w"].T, ((0, 0), (0, n_pad - act)))  # [512, n_pad]
    b_fc2 = jnp.pad(params["fc2_b"], (0, n_pad - act))
    out = pallas_mlp_head(flat, w_fc1, params["fc1_b"], w_fc2, b_fc2,
                          compute_dtype=compute_dtype)
    return out[:, :act]


# ---------------------------------------------------------------------------
# Parameter init (PyTorch default Linear/Conv2d init, PyTorch layouts) + reference
# ---------------------------------------------------------------------------

def init_params(key, observation_space, action_space, dtype=jnp.float32):
    ks = jax.random.split(key, 10)

    def conv_init(kw, kb, cout, cin, ksz):
        fan_in = cin * ksz * ksz
        bound = 1.0 / (fan_in ** 0.5)
        w = jax.random.uniform(kw, (cout, cin, ksz, ksz), dtype, -bound, bound)
        b = jax.random.uniform(kb, (cout,), dtype, -bound, bound)
        return w, b

    def fc_init(kw, kb, fout, fin):
        bound = 1.0 / (fin ** 0.5)
        w = jax.random.uniform(kw, (fout, fin), dtype, -bound, bound)
        b = jax.random.uniform(kb, (fout,), dtype, -bound, bound)
        return w, b

    conv1_w, conv1_b = conv_init(ks[0], ks[1], 32, observation_space, 8)
    conv2_w, conv2_b = conv_init(ks[2], ks[3], 64, 32, 4)
    conv3_w, conv3_b = conv_init(ks[4], ks[5], 64, 64, 3)
    fc1_w, fc1_b = fc_init(ks[6], ks[7], 512, 6 * 6 * 64)
    fc2_w, fc2_b = fc_init(ks[8], ks[9], action_space, 512)
    return {"conv1_w": conv1_w, "conv1_b": conv1_b,
            "conv2_w": conv2_w, "conv2_b": conv2_b,
            "conv3_w": conv3_w, "conv3_b": conv3_b,
            "fc1_w": fc1_w, "fc1_b": fc1_b,
            "fc2_w": fc2_w, "fc2_b": fc2_b}


def ref_forward(x, p):
    """Pure-JAX reference: direct translation of AtariNet1.forward (NCHW, PyTorch layouts)."""
    dn = ("NCHW", "OIHW", "NCHW")
    prec = jax.lax.Precision.HIGHEST
    h = jax.lax.conv_general_dilated(x, p["conv1_w"], (4, 4), "VALID",
                                     dimension_numbers=dn, precision=prec)
    h = jnp.maximum(h + p["conv1_b"].reshape(1, -1, 1, 1), 0.0)
    h = jax.lax.conv_general_dilated(h, p["conv2_w"], (2, 2), "VALID",
                                     dimension_numbers=dn, precision=prec)
    h = jnp.maximum(h + p["conv2_b"].reshape(1, -1, 1, 1), 0.0)
    h = jax.lax.conv_general_dilated(h, p["conv3_w"], (1, 1), "VALID",
                                     dimension_numbers=dn, precision=prec)
    h = jnp.maximum(h + p["conv3_b"].reshape(1, -1, 1, 1), 0.0)
    h = h.reshape(h.shape[0], -1)
    h = jnp.maximum(jnp.dot(h, p["fc1_w"].T, precision=prec) + p["fc1_b"], 0.0)
    return jnp.dot(h, p["fc2_w"].T, precision=prec) + p["fc2_b"]


if __name__ == "__main__":
    key = jax.random.PRNGKey(0)
    kx, kp = jax.random.split(key)

    observation_space = 4      # stacked frames (input channels)
    action_space = 6
    batch = 8
    spatial = 80               # 80x80 -> 19x19 -> 8x8 -> 6x6, so flatten = 6*6*64 = fc1 in_features

    x = jax.random.normal(kx, (batch, observation_space, spatial, spatial), dtype=jnp.float32)
    params = init_params(kp, observation_space, action_space)

    forward = jax.jit(atari_net_forward)   # f32 path; pass compute_dtype=jnp.bfloat16 on v6e/v7x
    out = jax.block_until_ready(forward(x, params))

    expected = jax.jit(ref_forward)(x, params)
    assert out.shape == (batch, action_space)
    assert bool(jnp.allclose(out, expected, atol=2e-4, rtol=2e-4)), (
        "max abs diff = %g" % float(jnp.max(jnp.abs(out - expected))))

    print("KERNEL_OK")
</pallas_src>

<mosaic_0001>
module attributes {stable_mosaic.version = 11 : i64} {
  func.func @_linear_kernel(%arg0: i32, %arg1: memref<256x256xf32, #tpu.memory_space<vmem>>, %arg2: memref<256x32xf32, #tpu.memory_space<vmem>>, %arg3: memref<1x32xf32, #tpu.memory_space<vmem>>, %arg4: memref<256x32xf32, #tpu.memory_space<vmem>>) attributes {dimension_semantics = [#tpu.dimension_semantics<parallel>], iteration_bounds = array<i64: 12>, scalar_prefetch = 0 : i64, scratch_operands = 0 : i64, tpu.core_type = #tpu.core_type<tc>, window_params = [{transform_indices = @transform_0, window_bounds = array<i64: 256, 256>}, {pipeline_mode = #tpu.pipeline_mode<synchronous>, transform_indices = @transform_1, window_bounds = array<i64: 256, 32>}, {pipeline_mode = #tpu.pipeline_mode<synchronous>, transform_indices = @transform_2, window_bounds = array<i64: 1, 32>}, {transform_indices = @transform_3, window_bounds = array<i64: 256, 32>}]} {
    %c0 = arith.constant 0 : index
    %c0_0 = arith.constant 0 : index
    %0 = vector.load %arg1[%c0, %c0_0] : memref<256x256xf32, #tpu.memory_space<vmem>>, vector<256x256xf32>
    %c0_1 = arith.constant 0 : index
    %c0_2 = arith.constant 0 : index
    %1 = vector.load %arg2[%c0_1, %c0_2] : memref<256x32xf32, #tpu.memory_space<vmem>>, vector<256x32xf32>
    %cst = arith.constant dense<0.000000e+00> : vector<256x32xf32>
    %2 = tpu.matmul %0, %1, %cst {dimension_numbers = #tpu.dot_dimension_numbers<[1], [0], [0], [1], [0, 0, 1, 1], [], []>} : vector<256x256xf32>, vector<256x32xf32>, vector<256x32xf32> -> vector<256x32xf32>
    %c0_3 = arith.constant 0 : index
    %c0_4 = arith.constant 0 : index
    %3 = vector.load %arg3[%c0_3, %c0_4] : memref<1x32xf32, #tpu.memory_space<vmem>>, vector<1x32xf32>
    %4 = vector.broadcast %3 : vector<1x32xf32> to vector<256x32xf32>
    %5 = arith.addf %2, %4 : vector<256x32xf32>
    %cst_5 = arith.constant 0.000000e+00 : f32
    %6 = vector.broadcast %cst_5 : f32 to vector<256x32xf32>
    %7 = arith.maximumf %5, %6 : vector<256x32xf32>
    %c0_6 = arith.constant 0 : index
    %c0_7 = arith.constant 0 : index
    %8 = vector.load %arg4[%c0_6, %c0_7] : memref<256x32xf32, #tpu.memory_space<vmem>>, vector<256x32xf32>
    tpu.vector_store %arg4[%c0_6, %c0_7], %7 {strides = array<i32>} : memref<256x32xf32, #tpu.memory_space<vmem>>, vector<256x32xf32>,
    return
  }
  func.func @transform_0(%arg0: i32) -> (i32, i32) {
    %c0_i32 = arith.constant 0 : i32
    %c0_i32_0 = arith.constant 0 : i32
    return %arg0, %c0_i32 : i32, i32
  }
  func.func @transform_1(%arg0: i32) -> (i32, i32) {
    %c0_i32 = arith.constant 0 : i32
    %c0_i32_0 = arith.constant 0 : i32
    %c0_i32_1 = arith.constant 0 : i32
    return %c0_i32, %c0_i32_0 : i32, i32
  }
  func.func @transform_2(%arg0: i32) -> (i32, i32) {
    %c0_i32 = arith.constant 0 : i32
    %c0_i32_0 = arith.constant 0 : i32
    %c0_i32_1 = arith.constant 0 : i32
    return %c0_i32, %c0_i32_0 : i32, i32
  }
  func.func @transform_3(%arg0: i32) -> (i32, i32) {
    %c0_i32 = arith.constant 0 : i32
    %c0_i32_0 = arith.constant 0 : i32
    return %arg0, %c0_i32 : i32, i32
  }
}

module attributes {stable_mosaic.version = 11 : i64} {
  func.func @_linear_kernel(%arg0: i32, %arg1: memref<256x512xf32, #tpu.memory_space<vmem>>, %arg2: memref<512x64xf32, #tpu.memory_space<vmem>>, %arg3: memref<1x64xf32, #tpu.memory_space<vmem>>, %arg4: memref<256x64xf32, #tpu.memory_space<vmem>>) attributes {dimension_semantics = [#tpu.dimension_semantics<parallel>], iteration_bounds = array<i64: 2>, scalar_prefetch = 0 : i64, scratch_operands = 0 : i64, tpu.core_type = #tpu.core_type<tc>, window_params = [{transform_indices = @transform_0, window_bounds = array<i64: 256, 512>}, {pipeline_mode = #tpu.pipeline_mode<synchronous>, transform_indices = @transform_1, window_bounds = array<i64: 512, 64>}, {pipeline_mode = #tpu.pipeline_mode<synchronous>, transform_indices = @transform_2, window_bounds = array<i64: 1, 64>}, {transform_indices = @transform_3, window_bounds = array<i64: 256, 64>}]} {
    %c0 = arith.constant 0 : index
    %c0_0 = arith.constant 0 : index
    %0 = vector.load %arg1[%c0, %c0_0] : memref<256x512xf32, #tpu.memory_space<vmem>>, vector<256x512xf32>
    %c0_1 = arith.constant 0 : index
    %c0_2 = arith.constant 0 : index
    %1 = vector.load %arg2[%c0_1, %c0_2] : memref<512x64xf32, #tpu.memory_space<vmem>>, vector<512x64xf32>
    %cst = arith.constant dense<0.000000e+00> : vector<256x64xf32>
    %2 = tpu.matmul %0, %1, %cst {dimension_numbers = #tpu.dot_dimension_numbers<[1], [0], [0], [1], [0, 0, 1, 1], [], []>} : vector<256x512xf32>, vector<512x64xf32>, vector<256x64xf32> -> vector<256x64xf32>
    %c0_3 = arith.constant 0 : index
    %c0_4 = arith.constant 0 : index
    %3 = vector.load %arg3[%c0_3, %c0_4] : memref<1x64xf32, #tpu.memory_space<vmem>>, vector<1x64xf32>
    %4 = vector.broadcast %3 : vector<1x64xf32> to vector<256x64xf32>
    %5 = arith.addf %2, %4 : vector<256x64xf32>
    %cst_5 = arith.constant 0.000000e+00 : f32
    %6 = vector.broadcast %cst_5 : f32 to vector<256x64xf32>
    %7 = arith.maximumf %5, %6 : vector<256x64xf32>
    %c0_6 = arith.constant 0 : index
    %c0_7 = arith.constant 0 : index
    %8 = vector.load %arg4[%c0_6, %c0_7] : memref<256x64xf32, #tpu.memory_space<vmem>>, vector<256x64xf32>
    tpu.vector_store %arg4[%c0_6, %c0_7], %7 {strides = array<i32>} : memref<256x64xf32, #tpu.memory_space<vmem>>, vector<256x64xf32>,
    return
  }
  func.func @transform_0(%arg0: i32) -> (i32, i32) {
    %c0_i32 = arith.constant 0 : i32
    %c0_i32_0 = arith.constant 0 : i32
    return %arg0, %c0_i32 : i32, i32
  }
  func.func @transform_1(%arg0: i32) -> (i32, i32) {
    %c0_i32 = arith.constant 0 : i32
    %c0_i32_0 = arith.constant 0 : i32
    %c0_i32_1 = arith.constant 0 : i32
    return %c0_i32, %c0_i32_0 : i32, i32
  }
  func.func @transform_2(%arg0: i32) -> (i32, i32) {
    %c0_i32 = arith.constant 0 : i32
    %c0_i32_0 = arith.constant 0 : i32
    %c0_i32_1 = arith.constant 0 : i32
    return %c0_i32, %c0_i32_0 : i32, i32
  }
  func.func @transform_3(%arg0: i32) -> (i32, i32) {
    %c0_i32 = arith.constant 0 : i32
    %c0_i32_0 = arith.constant 0 : i32
    return %arg0, %c0_i32 : i32, i32
  }
}

module attributes {stable_mosaic.version = 11 : i64} {
  func.func @_linear_kernel(%arg0: i32, %arg1: memref<144x576xf32, #tpu.memory_space<vmem>>, %arg2: memref<576x64xf32, #tpu.memory_space<vmem>>, %arg3: memref<1x64xf32, #tpu.memory_space<vmem>>, %arg4: memref<144x64xf32, #tpu.memory_space<vmem>>) attributes {dimension_semantics = [#tpu.dimension_semantics<parallel>], iteration_bounds = array<i64: 2>, scalar_prefetch = 0 : i64, scratch_operands = 0 : i64, tpu.core_type = #tpu.core_type<tc>, window_params = [{transform_indices = @transform_0, window_bounds = array<i64: 144, 576>}, {pipeline_mode = #tpu.pipeline_mode<synchronous>, transform_indices = @transform_1, window_bounds = array<i64: 576, 64>}, {pipeline_mode = #tpu.pipeline_mode<synchronous>, transform_indices = @transform_2, window_bounds = array<i64: 1, 64>}, {transform_indices = @transform_3, window_bounds = array<i64: 144, 64>}]} {
    %c0 = arith.constant 0 : index
    %c0_0 = arith.constant 0 : index
    %0 = vector.load %arg1[%c0, %c0_0] : memref<144x576xf32, #tpu.memory_space<vmem>>, vector<144x576xf32>
    %c0_1 = arith.constant 0 : index
    %c0_2 = arith.constant 0 : index
    %1 = vector.load %arg2[%c0_1, %c0_2] : memref<576x64xf32, #tpu.memory_space<vmem>>, vector<576x64xf32>
    %cst = arith.constant dense<0.000000e+00> : vector<144x64xf32>
    %2 = tpu.matmul %0, %1, %cst {dimension_numbers = #tpu.dot_dimension_numbers<[1], [0], [0], [1], [0, 0, 1, 1], [], []>} : vector<144x576xf32>, vector<576x64xf32>, vector<144x64xf32> -> vector<144x64xf32>
    %c0_3 = arith.constant 0 : index
    %c0_4 = arith.constant 0 : index
    %3 = vector.load %arg3[%c0_3, %c0_4] : memref<1x64xf32, #tpu.memory_space<vmem>>, vector<1x64xf32>
    %4 = vector.broadcast %3 : vector<1x64xf32> to vector<144x64xf32>
    %5 = arith.addf %2, %4 : vector<144x64xf32>
    %cst_5 = arith.constant 0.000000e+00 : f32
    %6 = vector.broadcast %cst_5 : f32 to vector<144x64xf32>
    %7 = arith.maximumf %5, %6 : vector<144x64xf32>
    %c0_6 = arith.constant 0 : index
    %c0_7 = arith.constant 0 : index
    %8 = vector.load %arg4[%c0_6, %c0_7] : memref<144x64xf32, #tpu.memory_space<vmem>>, vector<144x64xf32>
    tpu.vector_store %arg4[%c0_6, %c0_7], %7 {strides = array<i32>} : memref<144x64xf32, #tpu.memory_space<vmem>>, vector<144x64xf32>,
    return
  }
  func.func @transform_0(%arg0: i32) -> (i32, i32) {
    %c0_i32 = arith.constant 0 : i32
    %c0_i32_0 = arith.constant 0 : i32
    return %arg0, %c0_i32 : i32, i32
  }
  func.func @transform_1(%arg0: i32) -> (i32, i32) {
    %c0_i32 = arith.constant 0 : i32
    %c0_i32_0 = arith.constant 0 : i32
    %c0_i32_1 = arith.constant 0 : i32
    return %c0_i32, %c0_i32_0 : i32, i32
  }
  func.func @transform_2(%arg0: i32) -> (i32, i32) {
    %c0_i32 = arith.constant 0 : i32
    %c0_i32_0 = arith.constant 0 : i32
    %c0_i32_1 = arith.constant 0 : i32
    return %c0_i32, %c0_i32_0 : i32, i32
  }
  func.func @transform_3(%arg0: i32) -> (i32, i32) {
    %c0_i32 = arith.constant 0 : i32
    %c0_i32_0 = arith.constant 0 : i32
    return %arg0, %c0_i32 : i32, i32
  }
}

module attributes {stable_mosaic.version = 11 : i64} {
  func.func @_mlp_head_kernel(%arg0: i32, %arg1: memref<8x2304xf32, #tpu.memory_space<vmem>>, %arg2: memref<2304x512xf32, #tpu.memory_space<vmem>>, %arg3: memref<1x512xf32, #tpu.memory_space<vmem>>, %arg4: memref<512x128xf32, #tpu.memory_space<vmem>>, %arg5: memref<1x128xf32, #tpu.memory_space<vmem>>, %arg6: memref<8x128xf32, #tpu.memory_space<vmem>>) attributes {dimension_semantics = [#tpu.dimension_semantics<parallel>], iteration_bounds = array<i64: 1>, scalar_prefetch = 0 : i64, scratch_operands = 0 : i64, tpu.core_type = #tpu.core_type<tc>, window_params = [{transform_indices = @transform_0, window_bounds = array<i64: 8, 2304>}, {pipeline_mode = #tpu.pipeline_mode<synchronous>, transform_indices = @transform_1, window_bounds = array<i64: 2304, 512>}, {pipeline_mode = #tpu.pipeline_mode<synchronous>, transform_indices = @transform_2, window_bounds = array<i64: 1, 512>}, {pipeline_mode = #tpu.pipeline_mode<synchronous>, transform_indices = @transform_3, window_bounds = array<i64: 512, 128>}, {pipeline_mode = #tpu.pipeline_mode<synchronous>, transform_indices = @transform_4, window_bounds = array<i64: 1, 128>}, {transform_indices = @transform_5, window_bounds = array<i64: 8, 128>}]} {
    %c0 = arith.constant 0 : index
    %c0_0 = arith.constant 0 : index
    %0 = vector.load %arg1[%c0, %c0_0] : memref<8x2304xf32, #tpu.memory_space<vmem>>, vector<8x2304xf32>
    %c0_1 = arith.constant 0 : index
    %c0_2 = arith.constant 0 : index
    %1 = vector.load %arg2[%c0_1, %c0_2] : memref<2304x512xf32, #tpu.memory_space<vmem>>, vector<2304x512xf32>
    %cst = arith.constant dense<0.000000e+00> : vector<8x512xf32>
    %2 = tpu.matmul %0, %1, %cst {dimension_numbers = #tpu.dot_dimension_numbers<[1], [0], [0], [1], [0, 0, 1, 1], [], []>} : vector<8x2304xf32>, vector<2304x512xf32>, vector<8x512xf32> -> vector<8x512xf32>
    %c0_3 = arith.constant 0 : index
    %c0_4 = arith.constant 0 : index
    %3 = vector.load %arg3[%c0_3, %c0_4] : memref<1x512xf32, #tpu.memory_space<vmem>>, vector<1x512xf32>
    %4 = vector.broadcast %3 : vector<1x512xf32> to vector<8x512xf32>
    %5 = arith.addf %2, %4 : vector<8x512xf32>
    %cst_5 = arith.constant 0.000000e+00 : f32
    %6 = vector.broadcast %cst_5 : f32 to vector<8x512xf32>
    %7 = arith.maximumf %5, %6 : vector<8x512xf32>
    %c0_6 = arith.constant 0 : index
    %c0_7 = arith.constant 0 : index
    %8 = vector.load %arg4[%c0_6, %c0_7] : memref<512x128xf32, #tpu.memory_space<vmem>>, vector<512x128xf32>
    %cst_8 = arith.constant dense<0.000000e+00> : vector<8x128xf32>
    %9 = tpu.matmul %7, %8, %cst_8 {dimension_numbers = #tpu.dot_dimension_numbers<[1], [0], [0], [1], [0, 0, 1, 1], [], []>} : vector<8x512xf32>, vector<512x128xf32>, vector<8x128xf32> -> vector<8x128xf32>
    %c0_9 = arith.constant 0 : index
    %c0_10 = arith.constant 0 : index
    %10 = vector.load %arg5[%c0_9, %c0_10] : memref<1x128xf32, #tpu.memory_space<vmem>>, vector<1x128xf32>
    %11 = vector.broadcast %10 : vector<1x128xf32> to vector<8x128xf32>
    %12 = arith.addf %9, %11 : vector<8x128xf32>
    %c0_11 = arith.constant 0 : index
    %c0_12 = arith.constant 0 : index
    %13 = vector.load %arg6[%c0_11, %c0_12] : memref<8x128xf32, #tpu.memory_space<vmem>>, vector<8x128xf32>
    tpu.vector_store %arg6[%c0_11, %c0_12], %12 {strides = array<i32>} : memref<8x128xf32, #tpu.memory_space<vmem>>, vector<8x128xf32>,
    return
  }
  func.func @transform_0(%arg0: i32) -> (i32, i32) {
    %c0_i32 = arith.constant 0 : i32
    %c0_i32_0 = arith.constant 0 : i32
    return %arg0, %c0_i32 : i32, i32
  }
  func.func @transform_1(%arg0: i32) -> (i32, i32) {
    %c0_i32 = arith.constant 0 : i32
    %c0_i32_0 = arith.constant 0 : i32
    %c0_i32_1 = arith.constant 0 : i32
    return %c0_i32, %c0_i32_0 : i32, i32
  }
  func.func @transform_2(%arg0: i32) -> (i32, i32) {
    %c0_i32 = arith.constant 0 : i32
    %c0_i32_0 = arith.constant 0 : i32
    %c0_i32_1 = arith.constant 0 : i32
    return %c0_i32, %c0_i32_0 : i32, i32
  }
  func.func @transform_3(%arg0: i32) -> (i32, i32) {
    %c0_i32 = arith.constant 0 : i32
    %c0_i32_0 = arith.constant 0 : i32
    %c0_i32_1 = arith.constant 0 : i32
    return %c0_i32, %c0_i32_0 : i32, i32
  }
  func.func @transform_4(%arg0: i32) -> (i32, i32) {
    %c0_i32 = arith.constant 0 : i32
    %c0_i32_0 = arith.constant 0 : i32
    %c0_i32_1 = arith.constant 0 : i32
    return %c0_i32, %c0_i32_0 : i32, i32
  }
  func.func @transform_5(%arg0: i32) -> (i32, i32) {
    %c0_i32 = arith.constant 0 : i32
    %c0_i32_0 = arith.constant 0 : i32
    return %arg0, %c0_i32 : i32, i32
  }
}

</mosaic_0001>

<bundles_post_ra>
// kernel: atari_net_forward.4
= control target key start
LH: loop header
LB: loop body
LE: loop exit
PB: predicated region body
PF: predicated region fallthrough
CT: control target
= control target key end

     0   :  { %s758_s12 = smov 0   ;;  %s1076_s0 = inlined_call_operand.vmem [shape: f32[3072,256], index: 0, kind: input, shape index: {}]   ;;  %s1077_s1 = inlined_call_operand.vmem [shape: f32[256,32], index: 1, kind: input, shape index: {}]   ;;  %s1078_s2 = inlined_call_operand.vmem [shape: f32[1,32], index: 2, kind: input, shape index: {}]   ;;  %s1079_s3 = inlined_call_operand.vmem [shape: f32[3072,32], index: 3, kind: output, shape index: {}]  }
   0x1 LB: > { %s626_s13 = sadd.s32 4294967295, %s735_s12   ;;  %p630_p0 = scmp.ge.s32.totalorder %s735_s12, 1  ;;  %s735_s12 = sphi %s758_s12, %s13_s12  }
   0x2   : > { %p139_p1 = scmp.lt.s32.totalorder %s735_s12, 13 }
   0x4   : > { %p140_p2 = pnand %p630_p0, %p139_p1 }
   0x5   : > { %v241_v0 = vld [vmem:[%s1077_s1] sm:$0xff] (!%p140_p2)  ;;  %v242_v1 = vld [vmem:[%s1077_s1 + $0x8] sm:$0xff] (!%p140_p2)  ;;  %v243_v2 = vld [vmem:[%s1077_s1 + $0x10] sm:$0xff] (!%p140_p2)  ;;  %s631_s20 = sshll.u32 (!%p140_p2), %s626_s13, 5  ;;  %v737_v3 = vmov (!%p140_p2), 0.0|0.0   ;;  %vm537_vm0 = vcmask (!%p140_p2), 261120  }
   0x6   : > { %143 = sbr.rel (%p140_p2) target bundleno = 348 (0x15c), region = 32  ;;  %640 = vmatprep.subr.bf16.mxu0 (!%p140_p2), %v737_v3  ;;  %688 = vmatprep.subr.bf16.mxu1 (!%p140_p2), %v737_v3  ;;  %v641_v4 = vpack.c.bf16 (!%p140_p2), %v242_v1, %v241_v0  ;;  %v244_v5 = vld [vmem:[%s1077_s1 + $0x18] sm:$0xff] (!%p140_p2)  ;;  %p165_p3 = scmp.lt.s32.totalorder (!%p140_p2), %s631_s20, 383  ;;  %v245_v7 = vld [vmem:[%s1077_s1 + $0x20] sm:$0xff] (!%p140_p2)  ;;  %v246_v8 = vld [vmem:[%s1077_s1 + $0x28] sm:$0xff] (!%p140_p2) }
   0x7   : > { %v644_v6 = vpack.c.bf16 (!%p140_p2), %v244_v5, %v243_v2  ;;  %v647_v9 = vpack.c.bf16 (!%p140_p2), %v246_v8, %v245_v7  ;;  %v247_v10 = vld [vmem:[%s1077_s1 + $0x30] sm:$0xff] (!%p140_p2)  ;;  %v248_v11 = vld [vmem:[%s1077_s1 + $0x38] sm:$0xff] (!%p140_p2)  ;;  %v249_v15 = vld [vmem:[%s1077_s1 + $0x40] sm:$0xff] (!%p140_p2) }
   0x8   : > { %642 = vmatpush1.bf16.msra.mxu0 (!%p140_p2), %v641_v4  ;;  %704 = vmatpush1.bf16.msra.mxu1 (!%p140_p2), %v641_v4  ;;  %v650_v13 = vpack.c.bf16 (!%p140_p2), %v248_v11, %v247_v10  ;;  %v250_v16 = vld [vmem:[%s1077_s1 + $0x48] sm:$0xff] (!%p140_p2)  ;;  %v251_v18 = vld [vmem:[%s1077_s1 + $0x50] sm:$0xff] (!%p140_p2)  ;;  %v252_v19 = vld [vmem:[%s1077_s1 + $0x58] sm:$0xff] (!%p140_p2) }
   0x9   : > { %643 = vmatprep.subr.bf16.mxu0 (!%p140_p2), %v737_v3  ;;  %689 = vmatprep.subr.bf16.mxu1 (!%p140_p2), %v737_v3  ;;  %v653_v17 = vpack.c.bf16 (!%p140_p2), %v250_v16, %v249_v15  ;;  %v656_v20 = vpack.c.bf16 (!%p140_p2), %v252_v19, %v251_v18  ;;  %v253_v21 = vld [vmem:[%s1077_s1 + $0x60] sm:$0xff] (!%p140_p2)  ;;  %v254_v22 = vld [vmem:[%s1077_s1 + $0x68] sm:$0xff] (!%p140_p2)  ;;  %v255_v24 = vld [vmem:[%s1077_s1 + $0x70] sm:$0xff] (!%p140_p2) }
   0xa   : > { %v659_v23 = vpack.c.bf16 (!%p140_p2), %v254_v22, %v253_v21  ;;  %v256_v25 = vld [vmem:[%s1077_s1 + $0x78] sm:$0xff] (!%p140_p2)  ;;  %v257_v27 = vld [vmem:[%s1077_s1 + $0x80] sm:$0xff] (!%p140_p2)  ;;  %v258_v28 = vld [vmem:[%s1077_s1 + $0x88] sm:$0xff] (!%p140_p2) }
   0xb   : > { %v662_v26 = vpack.c.bf16 (!%p140_p2), %v256_v25, %v255_v24  ;;  %v665_v29 = vpack.c.bf16 (!%p140_p2), %v258_v28, %v257_v27  ;;  %v259_v30 = vld [vmem:[%s1077_s1 + $0x90] sm:$0xff] (!%p140_p2)  ;;  %v260_v31 = vld [vmem:[%s1077_s1 + $0x98] sm:$0xff] (!%p140_p2)  ;;  %v261_v33 = vld [vmem:[%s1077_s1 + $0xa0] sm:$0xff] (!%p140_p2) }
   0xc   : > { %645 = vmatpush1.bf16.msra.mxu0 (!%p140_p2), %v644_v6  ;;  %705 = vmatpush1.bf16.msra.mxu1 (!%p140_p2), %v644_v6  ;;  %v668_v32 = vpack.c.bf16 (!%p140_p2), %v260_v31, %v259_v30  ;;  %v262_v34 = vld [vmem:[%s1077_s1 + $0xa8] sm:$0xff] (!%p140_p2)  ;;  %v263_v36 = vld [vmem:[%s1077_s1 + $0xb0] sm:$0xff] (!%p140_p2)  ;;  %v264_v37 = vld [vmem:[%s1077_s1 + $0xb8] sm:$0xff] (!%p140_p2) }
   0xd   : > { %s1081_s20 = smov (!%p165_p3, %s631_s20), 383  ;;  %646 = vmatprep.subr.bf16.mxu0 %v737_v3  ;;  %690 = vmatprep.subr.bf16.mxu1 %v737_v3  ;;  %v671_v35 = vpack.c.bf16 %v262_v34, %v261_v33  ;;  %v674_v38 = vpack.c.bf16 %v264_v37, %v263_v36  ;;  %v265_v39 = vld [vmem:[%s1077_s1 + $0xc0] sm:$0xff]  ;;  %v266_v40 = vld [vmem:[%s1077_s1 + $0xc8] sm:$0xff]  ;;  %v267_v42 = vld [vmem:[%s1077_s1 + $0xd0] sm:$0xff] }
   0xe   : > { %s639_s27 = sshll.u32 %s1081_s20, 4  ;;  %v677_v41 = vpack.c.bf16 %v266_v40, %v265_v39  ;;  %v268_v43 = vld [vmem:[%s1077_s1 + $0xd8] sm:$0xff]  ;;  %v269_v45 = vld [vmem:[%s1077_s1 + $0xe0] sm:$0xff]  ;;  %v270_v46 = vld [vmem:[%s1077_s1 + $0xe8] sm:$0xff]  ;;  %s635_s10 = sshll.u32 %s1081_s20, 3 }
   0xf   : > { %s794_s30 = scalar_lea.vmem %s1076_s0, %s639_s27  ;;  %v680_v44 = vpack.c.bf16 %v268_v43, %v267_v42  ;;  %v683_v47 = vpack.c.bf16 %v270_v46, %v269_v45  ;;  %v271_v48 = vld [vmem:[%s1077_s1 + $0xf0] sm:$0xff]  ;;  %v272_v49 = vld [vmem:[%s1077_s1 + $0xf8] sm:$0xff] }
  0x10   : > { %v178_v12 = vld [vmem:[%s794_s30 + $0x8] sm:$0xff]  ;;  %648 = vmatpush1.bf16.msra.mxu0 %v647_v9  ;;  %706 = vmatpush1.bf16.msra.mxu1 %v647_v9  ;;  %v686_v50 = vpack.c.bf16 %v272_v49, %v271_v48  ;;  %v177_v51 = vld [vmem:[%s794_s30] sm:$0xff]  ;;  %v180_v53 = vld [vmem:[%s794_s30 + $0x18] sm:$0xff] }
  0x11   : > { %v210_v14 = vld [vmem:[%s794_s30 + $0x108] sm:$0xff]  ;;  %649 = vmatprep.subr.bf16.mxu0 %v737_v3  ;;  %691 = vmatprep.subr.bf16.mxu1 %v737_v3  ;;  %v209_v52 = vld [vmem:[%s794_s30 + $0x100] sm:$0xff]  ;;  %v212_v54 = vld [vmem:[%s794_s30 + $0x118] sm:$0xff] }
  0x12   : > { %344 = vmatprep.mubr.f32.mxu0 %v178_v12  ;;  %424 = vmatprep.mubr.f32.mxu1 %v210_v14  ;;  %v179_v55 = vld [vmem:[%s794_s30 + $0x10] sm:$0xff]  ;;  %v182_v57 = vld [vmem:[%s794_s30 + $0x28] sm:$0xff]  ;;  %v181_v59 = vld [vmem:[%s794_s30 + $0x20] sm:$0xff] }
  0x13   : > { %v211_v56 = vld [vmem:[%s794_s30 + $0x110] sm:$0xff]  ;;  %v214_v58 = vld [vmem:[%s794_s30 + $0x128] sm:$0xff]  ;;  %v213_v60 = vld [vmem:[%s794_s30 + $0x120] sm:$0xff] }
  0x14   : > { %651 = vmatpush1.bf16.msra.mxu0 %v650_v13  ;;  %707 = vmatpush1.bf16.msra.mxu1 %v650_v13  ;;  %v184_v61 = vld [vmem:[%s794_s30 + $0x38] sm:$0xff]  ;;  %v183_v63 = vld [vmem:[%s794_s30 + $0x30] sm:$0xff]  ;;  %v186_v1 = vld [vmem:[%s794_s30 + $0x48] sm:$0xff] }
  0x15   : > { %652 = vmatprep.subr.bf16.mxu0 %v737_v3  ;;  %692 = vmatprep.subr.bf16.mxu1 %v737_v3  ;;  %v216_v62 = vld [vmem:[%s794_s30 + $0x138] sm:$0xff]  ;;  %v215_v0 = vld [vmem:[%s794_s30 + $0x130] sm:$0xff]  ;;  %v218_v2 = vld [vmem:[%s794_s30 + $0x148] sm:$0xff] }
  0x16   : > { %v217_v4 = vld [vmem:[%s794_s30 + $0x140] sm:$0xff]  ;;  %v188_v5 = vld [vmem:[%s794_s30 + $0x58] sm:$0xff]  ;;  %v187_v7 = vld [vmem:[%s794_s30 + $0x50] sm:$0xff] }
  0x17   : > { %v220_v6 = vld [vmem:[%s794_s30 + $0x158] sm:$0xff]  ;;  %v219_v8 = vld [vmem:[%s794_s30 + $0x150] sm:$0xff]  ;;  %v190_v9 = vld [vmem:[%s794_s30 + $0x68] sm:$0xff] }
  0x18   : > { %654 = vmatpush1.bf16.msra.mxu0 %v653_v17  ;;  %708 = vmatpush1.bf16.msra.mxu1 %v653_v17  ;;  %v222_v10 = vld [vmem:[%s794_s30 + $0x168] sm:$0xff]  ;;  %v189_v11 = vld [vmem:[%s794_s30 + $0x60] sm:$0xff]  ;;  %v192_v13 = vld [vmem:[%s794_s30 + $0x78] sm:$0xff] }
  0x19   : > { %655 = vmatprep.subr.bf16.mxu0 %v737_v3  ;;  %693 = vmatprep.subr.bf16.mxu1 %v737_v3  ;;  %v221_v12 = vld [vmem:[%s794_s30 + $0x160] sm:$0xff]  ;;  %v224_v14 = vld [vmem:[%s794_s30 + $0x178] sm:$0xff]  ;;  %v191_v15 = vld [vmem:[%s794_s30 + $0x70] sm:$0xff] }
  0x1a   : > { %v223_v16 = vld [vmem:[%s794_s30 + $0x170] sm:$0xff]  ;;  %v194_v17 = vld [vmem:[%s794_s30 + $0x88] sm:$0xff]  ;;  %v193_v19 = vld [vmem:[%s794_s30 + $0x80] sm:$0xff] }
  0x1b   : > { %v226_v18 = vld [vmem:[%s794_s30 + $0x188] sm:$0xff]  ;;  %v196_v21 = vld [vmem:[%s794_s30 + $0x98] sm:$0xff]  ;;  %v227_v24 = vld [vmem:[%s794_s30 + $0x190] sm:$0xff] }
  0x1c   : > { %657 = vmatpush1.bf16.msra.mxu0 %v656_v20  ;;  %709 = vmatpush1.bf16.msra.mxu1 %v656_v20  ;;  %v225_v20 = vld [vmem:[%s794_s30 + $0x180] sm:$0xff]  ;;  %v228_v22 = vld [vmem:[%s794_s30 + $0x198] sm:$0xff]  ;;  %v198_v25 = vld [vmem:[%s794_s30 + $0xa8] sm:$0xff] }
  0x1d   : > { %658 = vmatprep.subr.bf16.mxu0 %v737_v3  ;;  %694 = vmatprep.subr.bf16.mxu1 %v737_v3  ;;  %v197_v27 = vld [vmem:[%s794_s30 + $0xa0] sm:$0xff]  ;;  %v232_v30 = vld [vmem:[%s794_s30 + $0x1b8] sm:$0xff]  ;;  %v199_v31 = vld [vmem:[%s794_s30 + $0xb0] sm:$0xff] }
  0x1e   : > { %v229_v28 = vld [vmem:[%s794_s30 + $0x1a0] sm:$0xff]  ;;  %v202_v33 = vld [vmem:[%s794_s30 + $0xc8] sm:$0xff]  ;;  %v204_v37 = vld [vmem:[%s794_s30 + $0xd8] sm:$0xff] }
  0x1f   : > { %v234_v34 = vld [vmem:[%s794_s30 + $0x1c8] sm:$0xff]  ;;  %v233_v36 = vld [vmem:[%s794_s30 + $0x1c0] sm:$0xff]  ;;  %v203_v39 = vld [vmem:[%s794_s30 + $0xd0] sm:$0xff] }
  0x20   : > { %660 = vmatpush1.bf16.msra.mxu0 %v659_v23  ;;  %710 = vmatpush1.bf16.msra.mxu1 %v659_v23  ;;  %v195_v23 = vld [vmem:[%s794_s30 + $0x90] sm:$0xff]  ;;  %v238_v42 = vld [vmem:[%s794_s30 + $0x1e8] sm:$0xff]  ;;  %v205_v43 = vld [vmem:[%s794_s30 + $0xe0] sm:$0xff] }
  0x21   : > { %661 = vmatprep.subr.bf16.mxu0 %v737_v3  ;;  %695 = vmatprep.subr.bf16.mxu1 %v737_v3  ;;  %v235_v40 = vld [vmem:[%s794_s30 + $0x1d0] sm:$0xff]  ;;  %v208_v45 = vld [vmem:[%s794_s30 + $0xf8] sm:$0xff]  ;;  %v969_v49 = vld [vmem:[%s1078_s2] ss:$0 sm:$0xff] }
  0x22   : > { %v240_v46 = vld [vmem:[%s794_s30 + $0x1f8] sm:$0xff]  ;;  %v239_v48 = vld [vmem:[%s794_s30 + $0x1f0] sm:$0xff] }
  0x24   : > { %663 = vmatpush1.bf16.msra.mxu0 %v662_v26  ;;  %711 = vmatpush1.bf16.msra.mxu1 %v662_v26  ;;  %v230_v26 = vld [vmem:[%s794_s30 + $0x1a8] sm:$0xff] }
  0x25   : > { %664 = vmatprep.subr.bf16.mxu0 %v737_v3  ;;  %696 = vmatprep.subr.bf16.mxu1 %v737_v3 }
  0x28   : > { %666 = vmatpush1.bf16.msra.mxu0 %v665_v29  ;;  %712 = vmatpush1.bf16.msra.mxu1 %v665_v29  ;;  %v200_v29 = vld [vmem:[%s794_s30 + $0xb8] sm:$0xff] }
  0x29   : > { %667 = vmatprep.subr.bf16.mxu0 %v737_v3  ;;  %697 = vmatprep.subr.bf16.mxu1 %v737_v3 }
  0x2c   : > { %669 = vmatpush1.bf16.msra.mxu0 %v668_v32  ;;  %713 = vmatpush1.bf16.msra.mxu1 %v668_v32  ;;  %v231_v32 = vld [vmem:[%s794_s30 + $0x1b0] sm:$0xff] }
  0x2d   : > { %670 = vmatprep.subr.bf16.mxu0 %v737_v3  ;;  %698 = vmatprep.subr.bf16.mxu1 %v737_v3 }
  0x30   : > { %672 = vmatpush1.bf16.msra.mxu0 %v671_v35  ;;  %714 = vmatpush1.bf16.msra.mxu1 %v671_v35  ;;  %v201_v35 = vld [vmem:[%s794_s30 + $0xc0] sm:$0xff] }
  0x31   : > { %673 = vmatprep.subr.bf16.mxu0 %v737_v3  ;;  %699 = vmatprep.subr.bf16.mxu1 %v737_v3 }
  0x34   : > { %675 = vmatpush1.bf16.msra.mxu0 %v674_v38  ;;  %715 = vmatpush1.bf16.msra.mxu1 %v674_v38  ;;  %v236_v38 = vld [vmem:[%s794_s30 + $0x1d8] sm:$0xff] }
  0x35   : > { %676 = vmatprep.subr.bf16.mxu0 %v737_v3  ;;  %700 = vmatprep.subr.bf16.mxu1 %v737_v3 }
  0x38   : > { %678 = vmatpush1.bf16.msra.mxu0 %v677_v41  ;;  %716 = vmatpush1.bf16.msra.mxu1 %v677_v41  ;;  %v206_v41 = vld [vmem:[%s794_s30 + $0xe8] sm:$0xff] }
  0x39   : > { %679 = vmatprep.subr.bf16.mxu0 %v737_v3  ;;  %701 = vmatprep.subr.bf16.mxu1 %v737_v3 }
  0x3c   : > { %681 = vmatpush1.bf16.msra.mxu0 %v680_v44  ;;  %717 = vmatpush1.bf16.msra.mxu1 %v680_v44  ;;  %v237_v44 = vld [vmem:[%s794_s30 + $0x1e0] sm:$0xff] }
  0x3d   : > { %682 = vmatprep.subr.bf16.mxu0 %v737_v3  ;;  %702 = vmatprep.subr.bf16.mxu1 %v737_v3 }
  0x40   : > { %684 = vmatpush1.bf16.msra.mxu0 %v683_v47  ;;  %718 = vmatpush1.bf16.msra.mxu1 %v683_v47  ;;  %v207_v47 = vld [vmem:[%s794_s30 + $0xf0] sm:$0xff] }
  0x41   : > { %685 = vmatprep.subr.bf16.mxu0 %v737_v3  ;;  %703 = vmatprep.subr.bf16.mxu1 %v737_v3  ;;  %v185_v3 = vld [vmem:[%s794_s30 + $0x40] sm:$0xff]  ;;  %s977_s30 = scalar_lea.vmem %s1079_s3, %s635_s10 }
  0x44   : > { %687 = vmatpush1.bf16.msra.mxu0 %v686_v50  ;;  %719 = vmatpush1.bf16.msra.mxu1 %v686_v50 }
  0x47   : > { %345 = vmatmul.mubr.f32.vlgmr.msra.gmra.mrb[0].mxu0 %v177_v51  ;;  %425 = vmatmul.mubr.f32.vlgmr.msra.gmra.mrb[0].mxu1 %v209_v52 }
  0x48   : > { %349 = vmatprep.mubr.f32.mxu0 %v180_v53  ;;  %429 = vmatprep.mubr.f32.mxu1 %v212_v54 }
  0x4b   : > { %350 = vmatmul.mubr.f32.gmra.mrb[2].mxu0 %v179_v55  ;;  %430 = vmatmul.mubr.f32.gmra.mrb[2].mxu1 %v211_v56 }
  0x4c   : > { %354 = vmatprep.mubr.f32.mxu0 %v182_v57  ;;  %434 = vmatprep.mubr.f32.mxu1 %v214_v58 }
  0x4f   : > { %355 = vmatmul.mubr.f32.gmra.mrb[4].mxu0 %v181_v59  ;;  %435 = vmatmul.mubr.f32.gmra.mrb[4].mxu1 %v213_v60 }
  0x50   : > { %359 = vmatprep.mubr.f32.mxu0 %v184_v61  ;;  %439 = vmatprep.mubr.f32.mxu1 %v216_v62 }
  0x53   : > { %360 = vmatmul.mubr.f32.gmra.mrb[6].mxu0 %v183_v63  ;;  %440 = vmatmul.mubr.f32.gmra.mrb[6].mxu1 %v215_v0 }
  0x54   : > { %364 = vmatprep.mubr.f32.mxu0 %v186_v1  ;;  %444 = vmatprep.mubr.f32.mxu1 %v218_v2 }
  0x57   : > { %365 = vmatmul.mubr.f32.gmra.mrb[8].mxu0 %v185_v3  ;;  %445 = vmatmul.mubr.f32.gmra.mrb[8].mxu1 %v217_v4 }
  0x58   : > { %369 = vmatprep.mubr.f32.mxu0 %v188_v5  ;;  %449 = vmatprep.mubr.f32.mxu1 %v220_v6 }
  0x5b   : > { %370 = vmatmul.mubr.f32.gmra.mrb[10].mxu0 %v187_v7  ;;  %450 = vmatmul.mubr.f32.gmra.mrb[10].mxu1 %v219_v8 }
  0x5c   : > { %374 = vmatprep.mubr.f32.mxu0 %v190_v9  ;;  %454 = vmatprep.mubr.f32.mxu1 %v222_v10 }
  0x5f   : > { %375 = vmatmul.mubr.f32.gmra.mrb[12].mxu0 %v189_v11  ;;  %455 = vmatmul.mubr.f32.gmra.mrb[12].mxu1 %v221_v12 }
  0x60   : > { %379 = vmatprep.mubr.f32.mxu0 %v192_v13  ;;  %459 = vmatprep.mubr.f32.mxu1 %v224_v14 }
  0x63   : > { %380 = vmatmul.mubr.f32.gmra.mrb[14].mxu0 %v191_v15  ;;  %460 = vmatmul.mubr.f32.gmra.mrb[14].mxu1 %v223_v16 }
  0x64   : > { %384 = vmatprep.mubr.f32.mxu0 %v194_v17  ;;  %464 = vmatprep.mubr.f32.mxu1 %v226_v18 }
  0x67   : > { %385 = vmatmul.mubr.f32.gmra.mrb[16].mxu0 %v193_v19  ;;  %465 = vmatmul.mubr.f32.gmra.mrb[16].mxu1 %v225_v20 }
  0x68   : > { %389 = vmatprep.mubr.f32.mxu0 %v196_v21  ;;  %469 = vmatprep.mubr.f32.mxu1 %v228_v22 }
  0x6b   : > { %390 = vmatmul.mubr.f32.gmra.mrb[18].mxu0 %v195_v23  ;;  %470 = vmatmul.mubr.f32.gmra.mrb[18].mxu1 %v227_v24 }
  0x6c   : > { %394 = vmatprep.mubr.f32.mxu0 %v198_v25  ;;  %474 = vmatprep.mubr.f32.mxu1 %v230_v26 }
  0x6f   : > { %395 = vmatmul.mubr.f32.gmra.mrb[20].mxu0 %v197_v27  ;;  %475 = vmatmul.mubr.f32.gmra.mrb[20].mxu1 %v229_v28 }
  0x70   : > { %399 = vmatprep.mubr.f32.mxu0 %v200_v29  ;;  %479 = vmatprep.mubr.f32.mxu1 %v232_v30 }
  0x73   : > { %400 = vmatmul.mubr.f32.gmra.mrb[22].mxu0 %v199_v31  ;;  %480 = vmatmul.mubr.f32.gmra.mrb[22].mxu1 %v231_v32 }
  0x74   : > { %404 = vmatprep.mubr.f32.mxu0 %v202_v33  ;;  %484 = vmatprep.mubr.f32.mxu1 %v234_v34 }
  0x77   : > { %405 = vmatmul.mubr.f32.gmra.mrb[24].mxu0 %v201_v35  ;;  %485 = vmatmul.mubr.f32.gmra.mrb[24].mxu1 %v233_v36 }
  0x78   : > { %409 = vmatprep.mubr.f32.mxu0 %v204_v37  ;;  %489 = vmatprep.mubr.f32.mxu1 %v236_v38 }
  0x7b   : > { %410 = vmatmul.mubr.f32.gmra.mrb[26].mxu0 %v203_v39  ;;  %490 = vmatmul.mubr.f32.gmra.mrb[26].mxu1 %v235_v40 }
  0x7c   : > { %414 = vmatprep.mubr.f32.mxu0 %v206_v41  ;;  %494 = vmatprep.mubr.f32.mxu1 %v238_v42 }
  0x7f   : > { %415 = vmatmul.mubr.f32.gmra.mrb[28].mxu0 %v205_v43  ;;  %495 = vmatmul.mubr.f32.gmra.mrb[28].mxu1 %v237_v44 }
  0x80   : > { %419 = vmatprep.mubr.f32.mxu0 %v208_v45  ;;  %499 = vmatprep.mubr.f32.mxu1 %v240_v46 }
  0x83   : > { %420 = vmatmul.mubr.f32.gmra.mrb[30].mxu0 %v207_v47  ;;  %500 = vmatmul.mubr.f32.gmra.mrb[30].mxu1 %v239_v48 }
 0x11a   : > { %v346_v50 = vpop.f32.mrb[0].mxu0  ;;  %v426_v51 = vpop.f32.mrb[0].mxu1 }
 0x11b   : > { %v347_v52 = vadd.f32 %v969_v49, %v346_v50  ;;  %v427_v53 = vadd.f32 %v969_v49, %v426_v51  ;;  %v348_v54 = vpop.f32.mrb[1].mxu0  ;;  %v428_v55 = vpop.f32.mrb[1].mxu1 }
 0x11d   : > { %v505_v56 = vmax.f32 %v347_v52, 0.0  ;;  %v521_v57 = vmax.f32 %v427_v53, 0.0 }
 0x11e   : > { %v351_v58 = vpop.f32.mrb[2].mxu0  ;;  %v431_v59 = vpop.f32.mrb[2].mxu1 }
 0x11f   : > { %538 = vst.msk [vmem:[%s977_s30] sm:$0xff] %vm537_vm0, %v505_v56  ;;  %554 = vst.msk [vmem:[%s977_s30 + $0x80] sm:$0xff] %vm537_vm0, %v521_v57  ;;  %v352_v60 = vadd.f32 %v969_v49, %v351_v58  ;;  %v432_v61 = vadd.f32 %v969_v49, %v431_v59  ;;  %v353_v62 = vpop.f32.mrb[3].mxu0  ;;  %v433_v63 = vpop.f32.mrb[3].mxu1 }
 0x121   : > { %v506_v0 = vmax.f32 %v352_v60, 0.0  ;;  %v522_v1 = vmax.f32 %v432_v61, 0.0 }
 0x122   : > { %v356_v2 = vpop.f32.mrb[4].mxu0  ;;  %v436_v3 = vpop.f32.mrb[4].mxu1 }
 0x123   : > { %539 = vst.msk [vmem:[%s977_s30 + $0x8] sm:$0xff] %vm537_vm0, %v506_v0  ;;  %555 = vst.msk [vmem:[%s977_s30 + $0x88] sm:$0xff] %vm537_vm0, %v522_v1  ;;  %v357_v4 = vadd.f32 %v969_v49, %v356_v2  ;;  %v437_v5 = vadd.f32 %v969_v49, %v436_v3  ;;  %v358_v6 = vpop.f32.mrb[5].mxu0  ;;  %v438_v7 = vpop.f32.mrb[5].mxu1 }
 0x125   : > { %v507_v8 = vmax.f32 %v357_v4, 0.0  ;;  %v523_v9 = vmax.f32 %v437_v5, 0.0 }
 0x126   : > { %v361_v10 = vpop.f32.mrb[6].mxu0  ;;  %v441_v11 = vpop.f32.mrb[6].mxu1 }
 0x127   : > { %540 = vst.msk [vmem:[%s977_s30 + $0x10] sm:$0xff] %vm537_vm0, %v507_v8  ;;  %556 = vst.msk [vmem:[%s977_s30 + $0x90] sm:$0xff] %vm537_vm0, %v523_v9  ;;  %v362_v12 = vadd.f32 %v969_v49, %v361_v10  ;;  %v442_v13 = vadd.f32 %v969_v49, %v441_v11  ;;  %v363_v14 = vpop.f32.mrb[7].mxu0  ;;  %v443_v15 = vpop.f32.mrb[7].mxu1 }
 0x129   : > { %v508_v16 = vmax.f32 %v362_v12, 0.0  ;;  %v524_v17 = vmax.f32 %v442_v13, 0.0 }
 0x12a   : > { %v366_v18 = vpop.f32.mrb[8].mxu0  ;;  %v446_v19 = vpop.f32.mrb[8].mxu1 }
 0x12b   : > { %541 = vst.msk [vmem:[%s977_s30 + $0x18] sm:$0xff] %vm537_vm0, %v508_v16  ;;  %557 = vst.msk [vmem:[%s977_s30 + $0x98] sm:$0xff] %vm537_vm0, %v524_v17  ;;  %v367_v20 = vadd.f32 %v969_v49, %v366_v18  ;;  %v447_v21 = vadd.f32 %v969_v49, %v446_v19  ;;  %v368_v22 = vpop.f32.mrb[9].mxu0  ;;  %v448_v23 = vpop.f32.mrb[9].mxu1 }
 0x12d   : > { %v509_v24 = vmax.f32 %v367_v20, 0.0  ;;  %v525_v25 = vmax.f32 %v447_v21, 0.0 }
 0x12e   : > { %v371_v26 = vpop.f32.mrb[10].mxu0  ;;  %v451_v27 = vpop.f32.mrb[10].mxu1 }
 0x12f   : > { %542 = vst.msk [vmem:[%s977_s30 + $0x20] sm:$0xff] %vm537_vm0, %v509_v24  ;;  %558 = vst.msk [vmem:[%s977_s30 + $0xa0] sm:$0xff] %vm537_vm0, %v525_v25  ;;  %v372_v28 = vadd.f32 %v969_v49, %v371_v26  ;;  %v452_v29 = vadd.f32 %v969_v49, %v451_v27  ;;  %v373_v30 = vpop.f32.mrb[11].mxu0  ;;  %v453_v31 = vpop.f32.mrb[11].mxu1 }
 0x131   : > { %v510_v32 = vmax.f32 %v372_v28, 0.0  ;;  %v526_v33 = vmax.f32 %v452_v29, 0.0 }
 0x132   : > { %v376_v34 = vpop.f32.mrb[12].mxu0  ;;  %v456_v35 = vpop.f32.mrb[12].mxu1 }
 0x133   : > { %543 = vst.msk [vmem:[%s977_s30 + $0x28] sm:$0xff] %vm537_vm0, %v510_v32  ;;  %559 = vst.msk [vmem:[%s977_s30 + $0xa8] sm:$0xff] %vm537_vm0, %v526_v33  ;;  %v377_v36 = vadd.f32 %v969_v49, %v376_v34  ;;  %v457_v37 = vadd.f32 %v969_v49, %v456_v35  ;;  %v378_v38 = vpop.f32.mrb[13].mxu0  ;;  %v458_v39 = vpop.f32.mrb[13].mxu1 }
 0x135   : > { %v511_v40 = vmax.f32 %v377_v36, 0.0  ;;  %v527_v41 = vmax.f32 %v457_v37, 0.0 }
 0x136   : > { %v381_v42 = vpop.f32.mrb[14].mxu0  ;;  %v461_v43 = vpop.f32.mrb[14].mxu1 }
 0x137   : > { %544 = vst.msk [vmem:[%s977_s30 + $0x30] sm:$0xff] %vm537_vm0, %v511_v40  ;;  %560 = vst.msk [vmem:[%s977_s30 + $0xb0] sm:$0xff] %vm537_vm0, %v527_v41  ;;  %v382_v44 = vadd.f32 %v969_v49, %v381_v42  ;;  %v462_v45 = vadd.f32 %v969_v49, %v461_v43  ;;  %v383_v46 = vpop.f32.mrb[15].mxu0  ;;  %v463_v47 = vpop.f32.mrb[15].mxu1 }
 0x139   : > { %v512_v48 = vmax.f32 %v382_v44, 0.0  ;;  %v528_v50 = vmax.f32 %v462_v45, 0.0 }
 0x13a   : > { %v386_v51 = vpop.f32.mrb[16].mxu0  ;;  %v466_v52 = vpop.f32.mrb[16].mxu1 }
 0x13b   : > { %545 = vst.msk [vmem:[%s977_s30 + $0x38] sm:$0xff] %vm537_vm0, %v512_v48  ;;  %561 = vst.msk [vmem:[%s977_s30 + $0xb8] sm:$0xff] %vm537_vm0, %v528_v50  ;;  %v387_v53 = vadd.f32 %v969_v49, %v386_v51  ;;  %v467_v54 = vadd.f32 %v969_v49, %v466_v52  ;;  %v388_v55 = vpop.f32.mrb[17].mxu0  ;;  %v468_v56 = vpop.f32.mrb[17].mxu1 }
 0x13d   : > { %v513_v57 = vmax.f32 %v387_v53, 0.0  ;;  %v529_v58 = vmax.f32 %v467_v54, 0.0 }
 0x13e   : > { %v391_v59 = vpop.f32.mrb[18].mxu0  ;;  %v471_v60 = vpop.f32.mrb[18].mxu1 }
 0x13f   : > { %546 = vst.msk [vmem:[%s977_s30 + $0x40] sm:$0xff] %vm537_vm0, %v513_v57  ;;  %562 = vst.msk [vmem:[%s977_s30 + $0xc0] sm:$0xff] %vm537_vm0, %v529_v58  ;;  %v392_v61 = vadd.f32 %v969_v49, %v391_v59  ;;  %v472_v62 = vadd.f32 %v969_v49, %v471_v60  ;;  %v393_v63 = vpop.f32.mrb[19].mxu0  ;;  %v473_v0 = vpop.f32.mrb[19].mxu1 }
 0x141   : > { %v514_v1 = vmax.f32 %v392_v61, 0.0  ;;  %v530_v2 = vmax.f32 %v472_v62, 0.0 }
 0x142   : > { %v396_v3 = vpop.f32.mrb[20].mxu0  ;;  %v476_v4 = vpop.f32.mrb[20].mxu1 }
 0x143   : > { %547 = vst.msk [vmem:[%s977_s30 + $0x48] sm:$0xff] %vm537_vm0, %v514_v1  ;;  %563 = vst.msk [vmem:[%s977_s30 + $0xc8] sm:$0xff] %vm537_vm0, %v530_v2  ;;  %v397_v5 = vadd.f32 %v969_v49, %v396_v3  ;;  %v477_v6 = vadd.f32 %v969_v49, %v476_v4  ;;  %v398_v7 = vpop.f32.mrb[21].mxu0  ;;  %v478_v8 = vpop.f32.mrb[21].mxu1 }
 0x145   : > { %v515_v9 = vmax.f32 %v397_v5, 0.0  ;;  %v531_v10 = vmax.f32 %v477_v6, 0.0 }
 0x146   : > { %v401_v11 = vpop.f32.mrb[22].mxu0  ;;  %v481_v12 = vpop.f32.mrb[22].mxu1 }
 0x147   : > { %548 = vst.msk [vmem:[%s977_s30 + $0x50] sm:$0xff] %vm537_vm0, %v515_v9  ;;  %564 = vst.msk [vmem:[%s977_s30 + $0xd0] sm:$0xff] %vm537_vm0, %v531_v10  ;;  %v402_v13 = vadd.f32 %v969_v49, %v401_v11  ;;  %v482_v14 = vadd.f32 %v969_v49, %v481_v12  ;;  %v403_v15 = vpop.f32.mrb[23].mxu0  ;;  %v483_v16 = vpop.f32.mrb[23].mxu1 }
 0x149   : > { %v516_v17 = vmax.f32 %v402_v13, 0.0  ;;  %v532_v18 = vmax.f32 %v482_v14, 0.0 }
 0x14a   : > { %v406_v19 = vpop.f32.mrb[24].mxu0  ;;  %v486_v20 = vpop.f32.mrb[24].mxu1 }
 0x14b   : > { %549 = vst.msk [vmem:[%s977_s30 + $0x58] sm:$0xff] %vm537_vm0, %v516_v17  ;;  %565 = vst.msk [vmem:[%s977_s30 + $0xd8] sm:$0xff] %vm537_vm0, %v532_v18  ;;  %v407_v21 = vadd.f32 %v969_v49, %v406_v19  ;;  %v487_v22 = vadd.f32 %v969_v49, %v486_v20  ;;  %v408_v23 = vpop.f32.mrb[25].mxu0  ;;  %v488_v24 = vpop.f32.mrb[25].mxu1 }
 0x14d   : > { %v517_v25 = vmax.f32 %v407_v21, 0.0  ;;  %v533_v26 = vmax.f32 %v487_v22, 0.0 }
 0x14e   : > { %v411_v27 = vpop.f32.mrb[26].mxu0  ;;  %v491_v28 = vpop.f32.mrb[26].mxu1 }
 0x14f   : > { %550 = vst.msk [vmem:[%s977_s30 + $0x60] sm:$0xff] %vm537_vm0, %v517_v25  ;;  %566 = vst.msk [vmem:[%s977_s30 + $0xe0] sm:$0xff] %vm537_vm0, %v533_v26  ;;  %v412_v29 = vadd.f32 %v969_v49, %v411_v27  ;;  %v492_v30 = vadd.f32 %v969_v49, %v491_v28  ;;  %v413_v31 = vpop.f32.mrb[27].mxu0  ;;  %v493_v32 = vpop.f32.mrb[27].mxu1 }
 0x151   : > { %v518_v33 = vmax.f32 %v412_v29, 0.0  ;;  %v534_v34 = vmax.f32 %v492_v30, 0.0 }
 0x152   : > { %v416_v35 = vpop.f32.mrb[28].mxu0  ;;  %v496_v36 = vpop.f32.mrb[28].mxu1 }
 0x153   : > { %551 = vst.msk [vmem:[%s977_s30 + $0x68] sm:$0xff] %vm537_vm0, %v518_v33  ;;  %567 = vst.msk [vmem:[%s977_s30 + $0xe8] sm:$0xff] %vm537_vm0, %v534_v34  ;;  %v417_v37 = vadd.f32 %v969_v49, %v416_v35  ;;  %v497_v38 = vadd.f32 %v969_v49, %v496_v36  ;;  %v418_v39 = vpop.f32.mrb[29].mxu0  ;;  %v498_v40 = vpop.f32.mrb[29].mxu1 }
 0x155   : > { %v519_v41 = vmax.f32 %v417_v37, 0.0  ;;  %v535_v42 = vmax.f32 %v497_v38, 0.0 }
 0x156   : > { %v421_v43 = vpop.f32.mrb[30].mxu0  ;;  %v501_v44 = vpop.f32.mrb[30].mxu1 }
 0x157   : > { %552 = vst.msk [vmem:[%s977_s30 + $0x70] sm:$0xff] %vm537_vm0, %v519_v41  ;;  %568 = vst.msk [vmem:[%s977_s30 + $0xf0] sm:$0xff] %vm537_vm0, %v535_v42  ;;  %v422_v45 = vadd.f32 %v969_v49, %v421_v43  ;;  %v502_v46 = vadd.f32 %v969_v49, %v501_v44  ;;  %v423_v47 = vpop.f32.mrb[31].mxu0  ;;  %v503_v48 = vpop.f32.mrb[31].mxu1 }
 0x159   : > { %v520_v50 = vmax.f32 %v422_v45, 0.0  ;;  %v536_v51 = vmax.f32 %v502_v46, 0.0 }
 0x15b   : > { %553 = vst.msk [vmem:[%s977_s30 + $0x78] sm:$0xff] %vm537_vm0, %v520_v50  ;;  %569 = vst.msk [vmem:[%s977_s30 + $0xf8] sm:$0xff] %vm537_vm0, %v536_v51 }
 0x15c PF: > { %s13_s12 = sadd.s32 1, %s735_s12  }
 0x15d   : > { %p10_p4 = scmp.ge.s32.totalorder %s13_s12, 14  }
 0x15f   :  { %12 = sbr.rel (!%p10_p4) target bundleno = 1 (0x1), region = 62 }

// kernel: atari_net_forward.5
= control target key start
LH: loop header
LB: loop body
LE: loop exit
PB: predicated region body
PF: predicated region fallthrough
CT: control target
= control target key end

     0   :  { %s1159_s12 = smov 0   ;;  %s1637_s0 = inlined_call_operand.vmem [shape: f32[512,512], index: 0, kind: input, shape index: {}]   ;;  %s1638_s1 = inlined_call_operand.vmem [shape: f32[512,64], index: 1, kind: input, shape index: {}]   ;;  %s1639_s2 = inlined_call_operand.vmem [shape: f32[1,64], index: 2, kind: input, shape index: {}]   ;;  %s1640_s3 = inlined_call_operand.vmem [shape: f32[512,64], index: 3, kind: output, shape index: {}]  }
   0x1 LB: > { %s947_s13 = sadd.s32 4294967295, %s1136_s12   ;;  %p951_p0 = scmp.ge.s32.totalorder %s1136_s12, 1  ;;  %s1136_s12 = sphi %s1159_s12, %s13_s12  }
   0x2   : > { %p139_p1 = scmp.lt.s32.totalorder %s1136_s12, 3 }
   0x4   : > { %p140_p2 = pnand %p951_p0, %p139_p1 }
   0x5   : > { %v305_v0 = vld [vmem:[%s1638_s1] sm:$0xff] (!%p140_p2)  ;;  %v306_v1 = vld [vmem:[%s1638_s1 + $0x8] sm:$0xff] (!%p140_p2)  ;;  %v1138_v3 = vmov (!%p140_p2), 0.0|0.0   ;;  %v307_v6 = vld [vmem:[%s1638_s1 + $0x10] sm:$0xff] (!%p140_p2)  ;;  %s952_s7 = sshll.u32 (!%p140_p2), %s947_s13, 5  ;;  %vm858_vm0 = vcmask (!%p140_p2), 523264  }
   0x6   : > { %143 = sbr.rel (%p140_p2) target bundleno = 414 (0x19e), region = 32  ;;  %v337_v2 = vld [vmem:[%s1638_s1 + $0x100] sm:$0xff] (!%p140_p2)  ;;  %961 = vmatprep.subr.bf16.mxu1 (!%p140_p2), %v1138_v3  ;;  %v962_v4 = vpack.c.bf16 (!%p140_p2), %v306_v1, %v305_v0  ;;  %1009 = vmatprep.subr.bf16.mxu0 (!%p140_p2), %v1138_v3  ;;  %v338_v5 = vld [vmem:[%s1638_s1 + $0x108] sm:$0xff] (!%p140_p2)  ;;  %v308_v7 = vld [vmem:[%s1638_s1 + $0x18] sm:$0xff] (!%p140_p2)  ;;  %p165_p3 = scmp.lt.s32.totalorder (!%p140_p2), %s952_s7, 63 }
   0x7   : > { %v1010_v8 = vpack.c.bf16 (!%p140_p2), %v338_v5, %v337_v2  ;;  %v339_v9 = vld [vmem:[%s1638_s1 + $0x110] sm:$0xff] (!%p140_p2)  ;;  %v340_v10 = vld [vmem:[%s1638_s1 + $0x118] sm:$0xff] (!%p140_p2)  ;;  %v965_v11 = vpack.c.bf16 (!%p140_p2), %v308_v7, %v307_v6  ;;  %v309_v13 = vld [vmem:[%s1638_s1 + $0x20] sm:$0xff] (!%p140_p2) }
   0x8   : > { %963 = vmatpush1.bf16.msra.mxu1 (!%p140_p2), %v962_v4  ;;  %v1013_v12 = vpack.c.bf16 (!%p140_p2), %v340_v10, %v339_v9  ;;  %v310_v14 = vld [vmem:[%s1638_s1 + $0x28] sm:$0xff] (!%p140_p2)  ;;  %v341_v15 = vld [vmem:[%s1638_s1 + $0x120] sm:$0xff] (!%p140_p2)  ;;  %v311_v19 = vld [vmem:[%s1638_s1 + $0x30] sm:$0xff] (!%p140_p2) }
   0x9   : > { %1011 = vmatpush1.bf16.msra.mxu0 (!%p140_p2), %v1010_v8  ;;  %964 = vmatprep.subr.bf16.mxu1 (!%p140_p2), %v1138_v3  ;;  %v342_v16 = vld [vmem:[%s1638_s1 + $0x128] sm:$0xff] (!%p140_p2)  ;;  %v968_v17 = vpack.c.bf16 (!%p140_p2), %v310_v14, %v309_v13  ;;  %v312_v20 = vld [vmem:[%s1638_s1 + $0x38] sm:$0xff] (!%p140_p2)  ;;  %v343_v21 = vld [vmem:[%s1638_s1 + $0x130] sm:$0xff] (!%p140_p2) }
   0xa   : > { %1012 = vmatprep.subr.bf16.mxu0 (!%p140_p2), %v1138_v3  ;;  %v1016_v18 = vpack.c.bf16 (!%p140_p2), %v342_v16, %v341_v15  ;;  %v344_v22 = vld [vmem:[%s1638_s1 + $0x138] sm:$0xff] (!%p140_p2)  ;;  %v971_v23 = vpack.c.bf16 (!%p140_p2), %v312_v20, %v311_v19  ;;  %v313_v25 = vld [vmem:[%s1638_s1 + $0x40] sm:$0xff] (!%p140_p2)  ;;  %v314_v26 = vld [vmem:[%s1638_s1 + $0x48] sm:$0xff] (!%p140_p2) }
   0xb   : > { %v1019_v24 = vpack.c.bf16 (!%p140_p2), %v344_v22, %v343_v21  ;;  %v345_v27 = vld [vmem:[%s1638_s1 + $0x140] sm:$0xff] (!%p140_p2)  ;;  %v346_v28 = vld [vmem:[%s1638_s1 + $0x148] sm:$0xff] (!%p140_p2)  ;;  %v974_v29 = vpack.c.bf16 (!%p140_p2), %v314_v26, %v313_v25  ;;  %v315_v31 = vld [vmem:[%s1638_s1 + $0x50] sm:$0xff] (!%p140_p2) }
   0xc   : > { %966 = vmatpush1.bf16.msra.mxu1 (!%p140_p2), %v965_v11  ;;  %v1022_v30 = vpack.c.bf16 (!%p140_p2), %v346_v28, %v345_v27  ;;  %v316_v32 = vld [vmem:[%s1638_s1 + $0x58] sm:$0xff] (!%p140_p2)  ;;  %v347_v33 = vld [vmem:[%s1638_s1 + $0x150] sm:$0xff] (!%p140_p2)  ;;  %v317_v37 = vld [vmem:[%s1638_s1 + $0x60] sm:$0xff] (!%p140_p2) }
   0xd   : > { %1014 = vmatpush1.bf16.msra.mxu0 %v1013_v12  ;;  %967 = vmatprep.subr.bf16.mxu1 %v1138_v3  ;;  %s1642_s7 = smov (!%p165_p3, %s952_s7), 63  ;;  %v348_v34 = vld [vmem:[%s1638_s1 + $0x158] sm:$0xff]  ;;  %v977_v35 = vpack.c.bf16 %v316_v32, %v315_v31  ;;  %v318_v38 = vld [vmem:[%s1638_s1 + $0x68] sm:$0xff]  ;;  %v349_v39 = vld [vmem:[%s1638_s1 + $0x160] sm:$0xff] }
   0xe   : > { %1015 = vmatprep.subr.bf16.mxu0 %v1138_v3  ;;  %s960_s29 = sshll.u32 %s1642_s7, 5  ;;  %v1025_v36 = vpack.c.bf16 %v348_v34, %v347_v33  ;;  %v350_v40 = vld [vmem:[%s1638_s1 + $0x168] sm:$0xff]  ;;  %v980_v43 = vpack.c.bf16 %v318_v38, %v317_v37  ;;  %v319_v45 = vld [vmem:[%s1638_s1 + $0x70] sm:$0xff]  ;;  %v320_v46 = vld [vmem:[%s1638_s1 + $0x78] sm:$0xff]  ;;  %s956_s26 = sshll.u32 %s1642_s7, 3 }
   0xf   : > { %s1255_s13 = scalar_lea.vmem %s1637_s0, %s960_s29  ;;  %v1028_v44 = vpack.c.bf16 %v350_v40, %v349_v39  ;;  %v351_v47 = vld [vmem:[%s1638_s1 + $0x170] sm:$0xff]  ;;  %v352_v48 = vld [vmem:[%s1638_s1 + $0x178] sm:$0xff]  ;;  %v983_v49 = vpack.c.bf16 %v320_v46, %v319_v45  ;;  %v321_v51 = vld [vmem:[%s1638_s1 + $0x80] sm:$0xff]  ;;  %s1537_s29 = scalar_lea.vmem %s1640_s3, %s956_s26 }
  0x10   : > { %969 = vmatpush1.bf16.msra.mxu1 %v968_v17  ;;  %v178_v41 = vld [vmem:[%s1255_s13 + $0x8] sm:$0xff]  ;;  %v180_v42 = vld [vmem:[%s1255_s13 + $0x18] sm:$0xff]  ;;  %v1031_v50 = vpack.c.bf16 %v352_v48, %v351_v47  ;;  %v353_v53 = vld [vmem:[%s1638_s1 + $0x180] sm:$0xff] }
  0x11   : > { %1017 = vmatpush1.bf16.msra.mxu0 %v1016_v18  ;;  %970 = vmatprep.subr.bf16.mxu1 %v1138_v3  ;;  %v322_v52 = vld [vmem:[%s1638_s1 + $0x88] sm:$0xff]  ;;  %v323_v57 = vld [vmem:[%s1638_s1 + $0x90] sm:$0xff]  ;;  %v324_v58 = vld [vmem:[%s1638_s1 + $0x98] sm:$0xff] }
  0x12   : > { %1018 = vmatprep.subr.bf16.mxu0 %v1138_v3  ;;  %440 = vmatprep.mubr.f32.mxu1 %v178_v41  ;;  %v354_v54 = vld [vmem:[%s1638_s1 + $0x188] sm:$0xff]  ;;  %v986_v55 = vpack.c.bf16 %v322_v52, %v321_v51  ;;  %v355_v59 = vld [vmem:[%s1638_s1 + $0x190] sm:$0xff]  ;;  %v356_v60 = vld [vmem:[%s1638_s1 + $0x198] sm:$0xff]  ;;  %v989_v61 = vpack.c.bf16 %v324_v58, %v323_v57 }
  0x13   : > { %665 = vmatprep.mubr.f32.mxu0 %v180_v42  ;;  %v1034_v56 = vpack.c.bf16 %v354_v54, %v353_v53  ;;  %v1037_v62 = vpack.c.bf16 %v356_v60, %v355_v59  ;;  %v325_v63 = vld [vmem:[%s1638_s1 + $0xa0] sm:$0xff]  ;;  %v326_v0 = vld [vmem:[%s1638_s1 + $0xa8] sm:$0xff]  ;;  %v327_v6 = vld [vmem:[%s1638_s1 + $0xb0] sm:$0xff] }
  0x14   : > { %972 = vmatpush1.bf16.msra.mxu1 %v971_v23  ;;  %v357_v1 = vld [vmem:[%s1638_s1 + $0x1a0] sm:$0xff]  ;;  %v358_v2 = vld [vmem:[%s1638_s1 + $0x1a8] sm:$0xff]  ;;  %v992_v4 = vpack.c.bf16 %v326_v0, %v325_v63  ;;  %v328_v7 = vld [vmem:[%s1638_s1 + $0xb8] sm:$0xff] }
  0x15   : > { %1020 = vmatpush1.bf16.msra.mxu0 %v1019_v24  ;;  %973 = vmatprep.subr.bf16.mxu1 %v1138_v3  ;;  %v1040_v5 = vpack.c.bf16 %v358_v2, %v357_v1  ;;  %v359_v8 = vld [vmem:[%s1638_s1 + $0x1b0] sm:$0xff]  ;;  %v360_v9 = vld [vmem:[%s1638_s1 + $0x1b8] sm:$0xff]  ;;  %v995_v10 = vpack.c.bf16 %v328_v7, %v327_v6  ;;  %v329_v12 = vld [vmem:[%s1638_s1 + $0xc0] sm:$0xff] }
  0x16   : > { %1021 = vmatprep.subr.bf16.mxu0 %v1138_v3  ;;  %v1043_v11 = vpack.c.bf16 %v360_v9, %v359_v8  ;;  %v330_v13 = vld [vmem:[%s1638_s1 + $0xc8] sm:$0xff]  ;;  %v361_v14 = vld [vmem:[%s1638_s1 + $0x1c0] sm:$0xff]  ;;  %v331_v18 = vld [vmem:[%s1638_s1 + $0xd0] sm:$0xff] }
  0x17   : > { %v362_v15 = vld [vmem:[%s1638_s1 + $0x1c8] sm:$0xff]  ;;  %v998_v16 = vpack.c.bf16 %v330_v13, %v329_v12  ;;  %v332_v19 = vld [vmem:[%s1638_s1 + $0xd8] sm:$0xff]  ;;  %v363_v20 = vld [vmem:[%s1638_s1 + $0x1d0] sm:$0xff] }
  0x18   : > { %975 = vmatpush1.bf16.msra.mxu1 %v974_v29  ;;  %v1046_v17 = vpack.c.bf16 %v362_v15, %v361_v14  ;;  %v364_v21 = vld [vmem:[%s1638_s1 + $0x1d8] sm:$0xff]  ;;  %v1001_v22 = vpack.c.bf16 %v332_v19, %v331_v18  ;;  %v333_v24 = vld [vmem:[%s1638_s1 + $0xe0] sm:$0xff]  ;;  %v334_v25 = vld [vmem:[%s1638_s1 + $0xe8] sm:$0xff] }
  0x19   : > { %1023 = vmatpush1.bf16.msra.mxu0 %v1022_v30  ;;  %976 = vmatprep.subr.bf16.mxu1 %v1138_v3  ;;  %v1049_v23 = vpack.c.bf16 %v364_v21, %v363_v20  ;;  %v365_v26 = vld [vmem:[%s1638_s1 + $0x1e0] sm:$0xff]  ;;  %v366_v27 = vld [vmem:[%s1638_s1 + $0x1e8] sm:$0xff]  ;;  %v1004_v28 = vpack.c.bf16 %v334_v25, %v333_v24  ;;  %v335_v30 = vld [vmem:[%s1638_s1 + $0xf0] sm:$0xff] }
  0x1a   : > { %1024 = vmatprep.subr.bf16.mxu0 %v1138_v3  ;;  %v1052_v29 = vpack.c.bf16 %v366_v27, %v365_v26  ;;  %v336_v31 = vld [vmem:[%s1638_s1 + $0xf8] sm:$0xff]  ;;  %v367_v32 = vld [vmem:[%s1638_s1 + $0x1f0] sm:$0xff]  ;;  %v182_v38 = vld [vmem:[%s1255_s13 + $0x28] sm:$0xff] }
  0x1b   : > { %v368_v33 = vld [vmem:[%s1638_s1 + $0x1f8] sm:$0xff]  ;;  %v1007_v34 = vpack.c.bf16 %v336_v31, %v335_v30  ;;  %v179_v37 = vld [vmem:[%s1255_s13 + $0x10] sm:$0xff]  ;;  %v181_v40 = vld [vmem:[%s1255_s13 + $0x20] sm:$0xff] }
  0x1c   : > { %978 = vmatpush1.bf16.msra.mxu1 %v977_v35  ;;  %v1055_v35 = vpack.c.bf16 %v368_v33, %v367_v32  ;;  %v184_v39 = vld [vmem:[%s1255_s13 + $0x38] sm:$0xff]  ;;  %v183_v41 = vld [vmem:[%s1255_s13 + $0x30] sm:$0xff]  ;;  %v186_v42 = vld [vmem:[%s1255_s13 + $0x48] sm:$0xff] }
  0x1d   : > { %1026 = vmatpush1.bf16.msra.mxu0 %v1025_v36  ;;  %979 = vmatprep.subr.bf16.mxu1 %v1138_v3  ;;  %v177_v36 = vld [vmem:[%s1255_s13] sm:$0xff]  ;;  %v190_v45 = vld [vmem:[%s1255_s13 + $0x68] sm:$0xff]  ;;  %v192_v46 = vld [vmem:[%s1255_s13 + $0x78] sm:$0xff] }
  0x1e   : > { %1027 = vmatprep.subr.bf16.mxu0 %v1138_v3  ;;  %v189_v47 = vld [vmem:[%s1255_s13 + $0x60] sm:$0xff]  ;;  %v191_v48 = vld [vmem:[%s1255_s13 + $0x70] sm:$0xff]  ;;  %v198_v53 = vld [vmem:[%s1255_s13 + $0xa8] sm:$0xff] }
  0x1f   : > { %v193_v51 = vld [vmem:[%s1255_s13 + $0x80] sm:$0xff]  ;;  %v195_v52 = vld [vmem:[%s1255_s13 + $0x90] sm:$0xff]  ;;  %v200_v54 = vld [vmem:[%s1255_s13 + $0xb8] sm:$0xff] }
  0x20   : > { %981 = vmatpush1.bf16.msra.mxu1 %v980_v43  ;;  %v185_v43 = vld [vmem:[%s1255_s13 + $0x40] sm:$0xff]  ;;  %v202_v57 = vld [vmem:[%s1255_s13 + $0xc8] sm:$0xff]  ;;  %v204_v58 = vld [vmem:[%s1255_s13 + $0xd8] sm:$0xff] }
  0x21   : > { %1029 = vmatpush1.bf16.msra.mxu0 %v1028_v44  ;;  %982 = vmatprep.subr.bf16.mxu1 %v1138_v3  ;;  %v187_v44 = vld [vmem:[%s1255_s13 + $0x50] sm:$0xff]  ;;  %v201_v59 = vld [vmem:[%s1255_s13 + $0xc0] sm:$0xff]  ;;  %v210_v1 = vld [vmem:[%s1255_s13 + $0x108] sm:$0xff] }
  0x22   : > { %1030 = vmatprep.subr.bf16.mxu0 %v1138_v3  ;;  %v203_v60 = vld [vmem:[%s1255_s13 + $0xd0] sm:$0xff]  ;;  %v205_v63 = vld [vmem:[%s1255_s13 + $0xe0] sm:$0xff]  ;;  %v212_v2 = vld [vmem:[%s1255_s13 + $0x118] sm:$0xff] }
  0x23   : > { %v207_v0 = vld [vmem:[%s1255_s13 + $0xf0] sm:$0xff]  ;;  %v214_v6 = vld [vmem:[%s1255_s13 + $0x128] sm:$0xff]  ;;  %v216_v7 = vld [vmem:[%s1255_s13 + $0x138] sm:$0xff] }
  0x24   : > { %984 = vmatpush1.bf16.msra.mxu1 %v983_v49  ;;  %v194_v49 = vld [vmem:[%s1255_s13 + $0x88] sm:$0xff]  ;;  %v213_v8 = vld [vmem:[%s1255_s13 + $0x120] sm:$0xff]  ;;  %v215_v9 = vld [vmem:[%s1255_s13 + $0x130] sm:$0xff] }
  0x25   : > { %1032 = vmatpush1.bf16.msra.mxu0 %v1031_v50  ;;  %985 = vmatprep.subr.bf16.mxu1 %v1138_v3  ;;  %v196_v50 = vld [vmem:[%s1255_s13 + $0x98] sm:$0xff]  ;;  %v217_v12 = vld [vmem:[%s1255_s13 + $0x140] sm:$0xff]  ;;  %v219_v13 = vld [vmem:[%s1255_s13 + $0x150] sm:$0xff] }
  0x26   : > { %1033 = vmatprep.subr.bf16.mxu0 %v1138_v3  ;;  %v222_v14 = vld [vmem:[%s1255_s13 + $0x168] sm:$0xff]  ;;  %v224_v15 = vld [vmem:[%s1255_s13 + $0x178] sm:$0xff]  ;;  %v225_v20 = vld [vmem:[%s1255_s13 + $0x180] sm:$0xff] }
  0x27   : > { %v226_v18 = vld [vmem:[%s1255_s13 + $0x188] sm:$0xff]  ;;  %v228_v19 = vld [vmem:[%s1255_s13 + $0x198] sm:$0xff]  ;;  %v227_v21 = vld [vmem:[%s1255_s13 + $0x190] sm:$0xff] }
  0x28   : > { %987 = vmatpush1.bf16.msra.mxu1 %v986_v55  ;;  %v197_v55 = vld [vmem:[%s1255_s13 + $0xa0] sm:$0xff]  ;;  %v231_v25 = vld [vmem:[%s1255_s13 + $0x1b0] sm:$0xff]  ;;  %v234_v26 = vld [vmem:[%s1255_s13 + $0x1c8] sm:$0xff] }
  0x29   : > { %1035 = vmatpush1.bf16.msra.mxu0 %v1034_v56  ;;  %988 = vmatprep.subr.bf16.mxu1 %v1138_v3  ;;  %v199_v56 = vld [vmem:[%s1255_s13 + $0xb0] sm:$0xff]  ;;  %v229_v24 = vld [vmem:[%s1255_s13 + $0x1a0] sm:$0xff]  ;;  %v236_v27 = vld [vmem:[%s1255_s13 + $0x1d8] sm:$0xff] }
  0x2a   : > { %1036 = vmatprep.subr.bf16.mxu0 %v1138_v3  ;;  %v238_v30 = vld [vmem:[%s1255_s13 + $0x1e8] sm:$0xff]  ;;  %v240_v31 = vld [vmem:[%s1255_s13 + $0x1f8] sm:$0xff]  ;;  %v237_v32 = vld [vmem:[%s1255_s13 + $0x1e0] sm:$0xff] }
  0x2b   : > { %v239_v33 = vld [vmem:[%s1255_s13 + $0x1f0] sm:$0xff] }
  0x2c   : > { %990 = vmatpush1.bf16.msra.mxu1 %v989_v61  ;;  %v206_v61 = vld [vmem:[%s1255_s13 + $0xe8] sm:$0xff] }
  0x2d   : > { %1038 = vmatpush1.bf16.msra.mxu0 %v1037_v62  ;;  %991 = vmatprep.subr.bf16.mxu1 %v1138_v3  ;;  %v208_v62 = vld [vmem:[%s1255_s13 + $0xf8] sm:$0xff] }
  0x2e   : > { %1039 = vmatprep.subr.bf16.mxu0 %v1138_v3 }
  0x30   : > { %993 = vmatpush1.bf16.msra.mxu1 %v992_v4  ;;  %v209_v4 = vld [vmem:[%s1255_s13 + $0x100] sm:$0xff] }
  0x31   : > { %1041 = vmatpush1.bf16.msra.mxu0 %v1040_v5  ;;  %994 = vmatprep.subr.bf16.mxu1 %v1138_v3  ;;  %v211_v5 = vld [vmem:[%s1255_s13 + $0x110] sm:$0xff] }
  0x32   : > { %1042 = vmatprep.subr.bf16.mxu0 %v1138_v3 }
  0x34   : > { %996 = vmatpush1.bf16.msra.mxu1 %v995_v10  ;;  %v218_v10 = vld [vmem:[%s1255_s13 + $0x148] sm:$0xff] }
  0x35   : > { %1044 = vmatpush1.bf16.msra.mxu0 %v1043_v11  ;;  %997 = vmatprep.subr.bf16.mxu1 %v1138_v3  ;;  %v220_v11 = vld [vmem:[%s1255_s13 + $0x158] sm:$0xff] }
  0x36   : > { %1045 = vmatprep.subr.bf16.mxu0 %v1138_v3 }
  0x38   : > { %999 = vmatpush1.bf16.msra.mxu1 %v998_v16  ;;  %v221_v16 = vld [vmem:[%s1255_s13 + $0x160] sm:$0xff] }
  0x39   : > { %1047 = vmatpush1.bf16.msra.mxu0 %v1046_v17  ;;  %1000 = vmatprep.subr.bf16.mxu1 %v1138_v3  ;;  %v223_v17 = vld [vmem:[%s1255_s13 + $0x170] sm:$0xff] }
  0x3a   : > { %1048 = vmatprep.subr.bf16.mxu0 %v1138_v3 }
  0x3c   : > { %1002 = vmatpush1.bf16.msra.mxu1 %v1001_v22  ;;  %v230_v22 = vld [vmem:[%s1255_s13 + $0x1a8] sm:$0xff] }
  0x3d   : > { %1050 = vmatpush1.bf16.msra.mxu0 %v1049_v23  ;;  %1003 = vmatprep.subr.bf16.mxu1 %v1138_v3  ;;  %v232_v23 = vld [vmem:[%s1255_s13 + $0x1b8] sm:$0xff] }
  0x3e   : > { %1051 = vmatprep.subr.bf16.mxu0 %v1138_v3 }
  0x40   : > { %1005 = vmatpush1.bf16.msra.mxu1 %v1004_v28  ;;  %v233_v28 = vld [vmem:[%s1255_s13 + $0x1c0] sm:$0xff] }
  0x41   : > { %1053 = vmatpush1.bf16.msra.mxu0 %v1052_v29  ;;  %1006 = vmatprep.subr.bf16.mxu1 %v1138_v3  ;;  %v235_v29 = vld [vmem:[%s1255_s13 + $0x1d0] sm:$0xff] }
  0x42   : > { %1054 = vmatprep.subr.bf16.mxu0 %v1138_v3  ;;  %v188_v3 = vld [vmem:[%s1255_s13 + $0x58] sm:$0xff] }
  0x44   : > { %1008 = vmatpush1.bf16.msra.mxu1 %v1007_v34  ;;  %v242_v34 = vld [vmem:[%s1255_s13 + $0x208] sm:$0xff] }
  0x45   : > { %1056 = vmatpush1.bf16.msra.mxu0 %v1055_v35  ;;  %v244_v35 = vld [vmem:[%s1255_s13 + $0x218] sm:$0xff] }
  0x47   : > { %441 = vmatmul.mubr.f32.vlgmr.msra.gmra.mrb[0].mxu1 %v177_v36  ;;  %v241_v36 = vld [vmem:[%s1255_s13 + $0x200] sm:$0xff] }
  0x48   : > { %666 = vmatmul.mubr.f32.vlgmr.msra.gmra.mrb[0].mxu0 %v179_v37  ;;  %445 = vmatprep.mubr.f32.mxu1 %v182_v38  ;;  %v243_v37 = vld [vmem:[%s1255_s13 + $0x210] sm:$0xff]  ;;  %v246_v38 = vld [vmem:[%s1255_s13 + $0x228] sm:$0xff] }
  0x49   : > { %670 = vmatprep.mubr.f32.mxu0 %v184_v39  ;;  %v248_v39 = vld [vmem:[%s1255_s13 + $0x238] sm:$0xff] }
  0x4b   : > { %446 = vmatmul.mubr.f32.gmra.mrb[2].mxu1 %v181_v40  ;;  %v245_v40 = vld [vmem:[%s1255_s13 + $0x220] sm:$0xff] }
  0x4c   : > { %671 = vmatmul.mubr.f32.gmra.mrb[2].mxu0 %v183_v41  ;;  %450 = vmatprep.mubr.f32.mxu1 %v186_v42  ;;  %v247_v41 = vld [vmem:[%s1255_s13 + $0x230] sm:$0xff]  ;;  %v250_v42 = vld [vmem:[%s1255_s13 + $0x248] sm:$0xff] }
  0x4d   : > { %675 = vmatprep.mubr.f32.mxu0 %v188_v3  ;;  %v252_v3 = vld [vmem:[%s1255_s13 + $0x258] sm:$0xff] }
  0x4f   : > { %451 = vmatmul.mubr.f32.gmra.mrb[4].mxu1 %v185_v43  ;;  %v249_v43 = vld [vmem:[%s1255_s13 + $0x240] sm:$0xff] }
  0x50   : > { %676 = vmatmul.mubr.f32.gmra.mrb[4].mxu0 %v187_v44  ;;  %455 = vmatprep.mubr.f32.mxu1 %v190_v45  ;;  %v251_v44 = vld [vmem:[%s1255_s13 + $0x250] sm:$0xff]  ;;  %v254_v45 = vld [vmem:[%s1255_s13 + $0x268] sm:$0xff] }
  0x51   : > { %680 = vmatprep.mubr.f32.mxu0 %v192_v46  ;;  %v256_v46 = vld [vmem:[%s1255_s13 + $0x278] sm:$0xff] }
  0x53   : > { %456 = vmatmul.mubr.f32.gmra.mrb[6].mxu1 %v189_v47  ;;  %v253_v47 = vld [vmem:[%s1255_s13 + $0x260] sm:$0xff] }
  0x54   : > { %681 = vmatmul.mubr.f32.gmra.mrb[6].mxu0 %v191_v48  ;;  %460 = vmatprep.mubr.f32.mxu1 %v194_v49  ;;  %v255_v48 = vld [vmem:[%s1255_s13 + $0x270] sm:$0xff]  ;;  %v258_v49 = vld [vmem:[%s1255_s13 + $0x288] sm:$0xff] }
  0x55   : > { %685 = vmatprep.mubr.f32.mxu0 %v196_v50  ;;  %v260_v50 = vld [vmem:[%s1255_s13 + $0x298] sm:$0xff] }
  0x57   : > { %461 = vmatmul.mubr.f32.gmra.mrb[8].mxu1 %v193_v51  ;;  %v257_v51 = vld [vmem:[%s1255_s13 + $0x280] sm:$0xff] }
  0x58   : > { %686 = vmatmul.mubr.f32.gmra.mrb[8].mxu0 %v195_v52  ;;  %465 = vmatprep.mubr.f32.mxu1 %v198_v53  ;;  %v259_v52 = vld [vmem:[%s1255_s13 + $0x290] sm:$0xff]  ;;  %v262_v53 = vld [vmem:[%s1255_s13 + $0x2a8] sm:$0xff] }
  0x59   : > { %690 = vmatprep.mubr.f32.mxu0 %v200_v54  ;;  %v264_v54 = vld [vmem:[%s1255_s13 + $0x2b8] sm:$0xff] }
  0x5b   : > { %466 = vmatmul.mubr.f32.gmra.mrb[10].mxu1 %v197_v55  ;;  %v261_v55 = vld [vmem:[%s1255_s13 + $0x2a0] sm:$0xff] }
  0x5c   : > { %691 = vmatmul.mubr.f32.gmra.mrb[10].mxu0 %v199_v56  ;;  %470 = vmatprep.mubr.f32.mxu1 %v202_v57  ;;  %v263_v56 = vld [vmem:[%s1255_s13 + $0x2b0] sm:$0xff]  ;;  %v266_v57 = vld [vmem:[%s1255_s13 + $0x2c8] sm:$0xff] }
  0x5d   : > { %695 = vmatprep.mubr.f32.mxu0 %v204_v58  ;;  %v268_v58 = vld [vmem:[%s1255_s13 + $0x2d8] sm:$0xff] }
  0x5f   : > { %471 = vmatmul.mubr.f32.gmra.mrb[12].mxu1 %v201_v59  ;;  %v265_v59 = vld [vmem:[%s1255_s13 + $0x2c0] sm:$0xff] }
  0x60   : > { %696 = vmatmul.mubr.f32.gmra.mrb[12].mxu0 %v203_v60  ;;  %475 = vmatprep.mubr.f32.mxu1 %v206_v61  ;;  %v267_v60 = vld [vmem:[%s1255_s13 + $0x2d0] sm:$0xff]  ;;  %v270_v61 = vld [vmem:[%s1255_s13 + $0x2e8] sm:$0xff] }
  0x61   : > { %700 = vmatprep.mubr.f32.mxu0 %v208_v62  ;;  %v272_v62 = vld [vmem:[%s1255_s13 + $0x2f8] sm:$0xff] }
  0x63   : > { %476 = vmatmul.mubr.f32.gmra.mrb[14].mxu1 %v205_v63  ;;  %v269_v63 = vld [vmem:[%s1255_s13 + $0x2e0] sm:$0xff] }
  0x64   : > { %701 = vmatmul.mubr.f32.gmra.mrb[14].mxu0 %v207_v0  ;;  %480 = vmatprep.mubr.f32.mxu1 %v210_v1  ;;  %v271_v0 = vld [vmem:[%s1255_s13 + $0x2f0] sm:$0xff]  ;;  %v274_v1 = vld [vmem:[%s1255_s13 + $0x308] sm:$0xff] }
  0x65   : > { %705 = vmatprep.mubr.f32.mxu0 %v212_v2  ;;  %v276_v2 = vld [vmem:[%s1255_s13 + $0x318] sm:$0xff] }
  0x67   : > { %481 = vmatmul.mubr.f32.gmra.mrb[16].mxu1 %v209_v4  ;;  %v273_v4 = vld [vmem:[%s1255_s13 + $0x300] sm:$0xff] }
  0x68   : > { %706 = vmatmul.mubr.f32.gmra.mrb[16].mxu0 %v211_v5  ;;  %485 = vmatprep.mubr.f32.mxu1 %v214_v6  ;;  %v275_v5 = vld [vmem:[%s1255_s13 + $0x310] sm:$0xff]  ;;  %v278_v6 = vld [vmem:[%s1255_s13 + $0x328] sm:$0xff] }
  0x69   : > { %710 = vmatprep.mubr.f32.mxu0 %v216_v7  ;;  %v280_v7 = vld [vmem:[%s1255_s13 + $0x338] sm:$0xff] }
  0x6b   : > { %486 = vmatmul.mubr.f32.gmra.mrb[18].mxu1 %v213_v8  ;;  %v277_v8 = vld [vmem:[%s1255_s13 + $0x320] sm:$0xff] }
  0x6c   : > { %711 = vmatmul.mubr.f32.gmra.mrb[18].mxu0 %v215_v9  ;;  %490 = vmatprep.mubr.f32.mxu1 %v218_v10  ;;  %v279_v9 = vld [vmem:[%s1255_s13 + $0x330] sm:$0xff]  ;;  %v282_v10 = vld [vmem:[%s1255_s13 + $0x348] sm:$0xff] }
  0x6d   : > { %715 = vmatprep.mubr.f32.mxu0 %v220_v11  ;;  %v284_v11 = vld [vmem:[%s1255_s13 + $0x358] sm:$0xff] }
  0x6f   : > { %491 = vmatmul.mubr.f32.gmra.mrb[20].mxu1 %v217_v12  ;;  %v281_v12 = vld [vmem:[%s1255_s13 + $0x340] sm:$0xff] }
  0x70   : > { %716 = vmatmul.mubr.f32.gmra.mrb[20].mxu0 %v219_v13  ;;  %495 = vmatprep.mubr.f32.mxu1 %v222_v14  ;;  %v283_v13 = vld [vmem:[%s1255_s13 + $0x350] sm:$0xff]  ;;  %v286_v14 = vld [vmem:[%s1255_s13 + $0x368] sm:$0xff] }
  0x71   : > { %720 = vmatprep.mubr.f32.mxu0 %v224_v15  ;;  %v288_v15 = vld [vmem:[%s1255_s13 + $0x378] sm:$0xff] }
  0x73   : > { %496 = vmatmul.mubr.f32.gmra.mrb[22].mxu1 %v221_v16  ;;  %v285_v16 = vld [vmem:[%s1255_s13 + $0x360] sm:$0xff] }
  0x74   : > { %721 = vmatmul.mubr.f32.gmra.mrb[22].mxu0 %v223_v17  ;;  %500 = vmatprep.mubr.f32.mxu1 %v226_v18  ;;  %v287_v17 = vld [vmem:[%s1255_s13 + $0x370] sm:$0xff]  ;;  %v290_v18 = vld [vmem:[%s1255_s13 + $0x388] sm:$0xff] }
  0x75   : > { %725 = vmatprep.mubr.f32.mxu0 %v228_v19  ;;  %v292_v19 = vld [vmem:[%s1255_s13 + $0x398] sm:$0xff] }
  0x77   : > { %501 = vmatmul.mubr.f32.gmra.mrb[24].mxu1 %v225_v20  ;;  %v289_v20 = vld [vmem:[%s1255_s13 + $0x380] sm:$0xff] }
  0x78   : > { %726 = vmatmul.mubr.f32.gmra.mrb[24].mxu0 %v227_v21  ;;  %505 = vmatprep.mubr.f32.mxu1 %v230_v22  ;;  %v291_v21 = vld [vmem:[%s1255_s13 + $0x390] sm:$0xff]  ;;  %v294_v22 = vld [vmem:[%s1255_s13 + $0x3a8] sm:$0xff] }
  0x79   : > { %730 = vmatprep.mubr.f32.mxu0 %v232_v23  ;;  %v296_v23 = vld [vmem:[%s1255_s13 + $0x3b8] sm:$0xff] }
  0x7b   : > { %506 = vmatmul.mubr.f32.gmra.mrb[26].mxu1 %v229_v24  ;;  %v293_v24 = vld [vmem:[%s1255_s13 + $0x3a0] sm:$0xff] }
  0x7c   : > { %731 = vmatmul.mubr.f32.gmra.mrb[26].mxu0 %v231_v25  ;;  %510 = vmatprep.mubr.f32.mxu1 %v234_v26  ;;  %v295_v25 = vld [vmem:[%s1255_s13 + $0x3b0] sm:$0xff]  ;;  %v298_v26 = vld [vmem:[%s1255_s13 + $0x3c8] sm:$0xff] }
  0x7d   : > { %735 = vmatprep.mubr.f32.mxu0 %v236_v27  ;;  %v300_v27 = vld [vmem:[%s1255_s13 + $0x3d8] sm:$0xff] }
  0x7f   : > { %511 = vmatmul.mubr.f32.gmra.mrb[28].mxu1 %v233_v28  ;;  %v297_v28 = vld [vmem:[%s1255_s13 + $0x3c0] sm:$0xff] }
  0x80   : > { %736 = vmatmul.mubr.f32.gmra.mrb[28].mxu0 %v235_v29  ;;  %515 = vmatprep.mubr.f32.mxu1 %v238_v30  ;;  %v299_v29 = vld [vmem:[%s1255_s13 + $0x3d0] sm:$0xff]  ;;  %v302_v30 = vld [vmem:[%s1255_s13 + $0x3e8] sm:$0xff] }
  0x81   : > { %740 = vmatprep.mubr.f32.mxu0 %v240_v31  ;;  %v304_v31 = vld [vmem:[%s1255_s13 + $0x3f8] sm:$0xff] }
  0x83   : > { %516 = vmatmul.mubr.f32.gmra.mrb[30].mxu1 %v237_v32  ;;  %v301_v32 = vld [vmem:[%s1255_s13 + $0x3e0] sm:$0xff] }
  0x84   : > { %741 = vmatmul.mubr.f32.gmra.mrb[30].mxu0 %v239_v33  ;;  %520 = vmatprep.mubr.f32.mxu1 %v242_v34  ;;  %v303_v33 = vld [vmem:[%s1255_s13 + $0x3f0] sm:$0xff]  ;;  %v1530_v34 = vld [vmem:[%s1639_s2] ss:$0 sm:$0xff] }
  0x85   : > { %745 = vmatprep.mubr.f32.mxu0 %v244_v35 }
  0x87   : > { %521 = vmatmul.mubr.f32.gmra.mrb[32].mxu1 %v241_v36 }
  0x88   : > { %746 = vmatmul.mubr.f32.gmra.mrb[32].mxu0 %v243_v37  ;;  %525 = vmatprep.mubr.f32.mxu1 %v246_v38 }
  0x89   : > { %750 = vmatprep.mubr.f32.mxu0 %v248_v39 }
  0x8b   : > { %526 = vmatmul.mubr.f32.gmra.mrb[34].mxu1 %v245_v40 }
  0x8c   : > { %751 = vmatmul.mubr.f32.gmra.mrb[34].mxu0 %v247_v41  ;;  %530 = vmatprep.mubr.f32.mxu1 %v250_v42 }
  0x8d   : > { %755 = vmatprep.mubr.f32.mxu0 %v252_v3 }
  0x8f   : > { %531 = vmatmul.mubr.f32.gmra.mrb[36].mxu1 %v249_v43 }
  0x90   : > { %756 = vmatmul.mubr.f32.gmra.mrb[36].mxu0 %v251_v44  ;;  %535 = vmatprep.mubr.f32.mxu1 %v254_v45 }
  0x91   : > { %760 = vmatprep.mubr.f32.mxu0 %v256_v46 }
  0x93   : > { %536 = vmatmul.mubr.f32.gmra.mrb[38].mxu1 %v253_v47 }
  0x94   : > { %761 = vmatmul.mubr.f32.gmra.mrb[38].mxu0 %v255_v48  ;;  %540 = vmatprep.mubr.f32.mxu1 %v258_v49 }
  0x95   : > { %765 = vmatprep.mubr.f32.mxu0 %v260_v50 }
  0x97   : > { %541 = vmatmul.mubr.f32.gmra.mrb[40].mxu1 %v257_v51 }
  0x98   : > { %766 = vmatmul.mubr.f32.gmra.mrb[40].mxu0 %v259_v52  ;;  %545 = vmatprep.mubr.f32.mxu1 %v262_v53 }
  0x99   : > { %770 = vmatprep.mubr.f32.mxu0 %v264_v54 }
  0x9b   : > { %546 = vmatmul.mubr.f32.gmra.mrb[42].mxu1 %v261_v55 }
  0x9c   : > { %771 = vmatmul.mubr.f32.gmra.mrb[42].mxu0 %v263_v56  ;;  %550 = vmatprep.mubr.f32.mxu1 %v266_v57 }
  0x9d   : > { %775 = vmatprep.mubr.f32.mxu0 %v268_v58 }
  0x9f   : > { %551 = vmatmul.mubr.f32.gmra.mrb[44].mxu1 %v265_v59 }
  0xa0   : > { %776 = vmatmul.mubr.f32.gmra.mrb[44].mxu0 %v267_v60  ;;  %555 = vmatprep.mubr.f32.mxu1 %v270_v61 }
  0xa1   : > { %780 = vmatprep.mubr.f32.mxu0 %v272_v62 }
  0xa3   : > { %556 = vmatmul.mubr.f32.gmra.mrb[46].mxu1 %v269_v63 }
  0xa4   : > { %781 = vmatmul.mubr.f32.gmra.mrb[46].mxu0 %v271_v0  ;;  %560 = vmatprep.mubr.f32.mxu1 %v274_v1 }
  0xa5   : > { %785 = vmatprep.mubr.f32.mxu0 %v276_v2 }
  0xa7   : > { %561 = vmatmul.mubr.f32.gmra.mrb[48].mxu1 %v273_v4 }
  0xa8   : > { %786 = vmatmul.mubr.f32.gmra.mrb[48].mxu0 %v275_v5  ;;  %565 = vmatprep.mubr.f32.mxu1 %v278_v6 }
  0xa9   : > { %790 = vmatprep.mubr.f32.mxu0 %v280_v7 }
  0xab   : > { %566 = vmatmul.mubr.f32.gmra.mrb[50].mxu1 %v277_v8 }
  0xac   : > { %791 = vmatmul.mubr.f32.gmra.mrb[50].mxu0 %v279_v9  ;;  %570 = vmatprep.mubr.f32.mxu1 %v282_v10 }
  0xad   : > { %795 = vmatprep.mubr.f32.mxu0 %v284_v11 }
  0xaf   : > { %571 = vmatmul.mubr.f32.gmra.mrb[52].mxu1 %v281_v12 }
  0xb0   : > { %796 = vmatmul.mubr.f32.gmra.mrb[52].mxu0 %v283_v13  ;;  %575 = vmatprep.mubr.f32.mxu1 %v286_v14 }
  0xb1   : > { %800 = vmatprep.mubr.f32.mxu0 %v288_v15 }
  0xb3   : > { %576 = vmatmul.mubr.f32.gmra.mrb[54].mxu1 %v285_v16 }
  0xb4   : > { %801 = vmatmul.mubr.f32.gmra.mrb[54].mxu0 %v287_v17  ;;  %580 = vmatprep.mubr.f32.mxu1 %v290_v18 }
  0xb5   : > { %805 = vmatprep.mubr.f32.mxu0 %v292_v19 }
  0xb7   : > { %581 = vmatmul.mubr.f32.gmra.mrb[56].mxu1 %v289_v20 }
  0xb8   : > { %806 = vmatmul.mubr.f32.gmra.mrb[56].mxu0 %v291_v21  ;;  %585 = vmatprep.mubr.f32.mxu1 %v294_v22 }
  0xb9   : > { %810 = vmatprep.mubr.f32.mxu0 %v296_v23 }
  0xbb   : > { %586 = vmatmul.mubr.f32.gmra.mrb[58].mxu1 %v293_v24 }
  0xbc   : > { %811 = vmatmul.mubr.f32.gmra.mrb[58].mxu0 %v295_v25  ;;  %590 = vmatprep.mubr.f32.mxu1 %v298_v26 }
  0xbd   : > { %815 = vmatprep.mubr.f32.mxu0 %v300_v27 }
  0xbf   : > { %591 = vmatmul.mubr.f32.gmra.mrb[60].mxu1 %v297_v28 }
  0xc0   : > { %816 = vmatmul.mubr.f32.gmra.mrb[60].mxu0 %v299_v29  ;;  %595 = vmatprep.mubr.f32.mxu1 %v302_v30 }
  0xc1   : > { %820 = vmatprep.mubr.f32.mxu0 %v304_v31 }
  0xc3   : > { %596 = vmatmul.mubr.f32.gmra.mrb[62].mxu1 %v301_v32 }
  0xc4   : > { %821 = vmatmul.mubr.f32.gmra.mrb[62].mxu0 %v303_v33 }
 0x11a   : > { %v442_v35 = vpop.f32.mrb[0].mxu1 }
 0x11b   : > { %v443_v36 = vadd.f32 %v1530_v34, %v442_v35  ;;  %v444_v37 = vpop.f32.mrb[1].mxu1  ;;  %v667_v38 = vpop.f32.mrb[0].mxu0 }
 0x11c   : > { %v669_v39 = vpop.f32.mrb[1].mxu0 }
 0x11d   : > { %v668_v40 = vadd.f32 %v667_v38, %v443_v36 }
 0x11e   : > { %v447_v41 = vpop.f32.mrb[2].mxu1 }
 0x11f   : > { %v826_v42 = vmax.f32 %v668_v40, 0.0  ;;  %v448_v3 = vadd.f32 %v1530_v34, %v447_v41  ;;  %v449_v43 = vpop.f32.mrb[3].mxu1  ;;  %v672_v44 = vpop.f32.mrb[2].mxu0 }
 0x120   : > { %v674_v45 = vpop.f32.mrb[3].mxu0 }
 0x121   : > { %859 = vst.msk [vmem:[%s1537_s29] sm:$0xff] %vm858_vm0, %v826_v42  ;;  %v673_v46 = vadd.f32 %v672_v44, %v448_v3 }
 0x122   : > { %v452_v47 = vpop.f32.mrb[4].mxu1 }
 0x123   : > { %v827_v48 = vmax.f32 %v673_v46, 0.0  ;;  %v453_v49 = vadd.f32 %v1530_v34, %v452_v47  ;;  %v454_v50 = vpop.f32.mrb[5].mxu1  ;;  %v677_v51 = vpop.f32.mrb[4].mxu0 }
 0x124   : > { %v679_v52 = vpop.f32.mrb[5].mxu0 }
 0x125   : > { %860 = vst.msk [vmem:[%s1537_s29 + $0x8] sm:$0xff] %vm858_vm0, %v827_v48  ;;  %v678_v53 = vadd.f32 %v677_v51, %v453_v49 }
 0x126   : > { %v457_v54 = vpop.f32.mrb[6].mxu1 }
 0x127   : > { %v828_v55 = vmax.f32 %v678_v53, 0.0  ;;  %v458_v56 = vadd.f32 %v1530_v34, %v457_v54  ;;  %v459_v57 = vpop.f32.mrb[7].mxu1  ;;  %v682_v58 = vpop.f32.mrb[6].mxu0 }
 0x128   : > { %v684_v59 = vpop.f32.mrb[7].mxu0 }
 0x129   : > { %861 = vst.msk [vmem:[%s1537_s29 + $0x10] sm:$0xff] %vm858_vm0, %v828_v55  ;;  %v683_v60 = vadd.f32 %v682_v58, %v458_v56 }
 0x12a   : > { %v462_v61 = vpop.f32.mrb[8].mxu1 }
 0x12b   : > { %v829_v62 = vmax.f32 %v683_v60, 0.0  ;;  %v463_v63 = vadd.f32 %v1530_v34, %v462_v61  ;;  %v464_v0 = vpop.f32.mrb[9].mxu1  ;;  %v687_v1 = vpop.f32.mrb[8].mxu0 }
 0x12c   : > { %v689_v2 = vpop.f32.mrb[9].mxu0 }
 0x12d   : > { %862 = vst.msk [vmem:[%s1537_s29 + $0x18] sm:$0xff] %vm858_vm0, %v829_v62  ;;  %v688_v4 = vadd.f32 %v687_v1, %v463_v63 }
 0x12e   : > { %v467_v5 = vpop.f32.mrb[10].mxu1 }
 0x12f   : > { %v830_v6 = vmax.f32 %v688_v4, 0.0  ;;  %v468_v7 = vadd.f32 %v1530_v34, %v467_v5  ;;  %v469_v8 = vpop.f32.mrb[11].mxu1  ;;  %v692_v9 = vpop.f32.mrb[10].mxu0 }
 0x130   : > { %v694_v10 = vpop.f32.mrb[11].mxu0 }
 0x131   : > { %863 = vst.msk [vmem:[%s1537_s29 + $0x20] sm:$0xff] %vm858_vm0, %v830_v6  ;;  %v693_v11 = vadd.f32 %v692_v9, %v468_v7 }
 0x132   : > { %v472_v12 = vpop.f32.mrb[12].mxu1 }
 0x133   : > { %v831_v13 = vmax.f32 %v693_v11, 0.0  ;;  %v473_v14 = vadd.f32 %v1530_v34, %v472_v12  ;;  %v474_v15 = vpop.f32.mrb[13].mxu1  ;;  %v697_v16 = vpop.f32.mrb[12].mxu0 }
 0x134   : > { %v699_v17 = vpop.f32.mrb[13].mxu0 }
 0x135   : > { %864 = vst.msk [vmem:[%s1537_s29 + $0x28] sm:$0xff] %vm858_vm0, %v831_v13  ;;  %v698_v18 = vadd.f32 %v697_v16, %v473_v14 }
 0x136   : > { %v477_v19 = vpop.f32.mrb[14].mxu1 }
 0x137   : > { %v832_v20 = vmax.f32 %v698_v18, 0.0  ;;  %v478_v21 = vadd.f32 %v1530_v34, %v477_v19  ;;  %v479_v22 = vpop.f32.mrb[15].mxu1  ;;  %v702_v23 = vpop.f32.mrb[14].mxu0 }
 0x138   : > { %v704_v24 = vpop.f32.mrb[15].mxu0 }
 0x139   : > { %865 = vst.msk [vmem:[%s1537_s29 + $0x30] sm:$0xff] %vm858_vm0, %v832_v20  ;;  %v703_v25 = vadd.f32 %v702_v23, %v478_v21 }
 0x13a   : > { %v482_v26 = vpop.f32.mrb[16].mxu1 }
 0x13b   : > { %v833_v27 = vmax.f32 %v703_v25, 0.0  ;;  %v483_v28 = vadd.f32 %v1530_v34, %v482_v26  ;;  %v484_v29 = vpop.f32.mrb[17].mxu1  ;;  %v707_v30 = vpop.f32.mrb[16].mxu0 }
 0x13c   : > { %v709_v31 = vpop.f32.mrb[17].mxu0 }
 0x13d   : > { %866 = vst.msk [vmem:[%s1537_s29 + $0x38] sm:$0xff] %vm858_vm0, %v833_v27  ;;  %v708_v32 = vadd.f32 %v707_v30, %v483_v28 }
 0x13e   : > { %v487_v33 = vpop.f32.mrb[18].mxu1 }
 0x13f   : > { %v834_v35 = vmax.f32 %v708_v32, 0.0  ;;  %v488_v36 = vadd.f32 %v1530_v34, %v487_v33  ;;  %v489_v37 = vpop.f32.mrb[19].mxu1  ;;  %v712_v38 = vpop.f32.mrb[18].mxu0 }
 0x140   : > { %v714_v39 = vpop.f32.mrb[19].mxu0 }
 0x141   : > { %867 = vst.msk [vmem:[%s1537_s29 + $0x40] sm:$0xff] %vm858_vm0, %v834_v35  ;;  %v713_v40 = vadd.f32 %v712_v38, %v488_v36 }
 0x142   : > { %v492_v41 = vpop.f32.mrb[20].mxu1 }
 0x143   : > { %v835_v42 = vmax.f32 %v713_v40, 0.0  ;;  %v493_v3 = vadd.f32 %v1530_v34, %v492_v41  ;;  %v494_v43 = vpop.f32.mrb[21].mxu1  ;;  %v717_v44 = vpop.f32.mrb[20].mxu0 }
 0x144   : > { %v719_v45 = vpop.f32.mrb[21].mxu0 }
 0x145   : > { %868 = vst.msk [vmem:[%s1537_s29 + $0x48] sm:$0xff] %vm858_vm0, %v835_v42  ;;  %v718_v46 = vadd.f32 %v717_v44, %v493_v3 }
 0x146   : > { %v497_v47 = vpop.f32.mrb[22].mxu1 }
 0x147   : > { %v836_v48 = vmax.f32 %v718_v46, 0.0  ;;  %v498_v49 = vadd.f32 %v1530_v34, %v497_v47  ;;  %v499_v50 = vpop.f32.mrb[23].mxu1  ;;  %v722_v51 = vpop.f32.mrb[22].mxu0 }
 0x148   : > { %v724_v52 = vpop.f32.mrb[23].mxu0 }
 0x149   : > { %869 = vst.msk [vmem:[%s1537_s29 + $0x50] sm:$0xff] %vm858_vm0, %v836_v48  ;;  %v723_v53 = vadd.f32 %v722_v51, %v498_v49 }
 0x14a   : > { %v502_v54 = vpop.f32.mrb[24].mxu1 }
 0x14b   : > { %v837_v55 = vmax.f32 %v723_v53, 0.0  ;;  %v503_v56 = vadd.f32 %v1530_v34, %v502_v54  ;;  %v504_v57 = vpop.f32.mrb[25].mxu1  ;;  %v727_v58 = vpop.f32.mrb[24].mxu0 }
 0x14c   : > { %v729_v59 = vpop.f32.mrb[25].mxu0 }
 0x14d   : > { %870 = vst.msk [vmem:[%s1537_s29 + $0x58] sm:$0xff] %vm858_vm0, %v837_v55  ;;  %v728_v60 = vadd.f32 %v727_v58, %v503_v56 }
 0x14e   : > { %v507_v61 = vpop.f32.mrb[26].mxu1 }
 0x14f   : > { %v838_v62 = vmax.f32 %v728_v60, 0.0  ;;  %v508_v63 = vadd.f32 %v1530_v34, %v507_v61  ;;  %v509_v0 = vpop.f32.mrb[27].mxu1  ;;  %v732_v1 = vpop.f32.mrb[26].mxu0 }
 0x150   : > { %v734_v2 = vpop.f32.mrb[27].mxu0 }
 0x151   : > { %871 = vst.msk [vmem:[%s1537_s29 + $0x60] sm:$0xff] %vm858_vm0, %v838_v62  ;;  %v733_v4 = vadd.f32 %v732_v1, %v508_v63 }
 0x152   : > { %v512_v5 = vpop.f32.mrb[28].mxu1 }
 0x153   : > { %v839_v6 = vmax.f32 %v733_v4, 0.0  ;;  %v513_v7 = vadd.f32 %v1530_v34, %v512_v5  ;;  %v514_v8 = vpop.f32.mrb[29].mxu1  ;;  %v737_v9 = vpop.f32.mrb[28].mxu0 }
 0x154   : > { %v739_v10 = vpop.f32.mrb[29].mxu0 }
 0x155   : > { %872 = vst.msk [vmem:[%s1537_s29 + $0x68] sm:$0xff] %vm858_vm0, %v839_v6  ;;  %v738_v11 = vadd.f32 %v737_v9, %v513_v7 }
 0x156   : > { %v517_v12 = vpop.f32.mrb[30].mxu1 }
 0x157   : > { %v840_v13 = vmax.f32 %v738_v11, 0.0  ;;  %v518_v14 = vadd.f32 %v1530_v34, %v517_v12  ;;  %v519_v15 = vpop.f32.mrb[31].mxu1  ;;  %v742_v16 = vpop.f32.mrb[30].mxu0 }
 0x158   : > { %v744_v17 = vpop.f32.mrb[31].mxu0 }
 0x159   : > { %873 = vst.msk [vmem:[%s1537_s29 + $0x70] sm:$0xff] %vm858_vm0, %v840_v13  ;;  %v743_v18 = vadd.f32 %v742_v16, %v518_v14 }
 0x15a   : > { %v522_v19 = vpop.f32.mrb[32].mxu1 }
 0x15b   : > { %v841_v20 = vmax.f32 %v743_v18, 0.0  ;;  %v523_v21 = vadd.f32 %v1530_v34, %v522_v19  ;;  %v524_v22 = vpop.f32.mrb[33].mxu1  ;;  %v747_v23 = vpop.f32.mrb[32].mxu0 }
 0x15c   : > { %v749_v24 = vpop.f32.mrb[33].mxu0 }
 0x15d   : > { %874 = vst.msk [vmem:[%s1537_s29 + $0x78] sm:$0xff] %vm858_vm0, %v841_v20  ;;  %v748_v25 = vadd.f32 %v747_v23, %v523_v21 }
 0x15e   : > { %v527_v26 = vpop.f32.mrb[34].mxu1 }
 0x15f   : > { %v842_v27 = vmax.f32 %v748_v25, 0.0  ;;  %v528_v28 = vadd.f32 %v1530_v34, %v527_v26  ;;  %v529_v29 = vpop.f32.mrb[35].mxu1  ;;  %v752_v30 = vpop.f32.mrb[34].mxu0 }
 0x160   : > { %v754_v31 = vpop.f32.mrb[35].mxu0 }
 0x161   : > { %875 = vst.msk [vmem:[%s1537_s29 + $0x80] sm:$0xff] %vm858_vm0, %v842_v27  ;;  %v753_v32 = vadd.f32 %v752_v30, %v528_v28 }
 0x162   : > { %v532_v33 = vpop.f32.mrb[36].mxu1 }
 0x163   : > { %v843_v35 = vmax.f32 %v753_v32, 0.0  ;;  %v533_v36 = vadd.f32 %v1530_v34, %v532_v33  ;;  %v534_v37 = vpop.f32.mrb[37].mxu1  ;;  %v757_v38 = vpop.f32.mrb[36].mxu0 }
 0x164   : > { %v759_v39 = vpop.f32.mrb[37].mxu0 }
 0x165   : > { %876 = vst.msk [vmem:[%s1537_s29 + $0x88] sm:$0xff] %vm858_vm0, %v843_v35  ;;  %v758_v40 = vadd.f32 %v757_v38, %v533_v36 }
 0x166   : > { %v537_v41 = vpop.f32.mrb[38].mxu1 }
 0x167   : > { %v844_v42 = vmax.f32 %v758_v40, 0.0  ;;  %v538_v3 = vadd.f32 %v1530_v34, %v537_v41  ;;  %v539_v43 = vpop.f32.mrb[39].mxu1  ;;  %v762_v44 = vpop.f32.mrb[38].mxu0 }
 0x168   : > { %v764_v45 = vpop.f32.mrb[39].mxu0 }
 0x169   : > { %877 = vst.msk [vmem:[%s1537_s29 + $0x90] sm:$0xff] %vm858_vm0, %v844_v42  ;;  %v763_v46 = vadd.f32 %v762_v44, %v538_v3 }
 0x16a   : > { %v542_v47 = vpop.f32.mrb[40].mxu1 }
 0x16b   : > { %v845_v48 = vmax.f32 %v763_v46, 0.0  ;;  %v543_v49 = vadd.f32 %v1530_v34, %v542_v47  ;;  %v544_v50 = vpop.f32.mrb[41].mxu1  ;;  %v767_v51 = vpop.f32.mrb[40].mxu0 }
 0x16c   : > { %v769_v52 = vpop.f32.mrb[41].mxu0 }
 0x16d   : > { %878 = vst.msk [vmem:[%s1537_s29 + $0x98] sm:$0xff] %vm858_vm0, %v845_v48  ;;  %v768_v53 = vadd.f32 %v767_v51, %v543_v49 }
 0x16e   : > { %v547_v54 = vpop.f32.mrb[42].mxu1 }
 0x16f   : > { %v846_v55 = vmax.f32 %v768_v53, 0.0  ;;  %v548_v56 = vadd.f32 %v1530_v34, %v547_v54  ;;  %v549_v57 = vpop.f32.mrb[43].mxu1  ;;  %v772_v58 = vpop.f32.mrb[42].mxu0 }
 0x170   : > { %v774_v59 = vpop.f32.mrb[43].mxu0 }
 0x171   : > { %879 = vst.msk [vmem:[%s1537_s29 + $0xa0] sm:$0xff] %vm858_vm0, %v846_v55  ;;  %v773_v60 = vadd.f32 %v772_v58, %v548_v56 }
 0x172   : > { %v552_v61 = vpop.f32.mrb[44].mxu1 }
 0x173   : > { %v847_v62 = vmax.f32 %v773_v60, 0.0  ;;  %v553_v63 = vadd.f32 %v1530_v34, %v552_v61  ;;  %v554_v0 = vpop.f32.mrb[45].mxu1  ;;  %v777_v1 = vpop.f32.mrb[44].mxu0 }
 0x174   : > { %v779_v2 = vpop.f32.mrb[45].mxu0 }
 0x175   : > { %880 = vst.msk [vmem:[%s1537_s29 + $0xa8] sm:$0xff] %vm858_vm0, %v847_v62  ;;  %v778_v4 = vadd.f32 %v777_v1, %v553_v63 }
 0x176   : > { %v557_v5 = vpop.f32.mrb[46].mxu1 }
 0x177   : > { %v848_v6 = vmax.f32 %v778_v4, 0.0  ;;  %v558_v7 = vadd.f32 %v1530_v34, %v557_v5  ;;  %v559_v8 = vpop.f32.mrb[47].mxu1  ;;  %v782_v9 = vpop.f32.mrb[46].mxu0 }
 0x178   : > { %v784_v10 = vpop.f32.mrb[47].mxu0 }
 0x179   : > { %881 = vst.msk [vmem:[%s1537_s29 + $0xb0] sm:$0xff] %vm858_vm0, %v848_v6  ;;  %v783_v11 = vadd.f32 %v782_v9, %v558_v7 }
 0x17a   : > { %v562_v12 = vpop.f32.mrb[48].mxu1 }
 0x17b   : > { %v849_v13 = vmax.f32 %v783_v11, 0.0  ;;  %v563_v14 = vadd.f32 %v1530_v34, %v562_v12  ;;  %v564_v15 = vpop.f32.mrb[49].mxu1  ;;  %v787_v16 = vpop.f32.mrb[48].mxu0 }
 0x17c   : > { %v789_v17 = vpop.f32.mrb[49].mxu0 }
 0x17d   : > { %882 = vst.msk [vmem:[%s1537_s29 + $0xb8] sm:$0xff] %vm858_vm0, %v849_v13  ;;  %v788_v18 = vadd.f32 %v787_v16, %v563_v14 }
 0x17e   : > { %v567_v19 = vpop.f32.mrb[50].mxu1 }
 0x17f   : > { %v850_v20 = vmax.f32 %v788_v18, 0.0  ;;  %v568_v21 = vadd.f32 %v1530_v34, %v567_v19  ;;  %v569_v22 = vpop.f32.mrb[51].mxu1  ;;  %v792_v23 = vpop.f32.mrb[50].mxu0 }
 0x180   : > { %v794_v24 = vpop.f32.mrb[51].mxu0 }
 0x181   : > { %883 = vst.msk [vmem:[%s1537_s29 + $0xc0] sm:$0xff] %vm858_vm0, %v850_v20  ;;  %v793_v25 = vadd.f32 %v792_v23, %v568_v21 }
 0x182   : > { %v572_v26 = vpop.f32.mrb[52].mxu1 }
 0x183   : > { %v851_v27 = vmax.f32 %v793_v25, 0.0  ;;  %v573_v28 = vadd.f32 %v1530_v34, %v572_v26  ;;  %v574_v29 = vpop.f32.mrb[53].mxu1  ;;  %v797_v30 = vpop.f32.mrb[52].mxu0 }
 0x184   : > { %v799_v31 = vpop.f32.mrb[53].mxu0 }
 0x185   : > { %884 = vst.msk [vmem:[%s1537_s29 + $0xc8] sm:$0xff] %vm858_vm0, %v851_v27  ;;  %v798_v32 = vadd.f32 %v797_v30, %v573_v28 }
 0x186   : > { %v577_v33 = vpop.f32.mrb[54].mxu1 }
 0x187   : > { %v852_v35 = vmax.f32 %v798_v32, 0.0  ;;  %v578_v36 = vadd.f32 %v1530_v34, %v577_v33  ;;  %v579_v37 = vpop.f32.mrb[55].mxu1  ;;  %v802_v38 = vpop.f32.mrb[54].mxu0 }
 0x188   : > { %v804_v39 = vpop.f32.mrb[55].mxu0 }
 0x189   : > { %885 = vst.msk [vmem:[%s1537_s29 + $0xd0] sm:$0xff] %vm858_vm0, %v852_v35  ;;  %v803_v40 = vadd.f32 %v802_v38, %v578_v36 }
 0x18a   : > { %v582_v41 = vpop.f32.mrb[56].mxu1 }
 0x18b   : > { %v853_v42 = vmax.f32 %v803_v40, 0.0  ;;  %v583_v3 = vadd.f32 %v1530_v34, %v582_v41  ;;  %v584_v43 = vpop.f32.mrb[57].mxu1  ;;  %v807_v44 = vpop.f32.mrb[56].mxu0 }
 0x18c   : > { %v809_v45 = vpop.f32.mrb[57].mxu0 }
 0x18d   : > { %886 = vst.msk [vmem:[%s1537_s29 + $0xd8] sm:$0xff] %vm858_vm0, %v853_v42  ;;  %v808_v46 = vadd.f32 %v807_v44, %v583_v3 }
 0x18e   : > { %v587_v47 = vpop.f32.mrb[58].mxu1 }
 0x18f   : > { %v854_v48 = vmax.f32 %v808_v46, 0.0  ;;  %v588_v49 = vadd.f32 %v1530_v34, %v587_v47  ;;  %v589_v50 = vpop.f32.mrb[59].mxu1  ;;  %v812_v51 = vpop.f32.mrb[58].mxu0 }
 0x190   : > { %v814_v52 = vpop.f32.mrb[59].mxu0 }
 0x191   : > { %887 = vst.msk [vmem:[%s1537_s29 + $0xe0] sm:$0xff] %vm858_vm0, %v854_v48  ;;  %v813_v53 = vadd.f32 %v812_v51, %v588_v49 }
 0x192   : > { %v592_v54 = vpop.f32.mrb[60].mxu1 }
 0x193   : > { %v855_v55 = vmax.f32 %v813_v53, 0.0  ;;  %v593_v56 = vadd.f32 %v1530_v34, %v592_v54  ;;  %v594_v57 = vpop.f32.mrb[61].mxu1  ;;  %v817_v58 = vpop.f32.mrb[60].mxu0 }
 0x194   : > { %v819_v59 = vpop.f32.mrb[61].mxu0 }
 0x195   : > { %888 = vst.msk [vmem:[%s1537_s29 + $0xe8] sm:$0xff] %vm858_vm0, %v855_v55  ;;  %v818_v60 = vadd.f32 %v817_v58, %v593_v56 }
 0x196   : > { %v597_v61 = vpop.f32.mrb[62].mxu1 }
 0x197   : > { %v856_v62 = vmax.f32 %v818_v60, 0.0  ;;  %v598_v63 = vadd.f32 %v1530_v34, %v597_v61  ;;  %v599_v0 = vpop.f32.mrb[63].mxu1  ;;  %v822_v1 = vpop.f32.mrb[62].mxu0 }
 0x198   : > { %v824_v2 = vpop.f32.mrb[63].mxu0 }
 0x199   : > { %889 = vst.msk [vmem:[%s1537_s29 + $0xf0] sm:$0xff] %vm858_vm0, %v856_v62  ;;  %v823_v4 = vadd.f32 %v822_v1, %v598_v63 }
 0x19b   : > { %v857_v5 = vmax.f32 %v823_v4, 0.0 }
 0x19d   : > { %890 = vst.msk [vmem:[%s1537_s29 + $0xf8] sm:$0xff] %vm858_vm0, %v857_v5 }
 0x19e PF: > { %s13_s12 = sadd.s32 1, %s1136_s12  }
 0x19f   : > { %p10_p4 = scmp.ge.s32.totalorder %s13_s12, 4  }
 0x1a1   :  { %12 = sbr.rel (!%p10_p4) target bundleno = 1 (0x1), region = 62 }

// kernel: atari_net_forward.6
= control target key start
LH: loop header
LB: loop body
LE: loop exit
PB: predicated region body
PF: predicated region fallthrough
CT: control target
= control target key end

     0   :  { %s1279_s12 = smov 0   ;;  %s1829_s0 = inlined_call_operand.vmem [shape: f32[288,576], index: 0, kind: input, shape index: {}]   ;;  %s1830_s1 = inlined_call_operand.vmem [shape: f32[576,64], index: 1, kind: input, shape index: {}]   ;;  %s1831_s2 = inlined_call_operand.vmem [shape: f32[1,64], index: 2, kind: input, shape index: {}]   ;;  %s1832_s3 = inlined_call_operand.vmem [shape: f32[288,64], index: 3, kind: output, shape index: {}]  }
   0x1 LB: > { %s958_s13 = sadd.s32 4294967295, %s1256_s12   ;;  %p962_p0 = scmp.ge.s32.totalorder %s1256_s12, 1  ;;  %s1256_s12 = sphi %s1279_s12, %s13_s12  }
   0x2   : > { %p139_p1 = scmp.lt.s32.totalorder %s1256_s12, 3 }
   0x4   : > { %p140_p2 = pnand %p962_p0, %p139_p1 }
   0x5   : > { %v267_v0 = vld [vmem:[%s1830_s1] sm:$0xff] (!%p140_p2)  ;;  %v268_v1 = vld [vmem:[%s1830_s1 + $0x8] sm:$0xff] (!%p140_p2)  ;;  %v1258_v3 = vmov (!%p140_p2), 0.0|0.0   ;;  %v269_v6 = vld [vmem:[%s1830_s1 + $0x10] sm:$0xff] (!%p140_p2)  ;;  %s164_s30 = smul.u32 (!%p140_p2), 18, %s958_s13  ;;  %vm346_vm0 = vcmask (!%p140_p2), 523264  }
   0x6   : > { %143 = sbr.rel (%p140_p2) target bundleno = 378 (0x17a), region = 32  ;;  %v299_v2 = vld [vmem:[%s1830_s1 + $0x100] sm:$0xff] (!%p140_p2)  ;;  %1055 = vmatprep.subr.bf16.mxu0 (!%p140_p2), %v1258_v3  ;;  %1167 = vmatprep.subr.bf16.mxu1 (!%p140_p2), %v1258_v3  ;;  %v1056_v4 = vpack.c.bf16 (!%p140_p2), %v268_v1, %v267_v0  ;;  %v300_v5 = vld [vmem:[%s1830_s1 + $0x108] sm:$0xff] (!%p140_p2)  ;;  %v270_v7 = vld [vmem:[%s1830_s1 + $0x18] sm:$0xff] (!%p140_p2) }
   0x7   : > { %v1307_v8 = vpack.c.bf16 (!%p140_p2), %v300_v5, %v299_v2  ;;  %v301_v9 = vld [vmem:[%s1830_s1 + $0x110] sm:$0xff] (!%p140_p2)  ;;  %v302_v10 = vld [vmem:[%s1830_s1 + $0x118] sm:$0xff] (!%p140_p2)  ;;  %v1059_v11 = vpack.c.bf16 (!%p140_p2), %v270_v7, %v269_v6  ;;  %v271_v13 = vld [vmem:[%s1830_s1 + $0x20] sm:$0xff] (!%p140_p2)  ;;  %p165_p3 = scmp.lt.s32.totalorder (!%p140_p2), %s164_s30, 35 }
   0x8   : > { %1057 = vmatpush1.bf16.msra.mxu0 (!%p140_p2), %v1056_v4  ;;  %v1317_v12 = vpack.c.bf16 (!%p140_p2), %v302_v10, %v301_v9  ;;  %v272_v14 = vld [vmem:[%s1830_s1 + $0x28] sm:$0xff] (!%p140_p2)  ;;  %v303_v15 = vld [vmem:[%s1830_s1 + $0x120] sm:$0xff] (!%p140_p2)  ;;  %v273_v19 = vld [vmem:[%s1830_s1 + $0x30] sm:$0xff] (!%p140_p2) }
   0x9   : > { %1183 = vmatpush1.bf16.msra.mxu1 (!%p140_p2), %v1307_v8  ;;  %1058 = vmatprep.subr.bf16.mxu0 (!%p140_p2), %v1258_v3  ;;  %v304_v16 = vld [vmem:[%s1830_s1 + $0x128] sm:$0xff] (!%p140_p2)  ;;  %v1062_v17 = vpack.c.bf16 (!%p140_p2), %v272_v14, %v271_v13  ;;  %v274_v20 = vld [vmem:[%s1830_s1 + $0x38] sm:$0xff] (!%p140_p2)  ;;  %v305_v21 = vld [vmem:[%s1830_s1 + $0x130] sm:$0xff] (!%p140_p2) }
   0xa   : > { %1168 = vmatprep.subr.bf16.mxu1 (!%p140_p2), %v1258_v3  ;;  %v1334_v18 = vpack.c.bf16 (!%p140_p2), %v304_v16, %v303_v15  ;;  %v306_v22 = vld [vmem:[%s1830_s1 + $0x138] sm:$0xff] (!%p140_p2)  ;;  %v1065_v23 = vpack.c.bf16 (!%p140_p2), %v274_v20, %v273_v19  ;;  %v275_v25 = vld [vmem:[%s1830_s1 + $0x40] sm:$0xff] (!%p140_p2)  ;;  %v276_v26 = vld [vmem:[%s1830_s1 + $0x48] sm:$0xff] (!%p140_p2) }
   0xb   : > { %v1353_v24 = vpack.c.bf16 (!%p140_p2), %v306_v22, %v305_v21  ;;  %v307_v27 = vld [vmem:[%s1830_s1 + $0x140] sm:$0xff] (!%p140_p2)  ;;  %v308_v28 = vld [vmem:[%s1830_s1 + $0x148] sm:$0xff] (!%p140_p2)  ;;  %v1068_v29 = vpack.c.bf16 (!%p140_p2), %v276_v26, %v275_v25  ;;  %v277_v31 = vld [vmem:[%s1830_s1 + $0x50] sm:$0xff] (!%p140_p2) }
   0xc   : > { %1060 = vmatpush1.bf16.msra.mxu0 (!%p140_p2), %v1059_v11  ;;  %v1371_v30 = vpack.c.bf16 (!%p140_p2), %v308_v28, %v307_v27  ;;  %v278_v32 = vld [vmem:[%s1830_s1 + $0x58] sm:$0xff] (!%p140_p2)  ;;  %v309_v33 = vld [vmem:[%s1830_s1 + $0x150] sm:$0xff] (!%p140_p2)  ;;  %v279_v37 = vld [vmem:[%s1830_s1 + $0x60] sm:$0xff] (!%p140_p2) }
   0xd   : > { %1184 = vmatpush1.bf16.msra.mxu1 %v1317_v12  ;;  %1061 = vmatprep.subr.bf16.mxu0 %v1258_v3  ;;  %s1834_s30 = smov (!%p165_p3, %s164_s30), 35  ;;  %v310_v34 = vld [vmem:[%s1830_s1 + $0x158] sm:$0xff]  ;;  %v1071_v35 = vpack.c.bf16 %v278_v32, %v277_v31  ;;  %v280_v38 = vld [vmem:[%s1830_s1 + $0x68] sm:$0xff]  ;;  %v311_v39 = vld [vmem:[%s1830_s1 + $0x160] sm:$0xff] }
   0xe   : > { %1169 = vmatprep.subr.bf16.mxu1 %v1258_v3  ;;  %s1240_s29 = smul.u32 40, %s1834_s30  ;;  %v1393_v36 = vpack.c.bf16 %v310_v34, %v309_v33  ;;  %v312_v40 = vld [vmem:[%s1830_s1 + $0x168] sm:$0xff]  ;;  %v1074_v43 = vpack.c.bf16 %v280_v38, %v279_v37  ;;  %v281_v45 = vld [vmem:[%s1830_s1 + $0x70] sm:$0xff]  ;;  %v282_v46 = vld [vmem:[%s1830_s1 + $0x78] sm:$0xff] }
   0xf   : > { %v1412_v44 = vpack.c.bf16 %v312_v40, %v311_v39  ;;  %v313_v47 = vld [vmem:[%s1830_s1 + $0x170] sm:$0xff]  ;;  %v314_v48 = vld [vmem:[%s1830_s1 + $0x178] sm:$0xff]  ;;  %v1077_v49 = vpack.c.bf16 %v282_v46, %v281_v45  ;;  %v283_v51 = vld [vmem:[%s1830_s1 + $0x80] sm:$0xff] }
  0x10   : > { %1063 = vmatpush1.bf16.msra.mxu0 %v1062_v17  ;;  %s1389_s15 = scalar_lea.vmem %s1829_s0, %s1240_s29  ;;  %v1429_v50 = vpack.c.bf16 %v314_v48, %v313_v47  ;;  %v284_v52 = vld [vmem:[%s1830_s1 + $0x88] sm:$0xff]  ;;  %v315_v53 = vld [vmem:[%s1830_s1 + $0x180] sm:$0xff]  ;;  %v285_v57 = vld [vmem:[%s1830_s1 + $0x90] sm:$0xff] }
  0x11   : > { %1185 = vmatpush1.bf16.msra.mxu1 %v1334_v18  ;;  %1064 = vmatprep.subr.bf16.mxu0 %v1258_v3  ;;  %v178_v41 = vld [vmem:[%s1389_s15 + $0x8] sm:$0xff]  ;;  %v205_v42 = vld [vmem:[%s1389_s15 + $0xe0] sm:$0xff]  ;;  %v1080_v55 = vpack.c.bf16 %v284_v52, %v283_v51  ;;  %v286_v58 = vld [vmem:[%s1830_s1 + $0x98] sm:$0xff] }
  0x12   : > { %1170 = vmatprep.subr.bf16.mxu1 %v1258_v3  ;;  %465 = vmatprep.mubr.f32.mxu0 %v178_v41  ;;  %v316_v54 = vld [vmem:[%s1830_s1 + $0x188] sm:$0xff]  ;;  %v317_v59 = vld [vmem:[%s1830_s1 + $0x190] sm:$0xff]  ;;  %v318_v60 = vld [vmem:[%s1830_s1 + $0x198] sm:$0xff]  ;;  %v1083_v61 = vpack.c.bf16 %v286_v58, %v285_v57 }
  0x13   : > { %645 = vmatprep.mubr.f32.mxu1 %v205_v42  ;;  %v1446_v56 = vpack.c.bf16 %v316_v54, %v315_v53  ;;  %v1463_v62 = vpack.c.bf16 %v318_v60, %v317_v59  ;;  %v287_v63 = vld [vmem:[%s1830_s1 + $0xa0] sm:$0xff]  ;;  %v288_v0 = vld [vmem:[%s1830_s1 + $0xa8] sm:$0xff]  ;;  %v289_v6 = vld [vmem:[%s1830_s1 + $0xb0] sm:$0xff] }
  0x14   : > { %1066 = vmatpush1.bf16.msra.mxu0 %v1065_v23  ;;  %v319_v1 = vld [vmem:[%s1830_s1 + $0x1a0] sm:$0xff]  ;;  %v320_v2 = vld [vmem:[%s1830_s1 + $0x1a8] sm:$0xff]  ;;  %v1086_v4 = vpack.c.bf16 %v288_v0, %v287_v63  ;;  %v290_v7 = vld [vmem:[%s1830_s1 + $0xb8] sm:$0xff] }
  0x15   : > { %1186 = vmatpush1.bf16.msra.mxu1 %v1353_v24  ;;  %1067 = vmatprep.subr.bf16.mxu0 %v1258_v3  ;;  %v1480_v5 = vpack.c.bf16 %v320_v2, %v319_v1  ;;  %v321_v9 = vld [vmem:[%s1830_s1 + $0x1b0] sm:$0xff]  ;;  %v322_v10 = vld [vmem:[%s1830_s1 + $0x1b8] sm:$0xff]  ;;  %v1089_v11 = vpack.c.bf16 %v290_v7, %v289_v6  ;;  %v291_v14 = vld [vmem:[%s1830_s1 + $0xc0] sm:$0xff] }
  0x16   : > { %1171 = vmatprep.subr.bf16.mxu1 %v1258_v3  ;;  %v1497_v13 = vpack.c.bf16 %v322_v10, %v321_v9  ;;  %v292_v15 = vld [vmem:[%s1830_s1 + $0xc8] sm:$0xff]  ;;  %v323_v16 = vld [vmem:[%s1830_s1 + $0x1c0] sm:$0xff]  ;;  %v293_v21 = vld [vmem:[%s1830_s1 + $0xd0] sm:$0xff] }
  0x17   : > { %v324_v17 = vld [vmem:[%s1830_s1 + $0x1c8] sm:$0xff]  ;;  %v1092_v19 = vpack.c.bf16 %v292_v15, %v291_v14  ;;  %v294_v22 = vld [vmem:[%s1830_s1 + $0xd8] sm:$0xff]  ;;  %v325_v23 = vld [vmem:[%s1830_s1 + $0x1d0] sm:$0xff] }
  0x18   : > { %1069 = vmatpush1.bf16.msra.mxu0 %v1068_v29  ;;  %v1514_v20 = vpack.c.bf16 %v324_v17, %v323_v16  ;;  %v326_v25 = vld [vmem:[%s1830_s1 + $0x1d8] sm:$0xff]  ;;  %v1095_v26 = vpack.c.bf16 %v294_v22, %v293_v21  ;;  %v295_v28 = vld [vmem:[%s1830_s1 + $0xe0] sm:$0xff]  ;;  %v296_v29 = vld [vmem:[%s1830_s1 + $0xe8] sm:$0xff] }
  0x19   : > { %1187 = vmatpush1.bf16.msra.mxu1 %v1371_v30  ;;  %1070 = vmatprep.subr.bf16.mxu0 %v1258_v3  ;;  %v1531_v27 = vpack.c.bf16 %v326_v25, %v325_v23  ;;  %v327_v31 = vld [vmem:[%s1830_s1 + $0x1e0] sm:$0xff]  ;;  %v328_v32 = vld [vmem:[%s1830_s1 + $0x1e8] sm:$0xff]  ;;  %v1098_v33 = vpack.c.bf16 %v296_v29, %v295_v28  ;;  %v298_v37 = vld [vmem:[%s1830_s1 + $0xf8] sm:$0xff] }
  0x1a   : > { %1172 = vmatprep.subr.bf16.mxu1 %v1258_v3  ;;  %v1548_v34 = vpack.c.bf16 %v328_v32, %v327_v31  ;;  %v329_v38 = vld [vmem:[%s1830_s1 + $0x1f0] sm:$0xff]  ;;  %v330_v39 = vld [vmem:[%s1830_s1 + $0x1f8] sm:$0xff]  ;;  %v331_v40 = vld [vmem:[%s1830_s1 + $0x200] sm:$0xff] }
  0x1b   : > { %v332_v41 = vld [vmem:[%s1830_s1 + $0x208] sm:$0xff]  ;;  %v177_v46 = vld [vmem:[%s1389_s15] sm:$0xff]  ;;  %v333_v47 = vld [vmem:[%s1830_s1 + $0x210] sm:$0xff] }
  0x1c   : > { %1072 = vmatpush1.bf16.msra.mxu0 %v1071_v35  ;;  %v297_v35 = vld [vmem:[%s1830_s1 + $0xf0] sm:$0xff]  ;;  %v1151_v45 = vpack.c.bf16 %v332_v41, %v331_v40  ;;  %v334_v48 = vld [vmem:[%s1830_s1 + $0x218] sm:$0xff]  ;;  %v210_v52 = vld [vmem:[%s1389_s15 + $0x108] sm:$0xff] }
  0x1d   : > { %1188 = vmatpush1.bf16.msra.mxu1 %v1393_v36  ;;  %1073 = vmatprep.subr.bf16.mxu0 %v1258_v3  ;;  %v1101_v42 = vpack.c.bf16 %v298_v37, %v297_v35  ;;  %v183_v51 = vld [vmem:[%s1389_s15 + $0x30] sm:$0xff]  ;;  %v1155_v53 = vpack.c.bf16 %v334_v48, %v333_v47  ;;  %v182_v54 = vld [vmem:[%s1389_s15 + $0x28] sm:$0xff]  ;;  %v209_v58 = vld [vmem:[%s1389_s15 + $0x100] sm:$0xff] }
  0x1e   : > { %1173 = vmatprep.subr.bf16.mxu1 %v1258_v3  ;;  %v336_v57 = vld [vmem:[%s1830_s1 + $0x228] sm:$0xff]  ;;  %v215_v59 = vld [vmem:[%s1389_s15 + $0x130] sm:$0xff]  ;;  %v338_v0 = vld [vmem:[%s1830_s1 + $0x238] sm:$0xff] }
  0x1f   : > { %v337_v63 = vld [vmem:[%s1830_s1 + $0x230] sm:$0xff]  ;;  %v214_v1 = vld [vmem:[%s1389_s15 + $0x128] sm:$0xff]  ;;  %v193_v2 = vld [vmem:[%s1389_s15 + $0x80] sm:$0xff] }
  0x20   : > { %1075 = vmatpush1.bf16.msra.mxu0 %v1074_v43  ;;  %v1571_v43 = vpack.c.bf16 %v330_v39, %v329_v38  ;;  %v192_v6 = vld [vmem:[%s1389_s15 + $0x78] sm:$0xff]  ;;  %v219_v7 = vld [vmem:[%s1389_s15 + $0x150] sm:$0xff]  ;;  %v198_v9 = vld [vmem:[%s1389_s15 + $0xa8] sm:$0xff] }
  0x21   : > { %1189 = vmatpush1.bf16.msra.mxu1 %v1412_v44  ;;  %1076 = vmatprep.subr.bf16.mxu0 %v1258_v3  ;;  %v225_v10 = vld [vmem:[%s1389_s15 + $0x180] sm:$0xff]  ;;  %v203_v14 = vld [vmem:[%s1389_s15 + $0xd0] sm:$0xff]  ;;  %v230_v15 = vld [vmem:[%s1389_s15 + $0x1a8] sm:$0xff] }
  0x22   : > { %1174 = vmatprep.subr.bf16.mxu1 %v1258_v3  ;;  %v202_v16 = vld [vmem:[%s1389_s15 + $0xc8] sm:$0xff]  ;;  %v208_v17 = vld [vmem:[%s1389_s15 + $0xf8] sm:$0xff]  ;;  %v207_v21 = vld [vmem:[%s1389_s15 + $0xf0] sm:$0xff] }
  0x23   : > { %v234_v22 = vld [vmem:[%s1389_s15 + $0x1c8] sm:$0xff]  ;;  %v213_v23 = vld [vmem:[%s1389_s15 + $0x120] sm:$0xff]  ;;  %v212_v25 = vld [vmem:[%s1389_s15 + $0x118] sm:$0xff] }
  0x24   : > { %1078 = vmatpush1.bf16.msra.mxu0 %v1077_v49  ;;  %v204_v49 = vld [vmem:[%s1389_s15 + $0xd8] sm:$0xff]  ;;  %v218_v28 = vld [vmem:[%s1389_s15 + $0x148] sm:$0xff]  ;;  %v217_v29 = vld [vmem:[%s1389_s15 + $0x140] sm:$0xff] }
  0x25   : > { %1190 = vmatpush1.bf16.msra.mxu1 %v1429_v50  ;;  %1079 = vmatprep.subr.bf16.mxu0 %v1258_v3  ;;  %v244_v31 = vld [vmem:[%s1389_s15 + $0x218] sm:$0xff]  ;;  %v223_v32 = vld [vmem:[%s1389_s15 + $0x170] sm:$0xff]  ;;  %v249_v35 = vld [vmem:[%s1389_s15 + $0x240] sm:$0xff] }
  0x26   : > { %1175 = vmatprep.subr.bf16.mxu1 %v1258_v3  ;;  %v228_v37 = vld [vmem:[%s1389_s15 + $0x198] sm:$0xff]  ;;  %v255_v38 = vld [vmem:[%s1389_s15 + $0x270] sm:$0xff]  ;;  %v254_v39 = vld [vmem:[%s1389_s15 + $0x268] sm:$0xff] }
  0x27   : > { %v233_v40 = vld [vmem:[%s1389_s15 + $0x1c0] sm:$0xff]  ;;  %v260_v41 = vld [vmem:[%s1389_s15 + $0x298] sm:$0xff]  ;;  %v243_v48 = vld [vmem:[%s1389_s15 + $0x210] sm:$0xff] }
  0x28   : > { %1081 = vmatpush1.bf16.msra.mxu0 %v1080_v55  ;;  %v335_v55 = vld [vmem:[%s1830_s1 + $0x220] sm:$0xff]  ;;  %v264_v47 = vld [vmem:[%s1389_s15 + $0x2b8] sm:$0xff] }
  0x29   : > { %1191 = vmatpush1.bf16.msra.mxu1 %v1446_v56  ;;  %1082 = vmatprep.subr.bf16.mxu0 %v1258_v3  ;;  %v1159_v60 = vpack.c.bf16 %v336_v57, %v335_v55  ;;  %v253_v55 = vld [vmem:[%s1389_s15 + $0x260] sm:$0xff]  ;;  %v252_v57 = vld [vmem:[%s1389_s15 + $0x258] sm:$0xff] }
  0x2a   : > { %1176 = vmatprep.subr.bf16.mxu1 %v1258_v3 }
  0x2c   : > { %1084 = vmatpush1.bf16.msra.mxu0 %v1083_v61  ;;  %v187_v61 = vld [vmem:[%s1389_s15 + $0x50] sm:$0xff] }
  0x2d   : > { %1192 = vmatpush1.bf16.msra.mxu1 %v1463_v62  ;;  %1085 = vmatprep.subr.bf16.mxu0 %v1258_v3 }
  0x2e   : > { %1177 = vmatprep.subr.bf16.mxu1 %v1258_v3 }
  0x30   : > { %1087 = vmatpush1.bf16.msra.mxu0 %v1086_v4  ;;  %v1163_v4 = vpack.c.bf16 %v338_v0, %v337_v63  ;;  %v226_v63 = vld [vmem:[%s1389_s15 + $0x188] sm:$0xff]  ;;  %v180_v0 = vld [vmem:[%s1389_s15 + $0x18] sm:$0xff] }
  0x31   : > { %1193 = vmatpush1.bf16.msra.mxu1 %v1480_v5  ;;  %1088 = vmatprep.subr.bf16.mxu0 %v1258_v3 }
  0x32   : > { %1178 = vmatprep.subr.bf16.mxu1 %v1258_v3 }
  0x34   : > { %1090 = vmatpush1.bf16.msra.mxu0 %v1089_v11  ;;  %v224_v11 = vld [vmem:[%s1389_s15 + $0x178] sm:$0xff] }
  0x35   : > { %1194 = vmatpush1.bf16.msra.mxu1 %v1497_v13  ;;  %1091 = vmatprep.subr.bf16.mxu0 %v1258_v3 }
  0x36   : > { %1179 = vmatprep.subr.bf16.mxu1 %v1258_v3 }
  0x38   : > { %1093 = vmatpush1.bf16.msra.mxu0 %v1092_v19  ;;  %v235_v19 = vld [vmem:[%s1389_s15 + $0x1d0] sm:$0xff] }
  0x39   : > { %1195 = vmatpush1.bf16.msra.mxu1 %v1514_v20  ;;  %1094 = vmatprep.subr.bf16.mxu0 %v1258_v3 }
  0x3a   : > { %1180 = vmatprep.subr.bf16.mxu1 %v1258_v3 }
  0x3c   : > { %1096 = vmatpush1.bf16.msra.mxu0 %v1095_v26  ;;  %v239_v26 = vld [vmem:[%s1389_s15 + $0x1f0] sm:$0xff] }
  0x3d   : > { %1196 = vmatpush1.bf16.msra.mxu1 %v1531_v27  ;;  %1097 = vmatprep.subr.bf16.mxu0 %v1258_v3 }
  0x3e   : > { %1181 = vmatprep.subr.bf16.mxu1 %v1258_v3 }
  0x40   : > { %1099 = vmatpush1.bf16.msra.mxu0 %v1098_v33  ;;  %v222_v33 = vld [vmem:[%s1389_s15 + $0x168] sm:$0xff] }
  0x41   : > { %1197 = vmatpush1.bf16.msra.mxu1 %v1548_v34  ;;  %1100 = vmatprep.subr.bf16.mxu0 %v1258_v3 }
  0x42   : > { %1182 = vmatprep.subr.bf16.mxu1 %v1258_v3 }
  0x44   : > { %1102 = vmatpush1.bf16.msra.mxu0 %v1101_v42  ;;  %v259_v42 = vld [vmem:[%s1389_s15 + $0x290] sm:$0xff] }
  0x45   : > { %1198 = vmatpush1.bf16.msra.mxu1 %v1571_v43  ;;  %1103 = vmatprep.subr.bf16.mxu0 %v1258_v3 }
  0x46   : > { %1152 = vmatprep.subr.bf16.mxu1 %v1151_v45 }
  0x47   : > { %466 = vmatmul.mubr.f32.vlgmr.msra.gmra.mrb[0].mxu0 %v177_v46  ;;  %v265_v46 = vld [vmem:[%s1389_s15 + $0x2c0] sm:$0xff] }
  0x48   : > { %646 = vmatmul.mubr.f32.vlgmr.msra.gmra.mrb[0].mxu1 %v204_v49  ;;  %1105 = vmatpush1.bf16.msra.mxu0 %v1307_v8  ;;  %v188_v8 = vld [vmem:[%s1389_s15 + $0x58] sm:$0xff]  ;;  %v181_v49 = vld [vmem:[%s1389_s15 + $0x20] sm:$0xff] }
  0x49   : > { %470 = vmatprep.mubr.f32.mxu0 %v183_v51  ;;  %650 = vmatprep.mubr.f32.mxu1 %v210_v52  ;;  %v186_v51 = vld [vmem:[%s1389_s15 + $0x48] sm:$0xff]  ;;  %v248_v52 = vld [vmem:[%s1389_s15 + $0x238] sm:$0xff] }
  0x4a   : > { %1106 = vmatprep.subr.bf16.mxu0 %v1258_v3  ;;  %1154 = vmatpush3.bf16.msra.mxu1 %v1151_v45  ;;  %v238_v45 = vld [vmem:[%s1389_s15 + $0x1e8] sm:$0xff] }
  0x4b   : > { %471 = vmatmul.mubr.f32.gmra.mrb[2].mxu0 %v182_v54  ;;  %1156 = vmatprep.subr.bf16.mxu1 %v1155_v53  ;;  %v196_v54 = vld [vmem:[%s1389_s15 + $0x98] sm:$0xff] }
  0x4c   : > { %651 = vmatmul.mubr.f32.gmra.mrb[2].mxu1 %v209_v58  ;;  %1108 = vmatpush1.bf16.msra.mxu0 %v1317_v12  ;;  %v220_v12 = vld [vmem:[%s1389_s15 + $0x158] sm:$0xff]  ;;  %v206_v58 = vld [vmem:[%s1389_s15 + $0xe8] sm:$0xff] }
  0x4d   : > { %475 = vmatprep.mubr.f32.mxu0 %v188_v8  ;;  %655 = vmatprep.mubr.f32.mxu1 %v215_v59  ;;  %v258_v8 = vld [vmem:[%s1389_s15 + $0x288] sm:$0xff]  ;;  %v257_v59 = vld [vmem:[%s1389_s15 + $0x280] sm:$0xff] }
  0x4e   : > { %1109 = vmatprep.subr.bf16.mxu0 %v1258_v3  ;;  %1158 = vmatpush3.bf16.msra.mxu1 %v1155_v53  ;;  %v247_v53 = vld [vmem:[%s1389_s15 + $0x230] sm:$0xff] }
  0x4f   : > { %476 = vmatmul.mubr.f32.gmra.mrb[4].mxu0 %v187_v61  ;;  %1160 = vmatprep.subr.bf16.mxu1 %v1159_v60  ;;  %v263_v61 = vld [vmem:[%s1389_s15 + $0x2b0] sm:$0xff] }
  0x50   : > { %656 = vmatmul.mubr.f32.gmra.mrb[4].mxu1 %v214_v1  ;;  %1111 = vmatpush1.bf16.msra.mxu0 %v1334_v18  ;;  %v197_v18 = vld [vmem:[%s1389_s15 + $0xa0] sm:$0xff]  ;;  %v231_v1 = vld [vmem:[%s1389_s15 + $0x1b0] sm:$0xff] }
  0x51   : > { %480 = vmatprep.mubr.f32.mxu0 %v193_v2  ;;  %660 = vmatprep.mubr.f32.mxu1 %v220_v12  ;;  %v236_v2 = vld [vmem:[%s1389_s15 + $0x1d8] sm:$0xff]  ;;  %v185_v12 = vld [vmem:[%s1389_s15 + $0x40] sm:$0xff] }
  0x52   : > { %1112 = vmatprep.subr.bf16.mxu0 %v1258_v3  ;;  %1162 = vmatpush3.bf16.msra.mxu1 %v1159_v60  ;;  %v216_v60 = vld [vmem:[%s1389_s15 + $0x138] sm:$0xff] }
  0x53   : > { %481 = vmatmul.mubr.f32.gmra.mrb[6].mxu0 %v192_v6  ;;  %1164 = vmatprep.subr.bf16.mxu1 %v1163_v4  ;;  %v184_v6 = vld [vmem:[%s1389_s15 + $0x38] sm:$0xff] }
  0x54   : > { %661 = vmatmul.mubr.f32.gmra.mrb[6].mxu1 %v219_v7  ;;  %485 = vmatprep.mubr.f32.mxu0 %v198_v9  ;;  %v246_v7 = vld [vmem:[%s1389_s15 + $0x228] sm:$0xff] }
  0x55   : > { %1114 = vmatpush1.bf16.msra.mxu0 %v1353_v24  ;;  %665 = vmatprep.mubr.f32.mxu1 %v225_v10  ;;  %v229_v24 = vld [vmem:[%s1389_s15 + $0x1a0] sm:$0xff]  ;;  %v190_v9 = vld [vmem:[%s1389_s15 + $0x68] sm:$0xff]  ;;  %v251_v10 = vld [vmem:[%s1389_s15 + $0x250] sm:$0xff] }
  0x56   : > { %1115 = vmatprep.subr.bf16.mxu0 %v1258_v3  ;;  %1166 = vmatpush3.bf16.msra.mxu1 %v1163_v4  ;;  %v241_v4 = vld [vmem:[%s1389_s15 + $0x200] sm:$0xff] }
  0x57   : > { %486 = vmatmul.mubr.f32.gmra.mrb[8].mxu0 %v197_v18  ;;  %v189_v18 = vld [vmem:[%s1389_s15 + $0x60] sm:$0xff] }
  0x58   : > { %666 = vmatmul.mubr.f32.gmra.mrb[8].mxu1 %v224_v11  ;;  %490 = vmatprep.mubr.f32.mxu0 %v203_v14  ;;  %v256_v11 = vld [vmem:[%s1389_s15 + $0x278] sm:$0xff]  ;;  %v195_v14 = vld [vmem:[%s1389_s15 + $0x90] sm:$0xff] }
  0x59   : > { %1117 = vmatpush1.bf16.msra.mxu0 %v1371_v30  ;;  %670 = vmatprep.mubr.f32.mxu1 %v230_v15  ;;  %v240_v30 = vld [vmem:[%s1389_s15 + $0x1f8] sm:$0xff]  ;;  %v261_v15 = vld [vmem:[%s1389_s15 + $0x2a0] sm:$0xff] }
  0x5a   : > { %1118 = vmatprep.subr.bf16.mxu0 %v1258_v3 }
  0x5b   : > { %491 = vmatmul.mubr.f32.gmra.mrb[10].mxu0 %v202_v16  ;;  %v194_v16 = vld [vmem:[%s1389_s15 + $0x88] sm:$0xff] }
  0x5c   : > { %671 = vmatmul.mubr.f32.gmra.mrb[10].mxu1 %v229_v24  ;;  %495 = vmatprep.mubr.f32.mxu0 %v208_v17  ;;  %v266_v24 = vld [vmem:[%s1389_s15 + $0x2c8] sm:$0xff]  ;;  %v200_v17 = vld [vmem:[%s1389_s15 + $0xb8] sm:$0xff] }
  0x5d   : > { %675 = vmatprep.mubr.f32.mxu1 %v235_v19  ;;  %1120 = vmatpush1.bf16.msra.mxu0 %v1393_v36  ;;  %v245_v36 = vld [vmem:[%s1389_s15 + $0x220] sm:$0xff]  ;;  %v199_v19 = vld [vmem:[%s1389_s15 + $0xb0] sm:$0xff] }
  0x5e   : > { %1121 = vmatprep.subr.bf16.mxu0 %v1258_v3 }
  0x5f   : > { %496 = vmatmul.mubr.f32.gmra.mrb[12].mxu0 %v207_v21 }
  0x60   : > { %676 = vmatmul.mubr.f32.gmra.mrb[12].mxu1 %v234_v22  ;;  %500 = vmatprep.mubr.f32.mxu0 %v213_v23 }
  0x61   : > { %680 = vmatprep.mubr.f32.mxu1 %v240_v30  ;;  %1123 = vmatpush1.bf16.msra.mxu0 %v1412_v44  ;;  %v250_v44 = vld [vmem:[%s1389_s15 + $0x248] sm:$0xff] }
  0x62   : > { %1124 = vmatprep.subr.bf16.mxu0 %v1258_v3 }
  0x63   : > { %501 = vmatmul.mubr.f32.gmra.mrb[14].mxu0 %v212_v25 }
  0x64   : > { %681 = vmatmul.mubr.f32.gmra.mrb[14].mxu1 %v239_v26  ;;  %505 = vmatprep.mubr.f32.mxu0 %v218_v28 }
  0x65   : > { %685 = vmatprep.mubr.f32.mxu1 %v245_v36  ;;  %1126 = vmatpush1.bf16.msra.mxu0 %v1429_v50  ;;  %v227_v50 = vld [vmem:[%s1389_s15 + $0x190] sm:$0xff] }
  0x66   : > { %1127 = vmatprep.subr.bf16.mxu0 %v1258_v3 }
  0x67   : > { %506 = vmatmul.mubr.f32.gmra.mrb[16].mxu0 %v217_v29 }
  0x68   : > { %686 = vmatmul.mubr.f32.gmra.mrb[16].mxu1 %v244_v31  ;;  %510 = vmatprep.mubr.f32.mxu0 %v223_v32  ;;  %v1734_v31 = vld [vmem:[%s1831_s2] ss:$0 sm:$0xff] }
  0x69   : > { %690 = vmatprep.mubr.f32.mxu1 %v250_v44  ;;  %1129 = vmatpush1.bf16.msra.mxu0 %v1446_v56  ;;  %v232_v56 = vld [vmem:[%s1389_s15 + $0x1b8] sm:$0xff] }
  0x6a   : > { %1130 = vmatprep.subr.bf16.mxu0 %v1258_v3 }
  0x6b   : > { %511 = vmatmul.mubr.f32.gmra.mrb[18].mxu0 %v222_v33 }
  0x6c   : > { %691 = vmatmul.mubr.f32.gmra.mrb[18].mxu1 %v249_v35  ;;  %515 = vmatprep.mubr.f32.mxu0 %v228_v37 }
  0x6d   : > { %695 = vmatprep.mubr.f32.mxu1 %v255_v38  ;;  %1132 = vmatpush1.bf16.msra.mxu0 %v1463_v62  ;;  %v237_v62 = vld [vmem:[%s1389_s15 + $0x1e0] sm:$0xff] }
  0x6e   : > { %1133 = vmatprep.subr.bf16.mxu0 %v1258_v3 }
  0x6f   : > { %516 = vmatmul.mubr.f32.gmra.mrb[20].mxu0 %v227_v50 }
  0x70   : > { %696 = vmatmul.mubr.f32.gmra.mrb[20].mxu1 %v254_v39  ;;  %520 = vmatprep.mubr.f32.mxu0 %v233_v40 }
  0x71   : > { %700 = vmatprep.mubr.f32.mxu1 %v260_v41  ;;  %1135 = vmatpush1.bf16.msra.mxu0 %v1480_v5  ;;  %v242_v5 = vld [vmem:[%s1389_s15 + $0x208] sm:$0xff] }
  0x72   : > { %1136 = vmatprep.subr.bf16.mxu0 %v1258_v3 }
  0x73   : > { %521 = vmatmul.mubr.f32.gmra.mrb[22].mxu0 %v232_v56 }
  0x74   : > { %701 = vmatmul.mubr.f32.gmra.mrb[22].mxu1 %v259_v42  ;;  %525 = vmatprep.mubr.f32.mxu0 %v238_v45 }
  0x75   : > { %705 = vmatprep.mubr.f32.mxu1 %v265_v46  ;;  %1138 = vmatpush1.bf16.msra.mxu0 %v1497_v13  ;;  %v191_v13 = vld [vmem:[%s1389_s15 + $0x70] sm:$0xff] }
  0x76   : > { %1139 = vmatprep.subr.bf16.mxu0 %v1258_v3 }
  0x77   : > { %526 = vmatmul.mubr.f32.gmra.mrb[24].mxu0 %v237_v62 }
  0x78   : > { %706 = vmatmul.mubr.f32.gmra.mrb[24].mxu1 %v264_v47  ;;  %530 = vmatprep.mubr.f32.mxu0 %v243_v48 }
  0x79   : > { %1028 = vmatprep.mubr.msk.f32.mxu1 %vm346_vm0, %v181_v49  ;;  %1141 = vmatpush1.bf16.msra.mxu0 %v1514_v20  ;;  %v201_v20 = vld [vmem:[%s1389_s15 + $0xc0] sm:$0xff] }
  0x7a   : > { %1142 = vmatprep.subr.bf16.mxu0 %v1258_v3 }
  0x7b   : > { %531 = vmatmul.mubr.f32.gmra.mrb[26].mxu0 %v242_v5 }
  0x7c   : > { %1029 = vmatmul.mubr.msk.f32.vlgmr.msra.gmra.mrb[26].mxu1 %vm346_vm0, %v186_v51  ;;  %535 = vmatprep.mubr.f32.mxu0 %v248_v52 }
  0x7d   : > { %1031 = vmatprep.mubr.msk.f32.mxu1 %vm346_vm0, %v191_v13  ;;  %1144 = vmatpush1.bf16.msra.mxu0 %v1531_v27  ;;  %v211_v27 = vld [vmem:[%s1389_s15 + $0x110] sm:$0xff] }
  0x7e   : > { %1145 = vmatprep.subr.bf16.mxu0 %v1258_v3 }
  0x7f   : > { %536 = vmatmul.mubr.f32.gmra.mrb[28].mxu0 %v247_v53 }
  0x80   : > { %1032 = vmatmul.mubr.msk.f32.gmra.mrb[28].mxu1 %vm346_vm0, %v196_v54  ;;  %540 = vmatprep.mubr.f32.mxu0 %v253_v55 }
  0x81   : > { %1034 = vmatprep.mubr.msk.f32.mxu1 %vm346_vm0, %v201_v20  ;;  %1147 = vmatpush1.bf16.msra.mxu0 %v1548_v34  ;;  %v221_v34 = vld [vmem:[%s1389_s15 + $0x160] sm:$0xff] }
  0x82   : > { %1148 = vmatprep.subr.bf16.mxu0 %v1258_v3  ;;  %v262_v3 = vld [vmem:[%s1389_s15 + $0x2a8] sm:$0xff] }
  0x83   : > { %541 = vmatmul.mubr.f32.gmra.mrb[30].mxu0 %v252_v57 }
  0x84   : > { %1035 = vmatmul.mubr.msk.f32.gmra.mrb[30].mxu1 %vm346_vm0, %v206_v58  ;;  %545 = vmatprep.mubr.f32.mxu0 %v258_v8 }
  0x85   : > { %1037 = vmatprep.mubr.msk.f32.mxu1 %vm346_vm0, %v211_v27  ;;  %1150 = vmatpush1.bf16.msra.mxu0 %v1571_v43  ;;  %v179_v43 = vld [vmem:[%s1389_s15 + $0x10] sm:$0xff]  ;;  %s964_s15 = sshll.u32 %s1834_s30, 3 }
  0x86   : > { %s1769_s20 = scalar_lea.vmem %s1832_s3, %s964_s15 }
  0x87   : > { %546 = vmatmul.mubr.f32.gmra.mrb[32].mxu0 %v257_v59 }
  0x88   : > { %1038 = vmatmul.mubr.msk.f32.gmra.mrb[32].mxu1 %vm346_vm0, %v216_v60  ;;  %550 = vmatprep.mubr.f32.mxu0 %v263_v61 }
  0x89   : > { %1040 = vmatprep.mubr.msk.f32.mxu1 %vm346_vm0, %v221_v34 }
  0x8b   : > { %551 = vmatmul.mubr.f32.gmra.mrb[34].mxu0 %v262_v3 }
  0x8c   : > { %1041 = vmatmul.mubr.msk.f32.gmra.mrb[34].mxu1 %vm346_vm0, %v226_v63  ;;  %620 = vmatprep.mubr.f32.mxu0 %v180_v0 }
  0x8d   : > { %1043 = vmatprep.mubr.msk.f32.mxu1 %vm346_vm0, %v231_v1 }
  0x8f   : > { %621 = vmatmul.mubr.f32.vlgmr.msra.gmra.mrb[0].mxu0 %v179_v43 }
  0x90   : > { %1044 = vmatmul.mubr.msk.f32.gmra.mrb[36].mxu1 %vm346_vm0, %v236_v2  ;;  %625 = vmatprep.mubr.f32.mxu0 %v185_v12 }
  0x91   : > { %1046 = vmatprep.mubr.msk.f32.mxu1 %vm346_vm0, %v241_v4 }
  0x93   : > { %626 = vmatmul.mubr.f32.gmra.mrb[2].mxu0 %v184_v6 }
  0x94   : > { %1047 = vmatmul.mubr.msk.f32.gmra.mrb[38].mxu1 %vm346_vm0, %v246_v7  ;;  %630 = vmatprep.mubr.f32.mxu0 %v190_v9 }
  0x95   : > { %1049 = vmatprep.mubr.msk.f32.mxu1 %vm346_vm0, %v251_v10 }
  0x97   : > { %631 = vmatmul.mubr.f32.gmra.mrb[4].mxu0 %v189_v18 }
  0x98   : > { %1050 = vmatmul.mubr.msk.f32.gmra.mrb[40].mxu1 %vm346_vm0, %v256_v11  ;;  %635 = vmatprep.mubr.f32.mxu0 %v195_v14 }
  0x99   : > { %1052 = vmatprep.mubr.msk.f32.mxu1 %vm346_vm0, %v261_v15 }
  0x9b   : > { %636 = vmatmul.mubr.f32.gmra.mrb[6].mxu0 %v194_v16 }
  0x9c   : > { %1053 = vmatmul.mubr.msk.f32.gmra.mrb[42].mxu1 %vm346_vm0, %v266_v24  ;;  %640 = vmatprep.mubr.f32.mxu0 %v200_v17 }
  0x9f   : > { %641 = vmatmul.mubr.f32.gmra.mrb[8].mxu0 %v199_v19 }
 0x11b   : > { %v647_v21 = vpop.f32.mrb[0].mxu1 }
 0x11c   : > { %v649_v22 = vpop.f32.mrb[1].mxu1 }
 0x11f   : > { %v652_v23 = vpop.f32.mrb[2].mxu1 }
 0x120   : > { %v654_v30 = vpop.f32.mrb[3].mxu1 }
 0x123   : > { %v657_v25 = vpop.f32.mrb[4].mxu1 }
 0x124   : > { %v659_v26 = vpop.f32.mrb[5].mxu1 }
 0x127   : > { %v662_v28 = vpop.f32.mrb[6].mxu1 }
 0x128   : > { %v664_v36 = vpop.f32.mrb[7].mxu1 }
 0x12b   : > { %v667_v29 = vpop.f32.mrb[8].mxu1 }
 0x12c   : > { %v669_v32 = vpop.f32.mrb[9].mxu1 }
 0x12e   : > { %v492_v44 = vpop.f32.mrb[10].mxu0 }
 0x12f   : > { %v493_v33 = vadd.f32 %v1734_v31, %v492_v44  ;;  %v494_v35 = vpop.f32.mrb[11].mxu0  ;;  %v672_v37 = vpop.f32.mrb[10].mxu1 }
 0x130   : > { %v674_v38 = vpop.f32.mrb[11].mxu1 }
 0x131   : > { %v648_v50 = vadd.f32 %v647_v21, %v493_v33 }
 0x132   : > { %v497_v39 = vpop.f32.mrb[12].mxu0 }
 0x133   : > { %v498_v40 = vadd.f32 %v1734_v31, %v497_v39  ;;  %v499_v41 = vpop.f32.mrb[13].mxu0  ;;  %v677_v56 = vpop.f32.mrb[12].mxu1 }
 0x134   : > { %v679_v42 = vpop.f32.mrb[13].mxu1 }
 0x135   : > { %v1738_v45 = vadd.f32 %v652_v23, %v498_v40 }
 0x136   : > { %v502_v46 = vpop.f32.mrb[14].mxu0 }
 0x137   : > { %v503_v62 = vadd.f32 %v1734_v31, %v502_v46  ;;  %v504_v47 = vpop.f32.mrb[15].mxu0  ;;  %v682_v48 = vpop.f32.mrb[14].mxu1 }
 0x138   : > { %v684_v49 = vpop.f32.mrb[15].mxu1 }
 0x139   : > { %v658_v5 = vadd.f32 %v657_v25, %v503_v62 }
 0x13a   : > { %v507_v51 = vpop.f32.mrb[16].mxu0 }
 0x13b   : > { %v508_v52 = vadd.f32 %v1734_v31, %v507_v51  ;;  %v509_v13 = vpop.f32.mrb[17].mxu0  ;;  %v687_v53 = vpop.f32.mrb[16].mxu1 }
 0x13c   : > { %v689_v54 = vpop.f32.mrb[17].mxu1 }
 0x13d   : > { %v1742_v55 = vadd.f32 %v662_v28, %v508_v52 }
 0x13e   : > { %v512_v20 = vpop.f32.mrb[18].mxu0 }
 0x13f   : > { %v513_v57 = vadd.f32 %v1734_v31, %v512_v20  ;;  %v514_v58 = vpop.f32.mrb[19].mxu0  ;;  %v692_v8 = vpop.f32.mrb[18].mxu1 }
 0x140   : > { %v694_v27 = vpop.f32.mrb[19].mxu1 }
 0x141   : > { %v668_v59 = vadd.f32 %v667_v29, %v513_v57 }
 0x142   : > { %v517_v60 = vpop.f32.mrb[20].mxu0 }
 0x143   : > { %v518_v61 = vadd.f32 %v1734_v31, %v517_v60  ;;  %v519_v34 = vpop.f32.mrb[21].mxu0  ;;  %v697_v3 = vpop.f32.mrb[20].mxu1 }
 0x144   : > { %v699_v63 = vpop.f32.mrb[21].mxu1 }
 0x145   : > { %v1746_v0 = vadd.f32 %v672_v37, %v518_v61 }
 0x146   : > { %v522_v1 = vpop.f32.mrb[22].mxu0 }
 0x147   : > { %v523_v43 = vadd.f32 %v1734_v31, %v522_v1  ;;  %v524_v2 = vpop.f32.mrb[23].mxu0  ;;  %v702_v12 = vpop.f32.mrb[22].mxu1 }
 0x148   : > { %v704_v4 = vpop.f32.mrb[23].mxu1 }
 0x149   : > { %v678_v6 = vadd.f32 %v677_v56, %v523_v43 }
 0x14a   : > { %v527_v7 = vpop.f32.mrb[24].mxu0 }
 0x14b   : > { %v528_v9 = vadd.f32 %v1734_v31, %v527_v7  ;;  %v529_v10 = vpop.f32.mrb[25].mxu0  ;;  %v707_v18 = vpop.f32.mrb[24].mxu1 }
 0x14c   : > { %v709_v11 = vpop.f32.mrb[25].mxu1 }
 0x14d   : > { %v1750_v14 = vadd.f32 %v682_v48, %v528_v9 }
 0x14e   : > { %v532_v15 = vpop.f32.mrb[26].mxu0 }
 0x14f   : > { %v533_v16 = vadd.f32 %v1734_v31, %v532_v15  ;;  %v534_v24 = vpop.f32.mrb[27].mxu0  ;;  %v1753_v17 = vpop.f32.mrb[26].mxu1 }
 0x150   : > { %v777_v19 = vpop.f32.mrb[27].mxu1 }
 0x151   : > { %v688_v21 = vadd.f32 %v687_v53, %v533_v16 }
 0x152   : > { %v537_v22 = vpop.f32.mrb[28].mxu0 }
 0x153   : > { %v538_v23 = vadd.f32 %v1734_v31, %v537_v22  ;;  %v539_v30 = vpop.f32.mrb[29].mxu0  ;;  %v1756_v25 = vpop.f32.mrb[28].mxu1 }
 0x154   : > { %v1758_v26 = vpop.f32.mrb[29].mxu1 }
 0x155   : > { %v1760_v28 = vadd.f32 %v692_v8, %v538_v23 }
 0x156   : > { %v542_v36 = vpop.f32.mrb[30].mxu0 }
 0x157   : > { %v543_v29 = vadd.f32 %v1734_v31, %v542_v36  ;;  %v1036_v32 = vpop.f32.mrb[30].mxu1  ;;  %v544_v44 = vpop.f32.mrb[31].mxu0 }
 0x158   : > { %v803_v33 = vadd.f32 %v1036_v32, %v648_v50  ;;  %v1764_v35 = vpop.f32.mrb[31].mxu1 }
 0x159   : > { %v698_v37 = vadd.f32 %v697_v3, %v543_v29 }
 0x15a   : > { %v871_v38 = vmax.f32 %v803_v33, 0.0  ;;  %v547_v39 = vpop.f32.mrb[32].mxu0 }
 0x15b   : > { %v548_v40 = vadd.f32 %v1734_v31, %v547_v39  ;;  %v1039_v41 = vpop.f32.mrb[32].mxu1  ;;  %v549_v56 = vpop.f32.mrb[33].mxu0 }
 0x15c   : > { %889 = vst.msk [vmem:[%s1769_s20 + $0x28] sm:$0xff] %vm346_vm0, %v871_v38  ;;  %v813_v50 = vadd.f32 %v1039_v41, %v658_v5  ;;  %v807_v42 = vpop.f32.mrb[33].mxu1 }
 0x15d   : > { %v808_v46 = vadd.f32 %v807_v42, %v1738_v45  ;;  %v1775_v62 = vadd.f32 %v702_v12, %v548_v40 }
 0x15e   : > { %v873_v47 = vmax.f32 %v813_v50, 0.0  ;;  %v552_v48 = vpop.f32.mrb[34].mxu0 }
 0x15f   : > { %v872_v49 = vmax.f32 %v808_v46, 0.0  ;;  %v553_v51 = vadd.f32 %v1734_v31, %v552_v48  ;;  %v1042_v52 = vpop.f32.mrb[34].mxu1  ;;  %v554_v13 = vpop.f32.mrb[35].mxu0 }
 0x160   : > { %891 = vst.msk [vmem:[%s1769_s20 + $0x38] sm:$0xff] %vm346_vm0, %v873_v47  ;;  %v823_v53 = vadd.f32 %v1042_v52, %v668_v59  ;;  %v817_v54 = vpop.f32.mrb[35].mxu1 }
 0x161   : > { %890 = vst.msk [vmem:[%s1769_s20 + $0x30] sm:$0xff] %vm346_vm0, %v872_v49  ;;  %v818_v5 = vadd.f32 %v817_v54, %v1742_v55  ;;  %v708_v45 = vadd.f32 %v707_v18, %v553_v51 }
 0x162   : > { %v875_v20 = vmax.f32 %v823_v53, 0.0  ;;  %v622_v57 = vpop.f32.mrb[0].mxu0 }
 0x163   : > { %v874_v58 = vmax.f32 %v818_v5, 0.0  ;;  %v1199_v8 = vadd.f32 %v1734_v31, %v622_v57  ;;  %v1045_v27 = vpop.f32.mrb[36].mxu1  ;;  %v624_v60 = vpop.f32.mrb[1].mxu0 }
 0x164   : > { %893 = vst.msk [vmem:[%s1769_s20 + $0x48] sm:$0xff] %vm346_vm0, %v875_v20  ;;  %v833_v61 = vadd.f32 %v1045_v27, %v678_v6  ;;  %v827_v59 = vpop.f32.mrb[37].mxu1 }
 0x165   : > { %892 = vst.msk [vmem:[%s1769_s20 + $0x40] sm:$0xff] %vm346_vm0, %v874_v58  ;;  %v778_v34 = vadd.f32 %v1199_v8, %v777_v19  ;;  %v828_v55 = vadd.f32 %v827_v59, %v1746_v0 }
 0x166   : > { %v877_v3 = vmax.f32 %v833_v61, 0.0  ;;  %v627_v63 = vpop.f32.mrb[2].mxu0 }
 0x167   : > { %v866_v1 = vmax.f32 %v778_v34, 0.0  ;;  %v876_v43 = vmax.f32 %v828_v55, 0.0  ;;  %v1200_v2 = vadd.f32 %v1734_v31, %v627_v63  ;;  %v1048_v12 = vpop.f32.mrb[38].mxu1  ;;  %v629_v4 = vpop.f32.mrb[3].mxu0 }
 0x168   : > { %895 = vst.msk [vmem:[%s1769_s20 + $0x58] sm:$0xff] %vm346_vm0, %v877_v3  ;;  %v843_v7 = vadd.f32 %v1048_v12, %v688_v21  ;;  %v837_v6 = vpop.f32.mrb[39].mxu1 }
 0x169   : > { %884 = vst.msk [vmem:[%s1769_s20] sm:$0xff] %vm346_vm0, %v866_v1  ;;  %894 = vst.msk [vmem:[%s1769_s20 + $0x50] sm:$0xff] %vm346_vm0, %v876_v43  ;;  %v783_v0 = vadd.f32 %v1200_v2, %v1753_v17  ;;  %v838_v9 = vadd.f32 %v837_v6, %v1750_v14 }
 0x16a   : > { %v879_v10 = vmax.f32 %v843_v7, 0.0  ;;  %v632_v18 = vpop.f32.mrb[4].mxu0 }
 0x16b   : > { %v867_v11 = vmax.f32 %v783_v0, 0.0  ;;  %v878_v15 = vmax.f32 %v838_v9, 0.0  ;;  %v1201_v16 = vadd.f32 %v1734_v31, %v632_v18  ;;  %v1051_v24 = vpop.f32.mrb[40].mxu1  ;;  %v634_v19 = vpop.f32.mrb[5].mxu0 }
 0x16c   : > { %897 = vst.msk [vmem:[%s1769_s20 + $0x68] sm:$0xff] %vm346_vm0, %v879_v10  ;;  %v853_v21 = vadd.f32 %v1051_v24, %v698_v37  ;;  %v847_v22 = vpop.f32.mrb[41].mxu1 }
 0x16d   : > { %885 = vst.msk [vmem:[%s1769_s20 + $0x8] sm:$0xff] %vm346_vm0, %v867_v11  ;;  %896 = vst.msk [vmem:[%s1769_s20 + $0x60] sm:$0xff] %vm346_vm0, %v878_v15  ;;  %v788_v14 = vadd.f32 %v1201_v16, %v1758_v26  ;;  %v848_v17 = vadd.f32 %v847_v22, %v1760_v28 }
 0x16e   : > { %v881_v23 = vmax.f32 %v853_v21, 0.0  ;;  %v637_v30 = vpop.f32.mrb[6].mxu0 }
 0x16f   : > { %v868_v36 = vmax.f32 %v788_v14, 0.0  ;;  %v880_v29 = vmax.f32 %v848_v17, 0.0  ;;  %v1202_v32 = vadd.f32 %v1734_v31, %v637_v30  ;;  %v1054_v44 = vpop.f32.mrb[42].mxu1  ;;  %v639_v33 = vpop.f32.mrb[7].mxu0 }
 0x170   : > { %899 = vst.msk [vmem:[%s1769_s20 + $0x78] sm:$0xff] %vm346_vm0, %v881_v23  ;;  %v863_v37 = vadd.f32 %v1054_v44, %v708_v45  ;;  %v857_v38 = vpop.f32.mrb[43].mxu1 }
 0x171   : > { %886 = vst.msk [vmem:[%s1769_s20 + $0x10] sm:$0xff] %vm346_vm0, %v868_v36  ;;  %898 = vst.msk [vmem:[%s1769_s20 + $0x70] sm:$0xff] %vm346_vm0, %v880_v29  ;;  %v793_v26 = vadd.f32 %v1202_v32, %v1756_v25  ;;  %v858_v28 = vadd.f32 %v857_v38, %v1775_v62 }
 0x172   : > { %v883_v39 = vmax.f32 %v863_v37, 0.0  ;;  %v642_v40 = vpop.f32.mrb[8].mxu0 }
 0x173   : > { %v869_v41 = vmax.f32 %v793_v26, 0.0  ;;  %v882_v56 = vmax.f32 %v858_v28, 0.0  ;;  %v1203_v50 = vadd.f32 %v1734_v31, %v642_v40  ;;  %v644_v42 = vpop.f32.mrb[9].mxu0 }
 0x174   : > { %901 = vst.msk [vmem:[%s1769_s20 + $0x88] sm:$0xff] %vm346_vm0, %v883_v39 }
 0x175   : > { %887 = vst.msk [vmem:[%s1769_s20 + $0x18] sm:$0xff] %vm346_vm0, %v869_v41  ;;  %900 = vst.msk [vmem:[%s1769_s20 + $0x80] sm:$0xff] %vm346_vm0, %v882_v56  ;;  %v798_v46 = vadd.f32 %v1203_v50, %v1764_v35 }
 0x177   : > { %v870_v47 = vmax.f32 %v798_v46, 0.0 }
 0x179   : > { %888 = vst.msk [vmem:[%s1769_s20 + $0x20] sm:$0xff] %vm346_vm0, %v870_v47 }
 0x17a PF: > { %s13_s12 = sadd.s32 1, %s1256_s12  }
 0x17b   : > { %p10_p4 = scmp.ge.s32.totalorder %s13_s12, 4  }
 0x17d   :  { %12 = sbr.rel (!%p10_p4) target bundleno = 1 (0x1), region = 62 }

// kernel: atari_net_forward.7
= control target key start
LH: loop header
LB: loop body
LE: loop exit
PB: predicated region body
PF: predicated region fallthrough
CT: control target
= control target key end

     0   :  { %s7820_s0 = inlined_call_operand.vmem [shape: f32[8,2304], index: 0, kind: input, shape index: {}]   ;;  %s7821_s1 = inlined_call_operand.vmem [shape: f32[2304,512], index: 1, kind: input, shape index: {}]   ;;  %s7822_s2 = inlined_call_operand.vmem [shape: f32[1,512], index: 2, kind: input, shape index: {}]   ;;  %s7823_s3 = inlined_call_operand.vmem [shape: f32[512,128], index: 3, kind: input, shape index: {}]   ;;  %s7824_s4 = inlined_call_operand.vmem [shape: f32[1,128], index: 4, kind: input, shape index: {}]   ;;  %s7825_s5 = inlined_call_operand.hbm [shape: f32[8,128], index: 5, kind: output, shape index: {}]  }
   0x1   :  { %v40_v0 = vld [vmem:[%s7821_s1 + $0x8] sm:$0xff]  ;;  %v42_v2 = vld [vmem:[%s7821_s1 + $0x18] sm:$0xff]  ;;  %v39_v5 = vld [vmem:[%s7821_s1] sm:$0xff] }
   0x2   :  { %v44_v1 = vld [vmem:[%s7821_s1 + $0x28] sm:$0xff]  ;;  %v46_v4 = vld [vmem:[%s7821_s1 + $0x38] sm:$0xff]  ;;  %v43_v6 = vld [vmem:[%s7821_s1 + $0x20] sm:$0xff] }
   0x3   :  { %v2792_v3 = vpack.c.bf16 %v44_v1, %v40_v0  ;;  %v3368_v7 = vpack.c.bf16 %v46_v4, %v42_v2  ;;  %v2794_v8 = vpack.c.bf16 %v43_v6, %v39_v5  ;;  %v41_v9 = vld [vmem:[%s7821_s1 + $0x10] sm:$0xff]  ;;  %v48_v11 = vld [vmem:[%s7821_s1 + $0x48] sm:$0xff]  ;;  %v50_v14 = vld [vmem:[%s7821_s1 + $0x58] sm:$0xff] }
   0x4   :  { %v45_v10 = vld [vmem:[%s7821_s1 + $0x30] sm:$0xff]  ;;  %v52_v13 = vld [vmem:[%s7821_s1 + $0x68] sm:$0xff]  ;;  %v54_v15 = vld [vmem:[%s7821_s1 + $0x78] sm:$0xff] }
   0x5   :  { %2793 = vmatprep.subr.bf16.mxu0 %v2792_v3  ;;  %v3370_v12 = vpack.c.bf16 %v45_v10, %v41_v9  ;;  %3369 = vmatprep.subr.bf16.mxu1 %v3368_v7  ;;  %v2796_v16 = vpack.c.bf16 %v52_v13, %v48_v11  ;;  %v3372_v17 = vpack.c.bf16 %v54_v15, %v50_v14  ;;  %v47_v18 = vld [vmem:[%s7821_s1 + $0x40] sm:$0xff]  ;;  %v49_v20 = vld [vmem:[%s7821_s1 + $0x50] sm:$0xff]  ;;  %v56_v23 = vld [vmem:[%s7821_s1 + $0x88] sm:$0xff] }
   0x6   :  { %2795 = vmatpush1.bf16.msra.mxu0 %v2794_v8  ;;  %v51_v19 = vld [vmem:[%s7821_s1 + $0x60] sm:$0xff]  ;;  %v53_v22 = vld [vmem:[%s7821_s1 + $0x70] sm:$0xff]  ;;  %v60_v24 = vld [vmem:[%s7821_s1 + $0xa8] sm:$0xff] }
   0x7   :  { %3371 = vmatpush1.bf16.msra.mxu1 %v3370_v12  ;;  %v2798_v21 = vpack.c.bf16 %v51_v19, %v47_v18  ;;  %2797 = vmatprep.subr.bf16.mxu0 %v2796_v16  ;;  %v3374_v25 = vpack.c.bf16 %v53_v22, %v49_v20  ;;  %v2800_v26 = vpack.c.bf16 %v60_v24, %v56_v23  ;;  %v58_v27 = vld [vmem:[%s7821_s1 + $0x98] sm:$0xff]  ;;  %v55_v29 = vld [vmem:[%s7821_s1 + $0x80] sm:$0xff]  ;;  %v57_v32 = vld [vmem:[%s7821_s1 + $0x90] sm:$0xff] }
   0x8   :  { %3373 = vmatprep.subr.bf16.mxu1 %v3372_v17  ;;  %v62_v28 = vld [vmem:[%s7821_s1 + $0xb8] sm:$0xff]  ;;  %v59_v31 = vld [vmem:[%s7821_s1 + $0xa0] sm:$0xff]  ;;  %v61_v33 = vld [vmem:[%s7821_s1 + $0xb0] sm:$0xff] }
   0x9   :  { %v3376_v30 = vpack.c.bf16 %v62_v28, %v58_v27  ;;  %v2802_v34 = vpack.c.bf16 %v59_v31, %v55_v29  ;;  %v64_v35 = vld [vmem:[%s7821_s1 + $0xc8] sm:$0xff]  ;;  %v66_v37 = vld [vmem:[%s7821_s1 + $0xd8] sm:$0xff]  ;;  %v3378_v38 = vpack.c.bf16 %v61_v33, %v57_v32  ;;  %v63_v41 = vld [vmem:[%s7821_s1 + $0xc0] sm:$0xff] }
   0xa   :  { %2799 = vmatpush1.bf16.msra.mxu0 %v2798_v21  ;;  %v68_v36 = vld [vmem:[%s7821_s1 + $0xe8] sm:$0xff]  ;;  %v70_v40 = vld [vmem:[%s7821_s1 + $0xf8] sm:$0xff]  ;;  %v67_v42 = vld [vmem:[%s7821_s1 + $0xe0] sm:$0xff] }
   0xb   :  { %3375 = vmatpush1.bf16.msra.mxu1 %v3374_v25  ;;  %2801 = vmatprep.subr.bf16.mxu0 %v2800_v26  ;;  %v2804_v39 = vpack.c.bf16 %v68_v36, %v64_v35  ;;  %v3380_v43 = vpack.c.bf16 %v70_v40, %v66_v37  ;;  %v65_v44 = vld [vmem:[%s7821_s1 + $0xd0] sm:$0xff]  ;;  %v72_v46 = vld [vmem:[%s7821_s1 + $0x108] sm:$0xff]  ;;  %v74_v48 = vld [vmem:[%s7821_s1 + $0x118] sm:$0xff]  ;;  %v2806_v50 = vpack.c.bf16 %v67_v42, %v63_v41 }
   0xc   :  { %3377 = vmatprep.subr.bf16.mxu1 %v3376_v30  ;;  %v69_v45 = vld [vmem:[%s7821_s1 + $0xf0] sm:$0xff]  ;;  %v76_v47 = vld [vmem:[%s7821_s1 + $0x128] sm:$0xff]  ;;  %v78_v49 = vld [vmem:[%s7821_s1 + $0x138] sm:$0xff] }
   0xd   :  { %v3382_v51 = vpack.c.bf16 %v69_v45, %v65_v44  ;;  %v2808_v52 = vpack.c.bf16 %v76_v47, %v72_v46  ;;  %v71_v53 = vld [vmem:[%s7821_s1 + $0x100] sm:$0xff]  ;;  %v73_v55 = vld [vmem:[%s7821_s1 + $0x110] sm:$0xff]  ;;  %v3384_v56 = vpack.c.bf16 %v78_v49, %v74_v48  ;;  %v80_v58 = vld [vmem:[%s7821_s1 + $0x148] sm:$0xff] }
   0xe   :  { %2803 = vmatpush1.bf16.msra.mxu0 %v2802_v34  ;;  %v75_v54 = vld [vmem:[%s7821_s1 + $0x120] sm:$0xff]  ;;  %v77_v57 = vld [vmem:[%s7821_s1 + $0x130] sm:$0xff]  ;;  %v84_v59 = vld [vmem:[%s7821_s1 + $0x168] sm:$0xff] }
   0xf   :  { %3379 = vmatpush1.bf16.msra.mxu1 %v3378_v38  ;;  %2805 = vmatprep.subr.bf16.mxu0 %v2804_v39  ;;  %v82_v60 = vld [vmem:[%s7821_s1 + $0x158] sm:$0xff]  ;;  %v2810_v62 = vpack.c.bf16 %v75_v54, %v71_v53  ;;  %v3386_v63 = vpack.c.bf16 %v77_v57, %v73_v55  ;;  %v2812_v0 = vpack.c.bf16 %v84_v59, %v80_v58  ;;  %v79_v1 = vld [vmem:[%s7821_s1 + $0x140] sm:$0xff]  ;;  %v81_v3 = vld [vmem:[%s7821_s1 + $0x150] sm:$0xff] }
  0x10   :  { %3381 = vmatprep.subr.bf16.mxu1 %v3380_v43  ;;  %v86_v61 = vld [vmem:[%s7821_s1 + $0x178] sm:$0xff]  ;;  %v83_v2 = vld [vmem:[%s7821_s1 + $0x160] sm:$0xff]  ;;  %v85_v5 = vld [vmem:[%s7821_s1 + $0x170] sm:$0xff] }
  0x11   :  { %v3388_v4 = vpack.c.bf16 %v86_v61, %v82_v60  ;;  %v88_v6 = vld [vmem:[%s7821_s1 + $0x188] sm:$0xff]  ;;  %v90_v8 = vld [vmem:[%s7821_s1 + $0x198] sm:$0xff]  ;;  %v2814_v10 = vpack.c.bf16 %v83_v2, %v79_v1  ;;  %v3390_v11 = vpack.c.bf16 %v85_v5, %v81_v3  ;;  %v87_v13 = vld [vmem:[%s7821_s1 + $0x180] sm:$0xff] }
  0x12   :  { %2807 = vmatpush1.bf16.msra.mxu0 %v2806_v50  ;;  %v92_v7 = vld [vmem:[%s7821_s1 + $0x1a8] sm:$0xff]  ;;  %v94_v9 = vld [vmem:[%s7821_s1 + $0x1b8] sm:$0xff]  ;;  %v91_v14 = vld [vmem:[%s7821_s1 + $0x1a0] sm:$0xff] }
  0x13   :  { %3383 = vmatpush1.bf16.msra.mxu1 %v3382_v51  ;;  %2809 = vmatprep.subr.bf16.mxu0 %v2808_v52  ;;  %v2816_v12 = vpack.c.bf16 %v92_v7, %v88_v6  ;;  %v89_v15 = vld [vmem:[%s7821_s1 + $0x190] sm:$0xff]  ;;  %v3392_v16 = vpack.c.bf16 %v94_v9, %v90_v8  ;;  %v96_v18 = vld [vmem:[%s7821_s1 + $0x1c8] sm:$0xff]  ;;  %v98_v20 = vld [vmem:[%s7821_s1 + $0x1d8] sm:$0xff]  ;;  %v2818_v22 = vpack.c.bf16 %v91_v14, %v87_v13 }
  0x14   :  { %3385 = vmatprep.subr.bf16.mxu1 %v3384_v56  ;;  %v93_v17 = vld [vmem:[%s7821_s1 + $0x1b0] sm:$0xff]  ;;  %v100_v19 = vld [vmem:[%s7821_s1 + $0x1e8] sm:$0xff]  ;;  %v102_v21 = vld [vmem:[%s7821_s1 + $0x1f8] sm:$0xff] }
  0x15   :  { %v3394_v23 = vpack.c.bf16 %v93_v17, %v89_v15  ;;  %v2820_v24 = vpack.c.bf16 %v100_v19, %v96_v18  ;;  %v95_v25 = vld [vmem:[%s7821_s1 + $0x1c0] sm:$0xff]  ;;  %v97_v27 = vld [vmem:[%s7821_s1 + $0x1d0] sm:$0xff]  ;;  %v3396_v28 = vpack.c.bf16 %v102_v21, %v98_v20  ;;  %v104_v30 = vld [vmem:[%s7821_s1 + $0x208] sm:$0xff] }
  0x16   :  { %2811 = vmatpush1.bf16.msra.mxu0 %v2810_v62  ;;  %v99_v26 = vld [vmem:[%s7821_s1 + $0x1e0] sm:$0xff]  ;;  %v101_v29 = vld [vmem:[%s7821_s1 + $0x1f0] sm:$0xff]  ;;  %v108_v31 = vld [vmem:[%s7821_s1 + $0x228] sm:$0xff] }
  0x17   :  { %3387 = vmatpush1.bf16.msra.mxu1 %v3386_v63  ;;  %2813 = vmatprep.subr.bf16.mxu0 %v2812_v0  ;;  %v106_v32 = vld [vmem:[%s7821_s1 + $0x218] sm:$0xff]  ;;  %v2822_v34 = vpack.c.bf16 %v99_v26, %v95_v25  ;;  %v3398_v35 = vpack.c.bf16 %v101_v29, %v97_v27  ;;  %v2824_v36 = vpack.c.bf16 %v108_v31, %v104_v30  ;;  %v103_v37 = vld [vmem:[%s7821_s1 + $0x200] sm:$0xff]  ;;  %v105_v39 = vld [vmem:[%s7821_s1 + $0x210] sm:$0xff] }
  0x18   :  { %3389 = vmatprep.subr.bf16.mxu1 %v3388_v4  ;;  %v110_v33 = vld [vmem:[%s7821_s1 + $0x238] sm:$0xff]  ;;  %v107_v38 = vld [vmem:[%s7821_s1 + $0x220] sm:$0xff]  ;;  %v109_v41 = vld [vmem:[%s7821_s1 + $0x230] sm:$0xff] }
  0x19   :  { %v3400_v40 = vpack.c.bf16 %v110_v33, %v106_v32  ;;  %v112_v42 = vld [vmem:[%s7821_s1 + $0x248] sm:$0xff]  ;;  %v114_v44 = vld [vmem:[%s7821_s1 + $0x258] sm:$0xff]  ;;  %v2826_v46 = vpack.c.bf16 %v107_v38, %v103_v37  ;;  %v3402_v47 = vpack.c.bf16 %v109_v41, %v105_v39  ;;  %v111_v49 = vld [vmem:[%s7821_s1 + $0x240] sm:$0xff] }
  0x1a   :  { %2815 = vmatpush1.bf16.msra.mxu0 %v2814_v10  ;;  %v116_v43 = vld [vmem:[%s7821_s1 + $0x268] sm:$0xff]  ;;  %v118_v45 = vld [vmem:[%s7821_s1 + $0x278] sm:$0xff]  ;;  %v115_v50 = vld [vmem:[%s7821_s1 + $0x260] sm:$0xff] }
  0x1b   :  { %3391 = vmatpush1.bf16.msra.mxu1 %v3390_v11  ;;  %2817 = vmatprep.subr.bf16.mxu0 %v2816_v12  ;;  %v2828_v48 = vpack.c.bf16 %v116_v43, %v112_v42  ;;  %v113_v51 = vld [vmem:[%s7821_s1 + $0x250] sm:$0xff]  ;;  %v3404_v52 = vpack.c.bf16 %v118_v45, %v114_v44  ;;  %v120_v54 = vld [vmem:[%s7821_s1 + $0x288] sm:$0xff]  ;;  %v122_v56 = vld [vmem:[%s7821_s1 + $0x298] sm:$0xff]  ;;  %v2830_v58 = vpack.c.bf16 %v115_v50, %v111_v49 }
  0x1c   :  { %3393 = vmatprep.subr.bf16.mxu1 %v3392_v16  ;;  %v117_v53 = vld [vmem:[%s7821_s1 + $0x270] sm:$0xff]  ;;  %v124_v55 = vld [vmem:[%s7821_s1 + $0x2a8] sm:$0xff]  ;;  %v126_v57 = vld [vmem:[%s7821_s1 + $0x2b8] sm:$0xff] }
  0x1d   :  { %v3406_v59 = vpack.c.bf16 %v117_v53, %v113_v51  ;;  %v2832_v60 = vpack.c.bf16 %v124_v55, %v120_v54  ;;  %v119_v61 = vld [vmem:[%s7821_s1 + $0x280] sm:$0xff]  ;;  %v121_v63 = vld [vmem:[%s7821_s1 + $0x290] sm:$0xff]  ;;  %v3408_v0 = vpack.c.bf16 %v126_v57, %v122_v56  ;;  %v128_v2 = vld [vmem:[%s7821_s1 + $0x2c8] sm:$0xff] }
  0x1e   :  { %2819 = vmatpush1.bf16.msra.mxu0 %v2818_v22  ;;  %v123_v62 = vld [vmem:[%s7821_s1 + $0x2a0] sm:$0xff]  ;;  %v125_v1 = vld [vmem:[%s7821_s1 + $0x2b0] sm:$0xff]  ;;  %v132_v3 = vld [vmem:[%s7821_s1 + $0x2e8] sm:$0xff] }
  0x1f   :  { %3395 = vmatpush1.bf16.msra.mxu1 %v3394_v23  ;;  %2821 = vmatprep.subr.bf16.mxu0 %v2820_v24  ;;  %v130_v4 = vld [vmem:[%s7821_s1 + $0x2d8] sm:$0xff]  ;;  %v2834_v6 = vpack.c.bf16 %v123_v62, %v119_v61  ;;  %v127_v7 = vld [vmem:[%s7821_s1 + $0x2c0] sm:$0xff]  ;;  %v3410_v8 = vpack.c.bf16 %v125_v1, %v121_v63  ;;  %v2836_v9 = vpack.c.bf16 %v132_v3, %v128_v2  ;;  %v129_v11 = vld [vmem:[%s7821_s1 + $0x2d0] sm:$0xff] }
  0x20   :  { %3397 = vmatprep.subr.bf16.mxu1 %v3396_v28  ;;  %v134_v5 = vld [vmem:[%s7821_s1 + $0x2f8] sm:$0xff]  ;;  %v131_v10 = vld [vmem:[%s7821_s1 + $0x2e0] sm:$0xff]  ;;  %v133_v12 = vld [vmem:[%s7821_s1 + $0x2f0] sm:$0xff] }
  0x21   :  { %v3412_v13 = vpack.c.bf16 %v134_v5, %v130_v4  ;;  %v136_v14 = vld [vmem:[%s7821_s1 + $0x308] sm:$0xff]  ;;  %v138_v17 = vld [vmem:[%s7821_s1 + $0x318] sm:$0xff]  ;;  %v2838_v19 = vpack.c.bf16 %v131_v10, %v127_v7  ;;  %v3414_v20 = vpack.c.bf16 %v133_v12, %v129_v11  ;;  %v135_v22 = vld [vmem:[%s7821_s1 + $0x300] sm:$0xff] }
  0x22   :  { %2823 = vmatpush1.bf16.msra.mxu0 %v2822_v34  ;;  %v140_v15 = vld [vmem:[%s7821_s1 + $0x328] sm:$0xff]  ;;  %v142_v18 = vld [vmem:[%s7821_s1 + $0x338] sm:$0xff]  ;;  %v139_v23 = vld [vmem:[%s7821_s1 + $0x320] sm:$0xff] }
  0x23   :  { %3399 = vmatpush1.bf16.msra.mxu1 %v3398_v35  ;;  %2825 = vmatprep.subr.bf16.mxu0 %v2824_v36  ;;  %v22_v16 = vld [vmem:[%s7820_s0 + $0x8] sm:$0xff]  ;;  %v2840_v21 = vpack.c.bf16 %v140_v15, %v136_v14  ;;  %v137_v24 = vld [vmem:[%s7821_s1 + $0x310] sm:$0xff]  ;;  %v3416_v25 = vpack.c.bf16 %v142_v18, %v138_v17  ;;  %v146_v29 = vld [vmem:[%s7821_s1 + $0x358] sm:$0xff]  ;;  %v2842_v31 = vpack.c.bf16 %v139_v23, %v135_v22 }
  0x24   :  { %3401 = vmatprep.subr.bf16.mxu1 %v3400_v40  ;;  %1277 = vmatprep.mubr.f32.mxu0 %v22_v16  ;;  %v141_v26 = vld [vmem:[%s7821_s1 + $0x330] sm:$0xff]  ;;  %v144_v27 = vld [vmem:[%s7821_s1 + $0x348] sm:$0xff]  ;;  %v150_v30 = vld [vmem:[%s7821_s1 + $0x378] sm:$0xff] }
  0x25   :  { %1916 = vmatprep.mubr.f32.mxu1 %v22_v16  ;;  %v148_v28 = vld [vmem:[%s7821_s1 + $0x368] sm:$0xff]  ;;  %v3418_v32 = vpack.c.bf16 %v141_v26, %v137_v24  ;;  %v143_v34 = vld [vmem:[%s7821_s1 + $0x340] sm:$0xff]  ;;  %v145_v36 = vld [vmem:[%s7821_s1 + $0x350] sm:$0xff]  ;;  %v3420_v37 = vpack.c.bf16 %v150_v30, %v146_v29 }
  0x26   :  { %2827 = vmatpush1.bf16.msra.mxu0 %v2826_v46  ;;  %v2844_v33 = vpack.c.bf16 %v148_v28, %v144_v27  ;;  %v147_v35 = vld [vmem:[%s7821_s1 + $0x360] sm:$0xff]  ;;  %v149_v38 = vld [vmem:[%s7821_s1 + $0x370] sm:$0xff]  ;;  %v152_v39 = vld [vmem:[%s7821_s1 + $0x388] sm:$0xff] }
  0x27   :  { %3403 = vmatpush1.bf16.msra.mxu1 %v3402_v47  ;;  %2829 = vmatprep.subr.bf16.mxu0 %v2828_v48  ;;  %v156_v40 = vld [vmem:[%s7821_s1 + $0x3a8] sm:$0xff]  ;;  %v154_v41 = vld [vmem:[%s7821_s1 + $0x398] sm:$0xff]  ;;  %v2846_v43 = vpack.c.bf16 %v147_v35, %v143_v34  ;;  %v3422_v44 = vpack.c.bf16 %v149_v38, %v145_v36  ;;  %v151_v46 = vld [vmem:[%s7821_s1 + $0x380] sm:$0xff] }
  0x28   :  { %3405 = vmatprep.subr.bf16.mxu1 %v3404_v52  ;;  %v158_v42 = vld [vmem:[%s7821_s1 + $0x3b8] sm:$0xff]  ;;  %v2848_v45 = vpack.c.bf16 %v156_v40, %v152_v39  ;;  %v155_v47 = vld [vmem:[%s7821_s1 + $0x3a0] sm:$0xff]  ;;  %v153_v48 = vld [vmem:[%s7821_s1 + $0x390] sm:$0xff] }
  0x29   :  { %v3424_v49 = vpack.c.bf16 %v158_v42, %v154_v41  ;;  %v157_v50 = vld [vmem:[%s7821_s1 + $0x3b0] sm:$0xff]  ;;  %v160_v51 = vld [vmem:[%s7821_s1 + $0x3c8] sm:$0xff]  ;;  %v162_v53 = vld [vmem:[%s7821_s1 + $0x3d8] sm:$0xff]  ;;  %v2850_v55 = vpack.c.bf16 %v155_v47, %v151_v46 }
  0x2a   :  { %2831 = vmatpush1.bf16.msra.mxu0 %v2830_v58  ;;  %v164_v52 = vld [vmem:[%s7821_s1 + $0x3e8] sm:$0xff]  ;;  %v166_v54 = vld [vmem:[%s7821_s1 + $0x3f8] sm:$0xff]  ;;  %v3426_v56 = vpack.c.bf16 %v157_v50, %v153_v48  ;;  %v159_v58 = vld [vmem:[%s7821_s1 + $0x3c0] sm:$0xff] }
  0x2b   :  { %3407 = vmatpush1.bf16.msra.mxu1 %v3406_v59  ;;  %2833 = vmatprep.subr.bf16.mxu0 %v2832_v60  ;;  %v2852_v57 = vpack.c.bf16 %v164_v52, %v160_v51  ;;  %v163_v59 = vld [vmem:[%s7821_s1 + $0x3e0] sm:$0xff]  ;;  %v161_v60 = vld [vmem:[%s7821_s1 + $0x3d0] sm:$0xff]  ;;  %v3428_v61 = vpack.c.bf16 %v166_v54, %v162_v53  ;;  %v168_v63 = vld [vmem:[%s7821_s1 + $0x408] sm:$0xff] }
  0x2c   :  { %3409 = vmatprep.subr.bf16.mxu1 %v3408_v0  ;;  %v165_v62 = vld [vmem:[%s7821_s1 + $0x3f0] sm:$0xff]  ;;  %v172_v0 = vld [vmem:[%s7821_s1 + $0x428] sm:$0xff]  ;;  %v170_v1 = vld [vmem:[%s7821_s1 + $0x418] sm:$0xff]  ;;  %v2854_v3 = vpack.c.bf16 %v163_v59, %v159_v58 }
  0x2d   :  { %v174_v2 = vld [vmem:[%s7821_s1 + $0x438] sm:$0xff]  ;;  %v3430_v4 = vpack.c.bf16 %v165_v62, %v161_v60  ;;  %v2856_v5 = vpack.c.bf16 %v172_v0, %v168_v63  ;;  %v171_v7 = vld [vmem:[%s7821_s1 + $0x420] sm:$0xff]  ;;  %v173_v10 = vld [vmem:[%s7821_s1 + $0x430] sm:$0xff] }
  0x2e   :  { %2835 = vmatpush1.bf16.msra.mxu0 %v2834_v6  ;;  %v167_v6 = vld [vmem:[%s7821_s1 + $0x400] sm:$0xff]  ;;  %v176_v11 = vld [vmem:[%s7821_s1 + $0x448] sm:$0xff]  ;;  %v182_v14 = vld [vmem:[%s7821_s1 + $0x478] sm:$0xff] }
  0x2f   :  { %3411 = vmatpush1.bf16.msra.mxu1 %v3410_v8  ;;  %2837 = vmatprep.subr.bf16.mxu0 %v2836_v9  ;;  %v169_v8 = vld [vmem:[%s7821_s1 + $0x410] sm:$0xff]  ;;  %v3432_v9 = vpack.c.bf16 %v174_v2, %v170_v1  ;;  %v180_v12 = vld [vmem:[%s7821_s1 + $0x468] sm:$0xff]  ;;  %v21_v15 = vld [vmem:[%s7820_s0] sm:$0xff]  ;;  %v2858_v16 = vpack.c.bf16 %v171_v7, %v167_v6 }
  0x30   :  { %3413 = vmatprep.subr.bf16.mxu1 %v3412_v13  ;;  %v178_v13 = vld [vmem:[%s7821_s1 + $0x458] sm:$0xff]  ;;  %v3434_v17 = vpack.c.bf16 %v173_v10, %v169_v8  ;;  %v2860_v18 = vpack.c.bf16 %v180_v12, %v176_v11  ;;  %v181_v23 = vld [vmem:[%s7821_s1 + $0x470] sm:$0xff]  ;;  %v184_v24 = vld [vmem:[%s7821_s1 + $0x488] sm:$0xff] }
  0x31   :  { %v3436_v22 = vpack.c.bf16 %v182_v14, %v178_v13  ;;  %v186_v26 = vld [vmem:[%s7821_s1 + $0x498] sm:$0xff]  ;;  %v189_v35 = vld [vmem:[%s7821_s1 + $0x4b0] sm:$0xff]  ;;  %v192_v36 = vld [vmem:[%s7821_s1 + $0x4c8] sm:$0xff] }
  0x32   :  { %2839 = vmatpush1.bf16.msra.mxu0 %v2838_v19  ;;  %v175_v19 = vld [vmem:[%s7821_s1 + $0x440] sm:$0xff]  ;;  %v190_v27 = vld [vmem:[%s7821_s1 + $0x4b8] sm:$0xff]  ;;  %v197_v47 = vld [vmem:[%s7821_s1 + $0x4f0] sm:$0xff] }
  0x33   :  { %3415 = vmatpush1.bf16.msra.mxu1 %v3414_v20  ;;  %2841 = vmatprep.subr.bf16.mxu0 %v2840_v21  ;;  %v179_v20 = vld [vmem:[%s7821_s1 + $0x460] sm:$0xff]  ;;  %v177_v21 = vld [vmem:[%s7821_s1 + $0x450] sm:$0xff]  ;;  %v3440_v34 = vpack.c.bf16 %v190_v27, %v186_v26  ;;  %v194_v38 = vld [vmem:[%s7821_s1 + $0x4d8] sm:$0xff] }
  0x34   :  { %3417 = vmatprep.subr.bf16.mxu1 %v3416_v25  ;;  %v188_v25 = vld [vmem:[%s7821_s1 + $0x4a8] sm:$0xff]  ;;  %v2862_v28 = vpack.c.bf16 %v179_v20, %v175_v19  ;;  %v3438_v29 = vpack.c.bf16 %v181_v23, %v177_v21  ;;  %v198_v39 = vld [vmem:[%s7821_s1 + $0x4f8] sm:$0xff]  ;;  %v205_v59 = vld [vmem:[%s7821_s1 + $0x530] sm:$0xff] }
  0x35   :  { %v2864_v30 = vpack.c.bf16 %v188_v25, %v184_v24  ;;  %v3444_v46 = vpack.c.bf16 %v198_v39, %v194_v38  ;;  %v200_v48 = vld [vmem:[%s7821_s1 + $0x508] sm:$0xff]  ;;  %v202_v50 = vld [vmem:[%s7821_s1 + $0x518] sm:$0xff]  ;;  %v213_v7 = vld [vmem:[%s7821_s1 + $0x570] sm:$0xff] }
  0x36   :  { %2843 = vmatpush1.bf16.msra.mxu0 %v2842_v31  ;;  %v183_v31 = vld [vmem:[%s7821_s1 + $0x480] sm:$0xff]  ;;  %v206_v51 = vld [vmem:[%s7821_s1 + $0x538] sm:$0xff]  ;;  %v208_v60 = vld [vmem:[%s7821_s1 + $0x548] sm:$0xff] }
  0x37   :  { %3419 = vmatpush1.bf16.msra.mxu1 %v3418_v32  ;;  %2845 = vmatprep.subr.bf16.mxu0 %v2844_v33  ;;  %v187_v32 = vld [vmem:[%s7821_s1 + $0x4a0] sm:$0xff]  ;;  %v185_v33 = vld [vmem:[%s7821_s1 + $0x490] sm:$0xff]  ;;  %v3448_v58 = vpack.c.bf16 %v206_v51, %v202_v50  ;;  %v210_v62 = vld [vmem:[%s7821_s1 + $0x558] sm:$0xff] }
  0x38   :  { %3421 = vmatprep.subr.bf16.mxu1 %v3420_v37  ;;  %v196_v37 = vld [vmem:[%s7821_s1 + $0x4e8] sm:$0xff]  ;;  %v2866_v40 = vpack.c.bf16 %v187_v32, %v183_v31  ;;  %v3442_v41 = vpack.c.bf16 %v189_v35, %v185_v33  ;;  %v214_v63 = vld [vmem:[%s7821_s1 + $0x578] sm:$0xff]  ;;  %v215_v13 = vld [vmem:[%s7821_s1 + $0x580] sm:$0xff] }
  0x39   :  { %v2868_v42 = vpack.c.bf16 %v196_v37, %v192_v36  ;;  %v3452_v6 = vpack.c.bf16 %v214_v63, %v210_v62  ;;  %v216_v8 = vld [vmem:[%s7821_s1 + $0x588] sm:$0xff]  ;;  %v218_v10 = vld [vmem:[%s7821_s1 + $0x598] sm:$0xff]  ;;  %v229_v32 = vld [vmem:[%s7821_s1 + $0x5f0] sm:$0xff] }
  0x3a   :  { %2847 = vmatpush1.bf16.msra.mxu0 %v2846_v43  ;;  %v191_v43 = vld [vmem:[%s7821_s1 + $0x4c0] sm:$0xff]  ;;  %v222_v11 = vld [vmem:[%s7821_s1 + $0x5b8] sm:$0xff]  ;;  %v224_v20 = vld [vmem:[%s7821_s1 + $0x5c8] sm:$0xff] }
  0x3b   :  { %3423 = vmatpush1.bf16.msra.mxu1 %v3422_v44  ;;  %2849 = vmatprep.subr.bf16.mxu0 %v2848_v45  ;;  %v195_v44 = vld [vmem:[%s7821_s1 + $0x4e0] sm:$0xff]  ;;  %v193_v45 = vld [vmem:[%s7821_s1 + $0x4d0] sm:$0xff]  ;;  %v3456_v19 = vpack.c.bf16 %v222_v11, %v218_v10  ;;  %v228_v21 = vld [vmem:[%s7821_s1 + $0x5e8] sm:$0xff] }
  0x3c   :  { %3425 = vmatprep.subr.bf16.mxu1 %v3424_v49  ;;  %v204_v49 = vld [vmem:[%s7821_s1 + $0x528] sm:$0xff]  ;;  %v2870_v52 = vpack.c.bf16 %v195_v44, %v191_v43  ;;  %v3446_v53 = vpack.c.bf16 %v197_v47, %v193_v45  ;;  %v226_v23 = vld [vmem:[%s7821_s1 + $0x5d8] sm:$0xff]  ;;  %v2884_v27 = vpack.c.bf16 %v228_v21, %v224_v20  ;;  %v237_v44 = vld [vmem:[%s7821_s1 + $0x630] sm:$0xff] }
  0x3d   :  { %v2872_v54 = vpack.c.bf16 %v204_v49, %v200_v48  ;;  %v230_v24 = vld [vmem:[%s7821_s1 + $0x5f8] sm:$0xff]  ;;  %v232_v33 = vld [vmem:[%s7821_s1 + $0x608] sm:$0xff] }
  0x3e   :  { %2851 = vmatpush1.bf16.msra.mxu0 %v2850_v55  ;;  %v199_v55 = vld [vmem:[%s7821_s1 + $0x500] sm:$0xff]  ;;  %v3460_v31 = vpack.c.bf16 %v230_v24, %v226_v23  ;;  %v234_v35 = vld [vmem:[%s7821_s1 + $0x618] sm:$0xff]  ;;  %v240_v45 = vld [vmem:[%s7821_s1 + $0x648] sm:$0xff] }
  0x3f   :  { %3427 = vmatpush1.bf16.msra.mxu1 %v3426_v56  ;;  %2853 = vmatprep.subr.bf16.mxu0 %v2852_v57  ;;  %v203_v56 = vld [vmem:[%s7821_s1 + $0x520] sm:$0xff]  ;;  %v201_v57 = vld [vmem:[%s7821_s1 + $0x510] sm:$0xff]  ;;  %v238_v36 = vld [vmem:[%s7821_s1 + $0x638] sm:$0xff] }
  0x40   :  { %3429 = vmatprep.subr.bf16.mxu1 %v3428_v61  ;;  %v212_v61 = vld [vmem:[%s7821_s1 + $0x568] sm:$0xff]  ;;  %v2874_v0 = vpack.c.bf16 %v203_v56, %v199_v55  ;;  %v3450_v1 = vpack.c.bf16 %v205_v59, %v201_v57  ;;  %v3464_v43 = vpack.c.bf16 %v238_v36, %v234_v35  ;;  %v242_v47 = vld [vmem:[%s7821_s1 + $0x658] sm:$0xff]  ;;  %v245_v56 = vld [vmem:[%s7821_s1 + $0x670] sm:$0xff] }
  0x41   :  { %v2876_v2 = vpack.c.bf16 %v212_v61, %v208_v60  ;;  %v246_v48 = vld [vmem:[%s7821_s1 + $0x678] sm:$0xff]  ;;  %v248_v57 = vld [vmem:[%s7821_s1 + $0x688] sm:$0xff]  ;;  %v263_v24 = vld [vmem:[%s7821_s1 + $0x700] sm:$0xff] }
  0x42   :  { %2855 = vmatpush1.bf16.msra.mxu0 %v2854_v3  ;;  %v207_v3 = vld [vmem:[%s7821_s1 + $0x540] sm:$0xff]  ;;  %v3468_v55 = vpack.c.bf16 %v246_v48, %v242_v47  ;;  %v250_v59 = vld [vmem:[%s7821_s1 + $0x698] sm:$0xff] }
  0x43   :  { %3431 = vmatpush1.bf16.msra.mxu1 %v3430_v4  ;;  %2857 = vmatprep.subr.bf16.mxu0 %v2856_v5  ;;  %v211_v4 = vld [vmem:[%s7821_s1 + $0x560] sm:$0xff]  ;;  %v209_v5 = vld [vmem:[%s7821_s1 + $0x550] sm:$0xff]  ;;  %v254_v60 = vld [vmem:[%s7821_s1 + $0x6b8] sm:$0xff] }
  0x44   :  { %3433 = vmatprep.subr.bf16.mxu1 %v3432_v9  ;;  %v220_v9 = vld [vmem:[%s7821_s1 + $0x5a8] sm:$0xff]  ;;  %v2878_v12 = vpack.c.bf16 %v211_v4, %v207_v3  ;;  %v3454_v14 = vpack.c.bf16 %v213_v7, %v209_v5  ;;  %v3472_v3 = vpack.c.bf16 %v254_v60, %v250_v59  ;;  %v253_v4 = vld [vmem:[%s7821_s1 + $0x6b0] sm:$0xff]  ;;  %v258_v7 = vld [vmem:[%s7821_s1 + $0x6d8] sm:$0xff] }
  0x45   :  { %1278 = vmatmul.mubr.f32.vlgmr.msra.gmra.mrb[0].mxu0 %v21_v15  ;;  %v256_v5 = vld [vmem:[%s7821_s1 + $0x6c8] sm:$0xff]  ;;  %v270_v20 = vld [vmem:[%s7821_s1 + $0x738] sm:$0xff]  ;;  %v271_v36 = vld [vmem:[%s7821_s1 + $0x740] sm:$0xff] }
  0x46   :  { %2859 = vmatpush1.bf16.msra.mxu0 %v2858_v16  ;;  %1917 = vmatmul.mubr.f32.vlgmr.msra.gmra.mrb[0].mxu1 %v21_v15  ;;  %v2880_v15 = vpack.c.bf16 %v220_v9, %v216_v8  ;;  %v219_v16 = vld [vmem:[%s7821_s1 + $0x5a0] sm:$0xff]  ;;  %v262_v8 = vld [vmem:[%s7821_s1 + $0x6f8] sm:$0xff] }
  0x47   :  { %3435 = vmatpush1.bf16.msra.mxu1 %v3434_v17  ;;  %2861 = vmatprep.subr.bf16.mxu0 %v2860_v18  ;;  %v217_v17 = vld [vmem:[%s7821_s1 + $0x590] sm:$0xff]  ;;  %v2882_v25 = vpack.c.bf16 %v219_v16, %v215_v13  ;;  %v259_v13 = vld [vmem:[%s7821_s1 + $0x6e0] sm:$0xff] }
  0x48   :  { %3437 = vmatprep.subr.bf16.mxu1 %v3436_v22  ;;  %v221_v18 = vld [vmem:[%s7821_s1 + $0x5b0] sm:$0xff]  ;;  %v24_v22 = vld [vmem:[%s7820_s0 + $0x18] sm:$0xff]  ;;  %v279_v48 = vld [vmem:[%s7821_s1 + $0x780] sm:$0xff] }
  0x49   :  { %1348 = vmatprep.mubr.f32.mxu0 %v24_v22  ;;  %1987 = vmatprep.mubr.f32.mxu1 %v24_v22  ;;  %v3458_v26 = vpack.c.bf16 %v221_v18, %v217_v17  ;;  %v261_v16 = vld [vmem:[%s7821_s1 + $0x6f0] sm:$0xff]  ;;  %v264_v17 = vld [vmem:[%s7821_s1 + $0x708] sm:$0xff]  ;;  %v287_v60 = vld [vmem:[%s7821_s1 + $0x7c0] sm:$0xff] }
  0x4a   :  { %2863 = vmatpush1.bf16.msra.mxu0 %v2862_v28  ;;  %v223_v28 = vld [vmem:[%s7821_s1 + $0x5c0] sm:$0xff]  ;;  %v268_v18 = vld [vmem:[%s7821_s1 + $0x728] sm:$0xff] }
  0x4b   :  { %3439 = vmatpush1.bf16.msra.mxu1 %v3438_v29  ;;  %2865 = vmatprep.subr.bf16.mxu0 %v2864_v30  ;;  %v227_v29 = vld [vmem:[%s7821_s1 + $0x5e0] sm:$0xff]  ;;  %v225_v30 = vld [vmem:[%s7821_s1 + $0x5d0] sm:$0xff]  ;;  %v2904_v23 = vpack.c.bf16 %v268_v18, %v264_v17 }
  0x4c   :  { %3441 = vmatprep.subr.bf16.mxu1 %v3440_v34  ;;  %v236_v34 = vld [vmem:[%s7821_s1 + $0x628] sm:$0xff]  ;;  %v2886_v37 = vpack.c.bf16 %v227_v29, %v223_v28  ;;  %v3462_v38 = vpack.c.bf16 %v229_v32, %v225_v30  ;;  %v269_v28 = vld [vmem:[%s7821_s1 + $0x730] sm:$0xff]  ;;  %v278_v32 = vld [vmem:[%s7821_s1 + $0x778] sm:$0xff] }
  0x4d   :  { %v2888_v39 = vpack.c.bf16 %v236_v34, %v232_v33  ;;  %v272_v29 = vld [vmem:[%s7821_s1 + $0x748] sm:$0xff]  ;;  %v23_v17 = vld [vmem:[%s7820_s0 + $0x10] sm:$0xff] }
  0x4e   :  { %2867 = vmatpush1.bf16.msra.mxu0 %v2866_v40  ;;  %v231_v40 = vld [vmem:[%s7821_s1 + $0x600] sm:$0xff]  ;;  %v276_v30 = vld [vmem:[%s7821_s1 + $0x768] sm:$0xff] }
  0x4f   :  { %3443 = vmatpush1.bf16.msra.mxu1 %v3442_v41  ;;  %2869 = vmatprep.subr.bf16.mxu0 %v2868_v42  ;;  %v235_v41 = vld [vmem:[%s7821_s1 + $0x620] sm:$0xff]  ;;  %v233_v42 = vld [vmem:[%s7821_s1 + $0x610] sm:$0xff]  ;;  %v2908_v35 = vpack.c.bf16 %v276_v30, %v272_v29  ;;  %v318_v29 = vld [vmem:[%s7821_s1 + $0x8b8] sm:$0xff] }
  0x50   :  { %3445 = vmatprep.subr.bf16.mxu1 %v3444_v46  ;;  %v244_v46 = vld [vmem:[%s7821_s1 + $0x668] sm:$0xff]  ;;  %v2890_v49 = vpack.c.bf16 %v235_v41, %v231_v40  ;;  %v3466_v50 = vpack.c.bf16 %v237_v44, %v233_v42  ;;  %v277_v40 = vld [vmem:[%s7821_s1 + $0x770] sm:$0xff]  ;;  %v286_v44 = vld [vmem:[%s7821_s1 + $0x7b8] sm:$0xff] }
  0x51   :  { %v2892_v51 = vpack.c.bf16 %v244_v46, %v240_v45  ;;  %v280_v41 = vld [vmem:[%s7821_s1 + $0x788] sm:$0xff] }
  0x52   :  { %2871 = vmatpush1.bf16.msra.mxu0 %v2870_v52  ;;  %v239_v52 = vld [vmem:[%s7821_s1 + $0x640] sm:$0xff]  ;;  %v284_v42 = vld [vmem:[%s7821_s1 + $0x7a8] sm:$0xff] }
  0x53   :  { %3447 = vmatpush1.bf16.msra.mxu1 %v3446_v53  ;;  %2873 = vmatprep.subr.bf16.mxu0 %v2872_v54  ;;  %v243_v53 = vld [vmem:[%s7821_s1 + $0x660] sm:$0xff]  ;;  %v241_v54 = vld [vmem:[%s7821_s1 + $0x650] sm:$0xff]  ;;  %v2912_v47 = vpack.c.bf16 %v284_v42, %v280_v41  ;;  %v26_v30 = vld [vmem:[%s7820_s0 + $0x28] sm:$0xff] }
  0x54   :  { %3449 = vmatprep.subr.bf16.mxu1 %v3448_v58  ;;  %v252_v58 = vld [vmem:[%s7821_s1 + $0x6a8] sm:$0xff]  ;;  %v2894_v61 = vpack.c.bf16 %v243_v53, %v239_v52  ;;  %v3470_v62 = vpack.c.bf16 %v245_v56, %v241_v54  ;;  %v285_v52 = vld [vmem:[%s7821_s1 + $0x7b0] sm:$0xff]  ;;  %v294_v56 = vld [vmem:[%s7821_s1 + $0x7f8] sm:$0xff] }
  0x55   :  { %v2896_v63 = vpack.c.bf16 %v252_v58, %v248_v57  ;;  %v288_v53 = vld [vmem:[%s7821_s1 + $0x7c8] sm:$0xff]  ;;  %v322_v41 = vld [vmem:[%s7821_s1 + $0x8d8] sm:$0xff] }
  0x56   :  { %2875 = vmatpush1.bf16.msra.mxu0 %v2874_v0  ;;  %v247_v0 = vld [vmem:[%s7821_s1 + $0x680] sm:$0xff]  ;;  %v292_v54 = vld [vmem:[%s7821_s1 + $0x7e8] sm:$0xff]  ;;  %v326_v42 = vld [vmem:[%s7821_s1 + $0x8f8] sm:$0xff] }
  0x57   :  { %3451 = vmatpush1.bf16.msra.mxu1 %v3450_v1  ;;  %2877 = vmatprep.subr.bf16.mxu0 %v2876_v2  ;;  %v251_v1 = vld [vmem:[%s7821_s1 + $0x6a0] sm:$0xff]  ;;  %v249_v2 = vld [vmem:[%s7821_s1 + $0x690] sm:$0xff]  ;;  %v2916_v59 = vpack.c.bf16 %v292_v54, %v288_v53  ;;  %v330_v53 = vld [vmem:[%s7821_s1 + $0x918] sm:$0xff] }
  0x58   :  { %3453 = vmatprep.subr.bf16.mxu1 %v3452_v6  ;;  %v260_v6 = vld [vmem:[%s7821_s1 + $0x6e8] sm:$0xff]  ;;  %v2898_v9 = vpack.c.bf16 %v251_v1, %v247_v0  ;;  %v3474_v10 = vpack.c.bf16 %v253_v4, %v249_v2  ;;  %v293_v0 = vld [vmem:[%s7821_s1 + $0x7f0] sm:$0xff]  ;;  %v302_v4 = vld [vmem:[%s7821_s1 + $0x838] sm:$0xff] }
  0x59   :  { %v2900_v11 = vpack.c.bf16 %v260_v6, %v256_v5  ;;  %v296_v1 = vld [vmem:[%s7821_s1 + $0x808] sm:$0xff]  ;;  %v334_v54 = vld [vmem:[%s7821_s1 + $0x938] sm:$0xff] }
  0x5a   :  { %2879 = vmatpush1.bf16.msra.mxu0 %v2878_v12  ;;  %v255_v12 = vld [vmem:[%s7821_s1 + $0x6c0] sm:$0xff]  ;;  %v300_v2 = vld [vmem:[%s7821_s1 + $0x828] sm:$0xff] }
  0x5b   :  { %3455 = vmatpush1.bf16.msra.mxu1 %v3454_v14  ;;  %2881 = vmatprep.subr.bf16.mxu0 %v2880_v15  ;;  %v257_v14 = vld [vmem:[%s7821_s1 + $0x6d0] sm:$0xff]  ;;  %v3476_v15 = vpack.c.bf16 %v262_v8, %v258_v7  ;;  %v2902_v21 = vpack.c.bf16 %v259_v13, %v255_v12  ;;  %v2920_v7 = vpack.c.bf16 %v300_v2, %v296_v1  ;;  %v295_v8 = vld [vmem:[%s7821_s1 + $0x800] sm:$0xff]  ;;  %v304_v13 = vld [vmem:[%s7821_s1 + $0x848] sm:$0xff] }
  0x5c   :  { %3457 = vmatprep.subr.bf16.mxu1 %v3456_v19  ;;  %v266_v19 = vld [vmem:[%s7821_s1 + $0x718] sm:$0xff]  ;;  %v3478_v22 = vpack.c.bf16 %v261_v16, %v257_v14  ;;  %v301_v12 = vld [vmem:[%s7821_s1 + $0x830] sm:$0xff]  ;;  %v308_v14 = vld [vmem:[%s7821_s1 + $0x868] sm:$0xff] }
  0x5d   :  { %v310_v16 = vld [vmem:[%s7821_s1 + $0x878] sm:$0xff] }
  0x5e   :  { %2883 = vmatpush1.bf16.msra.mxu0 %v2882_v25  ;;  %v267_v25 = vld [vmem:[%s7821_s1 + $0x720] sm:$0xff]  ;;  %v338_v1 = vld [vmem:[%s7821_s1 + $0x958] sm:$0xff] }
  0x5f   :  { %3459 = vmatpush1.bf16.msra.mxu1 %v3458_v26  ;;  %2885 = vmatprep.subr.bf16.mxu0 %v2884_v27  ;;  %v265_v26 = vld [vmem:[%s7821_s1 + $0x710] sm:$0xff]  ;;  %v3480_v27 = vpack.c.bf16 %v270_v20, %v266_v19  ;;  %v2906_v33 = vpack.c.bf16 %v267_v25, %v263_v24  ;;  %v2924_v20 = vpack.c.bf16 %v308_v14, %v304_v13  ;;  %v342_v2 = vld [vmem:[%s7821_s1 + $0x978] sm:$0xff] }
  0x60   :  { %3461 = vmatprep.subr.bf16.mxu1 %v3460_v31  ;;  %v274_v31 = vld [vmem:[%s7821_s1 + $0x758] sm:$0xff]  ;;  %v3482_v34 = vpack.c.bf16 %v269_v28, %v265_v26  ;;  %v309_v25 = vld [vmem:[%s7821_s1 + $0x870] sm:$0xff]  ;;  %v312_v26 = vld [vmem:[%s7821_s1 + $0x888] sm:$0xff] }
  0x61   :  { %v314_v28 = vld [vmem:[%s7821_s1 + $0x898] sm:$0xff] }
  0x62   :  { %2887 = vmatpush1.bf16.msra.mxu0 %v2886_v37  ;;  %v275_v37 = vld [vmem:[%s7821_s1 + $0x760] sm:$0xff]  ;;  %v346_v13 = vld [vmem:[%s7821_s1 + $0x998] sm:$0xff] }
  0x63   :  { %3463 = vmatpush1.bf16.msra.mxu1 %v3462_v38  ;;  %2889 = vmatprep.subr.bf16.mxu0 %v2888_v39  ;;  %v273_v38 = vld [vmem:[%s7821_s1 + $0x750] sm:$0xff]  ;;  %v3484_v39 = vpack.c.bf16 %v278_v32, %v274_v31  ;;  %v2910_v45 = vpack.c.bf16 %v275_v37, %v271_v36  ;;  %v3504_v37 = vpack.c.bf16 %v318_v29, %v314_v28  ;;  %v350_v14 = vld [vmem:[%s7821_s1 + $0x9b8] sm:$0xff] }
  0x64   :  { %3465 = vmatprep.subr.bf16.mxu1 %v3464_v43  ;;  %v282_v43 = vld [vmem:[%s7821_s1 + $0x798] sm:$0xff]  ;;  %v3486_v46 = vpack.c.bf16 %v277_v40, %v273_v38  ;;  %v313_v36 = vld [vmem:[%s7821_s1 + $0x890] sm:$0xff]  ;;  %v324_v40 = vld [vmem:[%s7821_s1 + $0x8e8] sm:$0xff] }
  0x65   :  { %v317_v38 = vld [vmem:[%s7821_s1 + $0x8b0] sm:$0xff] }
  0x66   :  { %2891 = vmatpush1.bf16.msra.mxu0 %v2890_v49  ;;  %v283_v49 = vld [vmem:[%s7821_s1 + $0x7a0] sm:$0xff] }
  0x67   :  { %3467 = vmatpush1.bf16.msra.mxu1 %v3466_v50  ;;  %2893 = vmatprep.subr.bf16.mxu0 %v2892_v51  ;;  %v281_v50 = vld [vmem:[%s7821_s1 + $0x790] sm:$0xff]  ;;  %v3488_v51 = vpack.c.bf16 %v286_v44, %v282_v43  ;;  %v2914_v57 = vpack.c.bf16 %v283_v49, %v279_v48  ;;  %v3506_v44 = vpack.c.bf16 %v317_v38, %v313_v36  ;;  %v364_v36 = vld [vmem:[%s7821_s1 + $0xa28] sm:$0xff]  ;;  %v366_v38 = vld [vmem:[%s7821_s1 + $0xa38] sm:$0xff] }
  0x68   :  { %3469 = vmatprep.subr.bf16.mxu1 %v3468_v55  ;;  %v290_v55 = vld [vmem:[%s7821_s1 + $0x7d8] sm:$0xff]  ;;  %v3490_v58 = vpack.c.bf16 %v285_v52, %v281_v50  ;;  %v321_v48 = vld [vmem:[%s7821_s1 + $0x8d0] sm:$0xff]  ;;  %v3508_v49 = vpack.c.bf16 %v326_v42, %v322_v41  ;;  %v332_v52 = vld [vmem:[%s7821_s1 + $0x928] sm:$0xff] }
  0x69   :  { %v325_v50 = vld [vmem:[%s7821_s1 + $0x8f0] sm:$0xff]  ;;  %v359_v42 = vld [vmem:[%s7821_s1 + $0xa00] sm:$0xff] }
  0x6a   :  { %2895 = vmatpush1.bf16.msra.mxu0 %v2894_v61  ;;  %v291_v61 = vld [vmem:[%s7821_s1 + $0x7e0] sm:$0xff] }
  0x6b   :  { %3471 = vmatpush1.bf16.msra.mxu1 %v3470_v62  ;;  %2897 = vmatprep.subr.bf16.mxu0 %v2896_v63  ;;  %v289_v62 = vld [vmem:[%s7821_s1 + $0x7d0] sm:$0xff]  ;;  %v3492_v63 = vpack.c.bf16 %v294_v56, %v290_v55  ;;  %v2918_v5 = vpack.c.bf16 %v291_v61, %v287_v60  ;;  %v3510_v56 = vpack.c.bf16 %v325_v50, %v321_v48  ;;  %v372_v48 = vld [vmem:[%s7821_s1 + $0xa68] sm:$0xff]  ;;  %v374_v50 = vld [vmem:[%s7821_s1 + $0xa78] sm:$0xff] }
  0x6c   :  { %3473 = vmatprep.subr.bf16.mxu1 %v3472_v3  ;;  %v298_v3 = vld [vmem:[%s7821_s1 + $0x818] sm:$0xff]  ;;  %v3494_v6 = vpack.c.bf16 %v293_v0, %v289_v62  ;;  %v329_v60 = vld [vmem:[%s7821_s1 + $0x910] sm:$0xff]  ;;  %v3512_v61 = vpack.c.bf16 %v334_v54, %v330_v53  ;;  %v340_v0 = vld [vmem:[%s7821_s1 + $0x968] sm:$0xff] }
  0x6d   :  { %v333_v62 = vld [vmem:[%s7821_s1 + $0x930] sm:$0xff]  ;;  %v367_v54 = vld [vmem:[%s7821_s1 + $0xa40] sm:$0xff] }
  0x6e   :  { %2899 = vmatpush1.bf16.msra.mxu0 %v2898_v9  ;;  %v299_v9 = vld [vmem:[%s7821_s1 + $0x820] sm:$0xff] }
  0x6f   :  { %3475 = vmatpush1.bf16.msra.mxu1 %v3474_v10  ;;  %2901 = vmatprep.subr.bf16.mxu0 %v2900_v11  ;;  %v297_v10 = vld [vmem:[%s7821_s1 + $0x810] sm:$0xff]  ;;  %v3496_v11 = vpack.c.bf16 %v302_v4, %v298_v3  ;;  %v2922_v18 = vpack.c.bf16 %v299_v9, %v295_v8  ;;  %v3514_v4 = vpack.c.bf16 %v333_v62, %v329_v60  ;;  %v380_v60 = vld [vmem:[%s7821_s1 + $0xaa8] sm:$0xff]  ;;  %v382_v62 = vld [vmem:[%s7821_s1 + $0xab8] sm:$0xff] }
  0x70   :  { %3477 = vmatprep.subr.bf16.mxu1 %v3476_v15  ;;  %v306_v15 = vld [vmem:[%s7821_s1 + $0x858] sm:$0xff]  ;;  %v3498_v19 = vpack.c.bf16 %v301_v12, %v297_v10  ;;  %v337_v8 = vld [vmem:[%s7821_s1 + $0x950] sm:$0xff]  ;;  %v3516_v9 = vpack.c.bf16 %v342_v2, %v338_v1  ;;  %v348_v12 = vld [vmem:[%s7821_s1 + $0x9a8] sm:$0xff] }
  0x71   :  { %v3500_v24 = vpack.c.bf16 %v310_v16, %v306_v15  ;;  %v341_v10 = vld [vmem:[%s7821_s1 + $0x970] sm:$0xff]  ;;  %v375_v2 = vld [vmem:[%s7821_s1 + $0xa80] sm:$0xff] }
  0x72   :  { %2903 = vmatpush1.bf16.msra.mxu0 %v2902_v21  ;;  %v303_v21 = vld [vmem:[%s7821_s1 + $0x840] sm:$0xff]  ;;  %v3518_v16 = vpack.c.bf16 %v341_v10, %v337_v8  ;;  %v388_v8 = vld [vmem:[%s7821_s1 + $0xae8] sm:$0xff]  ;;  %v390_v10 = vld [vmem:[%s7821_s1 + $0xaf8] sm:$0xff] }
  0x73   :  { %3479 = vmatpush1.bf16.msra.mxu1 %v3478_v22  ;;  %2905 = vmatprep.subr.bf16.mxu0 %v2904_v23  ;;  %v307_v22 = vld [vmem:[%s7821_s1 + $0x860] sm:$0xff]  ;;  %v305_v23 = vld [vmem:[%s7821_s1 + $0x850] sm:$0xff] }
  0x74   :  { %3481 = vmatprep.subr.bf16.mxu1 %v3480_v27  ;;  %v316_v27 = vld [vmem:[%s7821_s1 + $0x8a8] sm:$0xff]  ;;  %v2926_v31 = vpack.c.bf16 %v307_v22, %v303_v21  ;;  %v3502_v32 = vpack.c.bf16 %v309_v25, %v305_v23  ;;  %v3520_v21 = vpack.c.bf16 %v350_v14, %v346_v13  ;;  %v349_v22 = vld [vmem:[%s7821_s1 + $0x9b0] sm:$0xff]  ;;  %v354_v25 = vld [vmem:[%s7821_s1 + $0x9d8] sm:$0xff] }
  0x75   :  { %v352_v23 = vld [vmem:[%s7821_s1 + $0x9c8] sm:$0xff]  ;;  %v383_v14 = vld [vmem:[%s7821_s1 + $0xac0] sm:$0xff] }
  0x76   :  { %2907 = vmatpush1.bf16.msra.mxu0 %v2906_v33  ;;  %v2928_v33 = vpack.c.bf16 %v316_v27, %v312_v26  ;;  %v358_v26 = vld [vmem:[%s7821_s1 + $0x9f8] sm:$0xff] }
  0x77   :  { %3483 = vmatpush1.bf16.msra.mxu1 %v3482_v34  ;;  %2909 = vmatprep.subr.bf16.mxu0 %v2908_v35  ;;  %v311_v34 = vld [vmem:[%s7821_s1 + $0x880] sm:$0xff] }
  0x78   :  { %3485 = vmatprep.subr.bf16.mxu1 %v3484_v39  ;;  %v315_v35 = vld [vmem:[%s7821_s1 + $0x8a0] sm:$0xff]  ;;  %v320_v39 = vld [vmem:[%s7821_s1 + $0x8c8] sm:$0xff] }
  0x79   :  { %v2930_v43 = vpack.c.bf16 %v315_v35, %v311_v34  ;;  %v357_v34 = vld [vmem:[%s7821_s1 + $0x9f0] sm:$0xff]  ;;  %v360_v35 = vld [vmem:[%s7821_s1 + $0xa08] sm:$0xff] }
  0x7a   :  { %2911 = vmatpush1.bf16.msra.mxu0 %v2910_v45  ;;  %v2932_v45 = vpack.c.bf16 %v324_v40, %v320_v39  ;;  %v2952_v41 = vpack.c.bf16 %v364_v36, %v360_v35 }
  0x7b   :  { %3487 = vmatpush1.bf16.msra.mxu1 %v3486_v46  ;;  %2913 = vmatprep.subr.bf16.mxu0 %v2912_v47  ;;  %v319_v46 = vld [vmem:[%s7821_s1 + $0x8c0] sm:$0xff] }
  0x7c   :  { %3489 = vmatprep.subr.bf16.mxu1 %v3488_v51  ;;  %v323_v47 = vld [vmem:[%s7821_s1 + $0x8e0] sm:$0xff]  ;;  %v328_v51 = vld [vmem:[%s7821_s1 + $0x908] sm:$0xff] }
  0x7d   :  { %v2934_v55 = vpack.c.bf16 %v323_v47, %v319_v46  ;;  %v365_v46 = vld [vmem:[%s7821_s1 + $0xa30] sm:$0xff]  ;;  %v368_v47 = vld [vmem:[%s7821_s1 + $0xa48] sm:$0xff] }
  0x7e   :  { %2915 = vmatpush1.bf16.msra.mxu0 %v2914_v57  ;;  %v2936_v57 = vpack.c.bf16 %v332_v52, %v328_v51  ;;  %v2956_v53 = vpack.c.bf16 %v372_v48, %v368_v47 }
  0x7f   :  { %3491 = vmatpush1.bf16.msra.mxu1 %v3490_v58  ;;  %2917 = vmatprep.subr.bf16.mxu0 %v2916_v59  ;;  %v327_v58 = vld [vmem:[%s7821_s1 + $0x900] sm:$0xff] }
  0x80   :  { %3493 = vmatprep.subr.bf16.mxu1 %v3492_v63  ;;  %v331_v59 = vld [vmem:[%s7821_s1 + $0x920] sm:$0xff]  ;;  %v336_v63 = vld [vmem:[%s7821_s1 + $0x948] sm:$0xff] }
  0x81   :  { %v2938_v3 = vpack.c.bf16 %v331_v59, %v327_v58  ;;  %v373_v58 = vld [vmem:[%s7821_s1 + $0xa70] sm:$0xff]  ;;  %v376_v59 = vld [vmem:[%s7821_s1 + $0xa88] sm:$0xff] }
  0x82   :  { %2919 = vmatpush1.bf16.msra.mxu0 %v2918_v5  ;;  %v2940_v5 = vpack.c.bf16 %v340_v0, %v336_v63  ;;  %v2960_v1 = vpack.c.bf16 %v380_v60, %v376_v59 }
  0x83   :  { %3495 = vmatpush1.bf16.msra.mxu1 %v3494_v6  ;;  %2921 = vmatprep.subr.bf16.mxu0 %v2920_v7  ;;  %v335_v6 = vld [vmem:[%s7821_s1 + $0x940] sm:$0xff] }
  0x84   :  { %3497 = vmatprep.subr.bf16.mxu1 %v3496_v11  ;;  %v339_v7 = vld [vmem:[%s7821_s1 + $0x960] sm:$0xff]  ;;  %v344_v11 = vld [vmem:[%s7821_s1 + $0x988] sm:$0xff] }
  0x85   :  { %1349 = vmatmul.mubr.f32.vlgmr.msra.gmra.mrb[0].mxu0 %v23_v17  ;;  %v2942_v15 = vpack.c.bf16 %v339_v7, %v335_v6  ;;  %v381_v6 = vld [vmem:[%s7821_s1 + $0xab0] sm:$0xff]  ;;  %v384_v7 = vld [vmem:[%s7821_s1 + $0xac8] sm:$0xff] }
  0x86   :  { %2923 = vmatpush1.bf16.msra.mxu0 %v2922_v18  ;;  %1988 = vmatmul.mubr.f32.vlgmr.msra.gmra.mrb[0].mxu1 %v23_v17  ;;  %v2944_v17 = vpack.c.bf16 %v348_v12, %v344_v11  ;;  %v343_v18 = vld [vmem:[%s7821_s1 + $0x980] sm:$0xff]  ;;  %v2964_v13 = vpack.c.bf16 %v388_v8, %v384_v7 }
  0x87   :  { %3499 = vmatpush1.bf16.msra.mxu1 %v3498_v19  ;;  %2925 = vmatprep.subr.bf16.mxu0 %v2924_v20  ;;  %v347_v19 = vld [vmem:[%s7821_s1 + $0x9a0] sm:$0xff]  ;;  %v345_v20 = vld [vmem:[%s7821_s1 + $0x990] sm:$0xff] }
  0x88   :  { %3501 = vmatprep.subr.bf16.mxu1 %v3500_v24  ;;  %1419 = vmatprep.mubr.f32.mxu0 %v26_v30  ;;  %v356_v24 = vld [vmem:[%s7821_s1 + $0x9e8] sm:$0xff]  ;;  %v2946_v27 = vpack.c.bf16 %v347_v19, %v343_v18  ;;  %v3522_v28 = vpack.c.bf16 %v349_v22, %v345_v20  ;;  %v389_v18 = vld [vmem:[%s7821_s1 + $0xaf0] sm:$0xff]  ;;  %v398_v22 = vld [vmem:[%s7821_s1 + $0xb38] sm:$0xff] }
  0x89   :  { %2058 = vmatprep.mubr.f32.mxu1 %v26_v30  ;;  %v2948_v29 = vpack.c.bf16 %v356_v24, %v352_v23  ;;  %v351_v30 = vld [vmem:[%s7821_s1 + $0x9c0] sm:$0xff]  ;;  %v392_v19 = vld [vmem:[%s7821_s1 + $0xb08] sm:$0xff] }
  0x8a   :  { %2927 = vmatpush1.bf16.msra.mxu0 %v2926_v31  ;;  %v355_v31 = vld [vmem:[%s7821_s1 + $0x9e0] sm:$0xff]  ;;  %v396_v20 = vld [vmem:[%s7821_s1 + $0xb28] sm:$0xff] }
  0x8b   :  { %3503 = vmatpush1.bf16.msra.mxu1 %v3502_v32  ;;  %2929 = vmatprep.subr.bf16.mxu0 %v2928_v33  ;;  %v353_v32 = vld [vmem:[%s7821_s1 + $0x9d0] sm:$0xff]  ;;  %v3524_v33 = vpack.c.bf16 %v358_v26, %v354_v25  ;;  %v2950_v39 = vpack.c.bf16 %v355_v31, %v351_v30  ;;  %v2968_v25 = vpack.c.bf16 %v396_v20, %v392_v19  ;;  %v391_v26 = vld [vmem:[%s7821_s1 + $0xb00] sm:$0xff]  ;;  %v400_v31 = vld [vmem:[%s7821_s1 + $0xb48] sm:$0xff] }
  0x8c   :  { %3505 = vmatprep.subr.bf16.mxu1 %v3504_v37  ;;  %v362_v37 = vld [vmem:[%s7821_s1 + $0xa18] sm:$0xff]  ;;  %v3526_v40 = vpack.c.bf16 %v357_v34, %v353_v32  ;;  %v397_v30 = vld [vmem:[%s7821_s1 + $0xb30] sm:$0xff]  ;;  %v404_v32 = vld [vmem:[%s7821_s1 + $0xb68] sm:$0xff] }
  0x8d   :  { %v406_v34 = vld [vmem:[%s7821_s1 + $0xb78] sm:$0xff]  ;;  %v25_v19 = vld [vmem:[%s7820_s0 + $0x20] sm:$0xff] }
  0x8e   :  { %2931 = vmatpush1.bf16.msra.mxu0 %v2930_v43  ;;  %v363_v43 = vld [vmem:[%s7821_s1 + $0xa20] sm:$0xff] }
  0x8f   :  { %3507 = vmatpush1.bf16.msra.mxu1 %v3506_v44  ;;  %2933 = vmatprep.subr.bf16.mxu0 %v2932_v45  ;;  %v361_v44 = vld [vmem:[%s7821_s1 + $0xa10] sm:$0xff]  ;;  %v3528_v45 = vpack.c.bf16 %v366_v38, %v362_v37  ;;  %v2954_v51 = vpack.c.bf16 %v363_v43, %v359_v42  ;;  %v2972_v37 = vpack.c.bf16 %v404_v32, %v400_v31  ;;  %v399_v38 = vld [vmem:[%s7821_s1 + $0xb40] sm:$0xff]  ;;  %v408_v43 = vld [vmem:[%s7821_s1 + $0xb88] sm:$0xff] }
  0x90   :  { %3509 = vmatprep.subr.bf16.mxu1 %v3508_v49  ;;  %v370_v49 = vld [vmem:[%s7821_s1 + $0xa58] sm:$0xff]  ;;  %v3530_v52 = vpack.c.bf16 %v365_v46, %v361_v44  ;;  %v405_v42 = vld [vmem:[%s7821_s1 + $0xb70] sm:$0xff]  ;;  %v412_v44 = vld [vmem:[%s7821_s1 + $0xba8] sm:$0xff] }
  0x91   :  { %v414_v46 = vld [vmem:[%s7821_s1 + $0xbb8] sm:$0xff] }
  0x92   :  { %2935 = vmatpush1.bf16.msra.mxu0 %v2934_v55  ;;  %v371_v55 = vld [vmem:[%s7821_s1 + $0xa60] sm:$0xff]  ;;  %v446_v31 = vld [vmem:[%s7821_s1 + $0xcb8] sm:$0xff] }
  0x93   :  { %3511 = vmatpush1.bf16.msra.mxu1 %v3510_v56  ;;  %2937 = vmatprep.subr.bf16.mxu0 %v2936_v57  ;;  %v369_v56 = vld [vmem:[%s7821_s1 + $0xa50] sm:$0xff]  ;;  %v3532_v57 = vpack.c.bf16 %v374_v50, %v370_v49  ;;  %v2958_v63 = vpack.c.bf16 %v371_v55, %v367_v54  ;;  %v2976_v49 = vpack.c.bf16 %v412_v44, %v408_v43  ;;  %v407_v50 = vld [vmem:[%s7821_s1 + $0xb80] sm:$0xff]  ;;  %v416_v55 = vld [vmem:[%s7821_s1 + $0xbc8] sm:$0xff] }
  0x94   :  { %3513 = vmatprep.subr.bf16.mxu1 %v3512_v61  ;;  %v378_v61 = vld [vmem:[%s7821_s1 + $0xa98] sm:$0xff]  ;;  %v3534_v0 = vpack.c.bf16 %v373_v58, %v369_v56  ;;  %v413_v54 = vld [vmem:[%s7821_s1 + $0xbb0] sm:$0xff]  ;;  %v420_v56 = vld [vmem:[%s7821_s1 + $0xbe8] sm:$0xff] }
  0x95   :  { %v422_v58 = vld [vmem:[%s7821_s1 + $0xbf8] sm:$0xff] }
  0x96   :  { %2939 = vmatpush1.bf16.msra.mxu0 %v2938_v3  ;;  %v379_v3 = vld [vmem:[%s7821_s1 + $0xaa0] sm:$0xff]  ;;  %v28_v32 = vld [vmem:[%s7820_s0 + $0x38] sm:$0xff] }
  0x97   :  { %3515 = vmatpush1.bf16.msra.mxu1 %v3514_v4  ;;  %2941 = vmatprep.subr.bf16.mxu0 %v2940_v5  ;;  %v377_v4 = vld [vmem:[%s7821_s1 + $0xa90] sm:$0xff]  ;;  %v3536_v5 = vpack.c.bf16 %v382_v62, %v378_v61  ;;  %v2962_v11 = vpack.c.bf16 %v379_v3, %v375_v2  ;;  %v2980_v61 = vpack.c.bf16 %v420_v56, %v416_v55  ;;  %v415_v62 = vld [vmem:[%s7821_s1 + $0xbc0] sm:$0xff]  ;;  %v424_v3 = vld [vmem:[%s7821_s1 + $0xc08] sm:$0xff] }
  0x98   :  { %3517 = vmatprep.subr.bf16.mxu1 %v3516_v9  ;;  %v386_v9 = vld [vmem:[%s7821_s1 + $0xad8] sm:$0xff]  ;;  %v3538_v12 = vpack.c.bf16 %v381_v6, %v377_v4  ;;  %v421_v2 = vld [vmem:[%s7821_s1 + $0xbf0] sm:$0xff]  ;;  %v428_v4 = vld [vmem:[%s7821_s1 + $0xc28] sm:$0xff] }
  0x99   :  { %v430_v6 = vld [vmem:[%s7821_s1 + $0xc38] sm:$0xff] }
  0x9a   :  { %2943 = vmatpush1.bf16.msra.mxu0 %v2942_v15  ;;  %v387_v15 = vld [vmem:[%s7821_s1 + $0xae0] sm:$0xff]  ;;  %v450_v43 = vld [vmem:[%s7821_s1 + $0xcd8] sm:$0xff] }
  0x9b   :  { %3519 = vmatpush1.bf16.msra.mxu1 %v3518_v16  ;;  %2945 = vmatprep.subr.bf16.mxu0 %v2944_v17  ;;  %v385_v16 = vld [vmem:[%s7821_s1 + $0xad0] sm:$0xff]  ;;  %v3540_v17 = vpack.c.bf16 %v390_v10, %v386_v9  ;;  %v2966_v23 = vpack.c.bf16 %v387_v15, %v383_v14  ;;  %v2984_v9 = vpack.c.bf16 %v428_v4, %v424_v3  ;;  %v423_v10 = vld [vmem:[%s7821_s1 + $0xc00] sm:$0xff]  ;;  %v432_v15 = vld [vmem:[%s7821_s1 + $0xc48] sm:$0xff] }
  0x9c   :  { %3521 = vmatprep.subr.bf16.mxu1 %v3520_v21  ;;  %v394_v21 = vld [vmem:[%s7821_s1 + $0xb18] sm:$0xff]  ;;  %v3542_v24 = vpack.c.bf16 %v389_v18, %v385_v16  ;;  %v429_v14 = vld [vmem:[%s7821_s1 + $0xc30] sm:$0xff]  ;;  %v436_v16 = vld [vmem:[%s7821_s1 + $0xc68] sm:$0xff] }
  0x9d   :  { %v438_v18 = vld [vmem:[%s7821_s1 + $0xc78] sm:$0xff] }
  0x9e   :  { %2947 = vmatpush1.bf16.msra.mxu0 %v2946_v27  ;;  %v395_v27 = vld [vmem:[%s7821_s1 + $0xb20] sm:$0xff]  ;;  %v454_v44 = vld [vmem:[%s7821_s1 + $0xcf8] sm:$0xff] }
  0x9f   :  { %3523 = vmatpush1.bf16.msra.mxu1 %v3522_v28  ;;  %2949 = vmatprep.subr.bf16.mxu0 %v2948_v29  ;;  %v393_v28 = vld [vmem:[%s7821_s1 + $0xb10] sm:$0xff]  ;;  %v3544_v29 = vpack.c.bf16 %v398_v22, %v394_v21  ;;  %v2970_v35 = vpack.c.bf16 %v395_v27, %v391_v26  ;;  %v2988_v22 = vpack.c.bf16 %v436_v16, %v432_v15  ;;  %v458_v55 = vld [vmem:[%s7821_s1 + $0xd18] sm:$0xff] }
  0xa0   :  { %3525 = vmatprep.subr.bf16.mxu1 %v3524_v33  ;;  %v402_v33 = vld [vmem:[%s7821_s1 + $0xb58] sm:$0xff]  ;;  %v3546_v36 = vpack.c.bf16 %v397_v30, %v393_v28  ;;  %v437_v27 = vld [vmem:[%s7821_s1 + $0xc70] sm:$0xff]  ;;  %v440_v28 = vld [vmem:[%s7821_s1 + $0xc88] sm:$0xff] }
  0xa1   :  { %v442_v30 = vld [vmem:[%s7821_s1 + $0xc98] sm:$0xff] }
  0xa2   :  { %2951 = vmatpush1.bf16.msra.mxu0 %v2950_v39  ;;  %v403_v39 = vld [vmem:[%s7821_s1 + $0xb60] sm:$0xff]  ;;  %v462_v56 = vld [vmem:[%s7821_s1 + $0xd38] sm:$0xff] }
  0xa3   :  { %3527 = vmatpush1.bf16.msra.mxu1 %v3526_v40  ;;  %2953 = vmatprep.subr.bf16.mxu0 %v2952_v41  ;;  %v401_v40 = vld [vmem:[%s7821_s1 + $0xb50] sm:$0xff]  ;;  %v3548_v41 = vpack.c.bf16 %v406_v34, %v402_v33  ;;  %v2974_v47 = vpack.c.bf16 %v403_v39, %v399_v38  ;;  %v3568_v39 = vpack.c.bf16 %v446_v31, %v442_v30  ;;  %v466_v3 = vld [vmem:[%s7821_s1 + $0xd58] sm:$0xff] }
  0xa4   :  { %3529 = vmatprep.subr.bf16.mxu1 %v3528_v45  ;;  %v410_v45 = vld [vmem:[%s7821_s1 + $0xb98] sm:$0xff]  ;;  %v3550_v48 = vpack.c.bf16 %v405_v42, %v401_v40  ;;  %v441_v38 = vld [vmem:[%s7821_s1 + $0xc90] sm:$0xff]  ;;  %v452_v42 = vld [vmem:[%s7821_s1 + $0xce8] sm:$0xff] }
  0xa5   :  { %v445_v40 = vld [vmem:[%s7821_s1 + $0xcb0] sm:$0xff]  ;;  %v470_v4 = vld [vmem:[%s7821_s1 + $0xd78] sm:$0xff] }
  0xa6   :  { %2955 = vmatpush1.bf16.msra.mxu0 %v2954_v51  ;;  %v411_v51 = vld [vmem:[%s7821_s1 + $0xba0] sm:$0xff]  ;;  %v474_v15 = vld [vmem:[%s7821_s1 + $0xd98] sm:$0xff] }
  0xa7   :  { %3531 = vmatpush1.bf16.msra.mxu1 %v3530_v52  ;;  %2957 = vmatprep.subr.bf16.mxu0 %v2956_v53  ;;  %v409_v52 = vld [vmem:[%s7821_s1 + $0xb90] sm:$0xff]  ;;  %v3552_v53 = vpack.c.bf16 %v414_v46, %v410_v45  ;;  %v2978_v59 = vpack.c.bf16 %v411_v51, %v407_v50  ;;  %v3570_v46 = vpack.c.bf16 %v445_v40, %v441_v38  ;;  %v478_v16 = vld [vmem:[%s7821_s1 + $0xdb8] sm:$0xff]  ;;  %v492_v38 = vld [vmem:[%s7821_s1 + $0xe28] sm:$0xff] }
  0xa8   :  { %3533 = vmatprep.subr.bf16.mxu1 %v3532_v57  ;;  %v418_v57 = vld [vmem:[%s7821_s1 + $0xbd8] sm:$0xff]  ;;  %v3554_v60 = vpack.c.bf16 %v413_v54, %v409_v52  ;;  %v449_v50 = vld [vmem:[%s7821_s1 + $0xcd0] sm:$0xff]  ;;  %v3572_v51 = vpack.c.bf16 %v454_v44, %v450_v43  ;;  %v460_v54 = vld [vmem:[%s7821_s1 + $0xd28] sm:$0xff] }
  0xa9   :  { %v453_v52 = vld [vmem:[%s7821_s1 + $0xcf0] sm:$0xff]  ;;  %v494_v40 = vld [vmem:[%s7821_s1 + $0xe38] sm:$0xff]  ;;  %v487_v44 = vld [vmem:[%s7821_s1 + $0xe00] sm:$0xff] }
  0xaa   :  { %2959 = vmatpush1.bf16.msra.mxu0 %v2958_v63  ;;  %v419_v63 = vld [vmem:[%s7821_s1 + $0xbe0] sm:$0xff] }
  0xab   :  { %3535 = vmatpush1.bf16.msra.mxu1 %v3534_v0  ;;  %2961 = vmatprep.subr.bf16.mxu0 %v2960_v1  ;;  %v417_v0 = vld [vmem:[%s7821_s1 + $0xbd0] sm:$0xff]  ;;  %v3556_v1 = vpack.c.bf16 %v422_v58, %v418_v57  ;;  %v2982_v7 = vpack.c.bf16 %v419_v63, %v415_v62  ;;  %v3574_v58 = vpack.c.bf16 %v453_v52, %v449_v50  ;;  %v500_v50 = vld [vmem:[%s7821_s1 + $0xe68] sm:$0xff]  ;;  %v502_v52 = vld [vmem:[%s7821_s1 + $0xe78] sm:$0xff] }
  0xac   :  { %3537 = vmatprep.subr.bf16.mxu1 %v3536_v5  ;;  %v426_v5 = vld [vmem:[%s7821_s1 + $0xc18] sm:$0xff]  ;;  %v3558_v8 = vpack.c.bf16 %v421_v2, %v417_v0  ;;  %v457_v62 = vld [vmem:[%s7821_s1 + $0xd10] sm:$0xff]  ;;  %v3576_v63 = vpack.c.bf16 %v462_v56, %v458_v55  ;;  %v468_v2 = vld [vmem:[%s7821_s1 + $0xd68] sm:$0xff] }
  0xad   :  { %v461_v0 = vld [vmem:[%s7821_s1 + $0xd30] sm:$0xff]  ;;  %v495_v56 = vld [vmem:[%s7821_s1 + $0xe40] sm:$0xff] }
  0xae   :  { %2963 = vmatpush1.bf16.msra.mxu0 %v2962_v11  ;;  %v427_v11 = vld [vmem:[%s7821_s1 + $0xc20] sm:$0xff] }
  0xaf   :  { %3539 = vmatpush1.bf16.msra.mxu1 %v3538_v12  ;;  %2965 = vmatprep.subr.bf16.mxu0 %v2964_v13  ;;  %v425_v12 = vld [vmem:[%s7821_s1 + $0xc10] sm:$0xff]  ;;  %v3560_v13 = vpack.c.bf16 %v430_v6, %v426_v5  ;;  %v2986_v20 = vpack.c.bf16 %v427_v11, %v423_v10  ;;  %v3578_v6 = vpack.c.bf16 %v461_v0, %v457_v62  ;;  %v508_v62 = vld [vmem:[%s7821_s1 + $0xea8] sm:$0xff]  ;;  %v510_v0 = vld [vmem:[%s7821_s1 + $0xeb8] sm:$0xff] }
  0xb0   :  { %3541 = vmatprep.subr.bf16.mxu1 %v3540_v17  ;;  %v434_v17 = vld [vmem:[%s7821_s1 + $0xc58] sm:$0xff]  ;;  %v3562_v21 = vpack.c.bf16 %v429_v14, %v425_v12  ;;  %v465_v10 = vld [vmem:[%s7821_s1 + $0xd50] sm:$0xff]  ;;  %v3580_v11 = vpack.c.bf16 %v470_v4, %v466_v3  ;;  %v476_v14 = vld [vmem:[%s7821_s1 + $0xda8] sm:$0xff] }
  0xb1   :  { %v3564_v26 = vpack.c.bf16 %v438_v18, %v434_v17  ;;  %v469_v12 = vld [vmem:[%s7821_s1 + $0xd70] sm:$0xff]  ;;  %v503_v4 = vld [vmem:[%s7821_s1 + $0xe80] sm:$0xff] }
  0xb2   :  { %2967 = vmatpush1.bf16.msra.mxu0 %v2966_v23  ;;  %v431_v23 = vld [vmem:[%s7821_s1 + $0xc40] sm:$0xff]  ;;  %v3582_v18 = vpack.c.bf16 %v469_v12, %v465_v10  ;;  %v516_v10 = vld [vmem:[%s7821_s1 + $0xee8] sm:$0xff]  ;;  %v518_v12 = vld [vmem:[%s7821_s1 + $0xef8] sm:$0xff] }
  0xb3   :  { %3543 = vmatpush1.bf16.msra.mxu1 %v3542_v24  ;;  %2969 = vmatprep.subr.bf16.mxu0 %v2968_v25  ;;  %v435_v24 = vld [vmem:[%s7821_s1 + $0xc60] sm:$0xff]  ;;  %v433_v25 = vld [vmem:[%s7821_s1 + $0xc50] sm:$0xff] }
  0xb4   :  { %3545 = vmatprep.subr.bf16.mxu1 %v3544_v29  ;;  %v444_v29 = vld [vmem:[%s7821_s1 + $0xca8] sm:$0xff]  ;;  %v2990_v33 = vpack.c.bf16 %v435_v24, %v431_v23  ;;  %v3566_v34 = vpack.c.bf16 %v437_v27, %v433_v25  ;;  %v3584_v23 = vpack.c.bf16 %v478_v16, %v474_v15  ;;  %v477_v24 = vld [vmem:[%s7821_s1 + $0xdb0] sm:$0xff]  ;;  %v482_v27 = vld [vmem:[%s7821_s1 + $0xdd8] sm:$0xff] }
  0xb5   :  { %v480_v25 = vld [vmem:[%s7821_s1 + $0xdc8] sm:$0xff]  ;;  %v511_v16 = vld [vmem:[%s7821_s1 + $0xec0] sm:$0xff] }
  0xb6   :  { %2971 = vmatpush1.bf16.msra.mxu0 %v2970_v35  ;;  %v2992_v35 = vpack.c.bf16 %v444_v29, %v440_v28  ;;  %v486_v28 = vld [vmem:[%s7821_s1 + $0xdf8] sm:$0xff] }
  0xb7   :  { %3547 = vmatpush1.bf16.msra.mxu1 %v3546_v36  ;;  %2973 = vmatprep.subr.bf16.mxu0 %v2972_v37  ;;  %v439_v36 = vld [vmem:[%s7821_s1 + $0xc80] sm:$0xff] }
  0xb8   :  { %3549 = vmatprep.subr.bf16.mxu1 %v3548_v41  ;;  %v443_v37 = vld [vmem:[%s7821_s1 + $0xca0] sm:$0xff]  ;;  %v448_v41 = vld [vmem:[%s7821_s1 + $0xcc8] sm:$0xff] }
  0xb9   :  { %v2994_v45 = vpack.c.bf16 %v443_v37, %v439_v36  ;;  %v485_v36 = vld [vmem:[%s7821_s1 + $0xdf0] sm:$0xff]  ;;  %v488_v37 = vld [vmem:[%s7821_s1 + $0xe08] sm:$0xff] }
  0xba   :  { %2975 = vmatpush1.bf16.msra.mxu0 %v2974_v47  ;;  %v2996_v47 = vpack.c.bf16 %v452_v42, %v448_v41  ;;  %v3016_v43 = vpack.c.bf16 %v492_v38, %v488_v37 }
  0xbb   :  { %3551 = vmatpush1.bf16.msra.mxu1 %v3550_v48  ;;  %2977 = vmatprep.subr.bf16.mxu0 %v2976_v49  ;;  %v447_v48 = vld [vmem:[%s7821_s1 + $0xcc0] sm:$0xff] }
  0xbc   :  { %3553 = vmatprep.subr.bf16.mxu1 %v3552_v53  ;;  %v451_v49 = vld [vmem:[%s7821_s1 + $0xce0] sm:$0xff]  ;;  %v456_v53 = vld [vmem:[%s7821_s1 + $0xd08] sm:$0xff] }
  0xbd   :  { %v2998_v57 = vpack.c.bf16 %v451_v49, %v447_v48  ;;  %v493_v48 = vld [vmem:[%s7821_s1 + $0xe30] sm:$0xff]  ;;  %v496_v49 = vld [vmem:[%s7821_s1 + $0xe48] sm:$0xff] }
  0xbe   :  { %2979 = vmatpush1.bf16.msra.mxu0 %v2978_v59  ;;  %v3000_v59 = vpack.c.bf16 %v460_v54, %v456_v53  ;;  %v3020_v55 = vpack.c.bf16 %v500_v50, %v496_v49 }
  0xbf   :  { %3555 = vmatpush1.bf16.msra.mxu1 %v3554_v60  ;;  %2981 = vmatprep.subr.bf16.mxu0 %v2980_v61  ;;  %v455_v60 = vld [vmem:[%s7821_s1 + $0xd00] sm:$0xff] }
  0xc0   :  { %3557 = vmatprep.subr.bf16.mxu1 %v3556_v1  ;;  %v459_v61 = vld [vmem:[%s7821_s1 + $0xd20] sm:$0xff]  ;;  %v464_v1 = vld [vmem:[%s7821_s1 + $0xd48] sm:$0xff] }
  0xc1   :  { %v3002_v5 = vpack.c.bf16 %v459_v61, %v455_v60  ;;  %v501_v60 = vld [vmem:[%s7821_s1 + $0xe70] sm:$0xff]  ;;  %v504_v61 = vld [vmem:[%s7821_s1 + $0xe88] sm:$0xff] }
  0xc2   :  { %2983 = vmatpush1.bf16.msra.mxu0 %v2982_v7  ;;  %v3004_v7 = vpack.c.bf16 %v468_v2, %v464_v1  ;;  %v3024_v3 = vpack.c.bf16 %v508_v62, %v504_v61 }
  0xc3   :  { %3559 = vmatpush1.bf16.msra.mxu1 %v3558_v8  ;;  %2985 = vmatprep.subr.bf16.mxu0 %v2984_v9  ;;  %v463_v8 = vld [vmem:[%s7821_s1 + $0xd40] sm:$0xff] }
  0xc4   :  { %3561 = vmatprep.subr.bf16.mxu1 %v3560_v13  ;;  %v467_v9 = vld [vmem:[%s7821_s1 + $0xd60] sm:$0xff]  ;;  %v472_v13 = vld [vmem:[%s7821_s1 + $0xd88] sm:$0xff] }
  0xc5   :  { %1420 = vmatmul.mubr.f32.vlgmr.msra.gmra.mrb[0].mxu0 %v25_v19  ;;  %v3006_v17 = vpack.c.bf16 %v467_v9, %v463_v8  ;;  %v509_v8 = vld [vmem:[%s7821_s1 + $0xeb0] sm:$0xff]  ;;  %v512_v9 = vld [vmem:[%s7821_s1 + $0xec8] sm:$0xff] }
  0xc6   :  { %2987 = vmatpush1.bf16.msra.mxu0 %v2986_v20  ;;  %2059 = vmatmul.mubr.f32.vlgmr.msra.gmra.mrb[0].mxu1 %v25_v19  ;;  %v3008_v19 = vpack.c.bf16 %v476_v14, %v472_v13  ;;  %v471_v20 = vld [vmem:[%s7821_s1 + $0xd80] sm:$0xff]  ;;  %v3028_v15 = vpack.c.bf16 %v516_v10, %v512_v9 }
  0xc7   :  { %3563 = vmatpush1.bf16.msra.mxu1 %v3562_v21  ;;  %2989 = vmatprep.subr.bf16.mxu0 %v2988_v22  ;;  %v475_v21 = vld [vmem:[%s7821_s1 + $0xda0] sm:$0xff]  ;;  %v473_v22 = vld [vmem:[%s7821_s1 + $0xd90] sm:$0xff] }
  0xc8   :  { %3565 = vmatprep.subr.bf16.mxu1 %v3564_v26  ;;  %1490 = vmatprep.mubr.f32.mxu0 %v28_v32  ;;  %v484_v26 = vld [vmem:[%s7821_s1 + $0xde8] sm:$0xff]  ;;  %v3010_v29 = vpack.c.bf16 %v475_v21, %v471_v20  ;;  %v3586_v30 = vpack.c.bf16 %v477_v24, %v473_v22  ;;  %v517_v20 = vld [vmem:[%s7821_s1 + $0xef0] sm:$0xff]  ;;  %v526_v24 = vld [vmem:[%s7821_s1 + $0xf38] sm:$0xff] }
  0xc9   :  { %2129 = vmatprep.mubr.f32.mxu1 %v28_v32  ;;  %v3012_v31 = vpack.c.bf16 %v484_v26, %v480_v25  ;;  %v479_v32 = vld [vmem:[%s7821_s1 + $0xdc0] sm:$0xff]  ;;  %v520_v21 = vld [vmem:[%s7821_s1 + $0xf08] sm:$0xff] }
  0xca   :  { %2991 = vmatpush1.bf16.msra.mxu0 %v2990_v33  ;;  %v483_v33 = vld [vmem:[%s7821_s1 + $0xde0] sm:$0xff]  ;;  %v524_v22 = vld [vmem:[%s7821_s1 + $0xf28] sm:$0xff] }
  0xcb   :  { %3567 = vmatpush1.bf16.msra.mxu1 %v3566_v34  ;;  %2993 = vmatprep.subr.bf16.mxu0 %v2992_v35  ;;  %v481_v34 = vld [vmem:[%s7821_s1 + $0xdd0] sm:$0xff]  ;;  %v3588_v35 = vpack.c.bf16 %v486_v28, %v482_v27  ;;  %v3014_v41 = vpack.c.bf16 %v483_v33, %v479_v32  ;;  %v3032_v27 = vpack.c.bf16 %v524_v22, %v520_v21  ;;  %v519_v28 = vld [vmem:[%s7821_s1 + $0xf00] sm:$0xff]  ;;  %v528_v33 = vld [vmem:[%s7821_s1 + $0xf48] sm:$0xff] }
  0xcc   :  { %3569 = vmatprep.subr.bf16.mxu1 %v3568_v39  ;;  %v490_v39 = vld [vmem:[%s7821_s1 + $0xe18] sm:$0xff]  ;;  %v3590_v42 = vpack.c.bf16 %v485_v36, %v481_v34  ;;  %v525_v32 = vld [vmem:[%s7821_s1 + $0xf30] sm:$0xff]  ;;  %v532_v34 = vld [vmem:[%s7821_s1 + $0xf68] sm:$0xff] }
  0xcd   :  { %v534_v36 = vld [vmem:[%s7821_s1 + $0xf78] sm:$0xff]  ;;  %v27_v21 = vld [vmem:[%s7820_s0 + $0x30] sm:$0xff] }
  0xce   :  { %2995 = vmatpush1.bf16.msra.mxu0 %v2994_v45  ;;  %v491_v45 = vld [vmem:[%s7821_s1 + $0xe20] sm:$0xff] }
  0xcf   :  { %3571 = vmatpush1.bf16.msra.mxu1 %v3570_v46  ;;  %2997 = vmatprep.subr.bf16.mxu0 %v2996_v47  ;;  %v489_v46 = vld [vmem:[%s7821_s1 + $0xe10] sm:$0xff]  ;;  %v3592_v47 = vpack.c.bf16 %v494_v40, %v490_v39  ;;  %v3018_v53 = vpack.c.bf16 %v491_v45, %v487_v44  ;;  %v3036_v39 = vpack.c.bf16 %v532_v34, %v528_v33  ;;  %v527_v40 = vld [vmem:[%s7821_s1 + $0xf40] sm:$0xff]  ;;  %v536_v45 = vld [vmem:[%s7821_s1 + $0xf88] sm:$0xff] }
  0xd0   :  { %3573 = vmatprep.subr.bf16.mxu1 %v3572_v51  ;;  %v498_v51 = vld [vmem:[%s7821_s1 + $0xe58] sm:$0xff]  ;;  %v3594_v54 = vpack.c.bf16 %v493_v48, %v489_v46  ;;  %v533_v44 = vld [vmem:[%s7821_s1 + $0xf70] sm:$0xff]  ;;  %v540_v46 = vld [vmem:[%s7821_s1 + $0xfa8] sm:$0xff] }
  0xd1   :  { %v542_v48 = vld [vmem:[%s7821_s1 + $0xfb8] sm:$0xff]  ;;  %v30_v34 = vld [vmem:[%s7820_s0 + $0x48] sm:$0xff] }
  0xd2   :  { %2999 = vmatpush1.bf16.msra.mxu0 %v2998_v57  ;;  %v499_v57 = vld [vmem:[%s7821_s1 + $0xe60] sm:$0xff]  ;;  %v574_v33 = vld [vmem:[%s7821_s1 + $0x10b8] sm:$0xff] }
  0xd3   :  { %3575 = vmatpush1.bf16.msra.mxu1 %v3574_v58  ;;  %3001 = vmatprep.subr.bf16.mxu0 %v3000_v59  ;;  %v497_v58 = vld [vmem:[%s7821_s1 + $0xe50] sm:$0xff]  ;;  %v3596_v59 = vpack.c.bf16 %v502_v52, %v498_v51  ;;  %v3022_v1 = vpack.c.bf16 %v499_v57, %v495_v56  ;;  %v3040_v51 = vpack.c.bf16 %v540_v46, %v536_v45  ;;  %v535_v52 = vld [vmem:[%s7821_s1 + $0xf80] sm:$0xff]  ;;  %v544_v57 = vld [vmem:[%s7821_s1 + $0xfc8] sm:$0xff] }
  0xd4   :  { %3577 = vmatprep.subr.bf16.mxu1 %v3576_v63  ;;  %v506_v63 = vld [vmem:[%s7821_s1 + $0xe98] sm:$0xff]  ;;  %v3598_v2 = vpack.c.bf16 %v501_v60, %v497_v58  ;;  %v541_v56 = vld [vmem:[%s7821_s1 + $0xfb0] sm:$0xff]  ;;  %v548_v58 = vld [vmem:[%s7821_s1 + $0xfe8] sm:$0xff] }
  0xd5   :  { %v550_v60 = vld [vmem:[%s7821_s1 + $0xff8] sm:$0xff] }
  0xd6   :  { %3003 = vmatpush1.bf16.msra.mxu0 %v3002_v5  ;;  %v507_v5 = vld [vmem:[%s7821_s1 + $0xea0] sm:$0xff]  ;;  %v578_v45 = vld [vmem:[%s7821_s1 + $0x10d8] sm:$0xff] }
  0xd7   :  { %3579 = vmatpush1.bf16.msra.mxu1 %v3578_v6  ;;  %3005 = vmatprep.subr.bf16.mxu0 %v3004_v7  ;;  %v505_v6 = vld [vmem:[%s7821_s1 + $0xe90] sm:$0xff]  ;;  %v3600_v7 = vpack.c.bf16 %v510_v0, %v506_v63  ;;  %v3026_v13 = vpack.c.bf16 %v507_v5, %v503_v4  ;;  %v3044_v63 = vpack.c.bf16 %v548_v58, %v544_v57  ;;  %v543_v0 = vld [vmem:[%s7821_s1 + $0xfc0] sm:$0xff]  ;;  %v552_v5 = vld [vmem:[%s7821_s1 + $0x1008] sm:$0xff] }
  0xd8   :  { %3581 = vmatprep.subr.bf16.mxu1 %v3580_v11  ;;  %v514_v11 = vld [vmem:[%s7821_s1 + $0xed8] sm:$0xff]  ;;  %v3602_v14 = vpack.c.bf16 %v509_v8, %v505_v6  ;;  %v549_v4 = vld [vmem:[%s7821_s1 + $0xff0] sm:$0xff]  ;;  %v556_v6 = vld [vmem:[%s7821_s1 + $0x1028] sm:$0xff] }
  0xd9   :  { %v558_v8 = vld [vmem:[%s7821_s1 + $0x1038] sm:$0xff] }
  0xda   :  { %3007 = vmatpush1.bf16.msra.mxu0 %v3006_v17  ;;  %v515_v17 = vld [vmem:[%s7821_s1 + $0xee0] sm:$0xff]  ;;  %v582_v46 = vld [vmem:[%s7821_s1 + $0x10f8] sm:$0xff] }
  0xdb   :  { %3583 = vmatpush1.bf16.msra.mxu1 %v3582_v18  ;;  %3009 = vmatprep.subr.bf16.mxu0 %v3008_v19  ;;  %v513_v18 = vld [vmem:[%s7821_s1 + $0xed0] sm:$0xff]  ;;  %v3604_v19 = vpack.c.bf16 %v518_v12, %v514_v11  ;;  %v3030_v25 = vpack.c.bf16 %v515_v17, %v511_v16  ;;  %v3048_v11 = vpack.c.bf16 %v556_v6, %v552_v5  ;;  %v551_v12 = vld [vmem:[%s7821_s1 + $0x1000] sm:$0xff]  ;;  %v560_v17 = vld [vmem:[%s7821_s1 + $0x1048] sm:$0xff] }
  0xdc   :  { %3585 = vmatprep.subr.bf16.mxu1 %v3584_v23  ;;  %v522_v23 = vld [vmem:[%s7821_s1 + $0xf18] sm:$0xff]  ;;  %v3606_v26 = vpack.c.bf16 %v517_v20, %v513_v18  ;;  %v557_v16 = vld [vmem:[%s7821_s1 + $0x1030] sm:$0xff]  ;;  %v564_v18 = vld [vmem:[%s7821_s1 + $0x1068] sm:$0xff] }
  0xdd   :  { %v566_v20 = vld [vmem:[%s7821_s1 + $0x1078] sm:$0xff] }
  0xde   :  { %3011 = vmatpush1.bf16.msra.mxu0 %v3010_v29  ;;  %v523_v29 = vld [vmem:[%s7821_s1 + $0xf20] sm:$0xff]  ;;  %v586_v57 = vld [vmem:[%s7821_s1 + $0x1118] sm:$0xff] }
  0xdf   :  { %3587 = vmatpush1.bf16.msra.mxu1 %v3586_v30  ;;  %3013 = vmatprep.subr.bf16.mxu0 %v3012_v31  ;;  %v521_v30 = vld [vmem:[%s7821_s1 + $0xf10] sm:$0xff]  ;;  %v3608_v31 = vpack.c.bf16 %v526_v24, %v522_v23  ;;  %v3034_v37 = vpack.c.bf16 %v523_v29, %v519_v28  ;;  %v3052_v24 = vpack.c.bf16 %v564_v18, %v560_v17  ;;  %v590_v58 = vld [vmem:[%s7821_s1 + $0x1138] sm:$0xff] }
  0xe0   :  { %3589 = vmatprep.subr.bf16.mxu1 %v3588_v35  ;;  %v530_v35 = vld [vmem:[%s7821_s1 + $0xf58] sm:$0xff]  ;;  %v3610_v38 = vpack.c.bf16 %v525_v32, %v521_v30  ;;  %v565_v29 = vld [vmem:[%s7821_s1 + $0x1070] sm:$0xff]  ;;  %v568_v30 = vld [vmem:[%s7821_s1 + $0x1088] sm:$0xff] }
  0xe1   :  { %v570_v32 = vld [vmem:[%s7821_s1 + $0x1098] sm:$0xff] }
  0xe2   :  { %3015 = vmatpush1.bf16.msra.mxu0 %v3014_v41  ;;  %v531_v41 = vld [vmem:[%s7821_s1 + $0xf60] sm:$0xff] }
  0xe3   :  { %3591 = vmatpush1.bf16.msra.mxu1 %v3590_v42  ;;  %3017 = vmatprep.subr.bf16.mxu0 %v3016_v43  ;;  %v529_v42 = vld [vmem:[%s7821_s1 + $0xf50] sm:$0xff]  ;;  %v3612_v43 = vpack.c.bf16 %v534_v36, %v530_v35  ;;  %v3038_v49 = vpack.c.bf16 %v531_v41, %v527_v40  ;;  %v3632_v41 = vpack.c.bf16 %v574_v33, %v570_v32 }
  0xe4   :  { %3593 = vmatprep.subr.bf16.mxu1 %v3592_v47  ;;  %v538_v47 = vld [vmem:[%s7821_s1 + $0xf98] sm:$0xff]  ;;  %v3614_v50 = vpack.c.bf16 %v533_v44, %v529_v42  ;;  %v569_v40 = vld [vmem:[%s7821_s1 + $0x1090] sm:$0xff]  ;;  %v580_v44 = vld [vmem:[%s7821_s1 + $0x10e8] sm:$0xff] }
  0xe5   :  { %v573_v42 = vld [vmem:[%s7821_s1 + $0x10b0] sm:$0xff] }
  0xe6   :  { %3019 = vmatpush1.bf16.msra.mxu0 %v3018_v53  ;;  %v539_v53 = vld [vmem:[%s7821_s1 + $0xfa0] sm:$0xff] }
  0xe7   :  { %3595 = vmatpush1.bf16.msra.mxu1 %v3594_v54  ;;  %3021 = vmatprep.subr.bf16.mxu0 %v3020_v55  ;;  %v537_v54 = vld [vmem:[%s7821_s1 + $0xf90] sm:$0xff]  ;;  %v3616_v55 = vpack.c.bf16 %v542_v48, %v538_v47  ;;  %v3042_v61 = vpack.c.bf16 %v539_v53, %v535_v52  ;;  %v3634_v48 = vpack.c.bf16 %v573_v42, %v569_v40 }
  0xe8   :  { %3597 = vmatprep.subr.bf16.mxu1 %v3596_v59  ;;  %v546_v59 = vld [vmem:[%s7821_s1 + $0xfd8] sm:$0xff]  ;;  %v3618_v62 = vpack.c.bf16 %v541_v56, %v537_v54  ;;  %v577_v52 = vld [vmem:[%s7821_s1 + $0x10d0] sm:$0xff]  ;;  %v3636_v53 = vpack.c.bf16 %v582_v46, %v578_v45  ;;  %v588_v56 = vld [vmem:[%s7821_s1 + $0x1128] sm:$0xff] }
  0xe9   :  { %v581_v54 = vld [vmem:[%s7821_s1 + $0x10f0] sm:$0xff] }
  0xea   :  { %3023 = vmatpush1.bf16.msra.mxu0 %v3022_v1  ;;  %v547_v1 = vld [vmem:[%s7821_s1 + $0xfe0] sm:$0xff] }
  0xeb   :  { %3599 = vmatpush1.bf16.msra.mxu1 %v3598_v2  ;;  %3025 = vmatprep.subr.bf16.mxu0 %v3024_v3  ;;  %v545_v2 = vld [vmem:[%s7821_s1 + $0xfd0] sm:$0xff]  ;;  %v3620_v3 = vpack.c.bf16 %v550_v60, %v546_v59  ;;  %v3046_v9 = vpack.c.bf16 %v547_v1, %v543_v0 }
  0xec   :  { %3601 = vmatprep.subr.bf16.mxu1 %v3600_v7  ;;  %v554_v7 = vld [vmem:[%s7821_s1 + $0x1018] sm:$0xff]  ;;  %v3622_v10 = vpack.c.bf16 %v549_v4, %v545_v2 }
  0xee   :  { %3027 = vmatpush1.bf16.msra.mxu0 %v3026_v13  ;;  %v555_v13 = vld [vmem:[%s7821_s1 + $0x1020] sm:$0xff] }
  0xef   :  { %3603 = vmatpush1.bf16.msra.mxu1 %v3602_v14  ;;  %3029 = vmatprep.subr.bf16.mxu0 %v3028_v15  ;;  %v553_v14 = vld [vmem:[%s7821_s1 + $0x1010] sm:$0xff]  ;;  %v3624_v15 = vpack.c.bf16 %v558_v8, %v554_v7  ;;  %v3050_v22 = vpack.c.bf16 %v555_v13, %v551_v12 }
  0xf0   :  { %3605 = vmatprep.subr.bf16.mxu1 %v3604_v19  ;;  %v562_v19 = vld [vmem:[%s7821_s1 + $0x1058] sm:$0xff]  ;;  %v3626_v23 = vpack.c.bf16 %v557_v16, %v553_v14 }
  0xf1   :  { %v3628_v28 = vpack.c.bf16 %v566_v20, %v562_v19 }
  0xf2   :  { %3031 = vmatpush1.bf16.msra.mxu0 %v3030_v25  ;;  %v559_v25 = vld [vmem:[%s7821_s1 + $0x1040] sm:$0xff] }
  0xf3   :  { %3607 = vmatpush1.bf16.msra.mxu1 %v3606_v26  ;;  %3033 = vmatprep.subr.bf16.mxu0 %v3032_v27  ;;  %v563_v26 = vld [vmem:[%s7821_s1 + $0x1060] sm:$0xff]  ;;  %v561_v27 = vld [vmem:[%s7821_s1 + $0x1050] sm:$0xff] }
  0xf4   :  { %3609 = vmatprep.subr.bf16.mxu1 %v3608_v31  ;;  %v572_v31 = vld [vmem:[%s7821_s1 + $0x10a8] sm:$0xff]  ;;  %v3054_v35 = vpack.c.bf16 %v563_v26, %v559_v25  ;;  %v3630_v36 = vpack.c.bf16 %v565_v29, %v561_v27 }
  0xf6   :  { %3035 = vmatpush1.bf16.msra.mxu0 %v3034_v37  ;;  %v3056_v37 = vpack.c.bf16 %v572_v31, %v568_v30 }
  0xf7   :  { %3611 = vmatpush1.bf16.msra.mxu1 %v3610_v38  ;;  %3037 = vmatprep.subr.bf16.mxu0 %v3036_v39  ;;  %v567_v38 = vld [vmem:[%s7821_s1 + $0x1080] sm:$0xff] }
  0xf8   :  { %3613 = vmatprep.subr.bf16.mxu1 %v3612_v43  ;;  %v571_v39 = vld [vmem:[%s7821_s1 + $0x10a0] sm:$0xff]  ;;  %v576_v43 = vld [vmem:[%s7821_s1 + $0x10c8] sm:$0xff] }
  0xf9   :  { %v3058_v47 = vpack.c.bf16 %v571_v39, %v567_v38 }
  0xfa   :  { %3039 = vmatpush1.bf16.msra.mxu0 %v3038_v49  ;;  %v3060_v49 = vpack.c.bf16 %v580_v44, %v576_v43 }
  0xfb   :  { %3615 = vmatpush1.bf16.msra.mxu1 %v3614_v50  ;;  %3041 = vmatprep.subr.bf16.mxu0 %v3040_v51  ;;  %v575_v50 = vld [vmem:[%s7821_s1 + $0x10c0] sm:$0xff] }
  0xfc   :  { %3617 = vmatprep.subr.bf16.mxu1 %v3616_v55  ;;  %v579_v51 = vld [vmem:[%s7821_s1 + $0x10e0] sm:$0xff]  ;;  %v584_v55 = vld [vmem:[%s7821_s1 + $0x1108] sm:$0xff] }
  0xfd   :  { %v3062_v59 = vpack.c.bf16 %v579_v51, %v575_v50 }
  0xfe   :  { %3043 = vmatpush1.bf16.msra.mxu0 %v3042_v61 }
  0xff   :  { %3619 = vmatpush1.bf16.msra.mxu1 %v3618_v62  ;;  %3045 = vmatprep.subr.bf16.mxu0 %v3044_v63 }
 0x100   :  { %3621 = vmatprep.subr.bf16.mxu1 %v3620_v3 }
 0x102   :  { %3047 = vmatpush1.bf16.msra.mxu0 %v3046_v9 }
 0x103   :  { %3623 = vmatpush1.bf16.msra.mxu1 %v3622_v10  ;;  %3049 = vmatprep.subr.bf16.mxu0 %v3048_v11 }
 0x104   :  { %3625 = vmatprep.subr.bf16.mxu1 %v3624_v15 }
 0x105   :  { %1491 = vmatmul.mubr.f32.vlgmr.msra.gmra.mrb[0].mxu0 %v27_v21 }
 0x106   :  { %3051 = vmatpush1.bf16.msra.mxu0 %v3050_v22  ;;  %2130 = vmatmul.mubr.f32.vlgmr.msra.gmra.mrb[0].mxu1 %v27_v21 }
 0x107   :  { %3627 = vmatpush1.bf16.msra.mxu1 %v3626_v23  ;;  %3053 = vmatprep.subr.bf16.mxu0 %v3052_v24 }
 0x108   :  { %3629 = vmatprep.subr.bf16.mxu1 %v3628_v28  ;;  %1561 = vmatprep.mubr.f32.mxu0 %v30_v34 }
 0x109   :  { %2200 = vmatprep.mubr.f32.mxu1 %v30_v34 }
 0x10a   :  { %3055 = vmatpush1.bf16.msra.mxu0 %v3054_v35 }
 0x10b   :  { %3631 = vmatpush1.bf16.msra.mxu1 %v3630_v36  ;;  %3057 = vmatprep.subr.bf16.mxu0 %v3056_v37 }
 0x10c   :  { %3633 = vmatprep.subr.bf16.mxu1 %v3632_v41 }
 0x10e   :  { %3059 = vmatpush1.bf16.msra.mxu0 %v3058_v47 }
 0x10f   :  { %10 = vsyncpa [#allocation3], 0  ;;  %3635 = vmatpush1.bf16.msra.mxu1 %v3634_v48  ;;  %3061 = vmatprep.subr.bf16.mxu0 %v3060_v49  ;;  %v3638_v60 = vpack.c.bf16 %v581_v54, %v577_v52  ;;  %v3064_v61 = vpack.c.bf16 %v588_v56, %v584_v55  ;;  %v583_v62 = vld [vmem:[%s7821_s1 + $0x1100] sm:$0xff]  ;;  %v585_v0 = vld [vmem:[%s7821_s1 + $0x1110] sm:$0xff]  ;;  %v3640_v1 = vpack.c.bf16 %v590_v58, %v586_v57  ;;  %s4069_s29 = smov [#allocation2]  }
 0x110   :  { %v587_v63 = vld [vmem:[%s7821_s1 + $0x1120] sm:$0xff]  ;;  %3637 = vmatprep.subr.bf16.mxu1 %v3636_v53  ;;  %v589_v2 = vld [vmem:[%s7821_s1 + $0x1130] sm:$0xff]  ;;  %v592_v3 = vld [vmem:[%s7821_s1 + $0x1148] sm:$0xff]  ;;  %s2713_s30 = sshll.u32 %s4069_s29, 4  ;;  %s2714_s30 = int_to_ptr.vmem [resolvable:$true] %s2713_s30 }
 0x111   :  { %v596_v4 = vld [vmem:[%s7821_s1 + $0x1168] sm:$0xff]  ;;  %v594_v5 = vld [vmem:[%s7821_s1 + $0x1158] sm:$0xff]  ;;  %v3066_v7 = vpack.c.bf16 %v587_v63, %v583_v62  ;;  %v3642_v8 = vpack.c.bf16 %v589_v2, %v585_v0  ;;  %v591_v10 = vld [vmem:[%s7821_s1 + $0x1140] sm:$0xff]  ;;  %s4045_s6 = scalar_lea.vmem %s2714_s30, 128  ;;  %p4050_p1 = scmp.lt.s32.totalorder %s2714_s30, %s2714_s30 }
 0x112   :  { %v598_v6 = vld [vmem:[%s7821_s1 + $0x1178] sm:$0xff]  ;;  %3063 = vmatpush1.bf16.msra.mxu0 %v3062_v59  ;;  %v3068_v9 = vpack.c.bf16 %v596_v4, %v592_v3  ;;  %v595_v11 = vld [vmem:[%s7821_s1 + $0x1160] sm:$0xff]  ;;  %v593_v12 = vld [vmem:[%s7821_s1 + $0x1150] sm:$0xff]  ;;  %p4046_p0 = scmp.ne.s32.totalorder %s2714_s30, %s4045_s6  ;;  %p4051_p2 = scmp.lt.s32.totalorder %s4045_s6, %s4045_s6 }
 0x113   :  { %3639 = vmatpush1.bf16.msra.mxu1 %v3638_v60  ;;  %3065 = vmatprep.subr.bf16.mxu0 %v3064_v61  ;;  %v3644_v13 = vpack.c.bf16 %v598_v6, %v594_v5  ;;  %v597_v14 = vld [vmem:[%s7821_s1 + $0x1170] sm:$0xff]  ;;  %v600_v15 = vld [vmem:[%s7821_s1 + $0x1188] sm:$0xff]  ;;  %v602_v17 = vld [vmem:[%s7821_s1 + $0x1198] sm:$0xff]  ;;  %v3070_v19 = vpack.c.bf16 %v595_v11, %v591_v10 }
 0x114   :  { %3641 = vmatprep.subr.bf16.mxu1 %v3640_v1  ;;  %v604_v16 = vld [vmem:[%s7821_s1 + $0x11a8] sm:$0xff]  ;;  %v606_v18 = vld [vmem:[%s7821_s1 + $0x11b8] sm:$0xff]  ;;  %v3646_v20 = vpack.c.bf16 %v597_v14, %v593_v12  ;;  %v599_v22 = vld [vmem:[%s7821_s1 + $0x1180] sm:$0xff]  ;;  %p4052_p3 = por %p4051_p2, %p4050_p1 }
 0x115   :  { %v3072_v21 = vpack.c.bf16 %v604_v16, %v600_v15  ;;  %v603_v23 = vld [vmem:[%s7821_s1 + $0x11a0] sm:$0xff]  ;;  %v601_v24 = vld [vmem:[%s7821_s1 + $0x1190] sm:$0xff]  ;;  %v3648_v25 = vpack.c.bf16 %v606_v18, %v602_v17  ;;  %v608_v27 = vld [vmem:[%s7821_s1 + $0x11c8] sm:$0xff] }
 0x116   :  { %3067 = vmatpush1.bf16.msra.mxu0 %v3066_v7  ;;  %v605_v26 = vld [vmem:[%s7821_s1 + $0x11b0] sm:$0xff]  ;;  %v612_v28 = vld [vmem:[%s7821_s1 + $0x11e8] sm:$0xff]  ;;  %v610_v29 = vld [vmem:[%s7821_s1 + $0x11d8] sm:$0xff]  ;;  %v3074_v31 = vpack.c.bf16 %v603_v23, %v599_v22  ;;  %p4053_p4 = pnand %p4052_p3, %p4046_p0 }
 0x117   :  { %3643 = vmatpush1.bf16.msra.mxu1 %v3642_v8  ;;  %3069 = vmatprep.subr.bf16.mxu0 %v3068_v9  ;;  %v614_v30 = vld [vmem:[%s7821_s1 + $0x11f8] sm:$0xff]  ;;  %v3650_v32 = vpack.c.bf16 %v605_v26, %v601_v24  ;;  %v3076_v33 = vpack.c.bf16 %v612_v28, %v608_v27  ;;  %v607_v34 = vld [vmem:[%s7821_s1 + $0x11c0] sm:$0xff]  ;;  %v609_v36 = vld [vmem:[%s7821_s1 + $0x11d0] sm:$0xff] }
 0x118   :  { %3645 = vmatprep.subr.bf16.mxu1 %v3644_v13  ;;  %v611_v35 = vld [vmem:[%s7821_s1 + $0x11e0] sm:$0xff]  ;;  %v3652_v37 = vpack.c.bf16 %v614_v30, %v610_v29  ;;  %v613_v38 = vld [vmem:[%s7821_s1 + $0x11f0] sm:$0xff]  ;;  %v616_v39 = vld [vmem:[%s7821_s1 + $0x1208] sm:$0xff] }
 0x119   :  { %v620_v40 = vld [vmem:[%s7821_s1 + $0x1228] sm:$0xff]  ;;  %v618_v41 = vld [vmem:[%s7821_s1 + $0x1218] sm:$0xff]  ;;  %v3078_v43 = vpack.c.bf16 %v611_v35, %v607_v34  ;;  %v3654_v44 = vpack.c.bf16 %v613_v38, %v609_v36  ;;  %v615_v46 = vld [vmem:[%s7821_s1 + $0x1200] sm:$0xff] }
 0x11a   :  { %3071 = vmatpush1.bf16.msra.mxu0 %v3070_v19  ;;  %v622_v42 = vld [vmem:[%s7821_s1 + $0x1238] sm:$0xff]  ;;  %v3080_v45 = vpack.c.bf16 %v620_v40, %v616_v39  ;;  %v619_v47 = vld [vmem:[%s7821_s1 + $0x1220] sm:$0xff]  ;;  %v617_v48 = vld [vmem:[%s7821_s1 + $0x1210] sm:$0xff] }
 0x11b   :  { %3647 = vmatpush1.bf16.msra.mxu1 %v3646_v20  ;;  %3073 = vmatprep.subr.bf16.mxu0 %v3072_v21  ;;  %v3656_v49 = vpack.c.bf16 %v622_v42, %v618_v41  ;;  %v621_v50 = vld [vmem:[%s7821_s1 + $0x1230] sm:$0xff]  ;;  %v624_v51 = vld [vmem:[%s7821_s1 + $0x1248] sm:$0xff]  ;;  %v626_v53 = vld [vmem:[%s7821_s1 + $0x1258] sm:$0xff]  ;;  %v3082_v55 = vpack.c.bf16 %v619_v47, %v615_v46 }
 0x11c   :  { %3649 = vmatprep.subr.bf16.mxu1 %v3648_v25  ;;  %v628_v52 = vld [vmem:[%s7821_s1 + $0x1268] sm:$0xff]  ;;  %v630_v54 = vld [vmem:[%s7821_s1 + $0x1278] sm:$0xff]  ;;  %v3658_v56 = vpack.c.bf16 %v621_v50, %v617_v48  ;;  %v623_v58 = vld [vmem:[%s7821_s1 + $0x1240] sm:$0xff] }
 0x11d   :  { %v3084_v57 = vpack.c.bf16 %v628_v52, %v624_v51  ;;  %v627_v59 = vld [vmem:[%s7821_s1 + $0x1260] sm:$0xff]  ;;  %v625_v60 = vld [vmem:[%s7821_s1 + $0x1250] sm:$0xff]  ;;  %v3660_v61 = vpack.c.bf16 %v630_v54, %v626_v53  ;;  %v632_v63 = vld [vmem:[%s7821_s1 + $0x1288] sm:$0xff] }
 0x11e   :  { %3075 = vmatpush1.bf16.msra.mxu0 %v3074_v31  ;;  %v629_v62 = vld [vmem:[%s7821_s1 + $0x1270] sm:$0xff]  ;;  %v636_v0 = vld [vmem:[%s7821_s1 + $0x12a8] sm:$0xff]  ;;  %v634_v1 = vld [vmem:[%s7821_s1 + $0x1298] sm:$0xff]  ;;  %v3086_v3 = vpack.c.bf16 %v627_v59, %v623_v58 }
 0x11f   :  { %3651 = vmatpush1.bf16.msra.mxu1 %v3650_v32  ;;  %3077 = vmatprep.subr.bf16.mxu0 %v3076_v33  ;;  %v638_v2 = vld [vmem:[%s7821_s1 + $0x12b8] sm:$0xff]  ;;  %v3662_v4 = vpack.c.bf16 %v629_v62, %v625_v60  ;;  %v3088_v5 = vpack.c.bf16 %v636_v0, %v632_v63  ;;  %v631_v6 = vld [vmem:[%s7821_s1 + $0x1280] sm:$0xff]  ;;  %v633_v8 = vld [vmem:[%s7821_s1 + $0x1290] sm:$0xff] }
 0x120   :  { %3653 = vmatprep.subr.bf16.mxu1 %v3652_v37  ;;  %v635_v7 = vld [vmem:[%s7821_s1 + $0x12a0] sm:$0xff]  ;;  %v3664_v9 = vpack.c.bf16 %v638_v2, %v634_v1  ;;  %v637_v10 = vld [vmem:[%s7821_s1 + $0x12b0] sm:$0xff]  ;;  %v640_v11 = vld [vmem:[%s7821_s1 + $0x12c8] sm:$0xff] }
 0x121   :  { %v644_v12 = vld [vmem:[%s7821_s1 + $0x12e8] sm:$0xff]  ;;  %v642_v13 = vld [vmem:[%s7821_s1 + $0x12d8] sm:$0xff]  ;;  %v3090_v15 = vpack.c.bf16 %v635_v7, %v631_v6  ;;  %v3666_v16 = vpack.c.bf16 %v637_v10, %v633_v8  ;;  %v639_v18 = vld [vmem:[%s7821_s1 + $0x12c0] sm:$0xff] }
 0x122   :  { %3079 = vmatpush1.bf16.msra.mxu0 %v3078_v43  ;;  %v646_v14 = vld [vmem:[%s7821_s1 + $0x12f8] sm:$0xff]  ;;  %v3092_v17 = vpack.c.bf16 %v644_v12, %v640_v11  ;;  %v643_v19 = vld [vmem:[%s7821_s1 + $0x12e0] sm:$0xff]  ;;  %v641_v20 = vld [vmem:[%s7821_s1 + $0x12d0] sm:$0xff] }
 0x123   :  { %3655 = vmatpush1.bf16.msra.mxu1 %v3654_v44  ;;  %3081 = vmatprep.subr.bf16.mxu0 %v3080_v45  ;;  %v3668_v21 = vpack.c.bf16 %v646_v14, %v642_v13  ;;  %v645_v22 = vld [vmem:[%s7821_s1 + $0x12f0] sm:$0xff]  ;;  %v648_v23 = vld [vmem:[%s7821_s1 + $0x1308] sm:$0xff]  ;;  %v650_v25 = vld [vmem:[%s7821_s1 + $0x1318] sm:$0xff]  ;;  %v3094_v27 = vpack.c.bf16 %v643_v19, %v639_v18 }
 0x124   :  { %3657 = vmatprep.subr.bf16.mxu1 %v3656_v49  ;;  %v652_v24 = vld [vmem:[%s7821_s1 + $0x1328] sm:$0xff]  ;;  %v654_v26 = vld [vmem:[%s7821_s1 + $0x1338] sm:$0xff]  ;;  %v3670_v28 = vpack.c.bf16 %v645_v22, %v641_v20  ;;  %v647_v30 = vld [vmem:[%s7821_s1 + $0x1300] sm:$0xff] }
 0x125   :  { %v3096_v29 = vpack.c.bf16 %v652_v24, %v648_v23  ;;  %v651_v31 = vld [vmem:[%s7821_s1 + $0x1320] sm:$0xff]  ;;  %v649_v32 = vld [vmem:[%s7821_s1 + $0x1310] sm:$0xff]  ;;  %v3672_v33 = vpack.c.bf16 %v654_v26, %v650_v25  ;;  %v656_v35 = vld [vmem:[%s7821_s1 + $0x1348] sm:$0xff] }
 0x126   :  { %3083 = vmatpush1.bf16.msra.mxu0 %v3082_v55  ;;  %v653_v34 = vld [vmem:[%s7821_s1 + $0x1330] sm:$0xff]  ;;  %v660_v36 = vld [vmem:[%s7821_s1 + $0x1368] sm:$0xff]  ;;  %v658_v37 = vld [vmem:[%s7821_s1 + $0x1358] sm:$0xff]  ;;  %v3098_v39 = vpack.c.bf16 %v651_v31, %v647_v30 }
 0x127   :  { %3659 = vmatpush1.bf16.msra.mxu1 %v3658_v56  ;;  %3085 = vmatprep.subr.bf16.mxu0 %v3084_v57  ;;  %v662_v38 = vld [vmem:[%s7821_s1 + $0x1378] sm:$0xff]  ;;  %v3674_v40 = vpack.c.bf16 %v653_v34, %v649_v32  ;;  %v3100_v41 = vpack.c.bf16 %v660_v36, %v656_v35  ;;  %v655_v42 = vld [vmem:[%s7821_s1 + $0x1340] sm:$0xff]  ;;  %v657_v44 = vld [vmem:[%s7821_s1 + $0x1350] sm:$0xff] }
 0x128   :  { %3661 = vmatprep.subr.bf16.mxu1 %v3660_v61  ;;  %v659_v43 = vld [vmem:[%s7821_s1 + $0x1360] sm:$0xff]  ;;  %v3676_v45 = vpack.c.bf16 %v662_v38, %v658_v37  ;;  %v661_v46 = vld [vmem:[%s7821_s1 + $0x1370] sm:$0xff]  ;;  %v664_v47 = vld [vmem:[%s7821_s1 + $0x1388] sm:$0xff] }
 0x129   :  { %v668_v48 = vld [vmem:[%s7821_s1 + $0x13a8] sm:$0xff]  ;;  %v666_v49 = vld [vmem:[%s7821_s1 + $0x1398] sm:$0xff]  ;;  %v3102_v51 = vpack.c.bf16 %v659_v43, %v655_v42  ;;  %v3678_v52 = vpack.c.bf16 %v661_v46, %v657_v44  ;;  %v663_v54 = vld [vmem:[%s7821_s1 + $0x1380] sm:$0xff] }
 0x12a   :  { %3087 = vmatpush1.bf16.msra.mxu0 %v3086_v3  ;;  %v670_v50 = vld [vmem:[%s7821_s1 + $0x13b8] sm:$0xff]  ;;  %v3104_v53 = vpack.c.bf16 %v668_v48, %v664_v47  ;;  %v667_v55 = vld [vmem:[%s7821_s1 + $0x13a0] sm:$0xff]  ;;  %v665_v56 = vld [vmem:[%s7821_s1 + $0x1390] sm:$0xff] }
 0x12b   :  { %3663 = vmatpush1.bf16.msra.mxu1 %v3662_v4  ;;  %3089 = vmatprep.subr.bf16.mxu0 %v3088_v5  ;;  %v3680_v57 = vpack.c.bf16 %v670_v50, %v666_v49  ;;  %v669_v58 = vld [vmem:[%s7821_s1 + $0x13b0] sm:$0xff]  ;;  %v672_v59 = vld [vmem:[%s7821_s1 + $0x13c8] sm:$0xff]  ;;  %v674_v61 = vld [vmem:[%s7821_s1 + $0x13d8] sm:$0xff]  ;;  %v3106_v63 = vpack.c.bf16 %v667_v55, %v663_v54 }
 0x12c   :  { %3665 = vmatprep.subr.bf16.mxu1 %v3664_v9  ;;  %v676_v60 = vld [vmem:[%s7821_s1 + $0x13e8] sm:$0xff]  ;;  %v678_v62 = vld [vmem:[%s7821_s1 + $0x13f8] sm:$0xff]  ;;  %v3682_v0 = vpack.c.bf16 %v669_v58, %v665_v56  ;;  %v671_v2 = vld [vmem:[%s7821_s1 + $0x13c0] sm:$0xff] }
 0x12d   :  { %v3108_v1 = vpack.c.bf16 %v676_v60, %v672_v59  ;;  %v675_v3 = vld [vmem:[%s7821_s1 + $0x13e0] sm:$0xff]  ;;  %v673_v4 = vld [vmem:[%s7821_s1 + $0x13d0] sm:$0xff]  ;;  %v3684_v5 = vpack.c.bf16 %v678_v62, %v674_v61  ;;  %v680_v7 = vld [vmem:[%s7821_s1 + $0x1408] sm:$0xff] }
 0x12e   :  { %3091 = vmatpush1.bf16.msra.mxu0 %v3090_v15  ;;  %v677_v6 = vld [vmem:[%s7821_s1 + $0x13f0] sm:$0xff]  ;;  %v684_v8 = vld [vmem:[%s7821_s1 + $0x1428] sm:$0xff]  ;;  %v682_v9 = vld [vmem:[%s7821_s1 + $0x1418] sm:$0xff]  ;;  %v3110_v11 = vpack.c.bf16 %v675_v3, %v671_v2 }
 0x12f   :  { %3667 = vmatpush1.bf16.msra.mxu1 %v3666_v16  ;;  %3093 = vmatprep.subr.bf16.mxu0 %v3092_v17  ;;  %v686_v10 = vld [vmem:[%s7821_s1 + $0x1438] sm:$0xff]  ;;  %v3686_v12 = vpack.c.bf16 %v677_v6, %v673_v4  ;;  %v3112_v13 = vpack.c.bf16 %v684_v8, %v680_v7  ;;  %v679_v14 = vld [vmem:[%s7821_s1 + $0x1400] sm:$0xff]  ;;  %v681_v16 = vld [vmem:[%s7821_s1 + $0x1410] sm:$0xff] }
 0x130   :  { %3669 = vmatprep.subr.bf16.mxu1 %v3668_v21  ;;  %v683_v15 = vld [vmem:[%s7821_s1 + $0x1420] sm:$0xff]  ;;  %v3688_v17 = vpack.c.bf16 %v686_v10, %v682_v9  ;;  %v685_v18 = vld [vmem:[%s7821_s1 + $0x1430] sm:$0xff]  ;;  %v688_v19 = vld [vmem:[%s7821_s1 + $0x1448] sm:$0xff] }
 0x131   :  { %v692_v20 = vld [vmem:[%s7821_s1 + $0x1468] sm:$0xff]  ;;  %v690_v21 = vld [vmem:[%s7821_s1 + $0x1458] sm:$0xff]  ;;  %v29_v23 = vld [vmem:[%s7820_s0 + $0x40] sm:$0xff]  ;;  %v3114_v24 = vpack.c.bf16 %v683_v15, %v679_v14  ;;  %v3690_v25 = vpack.c.bf16 %v685_v18, %v681_v16 }
 0x132   :  { %3095 = vmatpush1.bf16.msra.mxu0 %v3094_v27  ;;  %v694_v22 = vld [vmem:[%s7821_s1 + $0x1478] sm:$0xff]  ;;  %v3116_v26 = vpack.c.bf16 %v692_v20, %v688_v19  ;;  %v687_v27 = vld [vmem:[%s7821_s1 + $0x1440] sm:$0xff]  ;;  %v693_v31 = vld [vmem:[%s7821_s1 + $0x1470] sm:$0xff] }
 0x133   :  { %3671 = vmatpush1.bf16.msra.mxu1 %v3670_v28  ;;  %3097 = vmatprep.subr.bf16.mxu0 %v3096_v29  ;;  %v691_v28 = vld [vmem:[%s7821_s1 + $0x1460] sm:$0xff]  ;;  %v689_v29 = vld [vmem:[%s7821_s1 + $0x1450] sm:$0xff]  ;;  %v3692_v30 = vpack.c.bf16 %v694_v22, %v690_v21  ;;  %v696_v32 = vld [vmem:[%s7821_s1 + $0x1488] sm:$0xff] }
 0x134   :  { %3673 = vmatprep.subr.bf16.mxu1 %v3672_v33  ;;  %v700_v33 = vld [vmem:[%s7821_s1 + $0x14a8] sm:$0xff]  ;;  %v698_v34 = vld [vmem:[%s7821_s1 + $0x1498] sm:$0xff]  ;;  %v3118_v37 = vpack.c.bf16 %v691_v28, %v687_v27  ;;  %v3694_v38 = vpack.c.bf16 %v693_v31, %v689_v29  ;;  %v697_v42 = vld [vmem:[%s7821_s1 + $0x1490] sm:$0xff] }
 0x135   :  { %v702_v35 = vld [vmem:[%s7821_s1 + $0x14b8] sm:$0xff]  ;;  %v701_v44 = vld [vmem:[%s7821_s1 + $0x14b0] sm:$0xff]  ;;  %v708_v46 = vld [vmem:[%s7821_s1 + $0x14e8] sm:$0xff] }
 0x136   :  { %3099 = vmatpush1.bf16.msra.mxu0 %v3098_v39  ;;  %v32_v36 = vld [vmem:[%s7820_s0 + $0x58] sm:$0xff]  ;;  %v3120_v39 = vpack.c.bf16 %v700_v33, %v696_v32  ;;  %v3696_v43 = vpack.c.bf16 %v702_v35, %v698_v34  ;;  %v3698_v50 = vpack.c.bf16 %v701_v44, %v697_v42  ;;  %v705_v54 = vld [vmem:[%s7821_s1 + $0x14d0] sm:$0xff]  ;;  %v716_v58 = vld [vmem:[%s7821_s1 + $0x1528] sm:$0xff] }
 0x137   :  { %3675 = vmatpush1.bf16.msra.mxu1 %v3674_v40  ;;  %3101 = vmatprep.subr.bf16.mxu0 %v3100_v41  ;;  %v695_v40 = vld [vmem:[%s7821_s1 + $0x1480] sm:$0xff]  ;;  %v706_v47 = vld [vmem:[%s7821_s1 + $0x14d8] sm:$0xff]  ;;  %v709_v56 = vld [vmem:[%s7821_s1 + $0x14f0] sm:$0xff] }
 0x138   :  { %3677 = vmatprep.subr.bf16.mxu1 %v3676_v45  ;;  %v699_v41 = vld [vmem:[%s7821_s1 + $0x14a0] sm:$0xff]  ;;  %v704_v45 = vld [vmem:[%s7821_s1 + $0x14c8] sm:$0xff]  ;;  %v710_v48 = vld [vmem:[%s7821_s1 + $0x14f8] sm:$0xff]  ;;  %v3702_v62 = vpack.c.bf16 %v709_v56, %v705_v54 }
 0x139   :  { %v3122_v49 = vpack.c.bf16 %v699_v41, %v695_v40  ;;  %v3700_v55 = vpack.c.bf16 %v710_v48, %v706_v47  ;;  %v714_v59 = vld [vmem:[%s7821_s1 + $0x1518] sm:$0xff]  ;;  %v713_v2 = vld [vmem:[%s7821_s1 + $0x1510] sm:$0xff]  ;;  %v724_v6 = vld [vmem:[%s7821_s1 + $0x1568] sm:$0xff] }
 0x13a   :  { %3103 = vmatpush1.bf16.msra.mxu0 %v3102_v51  ;;  %v3124_v51 = vpack.c.bf16 %v708_v46, %v704_v45  ;;  %v718_v60 = vld [vmem:[%s7821_s1 + $0x1538] sm:$0xff]  ;;  %v717_v4 = vld [vmem:[%s7821_s1 + $0x1530] sm:$0xff]  ;;  %v732_v18 = vld [vmem:[%s7821_s1 + $0x15a8] sm:$0xff] }
 0x13b   :  { %3679 = vmatpush1.bf16.msra.mxu1 %v3678_v52  ;;  %3105 = vmatprep.subr.bf16.mxu0 %v3104_v53  ;;  %v703_v52 = vld [vmem:[%s7821_s1 + $0x14c0] sm:$0xff]  ;;  %v3704_v3 = vpack.c.bf16 %v718_v60, %v714_v59  ;;  %v722_v7 = vld [vmem:[%s7821_s1 + $0x1558] sm:$0xff]  ;;  %v3706_v10 = vpack.c.bf16 %v717_v4, %v713_v2  ;;  %v721_v14 = vld [vmem:[%s7821_s1 + $0x1550] sm:$0xff] }
 0x13c   :  { %3681 = vmatprep.subr.bf16.mxu1 %v3680_v57  ;;  %v707_v53 = vld [vmem:[%s7821_s1 + $0x14e0] sm:$0xff]  ;;  %v712_v57 = vld [vmem:[%s7821_s1 + $0x1508] sm:$0xff]  ;;  %v726_v8 = vld [vmem:[%s7821_s1 + $0x1578] sm:$0xff] }
 0x13d   :  { %v3126_v61 = vpack.c.bf16 %v707_v53, %v703_v52  ;;  %v3708_v15 = vpack.c.bf16 %v726_v8, %v722_v7  ;;  %v725_v16 = vld [vmem:[%s7821_s1 + $0x1570] sm:$0xff]  ;;  %v730_v19 = vld [vmem:[%s7821_s1 + $0x1598] sm:$0xff]  ;;  %v736_v29 = vld [vmem:[%s7821_s1 + $0x15c8] sm:$0xff] }
 0x13e   :  { %3107 = vmatpush1.bf16.msra.mxu0 %v3106_v63  ;;  %v3128_v63 = vpack.c.bf16 %v716_v58, %v712_v57  ;;  %v734_v20 = vld [vmem:[%s7821_s1 + $0x15b8] sm:$0xff]  ;;  %v3710_v22 = vpack.c.bf16 %v725_v16, %v721_v14  ;;  %v733_v28 = vld [vmem:[%s7821_s1 + $0x15b0] sm:$0xff]  ;;  %v744_v41 = vld [vmem:[%s7821_s1 + $0x1608] sm:$0xff] }
 0x13f   :  { %3683 = vmatpush1.bf16.msra.mxu1 %v3682_v0  ;;  %3109 = vmatprep.subr.bf16.mxu0 %v3108_v1  ;;  %v711_v0 = vld [vmem:[%s7821_s1 + $0x1500] sm:$0xff]  ;;  %v3712_v27 = vpack.c.bf16 %v734_v20, %v730_v19  ;;  %v738_v31 = vld [vmem:[%s7821_s1 + $0x15d8] sm:$0xff]  ;;  %v741_v40 = vld [vmem:[%s7821_s1 + $0x15f0] sm:$0xff] }
 0x140   :  { %3685 = vmatprep.subr.bf16.mxu1 %v3684_v5  ;;  %v715_v1 = vld [vmem:[%s7821_s1 + $0x1520] sm:$0xff]  ;;  %v720_v5 = vld [vmem:[%s7821_s1 + $0x1548] sm:$0xff]  ;;  %v742_v32 = vld [vmem:[%s7821_s1 + $0x15f8] sm:$0xff] }
 0x141   :  { %v3130_v9 = vpack.c.bf16 %v715_v1, %v711_v0  ;;  %v748_v42 = vld [vmem:[%s7821_s1 + $0x1628] sm:$0xff]  ;;  %v750_v44 = vld [vmem:[%s7821_s1 + $0x1638] sm:$0xff]  ;;  %v743_v48 = vld [vmem:[%s7821_s1 + $0x1600] sm:$0xff] }
 0x142   :  { %3111 = vmatpush1.bf16.msra.mxu0 %v3110_v11  ;;  %v3132_v11 = vpack.c.bf16 %v724_v6, %v720_v5  ;;  %v3144_v47 = vpack.c.bf16 %v748_v42, %v744_v41  ;;  %v749_v52 = vld [vmem:[%s7821_s1 + $0x1630] sm:$0xff]  ;;  %v752_v53 = vld [vmem:[%s7821_s1 + $0x1648] sm:$0xff]  ;;  %v758_v56 = vld [vmem:[%s7821_s1 + $0x1678] sm:$0xff] }
 0x143   :  { %3687 = vmatpush1.bf16.msra.mxu1 %v3686_v12  ;;  %3113 = vmatprep.subr.bf16.mxu0 %v3112_v13  ;;  %v719_v12 = vld [vmem:[%s7821_s1 + $0x1540] sm:$0xff]  ;;  %v756_v54 = vld [vmem:[%s7821_s1 + $0x1668] sm:$0xff]  ;;  %v757_v0 = vld [vmem:[%s7821_s1 + $0x1670] sm:$0xff] }
 0x144   :  { %3689 = vmatprep.subr.bf16.mxu1 %v3688_v17  ;;  %v723_v13 = vld [vmem:[%s7821_s1 + $0x1560] sm:$0xff]  ;;  %v728_v17 = vld [vmem:[%s7821_s1 + $0x1588] sm:$0xff]  ;;  %v3148_v59 = vpack.c.bf16 %v756_v54, %v752_v53  ;;  %v766_v4 = vld [vmem:[%s7821_s1 + $0x16b8] sm:$0xff] }
 0x145   :  { %1562 = vmatmul.mubr.f32.vlgmr.msra.gmra.mrb[0].mxu0 %v29_v23  ;;  %v3134_v21 = vpack.c.bf16 %v723_v13, %v719_v12  ;;  %v751_v60 = vld [vmem:[%s7821_s1 + $0x1640] sm:$0xff]  ;;  %v760_v1 = vld [vmem:[%s7821_s1 + $0x1688] sm:$0xff]  ;;  %v765_v12 = vld [vmem:[%s7821_s1 + $0x16b0] sm:$0xff] }
 0x146   :  { %3115 = vmatpush1.bf16.msra.mxu0 %v3114_v24  ;;  %2201 = vmatmul.mubr.f32.vlgmr.msra.gmra.mrb[0].mxu1 %v29_v23  ;;  %v3136_v23 = vpack.c.bf16 %v732_v18, %v728_v17  ;;  %v727_v24 = vld [vmem:[%s7821_s1 + $0x1580] sm:$0xff]  ;;  %v764_v2 = vld [vmem:[%s7821_s1 + $0x16a8] sm:$0xff]  ;;  %v774_v16 = vld [vmem:[%s7821_s1 + $0x16f8] sm:$0xff] }
 0x147   :  { %3691 = vmatpush1.bf16.msra.mxu1 %v3690_v25  ;;  %3117 = vmatprep.subr.bf16.mxu0 %v3116_v26  ;;  %v731_v25 = vld [vmem:[%s7821_s1 + $0x15a0] sm:$0xff]  ;;  %v729_v26 = vld [vmem:[%s7821_s1 + $0x1590] sm:$0xff]  ;;  %v3152_v7 = vpack.c.bf16 %v764_v2, %v760_v1  ;;  %v768_v13 = vld [vmem:[%s7821_s1 + $0x16c8] sm:$0xff] }
 0x148   :  { %3693 = vmatprep.subr.bf16.mxu1 %v3692_v30  ;;  %1632 = vmatprep.mubr.f32.mxu0 %v32_v36  ;;  %v740_v30 = vld [vmem:[%s7821_s1 + $0x15e8] sm:$0xff]  ;;  %v3138_v33 = vpack.c.bf16 %v731_v25, %v727_v24  ;;  %v3714_v34 = vpack.c.bf16 %v733_v28, %v729_v26  ;;  %v759_v8 = vld [vmem:[%s7821_s1 + $0x1680] sm:$0xff]  ;;  %v773_v24 = vld [vmem:[%s7821_s1 + $0x16f0] sm:$0xff] }
 0x149   :  { %2271 = vmatprep.mubr.f32.mxu1 %v32_v36  ;;  %v3140_v35 = vpack.c.bf16 %v740_v30, %v736_v29  ;;  %v735_v36 = vld [vmem:[%s7821_s1 + $0x15c0] sm:$0xff]  ;;  %v772_v14 = vld [vmem:[%s7821_s1 + $0x16e8] sm:$0xff]  ;;  %v782_v28 = vld [vmem:[%s7821_s1 + $0x1738] sm:$0xff] }
 0x14a   :  { %3119 = vmatpush1.bf16.msra.mxu0 %v3118_v37  ;;  %v739_v37 = vld [vmem:[%s7821_s1 + $0x15e0] sm:$0xff]  ;;  %v3156_v19 = vpack.c.bf16 %v772_v14, %v768_v13  ;;  %v776_v25 = vld [vmem:[%s7821_s1 + $0x1708] sm:$0xff] }
 0x14b   :  { %3695 = vmatpush1.bf16.msra.mxu1 %v3694_v38  ;;  %3121 = vmatprep.subr.bf16.mxu0 %v3120_v39  ;;  %v737_v38 = vld [vmem:[%s7821_s1 + $0x15d0] sm:$0xff]  ;;  %v3716_v39 = vpack.c.bf16 %v742_v32, %v738_v31  ;;  %v3142_v45 = vpack.c.bf16 %v739_v37, %v735_v36  ;;  %v767_v20 = vld [vmem:[%s7821_s1 + $0x16c0] sm:$0xff]  ;;  %v780_v26 = vld [vmem:[%s7821_s1 + $0x1728] sm:$0xff] }
 0x14c   :  { %3697 = vmatprep.subr.bf16.mxu1 %v3696_v43  ;;  %v746_v43 = vld [vmem:[%s7821_s1 + $0x1618] sm:$0xff]  ;;  %v3718_v46 = vpack.c.bf16 %v741_v40, %v737_v38  ;;  %v3160_v31 = vpack.c.bf16 %v780_v26, %v776_v25  ;;  %v775_v32 = vld [vmem:[%s7821_s1 + $0x1700] sm:$0xff]  ;;  %v781_v36 = vld [vmem:[%s7821_s1 + $0x1730] sm:$0xff] }
 0x14d   :  { %v784_v37 = vld [vmem:[%s7821_s1 + $0x1748] sm:$0xff]  ;;  %v790_v40 = vld [vmem:[%s7821_s1 + $0x1778] sm:$0xff]  ;;  %v31_v25 = vld [vmem:[%s7820_s0 + $0x50] sm:$0xff] }
 0x14e   :  { %3123 = vmatpush1.bf16.msra.mxu0 %v3122_v49  ;;  %v747_v49 = vld [vmem:[%s7821_s1 + $0x1620] sm:$0xff]  ;;  %v788_v38 = vld [vmem:[%s7821_s1 + $0x1768] sm:$0xff] }
 0x14f   :  { %3699 = vmatpush1.bf16.msra.mxu1 %v3698_v50  ;;  %3125 = vmatprep.subr.bf16.mxu0 %v3124_v51  ;;  %v745_v50 = vld [vmem:[%s7821_s1 + $0x1610] sm:$0xff]  ;;  %v3720_v51 = vpack.c.bf16 %v750_v44, %v746_v43  ;;  %v3146_v57 = vpack.c.bf16 %v747_v49, %v743_v48  ;;  %v3164_v43 = vpack.c.bf16 %v788_v38, %v784_v37  ;;  %v783_v44 = vld [vmem:[%s7821_s1 + $0x1740] sm:$0xff]  ;;  %v792_v49 = vld [vmem:[%s7821_s1 + $0x1788] sm:$0xff] }
 0x150   :  { %3701 = vmatprep.subr.bf16.mxu1 %v3700_v55  ;;  %v754_v55 = vld [vmem:[%s7821_s1 + $0x1658] sm:$0xff]  ;;  %v3722_v58 = vpack.c.bf16 %v749_v52, %v745_v50  ;;  %v789_v48 = vld [vmem:[%s7821_s1 + $0x1770] sm:$0xff]  ;;  %v796_v50 = vld [vmem:[%s7821_s1 + $0x17a8] sm:$0xff] }
 0x151   :  { %v798_v52 = vld [vmem:[%s7821_s1 + $0x17b8] sm:$0xff]  ;;  %v34_v38 = vld [vmem:[%s7820_s0 + $0x68] sm:$0xff] }
 0x152   :  { %3127 = vmatpush1.bf16.msra.mxu0 %v3126_v61  ;;  %v755_v61 = vld [vmem:[%s7821_s1 + $0x1660] sm:$0xff]  ;;  %v830_v37 = vld [vmem:[%s7821_s1 + $0x18b8] sm:$0xff] }
 0x153   :  { %3703 = vmatpush1.bf16.msra.mxu1 %v3702_v62  ;;  %3129 = vmatprep.subr.bf16.mxu0 %v3128_v63  ;;  %v753_v62 = vld [vmem:[%s7821_s1 + $0x1650] sm:$0xff]  ;;  %v3724_v63 = vpack.c.bf16 %v758_v56, %v754_v55  ;;  %v3150_v5 = vpack.c.bf16 %v755_v61, %v751_v60  ;;  %v3168_v55 = vpack.c.bf16 %v796_v50, %v792_v49  ;;  %v791_v56 = vld [vmem:[%s7821_s1 + $0x1780] sm:$0xff]  ;;  %v800_v61 = vld [vmem:[%s7821_s1 + $0x17c8] sm:$0xff] }
 0x154   :  { %3705 = vmatprep.subr.bf16.mxu1 %v3704_v3  ;;  %v762_v3 = vld [vmem:[%s7821_s1 + $0x1698] sm:$0xff]  ;;  %v3726_v6 = vpack.c.bf16 %v757_v0, %v753_v62  ;;  %v797_v60 = vld [vmem:[%s7821_s1 + $0x17b0] sm:$0xff]  ;;  %v804_v62 = vld [vmem:[%s7821_s1 + $0x17e8] sm:$0xff] }
 0x155   :  { %v806_v0 = vld [vmem:[%s7821_s1 + $0x17f8] sm:$0xff] }
 0x156   :  { %3131 = vmatpush1.bf16.msra.mxu0 %v3130_v9  ;;  %v763_v9 = vld [vmem:[%s7821_s1 + $0x16a0] sm:$0xff]  ;;  %v834_v49 = vld [vmem:[%s7821_s1 + $0x18d8] sm:$0xff] }
 0x157   :  { %3707 = vmatpush1.bf16.msra.mxu1 %v3706_v10  ;;  %3133 = vmatprep.subr.bf16.mxu0 %v3132_v11  ;;  %v761_v10 = vld [vmem:[%s7821_s1 + $0x1690] sm:$0xff]  ;;  %v3728_v11 = vpack.c.bf16 %v766_v4, %v762_v3  ;;  %v3154_v17 = vpack.c.bf16 %v763_v9, %v759_v8  ;;  %v3172_v3 = vpack.c.bf16 %v804_v62, %v800_v61  ;;  %v799_v4 = vld [vmem:[%s7821_s1 + $0x17c0] sm:$0xff]  ;;  %v808_v9 = vld [vmem:[%s7821_s1 + $0x1808] sm:$0xff] }
 0x158   :  { %3709 = vmatprep.subr.bf16.mxu1 %v3708_v15  ;;  %v770_v15 = vld [vmem:[%s7821_s1 + $0x16d8] sm:$0xff]  ;;  %v3730_v18 = vpack.c.bf16 %v765_v12, %v761_v10  ;;  %v805_v8 = vld [vmem:[%s7821_s1 + $0x17f0] sm:$0xff]  ;;  %v812_v10 = vld [vmem:[%s7821_s1 + $0x1828] sm:$0xff] }
 0x159   :  { %v814_v12 = vld [vmem:[%s7821_s1 + $0x1838] sm:$0xff] }
 0x15a   :  { %3135 = vmatpush1.bf16.msra.mxu0 %v3134_v21  ;;  %v771_v21 = vld [vmem:[%s7821_s1 + $0x16e0] sm:$0xff]  ;;  %v838_v50 = vld [vmem:[%s7821_s1 + $0x18f8] sm:$0xff] }
 0x15b   :  { %3711 = vmatpush1.bf16.msra.mxu1 %v3710_v22  ;;  %3137 = vmatprep.subr.bf16.mxu0 %v3136_v23  ;;  %v769_v22 = vld [vmem:[%s7821_s1 + $0x16d0] sm:$0xff]  ;;  %v3732_v23 = vpack.c.bf16 %v774_v16, %v770_v15  ;;  %v3158_v29 = vpack.c.bf16 %v771_v21, %v767_v20  ;;  %v3176_v15 = vpack.c.bf16 %v812_v10, %v808_v9  ;;  %v807_v16 = vld [vmem:[%s7821_s1 + $0x1800] sm:$0xff]  ;;  %v816_v21 = vld [vmem:[%s7821_s1 + $0x1848] sm:$0xff] }
 0x15c   :  { %3713 = vmatprep.subr.bf16.mxu1 %v3712_v27  ;;  %v778_v27 = vld [vmem:[%s7821_s1 + $0x1718] sm:$0xff]  ;;  %v3734_v30 = vpack.c.bf16 %v773_v24, %v769_v22  ;;  %v813_v20 = vld [vmem:[%s7821_s1 + $0x1830] sm:$0xff]  ;;  %v820_v22 = vld [vmem:[%s7821_s1 + $0x1868] sm:$0xff] }
 0x15d   :  { %v822_v24 = vld [vmem:[%s7821_s1 + $0x1878] sm:$0xff] }
 0x15e   :  { %3139 = vmatpush1.bf16.msra.mxu0 %v3138_v33  ;;  %v779_v33 = vld [vmem:[%s7821_s1 + $0x1720] sm:$0xff]  ;;  %v842_v61 = vld [vmem:[%s7821_s1 + $0x1918] sm:$0xff] }
 0x15f   :  { %3715 = vmatpush1.bf16.msra.mxu1 %v3714_v34  ;;  %3141 = vmatprep.subr.bf16.mxu0 %v3140_v35  ;;  %v777_v34 = vld [vmem:[%s7821_s1 + $0x1710] sm:$0xff]  ;;  %v3736_v35 = vpack.c.bf16 %v782_v28, %v778_v27  ;;  %v3162_v41 = vpack.c.bf16 %v779_v33, %v775_v32  ;;  %v3180_v28 = vpack.c.bf16 %v820_v22, %v816_v21  ;;  %v846_v62 = vld [vmem:[%s7821_s1 + $0x1938] sm:$0xff] }
 0x160   :  { %3717 = vmatprep.subr.bf16.mxu1 %v3716_v39  ;;  %v786_v39 = vld [vmem:[%s7821_s1 + $0x1758] sm:$0xff]  ;;  %v3738_v42 = vpack.c.bf16 %v781_v36, %v777_v34  ;;  %v821_v33 = vld [vmem:[%s7821_s1 + $0x1870] sm:$0xff]  ;;  %v824_v34 = vld [vmem:[%s7821_s1 + $0x1888] sm:$0xff] }
 0x161   :  { %v826_v36 = vld [vmem:[%s7821_s1 + $0x1898] sm:$0xff] }
 0x162   :  { %3143 = vmatpush1.bf16.msra.mxu0 %v3142_v45  ;;  %v787_v45 = vld [vmem:[%s7821_s1 + $0x1760] sm:$0xff]  ;;  %v850_v9 = vld [vmem:[%s7821_s1 + $0x1958] sm:$0xff] }
 0x163   :  { %3719 = vmatpush1.bf16.msra.mxu1 %v3718_v46  ;;  %3145 = vmatprep.subr.bf16.mxu0 %v3144_v47  ;;  %v785_v46 = vld [vmem:[%s7821_s1 + $0x1750] sm:$0xff]  ;;  %v3740_v47 = vpack.c.bf16 %v790_v40, %v786_v39  ;;  %v3166_v53 = vpack.c.bf16 %v787_v45, %v783_v44  ;;  %v3760_v45 = vpack.c.bf16 %v830_v37, %v826_v36  ;;  %v854_v10 = vld [vmem:[%s7821_s1 + $0x1978] sm:$0xff] }
 0x164   :  { %3721 = vmatprep.subr.bf16.mxu1 %v3720_v51  ;;  %v794_v51 = vld [vmem:[%s7821_s1 + $0x1798] sm:$0xff]  ;;  %v3742_v54 = vpack.c.bf16 %v789_v48, %v785_v46  ;;  %v825_v44 = vld [vmem:[%s7821_s1 + $0x1890] sm:$0xff]  ;;  %v836_v48 = vld [vmem:[%s7821_s1 + $0x18e8] sm:$0xff] }
 0x165   :  { %v829_v46 = vld [vmem:[%s7821_s1 + $0x18b0] sm:$0xff]  ;;  %v858_v21 = vld [vmem:[%s7821_s1 + $0x1998] sm:$0xff] }
 0x166   :  { %3147 = vmatpush1.bf16.msra.mxu0 %v3146_v57  ;;  %v795_v57 = vld [vmem:[%s7821_s1 + $0x17a0] sm:$0xff]  ;;  %v862_v22 = vld [vmem:[%s7821_s1 + $0x19b8] sm:$0xff] }
 0x167   :  { %3723 = vmatpush1.bf16.msra.mxu1 %v3722_v58  ;;  %3149 = vmatprep.subr.bf16.mxu0 %v3148_v59  ;;  %v793_v58 = vld [vmem:[%s7821_s1 + $0x1790] sm:$0xff]  ;;  %v3744_v59 = vpack.c.bf16 %v798_v52, %v794_v51  ;;  %v3170_v1 = vpack.c.bf16 %v795_v57, %v791_v56  ;;  %v3762_v52 = vpack.c.bf16 %v829_v46, %v825_v44  ;;  %v876_v44 = vld [vmem:[%s7821_s1 + $0x1a28] sm:$0xff]  ;;  %v878_v46 = vld [vmem:[%s7821_s1 + $0x1a38] sm:$0xff] }
 0x168   :  { %3725 = vmatprep.subr.bf16.mxu1 %v3724_v63  ;;  %v802_v63 = vld [vmem:[%s7821_s1 + $0x17d8] sm:$0xff]  ;;  %v3746_v2 = vpack.c.bf16 %v797_v60, %v793_v58  ;;  %v833_v56 = vld [vmem:[%s7821_s1 + $0x18d0] sm:$0xff]  ;;  %v3764_v57 = vpack.c.bf16 %v838_v50, %v834_v49  ;;  %v844_v60 = vld [vmem:[%s7821_s1 + $0x1928] sm:$0xff] }
 0x169   :  { %v837_v58 = vld [vmem:[%s7821_s1 + $0x18f0] sm:$0xff]  ;;  %v871_v50 = vld [vmem:[%s7821_s1 + $0x1a00] sm:$0xff] }
 0x16a   :  { %3151 = vmatpush1.bf16.msra.mxu0 %v3150_v5  ;;  %v803_v5 = vld [vmem:[%s7821_s1 + $0x17e0] sm:$0xff] }
 0x16b   :  { %3727 = vmatpush1.bf16.msra.mxu1 %v3726_v6  ;;  %3153 = vmatprep.subr.bf16.mxu0 %v3152_v7  ;;  %v801_v6 = vld [vmem:[%s7821_s1 + $0x17d0] sm:$0xff]  ;;  %v3748_v7 = vpack.c.bf16 %v806_v0, %v802_v63  ;;  %v3174_v13 = vpack.c.bf16 %v803_v5, %v799_v4  ;;  %v3766_v0 = vpack.c.bf16 %v837_v58, %v833_v56  ;;  %v884_v56 = vld [vmem:[%s7821_s1 + $0x1a68] sm:$0xff]  ;;  %v886_v58 = vld [vmem:[%s7821_s1 + $0x1a78] sm:$0xff] }
 0x16c   :  { %3729 = vmatprep.subr.bf16.mxu1 %v3728_v11  ;;  %v810_v11 = vld [vmem:[%s7821_s1 + $0x1818] sm:$0xff]  ;;  %v3750_v14 = vpack.c.bf16 %v805_v8, %v801_v6  ;;  %v841_v4 = vld [vmem:[%s7821_s1 + $0x1910] sm:$0xff]  ;;  %v3768_v5 = vpack.c.bf16 %v846_v62, %v842_v61  ;;  %v852_v8 = vld [vmem:[%s7821_s1 + $0x1968] sm:$0xff] }
 0x16d   :  { %v845_v6 = vld [vmem:[%s7821_s1 + $0x1930] sm:$0xff]  ;;  %v879_v62 = vld [vmem:[%s7821_s1 + $0x1a40] sm:$0xff] }
 0x16e   :  { %3155 = vmatpush1.bf16.msra.mxu0 %v3154_v17  ;;  %v811_v17 = vld [vmem:[%s7821_s1 + $0x1820] sm:$0xff] }
 0x16f   :  { %3731 = vmatpush1.bf16.msra.mxu1 %v3730_v18  ;;  %3157 = vmatprep.subr.bf16.mxu0 %v3156_v19  ;;  %v809_v18 = vld [vmem:[%s7821_s1 + $0x1810] sm:$0xff]  ;;  %v3752_v19 = vpack.c.bf16 %v814_v12, %v810_v11  ;;  %v3178_v26 = vpack.c.bf16 %v811_v17, %v807_v16  ;;  %v3770_v12 = vpack.c.bf16 %v845_v6, %v841_v4  ;;  %v892_v4 = vld [vmem:[%s7821_s1 + $0x1aa8] sm:$0xff]  ;;  %v894_v6 = vld [vmem:[%s7821_s1 + $0x1ab8] sm:$0xff] }
 0x170   :  { %3733 = vmatprep.subr.bf16.mxu1 %v3732_v23  ;;  %v818_v23 = vld [vmem:[%s7821_s1 + $0x1858] sm:$0xff]  ;;  %v3754_v27 = vpack.c.bf16 %v813_v20, %v809_v18  ;;  %v849_v16 = vld [vmem:[%s7821_s1 + $0x1950] sm:$0xff]  ;;  %v3772_v17 = vpack.c.bf16 %v854_v10, %v850_v9  ;;  %v860_v20 = vld [vmem:[%s7821_s1 + $0x19a8] sm:$0xff] }
 0x171   :  { %v3756_v32 = vpack.c.bf16 %v822_v24, %v818_v23  ;;  %v853_v18 = vld [vmem:[%s7821_s1 + $0x1970] sm:$0xff]  ;;  %v887_v10 = vld [vmem:[%s7821_s1 + $0x1a80] sm:$0xff] }
 0x172   :  { %3159 = vmatpush1.bf16.msra.mxu0 %v3158_v29  ;;  %v815_v29 = vld [vmem:[%s7821_s1 + $0x1840] sm:$0xff]  ;;  %v3774_v24 = vpack.c.bf16 %v853_v18, %v849_v16  ;;  %v900_v16 = vld [vmem:[%s7821_s1 + $0x1ae8] sm:$0xff]  ;;  %v902_v18 = vld [vmem:[%s7821_s1 + $0x1af8] sm:$0xff] }
 0x173   :  { %3735 = vmatpush1.bf16.msra.mxu1 %v3734_v30  ;;  %3161 = vmatprep.subr.bf16.mxu0 %v3160_v31  ;;  %v819_v30 = vld [vmem:[%s7821_s1 + $0x1860] sm:$0xff]  ;;  %v817_v31 = vld [vmem:[%s7821_s1 + $0x1850] sm:$0xff] }
 0x174   :  { %3737 = vmatprep.subr.bf16.mxu1 %v3736_v35  ;;  %v828_v35 = vld [vmem:[%s7821_s1 + $0x18a8] sm:$0xff]  ;;  %v3182_v39 = vpack.c.bf16 %v819_v30, %v815_v29  ;;  %v3758_v40 = vpack.c.bf16 %v821_v33, %v817_v31  ;;  %v3776_v29 = vpack.c.bf16 %v862_v22, %v858_v21  ;;  %v861_v30 = vld [vmem:[%s7821_s1 + $0x19b0] sm:$0xff]  ;;  %v866_v33 = vld [vmem:[%s7821_s1 + $0x19d8] sm:$0xff] }
 0x175   :  { %v864_v31 = vld [vmem:[%s7821_s1 + $0x19c8] sm:$0xff]  ;;  %v895_v22 = vld [vmem:[%s7821_s1 + $0x1ac0] sm:$0xff] }
 0x176   :  { %3163 = vmatpush1.bf16.msra.mxu0 %v3162_v41  ;;  %v3184_v41 = vpack.c.bf16 %v828_v35, %v824_v34  ;;  %v870_v34 = vld [vmem:[%s7821_s1 + $0x19f8] sm:$0xff] }
 0x177   :  { %3739 = vmatpush1.bf16.msra.mxu1 %v3738_v42  ;;  %3165 = vmatprep.subr.bf16.mxu0 %v3164_v43  ;;  %v823_v42 = vld [vmem:[%s7821_s1 + $0x1880] sm:$0xff] }
 0x178   :  { %3741 = vmatprep.subr.bf16.mxu1 %v3740_v47  ;;  %v827_v43 = vld [vmem:[%s7821_s1 + $0x18a0] sm:$0xff]  ;;  %v832_v47 = vld [vmem:[%s7821_s1 + $0x18c8] sm:$0xff] }
 0x179   :  { %v3186_v51 = vpack.c.bf16 %v827_v43, %v823_v42  ;;  %v869_v42 = vld [vmem:[%s7821_s1 + $0x19f0] sm:$0xff]  ;;  %v872_v43 = vld [vmem:[%s7821_s1 + $0x1a08] sm:$0xff] }
 0x17a   :  { %3167 = vmatpush1.bf16.msra.mxu0 %v3166_v53  ;;  %v3188_v53 = vpack.c.bf16 %v836_v48, %v832_v47  ;;  %v3208_v49 = vpack.c.bf16 %v876_v44, %v872_v43 }
 0x17b   :  { %3743 = vmatpush1.bf16.msra.mxu1 %v3742_v54  ;;  %3169 = vmatprep.subr.bf16.mxu0 %v3168_v55  ;;  %v831_v54 = vld [vmem:[%s7821_s1 + $0x18c0] sm:$0xff] }
 0x17c   :  { %3745 = vmatprep.subr.bf16.mxu1 %v3744_v59  ;;  %v835_v55 = vld [vmem:[%s7821_s1 + $0x18e0] sm:$0xff]  ;;  %v840_v59 = vld [vmem:[%s7821_s1 + $0x1908] sm:$0xff] }
 0x17d   :  { %v3190_v63 = vpack.c.bf16 %v835_v55, %v831_v54  ;;  %v877_v54 = vld [vmem:[%s7821_s1 + $0x1a30] sm:$0xff]  ;;  %v880_v55 = vld [vmem:[%s7821_s1 + $0x1a48] sm:$0xff] }
 0x17e   :  { %3171 = vmatpush1.bf16.msra.mxu0 %v3170_v1  ;;  %v3192_v1 = vpack.c.bf16 %v844_v60, %v840_v59  ;;  %v3212_v61 = vpack.c.bf16 %v884_v56, %v880_v55 }
 0x17f   :  { %3747 = vmatpush1.bf16.msra.mxu1 %v3746_v2  ;;  %3173 = vmatprep.subr.bf16.mxu0 %v3172_v3  ;;  %v839_v2 = vld [vmem:[%s7821_s1 + $0x1900] sm:$0xff] }
 0x180   :  { %3749 = vmatprep.subr.bf16.mxu1 %v3748_v7  ;;  %v843_v3 = vld [vmem:[%s7821_s1 + $0x1920] sm:$0xff]  ;;  %v848_v7 = vld [vmem:[%s7821_s1 + $0x1948] sm:$0xff] }
 0x181   :  { %v3194_v11 = vpack.c.bf16 %v843_v3, %v839_v2  ;;  %v885_v2 = vld [vmem:[%s7821_s1 + $0x1a70] sm:$0xff]  ;;  %v888_v3 = vld [vmem:[%s7821_s1 + $0x1a88] sm:$0xff] }
 0x182   :  { %3175 = vmatpush1.bf16.msra.mxu0 %v3174_v13  ;;  %v3196_v13 = vpack.c.bf16 %v852_v8, %v848_v7  ;;  %v3216_v9 = vpack.c.bf16 %v892_v4, %v888_v3 }
 0x183   :  { %3751 = vmatpush1.bf16.msra.mxu1 %v3750_v14  ;;  %3177 = vmatprep.subr.bf16.mxu0 %v3176_v15  ;;  %v847_v14 = vld [vmem:[%s7821_s1 + $0x1940] sm:$0xff] }
 0x184   :  { %3753 = vmatprep.subr.bf16.mxu1 %v3752_v19  ;;  %v851_v15 = vld [vmem:[%s7821_s1 + $0x1960] sm:$0xff]  ;;  %v856_v19 = vld [vmem:[%s7821_s1 + $0x1988] sm:$0xff] }
 0x185   :  { %1633 = vmatmul.mubr.f32.vlgmr.msra.gmra.mrb[0].mxu0 %v31_v25  ;;  %v3198_v23 = vpack.c.bf16 %v851_v15, %v847_v14  ;;  %v893_v14 = vld [vmem:[%s7821_s1 + $0x1ab0] sm:$0xff]  ;;  %v896_v15 = vld [vmem:[%s7821_s1 + $0x1ac8] sm:$0xff] }
 0x186   :  { %3179 = vmatpush1.bf16.msra.mxu0 %v3178_v26  ;;  %2272 = vmatmul.mubr.f32.vlgmr.msra.gmra.mrb[0].mxu1 %v31_v25  ;;  %v3200_v25 = vpack.c.bf16 %v860_v20, %v856_v19  ;;  %v855_v26 = vld [vmem:[%s7821_s1 + $0x1980] sm:$0xff]  ;;  %v3220_v21 = vpack.c.bf16 %v900_v16, %v896_v15 }
 0x187   :  { %3755 = vmatpush1.bf16.msra.mxu1 %v3754_v27  ;;  %3181 = vmatprep.subr.bf16.mxu0 %v3180_v28  ;;  %v859_v27 = vld [vmem:[%s7821_s1 + $0x19a0] sm:$0xff]  ;;  %v857_v28 = vld [vmem:[%s7821_s1 + $0x1990] sm:$0xff] }
 0x188   :  { %3757 = vmatprep.subr.bf16.mxu1 %v3756_v32  ;;  %1703 = vmatprep.mubr.f32.mxu0 %v34_v38  ;;  %v868_v32 = vld [vmem:[%s7821_s1 + $0x19e8] sm:$0xff]  ;;  %v3202_v35 = vpack.c.bf16 %v859_v27, %v855_v26  ;;  %v3778_v36 = vpack.c.bf16 %v861_v30, %v857_v28  ;;  %v901_v26 = vld [vmem:[%s7821_s1 + $0x1af0] sm:$0xff]  ;;  %v910_v30 = vld [vmem:[%s7821_s1 + $0x1b38] sm:$0xff] }
 0x189   :  { %2342 = vmatprep.mubr.f32.mxu1 %v34_v38  ;;  %v3204_v37 = vpack.c.bf16 %v868_v32, %v864_v31  ;;  %v863_v38 = vld [vmem:[%s7821_s1 + $0x19c0] sm:$0xff]  ;;  %v904_v27 = vld [vmem:[%s7821_s1 + $0x1b08] sm:$0xff] }
 0x18a   :  { %3183 = vmatpush1.bf16.msra.mxu0 %v3182_v39  ;;  %v867_v39 = vld [vmem:[%s7821_s1 + $0x19e0] sm:$0xff]  ;;  %v908_v28 = vld [vmem:[%s7821_s1 + $0x1b28] sm:$0xff] }
 0x18b   :  { %3759 = vmatpush1.bf16.msra.mxu1 %v3758_v40  ;;  %3185 = vmatprep.subr.bf16.mxu0 %v3184_v41  ;;  %v865_v40 = vld [vmem:[%s7821_s1 + $0x19d0] sm:$0xff]  ;;  %v3780_v41 = vpack.c.bf16 %v870_v34, %v866_v33  ;;  %v3206_v47 = vpack.c.bf16 %v867_v39, %v863_v38  ;;  %v3224_v33 = vpack.c.bf16 %v908_v28, %v904_v27  ;;  %v903_v34 = vld [vmem:[%s7821_s1 + $0x1b00] sm:$0xff]  ;;  %v912_v39 = vld [vmem:[%s7821_s1 + $0x1b48] sm:$0xff] }
 0x18c   :  { %3761 = vmatprep.subr.bf16.mxu1 %v3760_v45  ;;  %v874_v45 = vld [vmem:[%s7821_s1 + $0x1a18] sm:$0xff]  ;;  %v3782_v48 = vpack.c.bf16 %v869_v42, %v865_v40  ;;  %v909_v38 = vld [vmem:[%s7821_s1 + $0x1b30] sm:$0xff]  ;;  %v916_v40 = vld [vmem:[%s7821_s1 + $0x1b68] sm:$0xff] }
 0x18d   :  { %v918_v42 = vld [vmem:[%s7821_s1 + $0x1b78] sm:$0xff]  ;;  %v33_v27 = vld [vmem:[%s7820_s0 + $0x60] sm:$0xff] }
 0x18e   :  { %3187 = vmatpush1.bf16.msra.mxu0 %v3186_v51  ;;  %v875_v51 = vld [vmem:[%s7821_s1 + $0x1a20] sm:$0xff] }
 0x18f   :  { %3763 = vmatpush1.bf16.msra.mxu1 %v3762_v52  ;;  %3189 = vmatprep.subr.bf16.mxu0 %v3188_v53  ;;  %v873_v52 = vld [vmem:[%s7821_s1 + $0x1a10] sm:$0xff]  ;;  %v3784_v53 = vpack.c.bf16 %v878_v46, %v874_v45  ;;  %v3210_v59 = vpack.c.bf16 %v875_v51, %v871_v50  ;;  %v3228_v45 = vpack.c.bf16 %v916_v40, %v912_v39  ;;  %v911_v46 = vld [vmem:[%s7821_s1 + $0x1b40] sm:$0xff]  ;;  %v920_v51 = vld [vmem:[%s7821_s1 + $0x1b88] sm:$0xff] }
 0x190   :  { %3765 = vmatprep.subr.bf16.mxu1 %v3764_v57  ;;  %v882_v57 = vld [vmem:[%s7821_s1 + $0x1a58] sm:$0xff]  ;;  %v3786_v60 = vpack.c.bf16 %v877_v54, %v873_v52  ;;  %v917_v50 = vld [vmem:[%s7821_s1 + $0x1b70] sm:$0xff]  ;;  %v924_v52 = vld [vmem:[%s7821_s1 + $0x1ba8] sm:$0xff] }
 0x191   :  { %v926_v54 = vld [vmem:[%s7821_s1 + $0x1bb8] sm:$0xff] }
 0x192   :  { %3191 = vmatpush1.bf16.msra.mxu0 %v3190_v63  ;;  %v883_v63 = vld [vmem:[%s7821_s1 + $0x1a60] sm:$0xff]  ;;  %v958_v39 = vld [vmem:[%s7821_s1 + $0x1cb8] sm:$0xff] }
 0x193   :  { %3767 = vmatpush1.bf16.msra.mxu1 %v3766_v0  ;;  %3193 = vmatprep.subr.bf16.mxu0 %v3192_v1  ;;  %v881_v0 = vld [vmem:[%s7821_s1 + $0x1a50] sm:$0xff]  ;;  %v3788_v1 = vpack.c.bf16 %v886_v58, %v882_v57  ;;  %v3214_v7 = vpack.c.bf16 %v883_v63, %v879_v62  ;;  %v3232_v57 = vpack.c.bf16 %v924_v52, %v920_v51  ;;  %v919_v58 = vld [vmem:[%s7821_s1 + $0x1b80] sm:$0xff]  ;;  %v928_v63 = vld [vmem:[%s7821_s1 + $0x1bc8] sm:$0xff] }
 0x194   :  { %3769 = vmatprep.subr.bf16.mxu1 %v3768_v5  ;;  %v890_v5 = vld [vmem:[%s7821_s1 + $0x1a98] sm:$0xff]  ;;  %v3790_v8 = vpack.c.bf16 %v885_v2, %v881_v0  ;;  %v925_v62 = vld [vmem:[%s7821_s1 + $0x1bb0] sm:$0xff]  ;;  %v932_v0 = vld [vmem:[%s7821_s1 + $0x1be8] sm:$0xff] }
 0x195   :  { %v934_v2 = vld [vmem:[%s7821_s1 + $0x1bf8] sm:$0xff] }
 0x196   :  { %3195 = vmatpush1.bf16.msra.mxu0 %v3194_v11  ;;  %v891_v11 = vld [vmem:[%s7821_s1 + $0x1aa0] sm:$0xff]  ;;  %v36_v40 = vld [vmem:[%s7820_s0 + $0x78] sm:$0xff] }
 0x197   :  { %3771 = vmatpush1.bf16.msra.mxu1 %v3770_v12  ;;  %3197 = vmatprep.subr.bf16.mxu0 %v3196_v13  ;;  %v889_v12 = vld [vmem:[%s7821_s1 + $0x1a90] sm:$0xff]  ;;  %v3792_v13 = vpack.c.bf16 %v894_v6, %v890_v5  ;;  %v3218_v19 = vpack.c.bf16 %v891_v11, %v887_v10  ;;  %v3236_v5 = vpack.c.bf16 %v932_v0, %v928_v63  ;;  %v927_v6 = vld [vmem:[%s7821_s1 + $0x1bc0] sm:$0xff]  ;;  %v936_v11 = vld [vmem:[%s7821_s1 + $0x1c08] sm:$0xff] }
 0x198   :  { %3773 = vmatprep.subr.bf16.mxu1 %v3772_v17  ;;  %v898_v17 = vld [vmem:[%s7821_s1 + $0x1ad8] sm:$0xff]  ;;  %v3794_v20 = vpack.c.bf16 %v893_v14, %v889_v12  ;;  %v933_v10 = vld [vmem:[%s7821_s1 + $0x1bf0] sm:$0xff]  ;;  %v940_v12 = vld [vmem:[%s7821_s1 + $0x1c28] sm:$0xff] }
 0x199   :  { %v942_v14 = vld [vmem:[%s7821_s1 + $0x1c38] sm:$0xff] }
 0x19a   :  { %3199 = vmatpush1.bf16.msra.mxu0 %v3198_v23  ;;  %v899_v23 = vld [vmem:[%s7821_s1 + $0x1ae0] sm:$0xff]  ;;  %v962_v51 = vld [vmem:[%s7821_s1 + $0x1cd8] sm:$0xff] }
 0x19b   :  { %3775 = vmatpush1.bf16.msra.mxu1 %v3774_v24  ;;  %3201 = vmatprep.subr.bf16.mxu0 %v3200_v25  ;;  %v897_v24 = vld [vmem:[%s7821_s1 + $0x1ad0] sm:$0xff]  ;;  %v3796_v25 = vpack.c.bf16 %v902_v18, %v898_v17  ;;  %v3222_v31 = vpack.c.bf16 %v899_v23, %v895_v22  ;;  %v3240_v17 = vpack.c.bf16 %v940_v12, %v936_v11  ;;  %v935_v18 = vld [vmem:[%s7821_s1 + $0x1c00] sm:$0xff]  ;;  %v944_v23 = vld [vmem:[%s7821_s1 + $0x1c48] sm:$0xff] }
 0x19c   :  { %3777 = vmatprep.subr.bf16.mxu1 %v3776_v29  ;;  %v906_v29 = vld [vmem:[%s7821_s1 + $0x1b18] sm:$0xff]  ;;  %v3798_v32 = vpack.c.bf16 %v901_v26, %v897_v24  ;;  %v941_v22 = vld [vmem:[%s7821_s1 + $0x1c30] sm:$0xff]  ;;  %v948_v24 = vld [vmem:[%s7821_s1 + $0x1c68] sm:$0xff] }
 0x19d   :  { %v950_v26 = vld [vmem:[%s7821_s1 + $0x1c78] sm:$0xff] }
 0x19e   :  { %3203 = vmatpush1.bf16.msra.mxu0 %v3202_v35  ;;  %v907_v35 = vld [vmem:[%s7821_s1 + $0x1b20] sm:$0xff]  ;;  %v966_v52 = vld [vmem:[%s7821_s1 + $0x1cf8] sm:$0xff] }
 0x19f   :  { %3779 = vmatpush1.bf16.msra.mxu1 %v3778_v36  ;;  %3205 = vmatprep.subr.bf16.mxu0 %v3204_v37  ;;  %v905_v36 = vld [vmem:[%s7821_s1 + $0x1b10] sm:$0xff]  ;;  %v3800_v37 = vpack.c.bf16 %v910_v30, %v906_v29  ;;  %v3226_v43 = vpack.c.bf16 %v907_v35, %v903_v34  ;;  %v3244_v30 = vpack.c.bf16 %v948_v24, %v944_v23  ;;  %v970_v63 = vld [vmem:[%s7821_s1 + $0x1d18] sm:$0xff] }
 0x1a0   :  { %3781 = vmatprep.subr.bf16.mxu1 %v3780_v41  ;;  %v914_v41 = vld [vmem:[%s7821_s1 + $0x1b58] sm:$0xff]  ;;  %v3802_v44 = vpack.c.bf16 %v909_v38, %v905_v36  ;;  %v949_v35 = vld [vmem:[%s7821_s1 + $0x1c70] sm:$0xff]  ;;  %v952_v36 = vld [vmem:[%s7821_s1 + $0x1c88] sm:$0xff] }
 0x1a1   :  { %v954_v38 = vld [vmem:[%s7821_s1 + $0x1c98] sm:$0xff] }
 0x1a2   :  { %3207 = vmatpush1.bf16.msra.mxu0 %v3206_v47  ;;  %v915_v47 = vld [vmem:[%s7821_s1 + $0x1b60] sm:$0xff]  ;;  %v974_v0 = vld [vmem:[%s7821_s1 + $0x1d38] sm:$0xff] }
 0x1a3   :  { %3783 = vmatpush1.bf16.msra.mxu1 %v3782_v48  ;;  %3209 = vmatprep.subr.bf16.mxu0 %v3208_v49  ;;  %v913_v48 = vld [vmem:[%s7821_s1 + $0x1b50] sm:$0xff]  ;;  %v3804_v49 = vpack.c.bf16 %v918_v42, %v914_v41  ;;  %v3230_v55 = vpack.c.bf16 %v915_v47, %v911_v46  ;;  %v3824_v47 = vpack.c.bf16 %v958_v39, %v954_v38  ;;  %v978_v11 = vld [vmem:[%s7821_s1 + $0x1d58] sm:$0xff] }
 0x1a4   :  { %3785 = vmatprep.subr.bf16.mxu1 %v3784_v53  ;;  %v922_v53 = vld [vmem:[%s7821_s1 + $0x1b98] sm:$0xff]  ;;  %v3806_v56 = vpack.c.bf16 %v917_v50, %v913_v48  ;;  %v953_v46 = vld [vmem:[%s7821_s1 + $0x1c90] sm:$0xff]  ;;  %v964_v50 = vld [vmem:[%s7821_s1 + $0x1ce8] sm:$0xff] }
 0x1a5   :  { %v957_v48 = vld [vmem:[%s7821_s1 + $0x1cb0] sm:$0xff]  ;;  %v982_v12 = vld [vmem:[%s7821_s1 + $0x1d78] sm:$0xff] }
 0x1a6   :  { %3211 = vmatpush1.bf16.msra.mxu0 %v3210_v59  ;;  %v923_v59 = vld [vmem:[%s7821_s1 + $0x1ba0] sm:$0xff]  ;;  %v986_v23 = vld [vmem:[%s7821_s1 + $0x1d98] sm:$0xff] }
 0x1a7   :  { %3787 = vmatpush1.bf16.msra.mxu1 %v3786_v60  ;;  %3213 = vmatprep.subr.bf16.mxu0 %v3212_v61  ;;  %v921_v60 = vld [vmem:[%s7821_s1 + $0x1b90] sm:$0xff]  ;;  %v3808_v61 = vpack.c.bf16 %v926_v54, %v922_v53  ;;  %v3234_v3 = vpack.c.bf16 %v923_v59, %v919_v58  ;;  %v3826_v54 = vpack.c.bf16 %v957_v48, %v953_v46  ;;  %v990_v24 = vld [vmem:[%s7821_s1 + $0x1db8] sm:$0xff]  ;;  %v1004_v46 = vld [vmem:[%s7821_s1 + $0x1e28] sm:$0xff] }
 0x1a8   :  { %3789 = vmatprep.subr.bf16.mxu1 %v3788_v1  ;;  %v930_v1 = vld [vmem:[%s7821_s1 + $0x1bd8] sm:$0xff]  ;;  %v3810_v4 = vpack.c.bf16 %v925_v62, %v921_v60  ;;  %v961_v58 = vld [vmem:[%s7821_s1 + $0x1cd0] sm:$0xff]  ;;  %v3828_v59 = vpack.c.bf16 %v966_v52, %v962_v51  ;;  %v972_v62 = vld [vmem:[%s7821_s1 + $0x1d28] sm:$0xff] }
 0x1a9   :  { %v965_v60 = vld [vmem:[%s7821_s1 + $0x1cf0] sm:$0xff]  ;;  %v1006_v48 = vld [vmem:[%s7821_s1 + $0x1e38] sm:$0xff]  ;;  %v999_v52 = vld [vmem:[%s7821_s1 + $0x1e00] sm:$0xff] }
 0x1aa   :  { %3215 = vmatpush1.bf16.msra.mxu0 %v3214_v7  ;;  %v931_v7 = vld [vmem:[%s7821_s1 + $0x1be0] sm:$0xff] }
 0x1ab   :  { %3791 = vmatpush1.bf16.msra.mxu1 %v3790_v8  ;;  %3217 = vmatprep.subr.bf16.mxu0 %v3216_v9  ;;  %v929_v8 = vld [vmem:[%s7821_s1 + $0x1bd0] sm:$0xff]  ;;  %v3812_v9 = vpack.c.bf16 %v934_v2, %v930_v1  ;;  %v3238_v15 = vpack.c.bf16 %v931_v7, %v927_v6  ;;  %v3830_v2 = vpack.c.bf16 %v965_v60, %v961_v58  ;;  %v1012_v58 = vld [vmem:[%s7821_s1 + $0x1e68] sm:$0xff]  ;;  %v1014_v60 = vld [vmem:[%s7821_s1 + $0x1e78] sm:$0xff] }
 0x1ac   :  { %3793 = vmatprep.subr.bf16.mxu1 %v3792_v13  ;;  %v938_v13 = vld [vmem:[%s7821_s1 + $0x1c18] sm:$0xff]  ;;  %v3814_v16 = vpack.c.bf16 %v933_v10, %v929_v8  ;;  %v969_v6 = vld [vmem:[%s7821_s1 + $0x1d10] sm:$0xff]  ;;  %v3832_v7 = vpack.c.bf16 %v974_v0, %v970_v63  ;;  %v980_v10 = vld [vmem:[%s7821_s1 + $0x1d68] sm:$0xff] }
 0x1ad   :  { %v973_v8 = vld [vmem:[%s7821_s1 + $0x1d30] sm:$0xff]  ;;  %v1007_v0 = vld [vmem:[%s7821_s1 + $0x1e40] sm:$0xff] }
 0x1ae   :  { %3219 = vmatpush1.bf16.msra.mxu0 %v3218_v19  ;;  %v939_v19 = vld [vmem:[%s7821_s1 + $0x1c20] sm:$0xff] }
 0x1af   :  { %3795 = vmatpush1.bf16.msra.mxu1 %v3794_v20  ;;  %3221 = vmatprep.subr.bf16.mxu0 %v3220_v21  ;;  %v937_v20 = vld [vmem:[%s7821_s1 + $0x1c10] sm:$0xff]  ;;  %v3816_v21 = vpack.c.bf16 %v942_v14, %v938_v13  ;;  %v3242_v28 = vpack.c.bf16 %v939_v19, %v935_v18  ;;  %v3834_v14 = vpack.c.bf16 %v973_v8, %v969_v6  ;;  %v1020_v6 = vld [vmem:[%s7821_s1 + $0x1ea8] sm:$0xff]  ;;  %v1022_v8 = vld [vmem:[%s7821_s1 + $0x1eb8] sm:$0xff] }
 0x1b0   :  { %3797 = vmatprep.subr.bf16.mxu1 %v3796_v25  ;;  %v946_v25 = vld [vmem:[%s7821_s1 + $0x1c58] sm:$0xff]  ;;  %v3818_v29 = vpack.c.bf16 %v941_v22, %v937_v20  ;;  %v977_v18 = vld [vmem:[%s7821_s1 + $0x1d50] sm:$0xff]  ;;  %v3836_v19 = vpack.c.bf16 %v982_v12, %v978_v11  ;;  %v988_v22 = vld [vmem:[%s7821_s1 + $0x1da8] sm:$0xff] }
 0x1b1   :  { %v3820_v34 = vpack.c.bf16 %v950_v26, %v946_v25  ;;  %v981_v20 = vld [vmem:[%s7821_s1 + $0x1d70] sm:$0xff]  ;;  %v1015_v12 = vld [vmem:[%s7821_s1 + $0x1e80] sm:$0xff] }
 0x1b2   :  { %3223 = vmatpush1.bf16.msra.mxu0 %v3222_v31  ;;  %v943_v31 = vld [vmem:[%s7821_s1 + $0x1c40] sm:$0xff]  ;;  %v3838_v26 = vpack.c.bf16 %v981_v20, %v977_v18  ;;  %v1028_v18 = vld [vmem:[%s7821_s1 + $0x1ee8] sm:$0xff]  ;;  %v1030_v20 = vld [vmem:[%s7821_s1 + $0x1ef8] sm:$0xff] }
 0x1b3   :  { %3799 = vmatpush1.bf16.msra.mxu1 %v3798_v32  ;;  %3225 = vmatprep.subr.bf16.mxu0 %v3224_v33  ;;  %v947_v32 = vld [vmem:[%s7821_s1 + $0x1c60] sm:$0xff]  ;;  %v945_v33 = vld [vmem:[%s7821_s1 + $0x1c50] sm:$0xff] }
 0x1b4   :  { %3801 = vmatprep.subr.bf16.mxu1 %v3800_v37  ;;  %v956_v37 = vld [vmem:[%s7821_s1 + $0x1ca8] sm:$0xff]  ;;  %v3246_v41 = vpack.c.bf16 %v947_v32, %v943_v31  ;;  %v3822_v42 = vpack.c.bf16 %v949_v35, %v945_v33  ;;  %v3840_v31 = vpack.c.bf16 %v990_v24, %v986_v23  ;;  %v989_v32 = vld [vmem:[%s7821_s1 + $0x1db0] sm:$0xff]  ;;  %v994_v35 = vld [vmem:[%s7821_s1 + $0x1dd8] sm:$0xff] }
 0x1b5   :  { %v992_v33 = vld [vmem:[%s7821_s1 + $0x1dc8] sm:$0xff]  ;;  %v1023_v24 = vld [vmem:[%s7821_s1 + $0x1ec0] sm:$0xff] }
 0x1b6   :  { %3227 = vmatpush1.bf16.msra.mxu0 %v3226_v43  ;;  %v3248_v43 = vpack.c.bf16 %v956_v37, %v952_v36  ;;  %v998_v36 = vld [vmem:[%s7821_s1 + $0x1df8] sm:$0xff] }
 0x1b7   :  { %3803 = vmatpush1.bf16.msra.mxu1 %v3802_v44  ;;  %3229 = vmatprep.subr.bf16.mxu0 %v3228_v45  ;;  %v951_v44 = vld [vmem:[%s7821_s1 + $0x1c80] sm:$0xff] }
 0x1b8   :  { %3805 = vmatprep.subr.bf16.mxu1 %v3804_v49  ;;  %v955_v45 = vld [vmem:[%s7821_s1 + $0x1ca0] sm:$0xff]  ;;  %v960_v49 = vld [vmem:[%s7821_s1 + $0x1cc8] sm:$0xff] }
 0x1b9   :  { %v3250_v53 = vpack.c.bf16 %v955_v45, %v951_v44  ;;  %v997_v44 = vld [vmem:[%s7821_s1 + $0x1df0] sm:$0xff]  ;;  %v1000_v45 = vld [vmem:[%s7821_s1 + $0x1e08] sm:$0xff] }
 0x1ba   :  { %3231 = vmatpush1.bf16.msra.mxu0 %v3230_v55  ;;  %v3252_v55 = vpack.c.bf16 %v964_v50, %v960_v49  ;;  %v3272_v51 = vpack.c.bf16 %v1004_v46, %v1000_v45 }
 0x1bb   :  { %3807 = vmatpush1.bf16.msra.mxu1 %v3806_v56  ;;  %3233 = vmatprep.subr.bf16.mxu0 %v3232_v57  ;;  %v959_v56 = vld [vmem:[%s7821_s1 + $0x1cc0] sm:$0xff] }
 0x1bc   :  { %3809 = vmatprep.subr.bf16.mxu1 %v3808_v61  ;;  %v963_v57 = vld [vmem:[%s7821_s1 + $0x1ce0] sm:$0xff]  ;;  %v968_v61 = vld [vmem:[%s7821_s1 + $0x1d08] sm:$0xff] }
 0x1bd   :  { %v3254_v1 = vpack.c.bf16 %v963_v57, %v959_v56  ;;  %v1005_v56 = vld [vmem:[%s7821_s1 + $0x1e30] sm:$0xff]  ;;  %v1008_v57 = vld [vmem:[%s7821_s1 + $0x1e48] sm:$0xff] }
 0x1be   :  { %3235 = vmatpush1.bf16.msra.mxu0 %v3234_v3  ;;  %v3256_v3 = vpack.c.bf16 %v972_v62, %v968_v61  ;;  %v3276_v63 = vpack.c.bf16 %v1012_v58, %v1008_v57 }
 0x1bf   :  { %3811 = vmatpush1.bf16.msra.mxu1 %v3810_v4  ;;  %3237 = vmatprep.subr.bf16.mxu0 %v3236_v5  ;;  %v967_v4 = vld [vmem:[%s7821_s1 + $0x1d00] sm:$0xff] }
 0x1c0   :  { %3813 = vmatprep.subr.bf16.mxu1 %v3812_v9  ;;  %v971_v5 = vld [vmem:[%s7821_s1 + $0x1d20] sm:$0xff]  ;;  %v976_v9 = vld [vmem:[%s7821_s1 + $0x1d48] sm:$0xff] }
 0x1c1   :  { %v3258_v13 = vpack.c.bf16 %v971_v5, %v967_v4  ;;  %v1013_v4 = vld [vmem:[%s7821_s1 + $0x1e70] sm:$0xff]  ;;  %v1016_v5 = vld [vmem:[%s7821_s1 + $0x1e88] sm:$0xff] }
 0x1c2   :  { %3239 = vmatpush1.bf16.msra.mxu0 %v3238_v15  ;;  %v3260_v15 = vpack.c.bf16 %v980_v10, %v976_v9  ;;  %v3280_v11 = vpack.c.bf16 %v1020_v6, %v1016_v5 }
 0x1c3   :  { %3815 = vmatpush1.bf16.msra.mxu1 %v3814_v16  ;;  %3241 = vmatprep.subr.bf16.mxu0 %v3240_v17  ;;  %v975_v16 = vld [vmem:[%s7821_s1 + $0x1d40] sm:$0xff] }
 0x1c4   :  { %3817 = vmatprep.subr.bf16.mxu1 %v3816_v21  ;;  %v979_v17 = vld [vmem:[%s7821_s1 + $0x1d60] sm:$0xff]  ;;  %v984_v21 = vld [vmem:[%s7821_s1 + $0x1d88] sm:$0xff] }
 0x1c5   :  { %1704 = vmatmul.mubr.f32.vlgmr.msra.gmra.mrb[0].mxu0 %v33_v27  ;;  %v3262_v25 = vpack.c.bf16 %v979_v17, %v975_v16  ;;  %v1021_v16 = vld [vmem:[%s7821_s1 + $0x1eb0] sm:$0xff]  ;;  %v1024_v17 = vld [vmem:[%s7821_s1 + $0x1ec8] sm:$0xff] }
 0x1c6   :  { %3243 = vmatpush1.bf16.msra.mxu0 %v3242_v28  ;;  %2343 = vmatmul.mubr.f32.vlgmr.msra.gmra.mrb[0].mxu1 %v33_v27  ;;  %v3264_v27 = vpack.c.bf16 %v988_v22, %v984_v21  ;;  %v983_v28 = vld [vmem:[%s7821_s1 + $0x1d80] sm:$0xff]  ;;  %v3284_v23 = vpack.c.bf16 %v1028_v18, %v1024_v17 }
 0x1c7   :  { %3819 = vmatpush1.bf16.msra.mxu1 %v3818_v29  ;;  %3245 = vmatprep.subr.bf16.mxu0 %v3244_v30  ;;  %v987_v29 = vld [vmem:[%s7821_s1 + $0x1da0] sm:$0xff]  ;;  %v985_v30 = vld [vmem:[%s7821_s1 + $0x1d90] sm:$0xff] }
 0x1c8   :  { %3821 = vmatprep.subr.bf16.mxu1 %v3820_v34  ;;  %1774 = vmatprep.mubr.f32.mxu0 %v36_v40  ;;  %v996_v34 = vld [vmem:[%s7821_s1 + $0x1de8] sm:$0xff]  ;;  %v3266_v37 = vpack.c.bf16 %v987_v29, %v983_v28  ;;  %v3842_v38 = vpack.c.bf16 %v989_v32, %v985_v30  ;;  %v1029_v28 = vld [vmem:[%s7821_s1 + $0x1ef0] sm:$0xff]  ;;  %v1038_v32 = vld [vmem:[%s7821_s1 + $0x1f38] sm:$0xff] }
 0x1c9   :  { %2413 = vmatprep.mubr.f32.mxu1 %v36_v40  ;;  %v3268_v39 = vpack.c.bf16 %v996_v34, %v992_v33  ;;  %v991_v40 = vld [vmem:[%s7821_s1 + $0x1dc0] sm:$0xff]  ;;  %v1032_v29 = vld [vmem:[%s7821_s1 + $0x1f08] sm:$0xff] }
 0x1ca   :  { %3247 = vmatpush1.bf16.msra.mxu0 %v3246_v41  ;;  %v995_v41 = vld [vmem:[%s7821_s1 + $0x1de0] sm:$0xff]  ;;  %v1036_v30 = vld [vmem:[%s7821_s1 + $0x1f28] sm:$0xff] }
 0x1cb   :  { %3823 = vmatpush1.bf16.msra.mxu1 %v3822_v42  ;;  %3249 = vmatprep.subr.bf16.mxu0 %v3248_v43  ;;  %v993_v42 = vld [vmem:[%s7821_s1 + $0x1dd0] sm:$0xff]  ;;  %v3844_v43 = vpack.c.bf16 %v998_v36, %v994_v35  ;;  %v3270_v49 = vpack.c.bf16 %v995_v41, %v991_v40  ;;  %v3288_v35 = vpack.c.bf16 %v1036_v30, %v1032_v29  ;;  %v1031_v36 = vld [vmem:[%s7821_s1 + $0x1f00] sm:$0xff]  ;;  %v1040_v41 = vld [vmem:[%s7821_s1 + $0x1f48] sm:$0xff] }
 0x1cc   :  { %3825 = vmatprep.subr.bf16.mxu1 %v3824_v47  ;;  %v1002_v47 = vld [vmem:[%s7821_s1 + $0x1e18] sm:$0xff]  ;;  %v3846_v50 = vpack.c.bf16 %v997_v44, %v993_v42  ;;  %v1037_v40 = vld [vmem:[%s7821_s1 + $0x1f30] sm:$0xff]  ;;  %v1044_v42 = vld [vmem:[%s7821_s1 + $0x1f68] sm:$0xff] }
 0x1cd   :  { %v1046_v44 = vld [vmem:[%s7821_s1 + $0x1f78] sm:$0xff]  ;;  %v35_v29 = vld [vmem:[%s7820_s0 + $0x70] sm:$0xff] }
 0x1ce   :  { %3251 = vmatpush1.bf16.msra.mxu0 %v3250_v53  ;;  %v1003_v53 = vld [vmem:[%s7821_s1 + $0x1e20] sm:$0xff] }
 0x1cf   :  { %3827 = vmatpush1.bf16.msra.mxu1 %v3826_v54  ;;  %3253 = vmatprep.subr.bf16.mxu0 %v3252_v55  ;;  %v1001_v54 = vld [vmem:[%s7821_s1 + $0x1e10] sm:$0xff]  ;;  %v3848_v55 = vpack.c.bf16 %v1006_v48, %v1002_v47  ;;  %v3274_v61 = vpack.c.bf16 %v1003_v53, %v999_v52  ;;  %v3292_v47 = vpack.c.bf16 %v1044_v42, %v1040_v41  ;;  %v1039_v48 = vld [vmem:[%s7821_s1 + $0x1f40] sm:$0xff]  ;;  %v1048_v53 = vld [vmem:[%s7821_s1 + $0x1f88] sm:$0xff] }
 0x1d0   :  { %3829 = vmatprep.subr.bf16.mxu1 %v3828_v59  ;;  %v1010_v59 = vld [vmem:[%s7821_s1 + $0x1e58] sm:$0xff]  ;;  %v3850_v62 = vpack.c.bf16 %v1005_v56, %v1001_v54  ;;  %v1045_v52 = vld [vmem:[%s7821_s1 + $0x1f70] sm:$0xff]  ;;  %v1052_v54 = vld [vmem:[%s7821_s1 + $0x1fa8] sm:$0xff] }
 0x1d1   :  { %v1054_v56 = vld [vmem:[%s7821_s1 + $0x1fb8] sm:$0xff]  ;;  %v38_v42 = vld [vmem:[%s7820_s0 + $0x88] sm:$0xff] }
 0x1d2   :  { %3255 = vmatpush1.bf16.msra.mxu0 %v3254_v1  ;;  %v1011_v1 = vld [vmem:[%s7821_s1 + $0x1e60] sm:$0xff]  ;;  %v1086_v41 = vld [vmem:[%s7821_s1 + $0x20b8] sm:$0xff] }
 0x1d3   :  { %3831 = vmatpush1.bf16.msra.mxu1 %v3830_v2  ;;  %3257 = vmatprep.subr.bf16.mxu0 %v3256_v3  ;;  %v1009_v2 = vld [vmem:[%s7821_s1 + $0x1e50] sm:$0xff]  ;;  %v3852_v3 = vpack.c.bf16 %v1014_v60, %v1010_v59  ;;  %v3278_v9 = vpack.c.bf16 %v1011_v1, %v1007_v0  ;;  %v3296_v59 = vpack.c.bf16 %v1052_v54, %v1048_v53  ;;  %v1047_v60 = vld [vmem:[%s7821_s1 + $0x1f80] sm:$0xff]  ;;  %v1056_v1 = vld [vmem:[%s7821_s1 + $0x1fc8] sm:$0xff] }
 0x1d4   :  { %3833 = vmatprep.subr.bf16.mxu1 %v3832_v7  ;;  %v1018_v7 = vld [vmem:[%s7821_s1 + $0x1e98] sm:$0xff]  ;;  %v3854_v10 = vpack.c.bf16 %v1013_v4, %v1009_v2  ;;  %v1053_v0 = vld [vmem:[%s7821_s1 + $0x1fb0] sm:$0xff]  ;;  %v1060_v2 = vld [vmem:[%s7821_s1 + $0x1fe8] sm:$0xff] }
 0x1d5   :  { %v1062_v4 = vld [vmem:[%s7821_s1 + $0x1ff8] sm:$0xff] }
 0x1d6   :  { %3259 = vmatpush1.bf16.msra.mxu0 %v3258_v13  ;;  %v1019_v13 = vld [vmem:[%s7821_s1 + $0x1ea0] sm:$0xff]  ;;  %v1090_v53 = vld [vmem:[%s7821_s1 + $0x20d8] sm:$0xff] }
 0x1d7   :  { %3835 = vmatpush1.bf16.msra.mxu1 %v3834_v14  ;;  %3261 = vmatprep.subr.bf16.mxu0 %v3260_v15  ;;  %v1017_v14 = vld [vmem:[%s7821_s1 + $0x1e90] sm:$0xff]  ;;  %v3856_v15 = vpack.c.bf16 %v1022_v8, %v1018_v7  ;;  %v3282_v21 = vpack.c.bf16 %v1019_v13, %v1015_v12  ;;  %v3300_v7 = vpack.c.bf16 %v1060_v2, %v1056_v1  ;;  %v1055_v8 = vld [vmem:[%s7821_s1 + $0x1fc0] sm:$0xff]  ;;  %v1064_v13 = vld [vmem:[%s7821_s1 + $0x2008] sm:$0xff] }
 0x1d8   :  { %3837 = vmatprep.subr.bf16.mxu1 %v3836_v19  ;;  %v1026_v19 = vld [vmem:[%s7821_s1 + $0x1ed8] sm:$0xff]  ;;  %v3858_v22 = vpack.c.bf16 %v1021_v16, %v1017_v14  ;;  %v1061_v12 = vld [vmem:[%s7821_s1 + $0x1ff0] sm:$0xff]  ;;  %v1068_v14 = vld [vmem:[%s7821_s1 + $0x2028] sm:$0xff] }
 0x1d9   :  { %v1070_v16 = vld [vmem:[%s7821_s1 + $0x2038] sm:$0xff] }
 0x1da   :  { %3263 = vmatpush1.bf16.msra.mxu0 %v3262_v25  ;;  %v1027_v25 = vld [vmem:[%s7821_s1 + $0x1ee0] sm:$0xff]  ;;  %v1094_v54 = vld [vmem:[%s7821_s1 + $0x20f8] sm:$0xff] }
 0x1db   :  { %3839 = vmatpush1.bf16.msra.mxu1 %v3838_v26  ;;  %3265 = vmatprep.subr.bf16.mxu0 %v3264_v27  ;;  %v1025_v26 = vld [vmem:[%s7821_s1 + $0x1ed0] sm:$0xff]  ;;  %v3860_v27 = vpack.c.bf16 %v1030_v20, %v1026_v19  ;;  %v3286_v33 = vpack.c.bf16 %v1027_v25, %v1023_v24  ;;  %v3304_v19 = vpack.c.bf16 %v1068_v14, %v1064_v13  ;;  %v1063_v20 = vld [vmem:[%s7821_s1 + $0x2000] sm:$0xff]  ;;  %v1072_v25 = vld [vmem:[%s7821_s1 + $0x2048] sm:$0xff] }
 0x1dc   :  { %3841 = vmatprep.subr.bf16.mxu1 %v3840_v31  ;;  %v1034_v31 = vld [vmem:[%s7821_s1 + $0x1f18] sm:$0xff]  ;;  %v3862_v34 = vpack.c.bf16 %v1029_v28, %v1025_v26  ;;  %v1069_v24 = vld [vmem:[%s7821_s1 + $0x2030] sm:$0xff]  ;;  %v1076_v26 = vld [vmem:[%s7821_s1 + $0x2068] sm:$0xff] }
 0x1dd   :  { %v1078_v28 = vld [vmem:[%s7821_s1 + $0x2078] sm:$0xff] }
 0x1de   :  { %3267 = vmatpush1.bf16.msra.mxu0 %v3266_v37  ;;  %v1035_v37 = vld [vmem:[%s7821_s1 + $0x1f20] sm:$0xff]  ;;  %v1098_v1 = vld [vmem:[%s7821_s1 + $0x2118] sm:$0xff] }
 0x1df   :  { %3843 = vmatpush1.bf16.msra.mxu1 %v3842_v38  ;;  %3269 = vmatprep.subr.bf16.mxu0 %v3268_v39  ;;  %v1033_v38 = vld [vmem:[%s7821_s1 + $0x1f10] sm:$0xff]  ;;  %v3864_v39 = vpack.c.bf16 %v1038_v32, %v1034_v31  ;;  %v3290_v45 = vpack.c.bf16 %v1035_v37, %v1031_v36  ;;  %v3308_v32 = vpack.c.bf16 %v1076_v26, %v1072_v25  ;;  %v1102_v2 = vld [vmem:[%s7821_s1 + $0x2138] sm:$0xff] }
 0x1e0   :  { %3845 = vmatprep.subr.bf16.mxu1 %v3844_v43  ;;  %v1042_v43 = vld [vmem:[%s7821_s1 + $0x1f58] sm:$0xff]  ;;  %v3866_v46 = vpack.c.bf16 %v1037_v40, %v1033_v38  ;;  %v1077_v37 = vld [vmem:[%s7821_s1 + $0x2070] sm:$0xff]  ;;  %v1080_v38 = vld [vmem:[%s7821_s1 + $0x2088] sm:$0xff] }
 0x1e1   :  { %v1082_v40 = vld [vmem:[%s7821_s1 + $0x2098] sm:$0xff] }
 0x1e2   :  { %3271 = vmatpush1.bf16.msra.mxu0 %v3270_v49  ;;  %v1043_v49 = vld [vmem:[%s7821_s1 + $0x1f60] sm:$0xff]  ;;  %v1106_v13 = vld [vmem:[%s7821_s1 + $0x2158] sm:$0xff] }
 0x1e3   :  { %3847 = vmatpush1.bf16.msra.mxu1 %v3846_v50  ;;  %3273 = vmatprep.subr.bf16.mxu0 %v3272_v51  ;;  %v1041_v50 = vld [vmem:[%s7821_s1 + $0x1f50] sm:$0xff]  ;;  %v3868_v51 = vpack.c.bf16 %v1046_v44, %v1042_v43  ;;  %v3294_v57 = vpack.c.bf16 %v1043_v49, %v1039_v48  ;;  %v3888_v49 = vpack.c.bf16 %v1086_v41, %v1082_v40  ;;  %v1110_v14 = vld [vmem:[%s7821_s1 + $0x2178] sm:$0xff] }
 0x1e4   :  { %3849 = vmatprep.subr.bf16.mxu1 %v3848_v55  ;;  %v1050_v55 = vld [vmem:[%s7821_s1 + $0x1f98] sm:$0xff]  ;;  %v3870_v58 = vpack.c.bf16 %v1045_v52, %v1041_v50  ;;  %v1081_v48 = vld [vmem:[%s7821_s1 + $0x2090] sm:$0xff]  ;;  %v1092_v52 = vld [vmem:[%s7821_s1 + $0x20e8] sm:$0xff] }
 0x1e5   :  { %v1085_v50 = vld [vmem:[%s7821_s1 + $0x20b0] sm:$0xff]  ;;  %v1114_v25 = vld [vmem:[%s7821_s1 + $0x2198] sm:$0xff] }
 0x1e6   :  { %3275 = vmatpush1.bf16.msra.mxu0 %v3274_v61  ;;  %v1051_v61 = vld [vmem:[%s7821_s1 + $0x1fa0] sm:$0xff]  ;;  %v1118_v26 = vld [vmem:[%s7821_s1 + $0x21b8] sm:$0xff] }
 0x1e7   :  { %3851 = vmatpush1.bf16.msra.mxu1 %v3850_v62  ;;  %3277 = vmatprep.subr.bf16.mxu0 %v3276_v63  ;;  %v1049_v62 = vld [vmem:[%s7821_s1 + $0x1f90] sm:$0xff]  ;;  %v3872_v63 = vpack.c.bf16 %v1054_v56, %v1050_v55  ;;  %v3298_v5 = vpack.c.bf16 %v1051_v61, %v1047_v60  ;;  %v3890_v56 = vpack.c.bf16 %v1085_v50, %v1081_v48  ;;  %v1132_v48 = vld [vmem:[%s7821_s1 + $0x2228] sm:$0xff]  ;;  %v1134_v50 = vld [vmem:[%s7821_s1 + $0x2238] sm:$0xff] }
 0x1e8   :  { %3853 = vmatprep.subr.bf16.mxu1 %v3852_v3  ;;  %v1058_v3 = vld [vmem:[%s7821_s1 + $0x1fd8] sm:$0xff]  ;;  %v3874_v6 = vpack.c.bf16 %v1053_v0, %v1049_v62  ;;  %v1089_v60 = vld [vmem:[%s7821_s1 + $0x20d0] sm:$0xff]  ;;  %v3892_v61 = vpack.c.bf16 %v1094_v54, %v1090_v53  ;;  %v1100_v0 = vld [vmem:[%s7821_s1 + $0x2128] sm:$0xff] }
 0x1e9   :  { %v1093_v62 = vld [vmem:[%s7821_s1 + $0x20f0] sm:$0xff]  ;;  %v1127_v54 = vld [vmem:[%s7821_s1 + $0x2200] sm:$0xff] }
 0x1ea   :  { %3279 = vmatpush1.bf16.msra.mxu0 %v3278_v9  ;;  %v1059_v9 = vld [vmem:[%s7821_s1 + $0x1fe0] sm:$0xff] }
 0x1eb   :  { %3855 = vmatpush1.bf16.msra.mxu1 %v3854_v10  ;;  %3281 = vmatprep.subr.bf16.mxu0 %v3280_v11  ;;  %v1057_v10 = vld [vmem:[%s7821_s1 + $0x1fd0] sm:$0xff]  ;;  %v3876_v11 = vpack.c.bf16 %v1062_v4, %v1058_v3  ;;  %v3302_v17 = vpack.c.bf16 %v1059_v9, %v1055_v8  ;;  %v3894_v4 = vpack.c.bf16 %v1093_v62, %v1089_v60  ;;  %v1140_v60 = vld [vmem:[%s7821_s1 + $0x2268] sm:$0xff]  ;;  %v1142_v62 = vld [vmem:[%s7821_s1 + $0x2278] sm:$0xff] }
 0x1ec   :  { %3857 = vmatprep.subr.bf16.mxu1 %v3856_v15  ;;  %v1066_v15 = vld [vmem:[%s7821_s1 + $0x2018] sm:$0xff]  ;;  %v3878_v18 = vpack.c.bf16 %v1061_v12, %v1057_v10  ;;  %v1097_v8 = vld [vmem:[%s7821_s1 + $0x2110] sm:$0xff]  ;;  %v3896_v9 = vpack.c.bf16 %v1102_v2, %v1098_v1  ;;  %v1108_v12 = vld [vmem:[%s7821_s1 + $0x2168] sm:$0xff] }
 0x1ed   :  { %v1101_v10 = vld [vmem:[%s7821_s1 + $0x2130] sm:$0xff]  ;;  %v1135_v2 = vld [vmem:[%s7821_s1 + $0x2240] sm:$0xff] }
 0x1ee   :  { %3283 = vmatpush1.bf16.msra.mxu0 %v3282_v21  ;;  %v1067_v21 = vld [vmem:[%s7821_s1 + $0x2020] sm:$0xff] }
 0x1ef   :  { %3859 = vmatpush1.bf16.msra.mxu1 %v3858_v22  ;;  %3285 = vmatprep.subr.bf16.mxu0 %v3284_v23  ;;  %v1065_v22 = vld [vmem:[%s7821_s1 + $0x2010] sm:$0xff]  ;;  %v3880_v23 = vpack.c.bf16 %v1070_v16, %v1066_v15  ;;  %v3306_v30 = vpack.c.bf16 %v1067_v21, %v1063_v20  ;;  %v3898_v16 = vpack.c.bf16 %v1101_v10, %v1097_v8  ;;  %v1148_v8 = vld [vmem:[%s7821_s1 + $0x22a8] sm:$0xff]  ;;  %v1150_v10 = vld [vmem:[%s7821_s1 + $0x22b8] sm:$0xff] }
 0x1f0   :  { %3861 = vmatprep.subr.bf16.mxu1 %v3860_v27  ;;  %v1074_v27 = vld [vmem:[%s7821_s1 + $0x2058] sm:$0xff]  ;;  %v3882_v31 = vpack.c.bf16 %v1069_v24, %v1065_v22  ;;  %v1105_v20 = vld [vmem:[%s7821_s1 + $0x2150] sm:$0xff]  ;;  %v3900_v21 = vpack.c.bf16 %v1110_v14, %v1106_v13  ;;  %v1116_v24 = vld [vmem:[%s7821_s1 + $0x21a8] sm:$0xff] }
 0x1f1   :  { %v3884_v36 = vpack.c.bf16 %v1078_v28, %v1074_v27  ;;  %v1109_v22 = vld [vmem:[%s7821_s1 + $0x2170] sm:$0xff]  ;;  %v1143_v14 = vld [vmem:[%s7821_s1 + $0x2280] sm:$0xff] }
 0x1f2   :  { %3287 = vmatpush1.bf16.msra.mxu0 %v3286_v33  ;;  %v1071_v33 = vld [vmem:[%s7821_s1 + $0x2040] sm:$0xff]  ;;  %v3902_v28 = vpack.c.bf16 %v1109_v22, %v1105_v20  ;;  %v1156_v20 = vld [vmem:[%s7821_s1 + $0x22e8] sm:$0xff]  ;;  %v1158_v22 = vld [vmem:[%s7821_s1 + $0x22f8] sm:$0xff] }
 0x1f3   :  { %3863 = vmatpush1.bf16.msra.mxu1 %v3862_v34  ;;  %3289 = vmatprep.subr.bf16.mxu0 %v3288_v35  ;;  %v1075_v34 = vld [vmem:[%s7821_s1 + $0x2060] sm:$0xff]  ;;  %v1073_v35 = vld [vmem:[%s7821_s1 + $0x2050] sm:$0xff] }
 0x1f4   :  { %3865 = vmatprep.subr.bf16.mxu1 %v3864_v39  ;;  %v1084_v39 = vld [vmem:[%s7821_s1 + $0x20a8] sm:$0xff]  ;;  %v3310_v43 = vpack.c.bf16 %v1075_v34, %v1071_v33  ;;  %v3886_v44 = vpack.c.bf16 %v1077_v37, %v1073_v35  ;;  %v3904_v33 = vpack.c.bf16 %v1118_v26, %v1114_v25  ;;  %v1117_v34 = vld [vmem:[%s7821_s1 + $0x21b0] sm:$0xff]  ;;  %v1122_v37 = vld [vmem:[%s7821_s1 + $0x21d8] sm:$0xff] }
 0x1f5   :  { %v1120_v35 = vld [vmem:[%s7821_s1 + $0x21c8] sm:$0xff]  ;;  %v1151_v26 = vld [vmem:[%s7821_s1 + $0x22c0] sm:$0xff] }
 0x1f6   :  { %3291 = vmatpush1.bf16.msra.mxu0 %v3290_v45  ;;  %v3312_v45 = vpack.c.bf16 %v1084_v39, %v1080_v38  ;;  %v1126_v38 = vld [vmem:[%s7821_s1 + $0x21f8] sm:$0xff] }
 0x1f7   :  { %3867 = vmatpush1.bf16.msra.mxu1 %v3866_v46  ;;  %3293 = vmatprep.subr.bf16.mxu0 %v3292_v47  ;;  %v1079_v46 = vld [vmem:[%s7821_s1 + $0x2080] sm:$0xff] }
 0x1f8   :  { %3869 = vmatprep.subr.bf16.mxu1 %v3868_v51  ;;  %v1083_v47 = vld [vmem:[%s7821_s1 + $0x20a0] sm:$0xff]  ;;  %v1088_v51 = vld [vmem:[%s7821_s1 + $0x20c8] sm:$0xff] }
 0x1f9   :  { %v3314_v55 = vpack.c.bf16 %v1083_v47, %v1079_v46  ;;  %v1125_v46 = vld [vmem:[%s7821_s1 + $0x21f0] sm:$0xff]  ;;  %v1128_v47 = vld [vmem:[%s7821_s1 + $0x2208] sm:$0xff] }
 0x1fa   :  { %3295 = vmatpush1.bf16.msra.mxu0 %v3294_v57  ;;  %v3316_v57 = vpack.c.bf16 %v1092_v52, %v1088_v51  ;;  %v3336_v53 = vpack.c.bf16 %v1132_v48, %v1128_v47 }
 0x1fb   :  { %3871 = vmatpush1.bf16.msra.mxu1 %v3870_v58  ;;  %3297 = vmatprep.subr.bf16.mxu0 %v3296_v59  ;;  %v1087_v58 = vld [vmem:[%s7821_s1 + $0x20c0] sm:$0xff] }
 0x1fc   :  { %3873 = vmatprep.subr.bf16.mxu1 %v3872_v63  ;;  %v1091_v59 = vld [vmem:[%s7821_s1 + $0x20e0] sm:$0xff]  ;;  %v1096_v63 = vld [vmem:[%s7821_s1 + $0x2108] sm:$0xff] }
 0x1fd   :  { %v3318_v3 = vpack.c.bf16 %v1091_v59, %v1087_v58  ;;  %v1133_v58 = vld [vmem:[%s7821_s1 + $0x2230] sm:$0xff]  ;;  %v1136_v59 = vld [vmem:[%s7821_s1 + $0x2248] sm:$0xff] }
 0x1fe   :  { %3299 = vmatpush1.bf16.msra.mxu0 %v3298_v5  ;;  %v3320_v5 = vpack.c.bf16 %v1100_v0, %v1096_v63  ;;  %v3340_v1 = vpack.c.bf16 %v1140_v60, %v1136_v59 }
 0x1ff   :  { %3875 = vmatpush1.bf16.msra.mxu1 %v3874_v6  ;;  %3301 = vmatprep.subr.bf16.mxu0 %v3300_v7  ;;  %v1095_v6 = vld [vmem:[%s7821_s1 + $0x2100] sm:$0xff] }
 0x200   :  { %3877 = vmatprep.subr.bf16.mxu1 %v3876_v11  ;;  %v1099_v7 = vld [vmem:[%s7821_s1 + $0x2120] sm:$0xff]  ;;  %v1104_v11 = vld [vmem:[%s7821_s1 + $0x2148] sm:$0xff] }
 0x201   :  { %v3322_v15 = vpack.c.bf16 %v1099_v7, %v1095_v6  ;;  %v1141_v6 = vld [vmem:[%s7821_s1 + $0x2270] sm:$0xff]  ;;  %v1144_v7 = vld [vmem:[%s7821_s1 + $0x2288] sm:$0xff] }
 0x202   :  { %3303 = vmatpush1.bf16.msra.mxu0 %v3302_v17  ;;  %v3324_v17 = vpack.c.bf16 %v1108_v12, %v1104_v11  ;;  %v3344_v13 = vpack.c.bf16 %v1148_v8, %v1144_v7 }
 0x203   :  { %3879 = vmatpush1.bf16.msra.mxu1 %v3878_v18  ;;  %3305 = vmatprep.subr.bf16.mxu0 %v3304_v19  ;;  %v1103_v18 = vld [vmem:[%s7821_s1 + $0x2140] sm:$0xff] }
 0x204   :  { %3881 = vmatprep.subr.bf16.mxu1 %v3880_v23  ;;  %v1107_v19 = vld [vmem:[%s7821_s1 + $0x2160] sm:$0xff]  ;;  %v1112_v23 = vld [vmem:[%s7821_s1 + $0x2188] sm:$0xff] }
 0x205   :  { %1775 = vmatmul.mubr.f32.vlgmr.msra.gmra.mrb[0].mxu0 %v35_v29  ;;  %v3326_v27 = vpack.c.bf16 %v1107_v19, %v1103_v18  ;;  %v1149_v18 = vld [vmem:[%s7821_s1 + $0x22b0] sm:$0xff]  ;;  %v1152_v19 = vld [vmem:[%s7821_s1 + $0x22c8] sm:$0xff] }
 0x206   :  { %3307 = vmatpush1.bf16.msra.mxu0 %v3306_v30  ;;  %2414 = vmatmul.mubr.f32.vlgmr.msra.gmra.mrb[0].mxu1 %v35_v29  ;;  %v3328_v29 = vpack.c.bf16 %v1116_v24, %v1112_v23  ;;  %v1111_v30 = vld [vmem:[%s7821_s1 + $0x2180] sm:$0xff]  ;;  %v3348_v25 = vpack.c.bf16 %v1156_v20, %v1152_v19 }
 0x207   :  { %3883 = vmatpush1.bf16.msra.mxu1 %v3882_v31  ;;  %3309 = vmatprep.subr.bf16.mxu0 %v3308_v32  ;;  %v1115_v31 = vld [vmem:[%s7821_s1 + $0x21a0] sm:$0xff]  ;;  %v1113_v32 = vld [vmem:[%s7821_s1 + $0x2190] sm:$0xff] }
 0x208   :  { %3885 = vmatprep.subr.bf16.mxu1 %v3884_v36  ;;  %1845 = vmatprep.mubr.f32.mxu0 %v38_v42  ;;  %v1124_v36 = vld [vmem:[%s7821_s1 + $0x21e8] sm:$0xff]  ;;  %v3330_v39 = vpack.c.bf16 %v1115_v31, %v1111_v30  ;;  %v3906_v40 = vpack.c.bf16 %v1117_v34, %v1113_v32  ;;  %v1157_v30 = vld [vmem:[%s7821_s1 + $0x22f0] sm:$0xff]  ;;  %v1166_v34 = vld [vmem:[%s7821_s1 + $0x2338] sm:$0xff] }
 0x209   :  { %2484 = vmatprep.mubr.f32.mxu1 %v38_v42  ;;  %v3332_v41 = vpack.c.bf16 %v1124_v36, %v1120_v35  ;;  %v1119_v42 = vld [vmem:[%s7821_s1 + $0x21c0] sm:$0xff]  ;;  %v1160_v31 = vld [vmem:[%s7821_s1 + $0x2308] sm:$0xff] }
 0x20a   :  { %3311 = vmatpush1.bf16.msra.mxu0 %v3310_v43  ;;  %v1123_v43 = vld [vmem:[%s7821_s1 + $0x21e0] sm:$0xff]  ;;  %v1164_v32 = vld [vmem:[%s7821_s1 + $0x2328] sm:$0xff] }
 0x20b   :  { %3887 = vmatpush1.bf16.msra.mxu1 %v3886_v44  ;;  %3313 = vmatprep.subr.bf16.mxu0 %v3312_v45  ;;  %v1121_v44 = vld [vmem:[%s7821_s1 + $0x21d0] sm:$0xff]  ;;  %v3908_v45 = vpack.c.bf16 %v1126_v38, %v1122_v37  ;;  %v3334_v51 = vpack.c.bf16 %v1123_v43, %v1119_v42  ;;  %v3352_v37 = vpack.c.bf16 %v1164_v32, %v1160_v31  ;;  %v1159_v38 = vld [vmem:[%s7821_s1 + $0x2300] sm:$0xff]  ;;  %v1168_v43 = vld [vmem:[%s7821_s1 + $0x2348] sm:$0xff] }
 0x20c   :  { %3889 = vmatprep.subr.bf16.mxu1 %v3888_v49  ;;  %v1130_v49 = vld [vmem:[%s7821_s1 + $0x2218] sm:$0xff]  ;;  %v3910_v52 = vpack.c.bf16 %v1125_v46, %v1121_v44  ;;  %v1165_v42 = vld [vmem:[%s7821_s1 + $0x2330] sm:$0xff]  ;;  %v1172_v44 = vld [vmem:[%s7821_s1 + $0x2368] sm:$0xff] }
 0x20d   :  { %v1174_v46 = vld [vmem:[%s7821_s1 + $0x2378] sm:$0xff]  ;;  %v37_v31 = vld [vmem:[%s7820_s0 + $0x80] sm:$0xff] }
 0x20e   :  { %3315 = vmatpush1.bf16.msra.mxu0 %v3314_v55  ;;  %v1131_v55 = vld [vmem:[%s7821_s1 + $0x2220] sm:$0xff] }
 0x20f   :  { %3891 = vmatpush1.bf16.msra.mxu1 %v3890_v56  ;;  %3317 = vmatprep.subr.bf16.mxu0 %v3316_v57  ;;  %v1129_v56 = vld [vmem:[%s7821_s1 + $0x2210] sm:$0xff]  ;;  %v3912_v57 = vpack.c.bf16 %v1134_v50, %v1130_v49  ;;  %v3338_v63 = vpack.c.bf16 %v1131_v55, %v1127_v54  ;;  %v3356_v49 = vpack.c.bf16 %v1172_v44, %v1168_v43  ;;  %v1167_v50 = vld [vmem:[%s7821_s1 + $0x2340] sm:$0xff]  ;;  %v1176_v55 = vld [vmem:[%s7821_s1 + $0x2388] sm:$0xff] }
 0x210   :  { %3893 = vmatprep.subr.bf16.mxu1 %v3892_v61  ;;  %v1138_v61 = vld [vmem:[%s7821_s1 + $0x2258] sm:$0xff]  ;;  %v3914_v0 = vpack.c.bf16 %v1133_v58, %v1129_v56  ;;  %v1173_v54 = vld [vmem:[%s7821_s1 + $0x2370] sm:$0xff]  ;;  %v1180_v56 = vld [vmem:[%s7821_s1 + $0x23a8] sm:$0xff] }
 0x211   :  { %v1182_v58 = vld [vmem:[%s7821_s1 + $0x23b8] sm:$0xff]  ;;  %v2548_v43 = vld [vmem:[%s7823_s3 + $0x1a8] sm:$0xff] }
 0x212   :  { %3319 = vmatpush1.bf16.msra.mxu0 %v3318_v3  ;;  %v1139_v3 = vld [vmem:[%s7821_s1 + $0x2260] sm:$0xff] }
 0x213   :  { %3895 = vmatpush1.bf16.msra.mxu1 %v3894_v4  ;;  %3321 = vmatprep.subr.bf16.mxu0 %v3320_v5  ;;  %v1137_v4 = vld [vmem:[%s7821_s1 + $0x2250] sm:$0xff]  ;;  %v3916_v5 = vpack.c.bf16 %v1142_v62, %v1138_v61  ;;  %v3342_v11 = vpack.c.bf16 %v1139_v3, %v1135_v2  ;;  %v3360_v61 = vpack.c.bf16 %v1180_v56, %v1176_v55  ;;  %v1175_v62 = vld [vmem:[%s7821_s1 + $0x2380] sm:$0xff]  ;;  %v1184_v3 = vld [vmem:[%s7821_s1 + $0x23c8] sm:$0xff] }
 0x214   :  { %3897 = vmatprep.subr.bf16.mxu1 %v3896_v9  ;;  %v1146_v9 = vld [vmem:[%s7821_s1 + $0x2298] sm:$0xff]  ;;  %v3918_v12 = vpack.c.bf16 %v1141_v6, %v1137_v4  ;;  %v1181_v2 = vld [vmem:[%s7821_s1 + $0x23b0] sm:$0xff]  ;;  %v1188_v4 = vld [vmem:[%s7821_s1 + $0x23e8] sm:$0xff] }
 0x215   :  { %v1190_v6 = vld [vmem:[%s7821_s1 + $0x23f8] sm:$0xff] }
 0x216   :  { %3323 = vmatpush1.bf16.msra.mxu0 %v3322_v15  ;;  %v1147_v15 = vld [vmem:[%s7821_s1 + $0x22a0] sm:$0xff]  ;;  %v2550_v55 = vld [vmem:[%s7823_s3 + $0x1b8] sm:$0xff] }
 0x217   :  { %3899 = vmatpush1.bf16.msra.mxu1 %v3898_v16  ;;  %3325 = vmatprep.subr.bf16.mxu0 %v3324_v17  ;;  %v1145_v16 = vld [vmem:[%s7821_s1 + $0x2290] sm:$0xff]  ;;  %v3920_v17 = vpack.c.bf16 %v1150_v10, %v1146_v9  ;;  %v3346_v23 = vpack.c.bf16 %v1147_v15, %v1143_v14  ;;  %v3364_v9 = vpack.c.bf16 %v1188_v4, %v1184_v3  ;;  %v1183_v10 = vld [vmem:[%s7821_s1 + $0x23c0] sm:$0xff]  ;;  %v2552_v3 = vld [vmem:[%s7823_s3 + $0x1c8] sm:$0xff] }
 0x218   :  { %3901 = vmatprep.subr.bf16.mxu1 %v3900_v21  ;;  %v1154_v21 = vld [vmem:[%s7821_s1 + $0x22d8] sm:$0xff]  ;;  %v3922_v24 = vpack.c.bf16 %v1149_v18, %v1145_v16  ;;  %v1189_v14 = vld [vmem:[%s7821_s1 + $0x23f0] sm:$0xff]  ;;  %v2511_v15 = vld [vmem:[%s7823_s3 + $0x80] sm:$0xff] }
 0x219   :  { %v2512_v16 = vld [vmem:[%s7823_s3 + $0x88] sm:$0xff] }
 0x21a   :  { %3327 = vmatpush1.bf16.msra.mxu0 %v3326_v27  ;;  %v1155_v27 = vld [vmem:[%s7821_s1 + $0x22e0] sm:$0xff]  ;;  %v2544_v18 = vld [vmem:[%s7823_s3 + $0x188] sm:$0xff] }
 0x21b   :  { %3903 = vmatpush1.bf16.msra.mxu1 %v3902_v28  ;;  %3329 = vmatprep.subr.bf16.mxu0 %v3328_v29  ;;  %v1153_v28 = vld [vmem:[%s7821_s1 + $0x22d0] sm:$0xff]  ;;  %v3924_v29 = vpack.c.bf16 %v1158_v22, %v1154_v21  ;;  %v3350_v35 = vpack.c.bf16 %v1155_v27, %v1151_v26  ;;  %v3944_v21 = vpack.c.bf16 %v2512_v16, %v2511_v15  ;;  %v2495_v22 = vld [vmem:[%s7823_s3] sm:$0xff]  ;;  %v2528_v26 = vld [vmem:[%s7823_s3 + $0x108] sm:$0xff] }
 0x21c   :  { %3905 = vmatprep.subr.bf16.mxu1 %v3904_v33  ;;  %v1162_v33 = vld [vmem:[%s7821_s1 + $0x2318] sm:$0xff]  ;;  %v3926_v36 = vpack.c.bf16 %v1157_v30, %v1153_v28  ;;  %v2513_v27 = vld [vmem:[%s7823_s3 + $0x90] sm:$0xff] }
 0x21d   :  { %v2514_v28 = vld [vmem:[%s7823_s3 + $0x98] sm:$0xff] }
 0x21e   :  { %3331 = vmatpush1.bf16.msra.mxu0 %v3330_v39  ;;  %v1163_v39 = vld [vmem:[%s7821_s1 + $0x2320] sm:$0xff]  ;;  %v2546_v30 = vld [vmem:[%s7823_s3 + $0x198] sm:$0xff] }
 0x21f   :  { %3907 = vmatpush1.bf16.msra.mxu1 %v3906_v40  ;;  %3333 = vmatprep.subr.bf16.mxu0 %v3332_v41  ;;  %v1161_v40 = vld [vmem:[%s7821_s1 + $0x2310] sm:$0xff]  ;;  %v3928_v41 = vpack.c.bf16 %v1166_v34, %v1162_v33  ;;  %v3354_v47 = vpack.c.bf16 %v1163_v39, %v1159_v38  ;;  %v3948_v34 = vpack.c.bf16 %v2514_v28, %v2513_v27  ;;  %v2530_v39 = vld [vmem:[%s7823_s3 + $0x118] sm:$0xff]  ;;  %v2556_v27 = vld [vmem:[%s7823_s3 + $0x1e8] sm:$0xff] }
 0x220   :  { %3909 = vmatprep.subr.bf16.mxu1 %v3908_v45  ;;  %v1170_v45 = vld [vmem:[%s7821_s1 + $0x2358] sm:$0xff]  ;;  %v3930_v48 = vpack.c.bf16 %v1165_v42, %v1161_v40  ;;  %v2515_v40 = vld [vmem:[%s7823_s3 + $0xa0] sm:$0xff] }
 0x221   :  { %v2547_v42 = vld [vmem:[%s7823_s3 + $0x1a0] sm:$0xff]  ;;  %v2554_v15 = vld [vmem:[%s7823_s3 + $0x1d8] sm:$0xff] }
 0x222   :  { %3335 = vmatpush1.bf16.msra.mxu0 %v3334_v51  ;;  %v1171_v51 = vld [vmem:[%s7821_s1 + $0x2360] sm:$0xff] }
 0x223   :  { %3911 = vmatpush1.bf16.msra.mxu1 %v3910_v52  ;;  %3337 = vmatprep.subr.bf16.mxu0 %v3336_v53  ;;  %v1169_v52 = vld [vmem:[%s7821_s1 + $0x2350] sm:$0xff]  ;;  %v3932_v53 = vpack.c.bf16 %v1174_v46, %v1170_v45  ;;  %v3358_v59 = vpack.c.bf16 %v1171_v51, %v1167_v50  ;;  %v3984_v50 = vpack.c.bf16 %v2548_v43, %v2547_v42  ;;  %v2532_v51 = vld [vmem:[%s7823_s3 + $0x128] sm:$0xff]  ;;  %v2558_v42 = vld [vmem:[%s7823_s3 + $0x1f8] sm:$0xff] }
 0x224   :  { %3913 = vmatprep.subr.bf16.mxu1 %v3912_v57  ;;  %v1178_v57 = vld [vmem:[%s7821_s1 + $0x2398] sm:$0xff]  ;;  %v3934_v60 = vpack.c.bf16 %v1173_v54, %v1169_v52  ;;  %v2517_v52 = vld [vmem:[%s7823_s3 + $0xb0] sm:$0xff] }
 0x225   :  { %v2549_v54 = vld [vmem:[%s7823_s3 + $0x1b0] sm:$0xff] }
 0x226   :  { %3339 = vmatpush1.bf16.msra.mxu0 %v3338_v63  ;;  %v1179_v63 = vld [vmem:[%s7821_s1 + $0x23a0] sm:$0xff]  ;;  %v2509_v43 = vld [vmem:[%s7823_s3 + $0x70] sm:$0xff] }
 0x227   :  { %3915 = vmatpush1.bf16.msra.mxu1 %v3914_v0  ;;  %3341 = vmatprep.subr.bf16.mxu0 %v3340_v1  ;;  %v1177_v0 = vld [vmem:[%s7821_s1 + $0x2390] sm:$0xff]  ;;  %v3936_v1 = vpack.c.bf16 %v1182_v58, %v1178_v57  ;;  %v3362_v7 = vpack.c.bf16 %v1179_v63, %v1175_v62  ;;  %v3988_v62 = vpack.c.bf16 %v2550_v55, %v2549_v54  ;;  %v2534_v63 = vld [vmem:[%s7823_s3 + $0x138] sm:$0xff] }
 0x228   :  { %3917 = vmatprep.subr.bf16.mxu1 %v3916_v5  ;;  %v1186_v5 = vld [vmem:[%s7821_s1 + $0x23d8] sm:$0xff]  ;;  %v3938_v8 = vpack.c.bf16 %v1181_v2, %v1177_v0  ;;  %v2519_v0 = vld [vmem:[%s7823_s3 + $0xc0] sm:$0xff] }
 0x229   :  { %v2551_v2 = vld [vmem:[%s7823_s3 + $0x1c0] sm:$0xff] }
 0x22a   :  { %3343 = vmatpush1.bf16.msra.mxu0 %v3342_v11  ;;  %v1187_v11 = vld [vmem:[%s7821_s1 + $0x23e0] sm:$0xff] }
 0x22b   :  { %3919 = vmatpush1.bf16.msra.mxu1 %v3918_v12  ;;  %3345 = vmatprep.subr.bf16.mxu0 %v3344_v13  ;;  %v1185_v12 = vld [vmem:[%s7821_s1 + $0x23d0] sm:$0xff]  ;;  %v3940_v13 = vpack.c.bf16 %v1190_v6, %v1186_v5  ;;  %v3366_v19 = vpack.c.bf16 %v1187_v11, %v1183_v10  ;;  %v3992_v10 = vpack.c.bf16 %v2552_v3, %v2551_v2  ;;  %v2536_v11 = vld [vmem:[%s7823_s3 + $0x148] sm:$0xff] }
 0x22c   :  { %3921 = vmatprep.subr.bf16.mxu1 %v3920_v17  ;;  %v2543_v17 = vld [vmem:[%s7823_s3 + $0x180] sm:$0xff]  ;;  %v3942_v20 = vpack.c.bf16 %v1189_v14, %v1185_v12  ;;  %v2521_v12 = vld [vmem:[%s7823_s3 + $0xd0] sm:$0xff] }
 0x22d   :  { %v2553_v14 = vld [vmem:[%s7823_s3 + $0x1d0] sm:$0xff] }
 0x22e   :  { %3347 = vmatpush1.bf16.msra.mxu0 %v3346_v23  ;;  %v2496_v23 = vld [vmem:[%s7823_s3 + $0x8] sm:$0xff] }
 0x22f   :  { %3923 = vmatpush1.bf16.msra.mxu1 %v3922_v24  ;;  %3349 = vmatprep.subr.bf16.mxu0 %v3348_v25  ;;  %v2527_v24 = vld [vmem:[%s7823_s3 + $0x100] sm:$0xff]  ;;  %v3976_v25 = vpack.c.bf16 %v2544_v18, %v2543_v17  ;;  %v3946_v32 = vpack.c.bf16 %v2496_v23, %v2495_v22  ;;  %v3996_v22 = vpack.c.bf16 %v2554_v15, %v2553_v14  ;;  %v2538_v23 = vld [vmem:[%s7823_s3 + $0x158] sm:$0xff] }
 0x230   :  { %3925 = vmatprep.subr.bf16.mxu1 %v3924_v29  ;;  %v2545_v29 = vld [vmem:[%s7823_s3 + $0x190] sm:$0xff]  ;;  %v3978_v33 = vpack.c.bf16 %v2528_v26, %v2527_v24  ;;  %v2523_v24 = vld [vmem:[%s7823_s3 + $0xe0] sm:$0xff] }
 0x231   :  { %v3980_v38 = vpack.c.bf16 %v2546_v30, %v2545_v29  ;;  %v2555_v26 = vld [vmem:[%s7823_s3 + $0x1e0] sm:$0xff] }
 0x232   :  { %3351 = vmatpush1.bf16.msra.mxu0 %v3350_v35  ;;  %v2497_v35 = vld [vmem:[%s7823_s3 + $0x10] sm:$0xff] }
 0x233   :  { %3927 = vmatpush1.bf16.msra.mxu1 %v3926_v36  ;;  %3353 = vmatprep.subr.bf16.mxu0 %v3352_v37  ;;  %v2498_v36 = vld [vmem:[%s7823_s3 + $0x18] sm:$0xff]  ;;  %v2529_v37 = vld [vmem:[%s7823_s3 + $0x110] sm:$0xff] }
 0x234   :  { %3929 = vmatprep.subr.bf16.mxu1 %v3928_v41  ;;  %v2516_v41 = vld [vmem:[%s7823_s3 + $0xa8] sm:$0xff]  ;;  %v3950_v44 = vpack.c.bf16 %v2498_v36, %v2497_v35  ;;  %v3982_v45 = vpack.c.bf16 %v2530_v39, %v2529_v37  ;;  %v2526_v39 = vld [vmem:[%s7823_s3 + $0xf8] sm:$0xff] }
 0x235   :  { %v3952_v46 = vpack.c.bf16 %v2516_v41, %v2515_v40  ;;  %v2540_v36 = vld [vmem:[%s7823_s3 + $0x168] sm:$0xff]  ;;  %v2557_v40 = vld [vmem:[%s7823_s3 + $0x1f0] sm:$0xff] }
 0x236   :  { %3355 = vmatpush1.bf16.msra.mxu0 %v3354_v47  ;;  %v2499_v47 = vld [vmem:[%s7823_s3 + $0x20] sm:$0xff] }
 0x237   :  { %3931 = vmatpush1.bf16.msra.mxu1 %v3930_v48  ;;  %3357 = vmatprep.subr.bf16.mxu0 %v3356_v49  ;;  %v2500_v48 = vld [vmem:[%s7823_s3 + $0x28] sm:$0xff]  ;;  %v2531_v49 = vld [vmem:[%s7823_s3 + $0x120] sm:$0xff] }
 0x238   :  { %3933 = vmatprep.subr.bf16.mxu1 %v3932_v53  ;;  %v2518_v53 = vld [vmem:[%s7823_s3 + $0xb8] sm:$0xff]  ;;  %v3954_v56 = vpack.c.bf16 %v2500_v48, %v2499_v47  ;;  %v3986_v57 = vpack.c.bf16 %v2532_v51, %v2531_v49  ;;  %v2541_v47 = vld [vmem:[%s7823_s3 + $0x170] sm:$0xff] }
 0x239   :  { %v3956_v58 = vpack.c.bf16 %v2518_v53, %v2517_v52  ;;  %v2542_v48 = vld [vmem:[%s7823_s3 + $0x178] sm:$0xff]  ;;  %v1191_v53 = vld [vmem:[%s7822_s2] sm:$0xf] }
 0x23a   :  { %3359 = vmatpush1.bf16.msra.mxu0 %v3358_v59  ;;  %v2501_v59 = vld [vmem:[%s7823_s3 + $0x30] sm:$0xff]  ;;  %v4006_v49 = vpack.c.bf16 %v2542_v48, %v2541_v47 }
 0x23b   :  { %3935 = vmatpush1.bf16.msra.mxu1 %v3934_v60  ;;  %3361 = vmatprep.subr.bf16.mxu0 %v3360_v61  ;;  %v2502_v60 = vld [vmem:[%s7823_s3 + $0x38] sm:$0xff]  ;;  %v2533_v61 = vld [vmem:[%s7823_s3 + $0x130] sm:$0xff] }
 0x23c   :  { %3937 = vmatprep.subr.bf16.mxu1 %v3936_v1  ;;  %v2520_v1 = vld [vmem:[%s7823_s3 + $0xc8] sm:$0xff]  ;;  %v3958_v4 = vpack.c.bf16 %v2502_v60, %v2501_v59  ;;  %v3990_v5 = vpack.c.bf16 %v2534_v63, %v2533_v61 }
 0x23d   :  { %v3960_v6 = vpack.c.bf16 %v2520_v1, %v2519_v0 }
 0x23e   :  { %3363 = vmatpush1.bf16.msra.mxu0 %v3362_v7  ;;  %v2503_v7 = vld [vmem:[%s7823_s3 + $0x40] sm:$0xff] }
 0x23f   :  { %3939 = vmatpush1.bf16.msra.mxu1 %v3938_v8  ;;  %3365 = vmatprep.subr.bf16.mxu0 %v3364_v9  ;;  %v2504_v8 = vld [vmem:[%s7823_s3 + $0x48] sm:$0xff]  ;;  %v2535_v9 = vld [vmem:[%s7823_s3 + $0x140] sm:$0xff] }
 0x240   :  { %3941 = vmatprep.subr.bf16.mxu1 %v3940_v13  ;;  %v2522_v13 = vld [vmem:[%s7823_s3 + $0xd8] sm:$0xff]  ;;  %v3962_v16 = vpack.c.bf16 %v2504_v8, %v2503_v7  ;;  %v3994_v17 = vpack.c.bf16 %v2536_v11, %v2535_v9  ;;  %v2721_v11 = vld [vmem:[%s7824_s4] ss:$0 sm:$0xff] }
 0x241   :  { %v3964_v18 = vpack.c.bf16 %v2522_v13, %v2521_v12 }
 0x242   :  { %3367 = vmatpush1.bf16.msra.mxu0 %v3366_v19  ;;  %v2505_v19 = vld [vmem:[%s7823_s3 + $0x50] sm:$0xff] }
 0x243   :  { %3943 = vmatpush1.bf16.msra.mxu1 %v3942_v20  ;;  %3945 = vmatprep.subr.bf16.mxu0 %v3944_v21  ;;  %v2506_v20 = vld [vmem:[%s7823_s3 + $0x58] sm:$0xff]  ;;  %v2537_v21 = vld [vmem:[%s7823_s3 + $0x150] sm:$0xff] }
 0x244   :  { %3977 = vmatprep.subr.bf16.mxu1 %v3976_v25  ;;  %v2524_v25 = vld [vmem:[%s7823_s3 + $0xe8] sm:$0xff]  ;;  %v3966_v28 = vpack.c.bf16 %v2506_v20, %v2505_v19  ;;  %v3998_v29 = vpack.c.bf16 %v2538_v23, %v2537_v21 }
 0x245   :  { %1846 = vmatmul.mubr.f32.vlgmr.msra.gmra.mrb[0].mxu0 %v37_v31  ;;  %v3968_v30 = vpack.c.bf16 %v2524_v25, %v2523_v24 }
 0x246   :  { %2485 = vmatmul.mubr.f32.vlgmr.msra.gmra.mrb[0].mxu1 %v37_v31  ;;  %3947 = vmatpush3.bf16.msra.mxu0 %v3946_v32  ;;  %v4000_v31 = vpack.c.bf16 %v2556_v27, %v2555_v26  ;;  %v2507_v32 = vld [vmem:[%s7823_s3 + $0x60] sm:$0xff] }
 0x247   :  { %3979 = vmatpush3.bf16.msra.mxu1 %v3978_v33  ;;  %3949 = vmatprep.subr.bf16.mxu0 %v3948_v34  ;;  %v2508_v33 = vld [vmem:[%s7823_s3 + $0x68] sm:$0xff]  ;;  %v2539_v34 = vld [vmem:[%s7823_s3 + $0x160] sm:$0xff] }
 0x248   :  { %3981 = vmatprep.subr.bf16.mxu1 %v3980_v38  ;;  %v3970_v35 = vpack.c.bf16 %v2508_v33, %v2507_v32  ;;  %v4002_v37 = vpack.c.bf16 %v2540_v36, %v2539_v34  ;;  %v2525_v38 = vld [vmem:[%s7823_s3 + $0xf0] sm:$0xff] }
 0x249   :  { %v3972_v41 = vpack.c.bf16 %v2526_v39, %v2525_v38 }
 0x24a   :  { %3951 = vmatpush3.bf16.msra.mxu0 %v3950_v44  ;;  %v2510_v44 = vld [vmem:[%s7823_s3 + $0x78] sm:$0xff] }
 0x24b   :  { %3983 = vmatpush3.bf16.msra.mxu1 %v3982_v45  ;;  %3953 = vmatprep.subr.bf16.mxu0 %v3952_v46  ;;  %v4004_v45 = vpack.c.bf16 %v2558_v42, %v2557_v40  ;;  %v3974_v46 = vpack.c.bf16 %v2510_v44, %v2509_v43 }
 0x24c   :  { %3985 = vmatprep.subr.bf16.mxu1 %v3984_v50  ;;  %v1193_v50 = vlaneseq }
 0x24e   :  { %3955 = vmatpush3.bf16.msra.mxu0 %v3954_v56  ;;  %v1194_v51 = vshrl.u32 %v1193_v50, 7 }
 0x24f   :  { %3987 = vmatpush3.bf16.msra.mxu1 %v3986_v57  ;;  %3957 = vmatprep.subr.bf16.mxu0 %v3956_v58 }
 0x250   :  { %3989 = vmatprep.subr.bf16.mxu1 %v3988_v62  ;;  %v1195_v52 = vsub.s32 0, %v1194_v51  ;;  %v1203_v54 = vsub.s32 2, %v1194_v51  ;;  %v1199_v55 = vsub.s32 1, %v1194_v51  ;;  %v1207_v56 = vsub.s32 3, %v1194_v51 }
 0x252   :  { %3959 = vmatpush3.bf16.msra.mxu0 %v3958_v4  ;;  %v1196_v57 = vrot.slane %v1191_v53, %v1195_v52  ;;  %v1204_v58 = vrot.slane %v1191_v53, %v1203_v54  ;;  %v1200_v59 = vrot.slane %v1191_v53, %v1199_v55  ;;  %v1208_v60 = vrot.slane %v1191_v53, %v1207_v56 }
 0x253   :  { %3991 = vmatpush3.bf16.msra.mxu1 %v3990_v5  ;;  %3961 = vmatprep.subr.bf16.mxu0 %v3960_v6 }
 0x254   :  { %3993 = vmatprep.subr.bf16.mxu1 %v3992_v10 }
 0x256   :  { %3963 = vmatpush3.bf16.msra.mxu0 %v3962_v16 }
 0x257   :  { %3995 = vmatpush3.bf16.msra.mxu1 %v3994_v17  ;;  %3965 = vmatprep.subr.bf16.mxu0 %v3964_v18 }
 0x258   :  { %3997 = vmatprep.subr.bf16.mxu1 %v3996_v22 }
 0x25a   :  { %3967 = vmatpush3.bf16.msra.mxu0 %v3966_v28 }
 0x25b   :  { %3999 = vmatpush3.bf16.msra.mxu1 %v3998_v29  ;;  %3969 = vmatprep.subr.bf16.mxu0 %v3968_v30 }
 0x25c   :  { %4001 = vmatprep.subr.bf16.mxu1 %v4000_v31 }
 0x25e   :  { %3971 = vmatpush3.bf16.msra.mxu0 %v3970_v35 }
 0x25f   :  { %4003 = vmatpush3.bf16.msra.mxu1 %v4002_v37  ;;  %3973 = vmatprep.subr.bf16.mxu0 %v3972_v41 }
 0x260   :  { %4005 = vmatprep.subr.bf16.mxu1 %v4004_v45 }
 0x262   :  { %3975 = vmatpush3.bf16.msra.mxu0 %v3974_v46 }
 0x263   :  { %4007 = vmatpush3.bf16.msra.mxu1 %v4006_v49 }
 0x318   :  { %v1847_v61 = vpop.f32.mrb[0].mxu0 }
 0x319   :  { %v4008_v62 = vadd.f32 %v1847_v61, %v1196_v57  ;;  %v2486_v63 = vpop.f32.mrb[0].mxu1  ;;  %v1849_v0 = vpop.f32.mrb[1].mxu0 }
 0x31a   :  { %v4010_v1 = vadd.f32 %v2486_v63, %v1204_v58  ;;  %v4009_v2 = vadd.f32 %v1849_v0, %v1200_v59  ;;  %v2488_v3 = vpop.f32.mrb[1].mxu1 }
 0x31b   :  { %v4011_v4 = vadd.f32 %v2488_v3, %v1208_v60  ;;  %v2491_v6 = vmax.f32 %v4008_v62, 0.0 }
 0x31c   :  { %v2492_v5 = vmax.f32 %v4009_v2, 0.0  ;;  %v2493_v8 = vmax.f32 %v4010_v1, 0.0 }
 0x31d   :  { %v2494_v7 = vmax.f32 %v4011_v4, 0.0 }
 0x31e   :  { %2630 = vmatprep.mubr.f32.mxu0 %v2492_v5 }
 0x31f   :  { %2700 = vmatprep.mubr.f32.mxu1 %v2494_v7  ;;  %2631 = vmatmul.mubr.f32.vlgmr.msra.gmra.mrb[2].mxu0 %v2491_v6 }
 0x320   :  { %2701 = vmatmul.mubr.f32.vlgmr.msra.gmra.mrb[2].mxu1 %v2493_v8 }
 0x3f2   :  { %v2754_v9 = vpop.f32.mrb[2].mxu0 }
 0x3f3   :  { %v2789_v10 = vpop.f32.mrb[2].mxu1  ;;  %v2755_v12 = vpop.f32.mrb[3].mxu0 }
 0x3f4   :  { %v2756_v13 = vadd.f32 %v2755_v12, %v2754_v9  ;;  %v2790_v14 = vpop.f32.mrb[3].mxu1 }
 0x3f5   :  { %v2791_v15 = vadd.f32 %v2790_v14, %v2789_v10 }
 0x3f6   :  { %v2633_v16 = vadd.f32 %v2756_v13, %v2721_v11 }
 0x3f8   :  { %v2703_v17 = vadd.f32 %v2791_v15, %v2633_v16 }
 0x3fa   :  { %2706 = vst [vmem:[#allocation2] sm:$0xff] %v2703_v17 }
 0x3fb   :  { %4056 = shalt.err (!%p4053_p4)
}
 0x3fc   :  { %s4057_s4 = scalar_lea.hbm %s7825_s5, 128 }
 0x3fd   :  { %p4058_p5 = scmp.ne.s32.totalorder %s7825_s5, %s4057_s4  ;;  %p4061_p6 = scmp.lt.u32.totalorder %s4057_s4, %s7825_s5 }
 0x3ff   :  { %p4063_p7 = pnand %p4061_p6, %p4058_p5 }
 0x401   :  { %4066 = shalt.err (!%p4063_p7)
}
 0x402   :  { %2716 = dma.vmem_to_hbm [thread:$0]  %s2714_s30, 128, %s7825_s5, [#allocation3]  }
 0x403   :  { %4067 = dma.done.wait [#allocation3], 128  }
 0x404   :  { %4068 = vsyncadd [#allocation3], 4294967168 }
 0x405   :  { %2720 = vsyncpa [#allocation3], 1 }

</bundles_post_ra>
